<compile_context>
chip_gen: v7x
topology: tpu7x:2x2x1
jax: 0.10.0
libtpu: 0.0.40
codegen_flags: <defaults>
</compile_context>

<pallas_src>
import functools

import jax
import jax.numpy as jnp
from jax import lax
from jax.experimental import pallas as pl
from jax.experimental.pallas import tpu as pltpu

MATMUL_DTYPE = jnp.bfloat16   # MXU-native operand dtype; accumulation is f32.
CHAN_PAD = 128                # lane-dense channel width carried between layers.


def _round_up(x, m):
    return ((x + m - 1) // m) * m


def _pick_row_tile(oh, ow, k, elem_bytes=2, budget=4 << 20):
    """Largest divisor of `oh` whose im2col patch tile fits the VMEM budget.

    At the shapes used here this is always the full plane (one GEMM per batch
    element per layer), which is exactly what the review asked for."""
    for d in range(oh, 0, -1):
        if oh % d:
            continue
        if d * ow * k * elem_bytes > budget:
            continue
        if d != oh and (d * ow) % 8:
            continue
        return d
    return oh


def _pad_s2d(x):
    """Zero-pad H/W by 1 and space-to-depth(2): (N,H,W,C)->(N,(H+2)/2,(W+2)/2,4C).

    Channel order is (row-parity p, col-parity q, c), matching _weight_gemm_s2."""
    n, h, w, c = x.shape
    xp = jnp.pad(x, ((0, 0), (1, 1), (1, 1), (0, 0)))
    hs, ws = (h + 2) // 2, (w + 2) // 2
    xs = xp.reshape(n, hs, 2, ws, 2, c)
    return xs.transpose(0, 1, 3, 2, 4, 5).reshape(n, hs, ws, 4 * c)


def _pad_parity_planes(x):
    """Zero-pad H/W by 1 and split into 4 parity planes: (N,H,W,C)->(N,4,hs,ws,C)."""
    n, h, w, c = x.shape
    xp = jnp.pad(x, ((0, 0), (1, 1), (1, 1), (0, 0)))
    hs, ws = (h + 2) // 2, (w + 2) // 2
    xs = xp.reshape(n, hs, 2, ws, 2, c)
    return xs.transpose(0, 2, 4, 1, 3, 5).reshape(n, 4, hs, ws, c)


def _weight_gemm_s2(w_oihw, cin_p, cout_p):
    """4x4/stride-2 conv weight -> (K, cout_p) for the s2d 2x2 block conv."""
    cout, cin, _, _ = w_oihw.shape
    wt = jnp.transpose(w_oihw, (2, 3, 1, 0))            # (dy, dx, ci, co)
    wt = wt.reshape(2, 2, 2, 2, cin, cout)              # (a, p, b, q, ci, co)
    wt = jnp.transpose(wt, (0, 2, 1, 3, 4, 5))          # (a, b, p, q, ci, co)
    wt = jnp.pad(wt, ((0, 0), (0, 0), (0, 0), (0, 0),
                      (0, cin_p - cin), (0, cout_p - cout)))
    return wt.reshape(2 * 2 * 4 * cin_p, cout_p)         # K = 16 * cin_p


def _weight_gemm_s1(w_oihw, cin_p, cout_p):
    """4x4/stride-1 conv weight -> (K, cout_p) for the direct im2col GEMM."""
    cout, cin, kh, kw = w_oihw.shape
    wt = jnp.transpose(w_oihw, (2, 3, 1, 0))            # (dy, dx, ci, co)
    wt = jnp.pad(wt, ((0, 0), (0, 0), (0, cin_p - cin), (0, cout_p - cout)))
    return wt.reshape(kh * kw * cin_p, cout_p)           # K = 16 * cin_p


def _make_conv_kernel(*, kh, kw, toh, ow, k, alpha, n_tiles):
    """Fused im2col GEMM + bias (+LeakyReLU) over one output row-tile."""
    def kernel(x_ref, w_ref, b_ref, o_ref):
        # x_ref: (HS, WS, CS) bf16 full (padded/s2d) plane, VMEM-resident.
        if n_tiles == 1:
            r0 = 0
        else:
            r0 = pl.multiple_of(pl.program_id(1) * toh, toh)
        wins = []
        for dy in range(kh):
            for dx in range(kw):
                wins.append(x_ref[pl.ds(r0 + dy, toh), pl.ds(dx, ow), :])
        patches = jnp.concatenate(wins, axis=-1)          # (toh, ow, K) bf16
        a = patches.reshape(toh * ow, k)
        acc = jnp.dot(a, w_ref[...], preferred_element_type=jnp.float32)
        acc = acc + b_ref[...]                            # (M, cout_p) f32
        if alpha is not None:                             # LeakyReLU(alpha)
            acc = jnp.where(acc >= 0.0, acc, acc * alpha)
        o_ref[...] = acc.astype(o_ref.dtype)              # lane-dense (M, 128)
    return kernel


def _conv4x4_pallas(x_nhwc, w_oihw, b, *, stride, alpha, out_dtype):
    """Conv2d(kernel=4, padding=1, stride in {1,2}) + bias [+LeakyReLU].

    x_nhwc: (N, H, W, Cin_p) with the real input channels in the leading
    positions (padding channels are zero).  Returns (N, OH, OW, cout_p) with
    cout_p = round_up(cout, 128); padded channels are exactly zero.
    """
    n, h, w, cin_p = x_nhwc.shape
    cout = int(w_oihw.shape[0])
    cin = int(w_oihw.shape[1])
    assert cin <= cin_p
    cout_p = _round_up(cout, CHAN_PAD)

    if stride == 2:
        # TODO(synk): PyTorch handles odd H/W with stride 2; the s2d rewrite
        # here assumes even spatial sizes.
        assert h % 2 == 0 and w % 2 == 0, "stride-2 path needs even H, W"
        oh, ow = h // 2, w // 2
        xs = _pad_s2d(x_nhwc.astype(MATMUL_DTYPE))        # (n, oh+1, ow+1, 4*cin_p)
        kh = kw = 2
        wm = _weight_gemm_s2(w_oihw, cin_p, cout_p)
    elif stride == 1:
        oh, ow = h - 1, w - 1
        xs = jnp.pad(x_nhwc.astype(MATMUL_DTYPE),
                     ((0, 0), (1, 1), (1, 1), (0, 0)))    # (n, h+2, w+2, cin_p)
        kh = kw = 4
        wm = _weight_gemm_s1(w_oihw, cin_p, cout_p)
    else:
        raise ValueError(stride)

    wm = wm.astype(MATMUL_DTYPE)
    bm = jnp.pad(b.reshape(1, cout).astype(jnp.float32),
                 ((0, 0), (0, cout_p - cout)))

    _, hs, ws, cs = xs.shape
    k = kh * kw * cs
    assert wm.shape == (k, cout_p)
    toh = _pick_row_tile(oh, ow, k)
    t_steps = oh // toh
    m_tile = toh * ow

    kernel = _make_conv_kernel(kh=kh, kw=kw, toh=toh, ow=ow, k=k, alpha=alpha,
                               n_tiles=t_steps)

    out_item = jnp.dtype(out_dtype).itemsize
    flops = 2 * n * oh * ow * k * cout_p
    bytes_accessed = (xs.size * 2 + wm.size * 2 + bm.size * 4
                      + n * oh * ow * cout_p * out_item)
    # Explicit VMEM budget (double-buffered input/weight/output + im2col + acc).
    vmem_demand = (2 * hs * ws * cs * 2 + 2 * k * cout_p * 2 + 2 * cout_p * 4
                   + 2 * m_tile * cout_p * out_item
                   + m_tile * k * 2 + m_tile * cout_p * 4)
    vmem_limit = int(max(32 * 2 ** 20, 2 * vmem_demand))

    out_flat = pl.pallas_call(
        kernel,
        out_shape=jax.ShapeDtypeStruct((n, oh * ow, cout_p), out_dtype),
        grid=(n, t_steps),
        in_specs=[
            pl.BlockSpec((None, hs, ws, cs), lambda nn, tt: (nn, 0, 0, 0)),
            pl.BlockSpec((k, cout_p), lambda nn, tt: (0, 0)),
            pl.BlockSpec((1, cout_p), lambda nn, tt: (0, 0)),
        ],
        out_specs=pl.BlockSpec((None, m_tile, cout_p),
                               lambda nn, tt: (nn, tt, 0)),
        compiler_params=pltpu.CompilerParams(
            dimension_semantics=("parallel", "parallel"),
            vmem_limit_bytes=vmem_limit),
        cost_estimate=pl.CostEstimate(flops=int(flops), transcendentals=0,
                                      bytes_accessed=int(bytes_accessed)),
    )(xs, wm, bm)
    return out_flat.reshape(n, oh, ow, cout_p)


def _avg_pool_3x3_s2_pallas(x_nhwc):
    """F.avg_pool2d(kernel=3, stride=2, padding=1, count_include_pad=False).

    VPU kernel: 9 shifted adds accumulated in f32 + in-kernel 1/count."""
    n, h, w, c = x_nhwc.shape
    assert h % 2 == 0 and w % 2 == 0
    oh, ow = h // 2, w // 2
    xs = _pad_parity_planes(x_nhwc)                      # (n, 4, oh+1, ow+1, c)
    _, _, hs, ws, _ = xs.shape

    def kernel(x_ref, o_ref):
        s = None
        for u in range(3):
            a, p = u // 2, u % 2
            for v in range(3):
                bb, q = v // 2, v % 2
                tap = x_ref[p * 2 + q, pl.ds(a, oh), pl.ds(bb, ow), :]
                tap = tap.astype(jnp.float32)
                s = tap if s is None else s + tap
        oy = lax.broadcasted_iota(jnp.int32, (oh, ow, c), 0)
        ox = lax.broadcasted_iota(jnp.int32, (oh, ow, c), 1)
        cnt = jnp.where(oy == 0, 2.0, 3.0) * jnp.where(ox == 0, 2.0, 3.0)
        o_ref[...] = (s / cnt).astype(o_ref.dtype)

    return pl.pallas_call(
        kernel,
        out_shape=jax.ShapeDtypeStruct((n, oh, ow, c), x_nhwc.dtype),
        grid=(n,),
        in_specs=[pl.BlockSpec((None, 4, hs, ws, c),
                               lambda nn: (nn, 0, 0, 0, 0))],
        out_specs=pl.BlockSpec((None, oh, ow, c), lambda nn: (nn, 0, 0, 0)),
        compiler_params=pltpu.CompilerParams(
            dimension_semantics=("parallel",)),
        cost_estimate=pl.CostEstimate(
            flops=int(10 * n * oh * ow * c), transcendentals=0,
            bytes_accessed=int(xs.size * xs.dtype.itemsize
                               + n * oh * ow * c * 4)),
    )(xs)


def _nlayer_cfg(input_nc, ndf, n_layers):
    cfg = [(input_nc, ndf, 2, 0.2)]
    nf_mult = 1
    for nl in range(1, n_layers + 1):
        nf_prev, nf_mult = nf_mult, min(2 ** nl, 8)
        cfg.append((ndf * nf_prev, ndf * nf_mult, 2 if nl <= 2 else 1, 0.2))
    cfg.append((ndf * nf_mult, 1, 1, None))
    return tuple(cfg)


def _nlayer_discriminator_pallas(x_nhwc, layer_params, cfg):
    h = x_nhwc
    last = len(cfg) - 1
    for li, ((wt, b), (_, _, stride, alpha)) in enumerate(zip(layer_params, cfg)):
        # TODO(synk): nn.Dropout2d(0.3/0.4) is a train-mode stochastic channel
        # mask; treated as inference-mode identity here.
        out_dtype = jnp.float32 if li == last else MATMUL_DTYPE
        h = _conv4x4_pallas(h, wt, b, stride=stride, alpha=alpha,
                            out_dtype=out_dtype)
    return h


@functools.partial(jax.jit, static_argnums=(3, 4))
def multiscale_discriminator_pallas(blurry, sharp, params, cfg, num_d=2):
    x = jnp.concatenate([blurry, sharp], axis=1)               # NCHW concat
    x = jnp.transpose(x, (0, 2, 3, 1)).astype(jnp.float32)     # -> NHWC once
    cin = x.shape[-1]
    cin_p = _round_up(cin, 8)                                   # K0 = 16*8 = 128
    x = jnp.pad(x, ((0, 0), (0, 0), (0, 0), (0, cin_p - cin)))
    cout_last = cfg[-1][1]
    outputs = []
    for i in range(num_d):
        y = _nlayer_discriminator_pallas(x, params[i], cfg)     # (N,OH,OW,128) f32
        y = y[..., :cout_last]                                  # real channels
        outputs.append(jnp.transpose(y, (0, 3, 1, 2)))          # -> NCHW
        if i + 1 < num_d:
            x = _avg_pool_3x3_s2_pallas(x)                      # f32 VPU pool
    return outputs


# ----------------------------- reference path ------------------------------
def _reference_forward(blurry, sharp, params, cfg, num_d=2):
    x = jnp.concatenate([blurry, sharp], axis=1)
    outputs = []
    for i in range(num_d):
        h = x
        for (wt, b), (_, _, stride, alpha) in zip(params[i], cfg):
            h = lax.conv_general_dilated(
                h, wt, (stride, stride), [(1, 1), (1, 1)],
                dimension_numbers=("NCHW", "OIHW", "NCHW"))
            h = h + b[None, :, None, None]
            if alpha is not None:
                h = jnp.where(h >= 0, h, alpha * h)
        outputs.append(h)
        if i + 1 < num_d:
            win, strd = (1, 1, 3, 3), (1, 1, 2, 2)
            pad = [(0, 0), (0, 0), (1, 1), (1, 1)]
            s = lax.reduce_window(x, 0.0, lax.add, win, strd, pad)
            cnt = lax.reduce_window(jnp.ones_like(x), 0.0, lax.add, win, strd,
                                    pad)
            x = s / cnt
    return outputs


def _spectral_normalize(wt, n_iter=30, eps=1e-12):
    # TODO(synk): PyTorch's spectral_norm keeps persistent u/v power-iteration
    # buffers updated once per forward; here the converged spectral norm is
    # applied to the (tiny) weight directly in plain JAX.
    m = wt.reshape(wt.shape[0], -1)
    u = jnp.full((m.shape[0],), 1.0 / jnp.sqrt(m.shape[0]), m.dtype)
    v = None
    for _ in range(n_iter):
        v = m.T @ u
        v = v / (jnp.linalg.norm(v) + eps)
        u = m @ v
        u = u / (jnp.linalg.norm(u) + eps)
    sigma = u @ (m @ v)
    return wt / sigma


def _init_params(key, cfg, num_d):
    params = []
    for _ in range(num_d):
        layers = []
        for (cin, cout, _, _) in cfg:
            key, kw_, kb_ = jax.random.split(key, 3)
            bound = 1.0 / (cin * 16) ** 0.5
            wt = jax.random.uniform(kw_, (cout, cin, 4, 4), jnp.float32,
                                    -bound, bound)
            b = jax.random.uniform(kb_, (cout,), jnp.float32, -bound, bound)
            layers.append((_spectral_normalize(wt), b))
        params.append(layers)
    return params


if __name__ == "__main__":
    # 32x32 is the smallest spatial size for which the second (downscaled)
    # discriminator's final 4x4 conv still has a valid (non-empty) output.
    N, H, W = 2, 32, 32
    INPUT_NC, NDF, N_LAYERS, NUM_D = 6, 16, 2, 2
    cfg = _nlayer_cfg(INPUT_NC, NDF, N_LAYERS)

    key = jax.random.PRNGKey(0)
    kb, ks, kp = jax.random.split(key, 3)
    blurry = jax.random.normal(kb, (N, 3, H, W), jnp.float32)
    sharp = jax.random.normal(ks, (N, 3, H, W), jnp.float32)
    params = _init_params(kp, cfg, NUM_D)

    outs = multiscale_discriminator_pallas(blurry, sharp, params, cfg, NUM_D)
    outs = [jax.block_until_ready(o) for o in outs]

    refs = _reference_forward(blurry, sharp, params, cfg, NUM_D)
    refs = [jax.block_until_ready(r) for r in refs]

    assert len(outs) == NUM_D
    for o, r in zip(outs, refs):
        assert o.shape == r.shape, (o.shape, r.shape)
        max_err = float(jnp.max(jnp.abs(o - r)))
        # bf16 MXU operands / bf16 inter-layer activations vs f32 XLA
        # reference -> relaxed tolerance.
        assert jnp.allclose(o, r, atol=5e-2, rtol=5e-2), max_err
    print("KERNEL_OK")
</pallas_src>

<mosaic_0001>
module attributes {stable_mosaic.version = 11 : i64} {
  func.func @kernel(%arg0: i32, %arg1: i32, %arg2: memref<1x17x17x32xbf16, #tpu.memory_space<vmem>>, %arg3: memref<128x128xbf16, #tpu.memory_space<vmem>>, %arg4: memref<1x128xf32, #tpu.memory_space<vmem>>, %arg5: memref<1x256x128xbf16, #tpu.memory_space<vmem>>) attributes {dimension_semantics = [#tpu.dimension_semantics<parallel>, #tpu.dimension_semantics<parallel>], iteration_bounds = array<i64: 2, 1>, scalar_prefetch = 0 : i64, scratch_operands = 0 : i64, tpu.core_type = #tpu.core_type<tc>, window_params = [{transform_indices = @transform_0, window_bounds = array<i64: 1, 17, 17, 32>}, {pipeline_mode = #tpu.pipeline_mode<synchronous>, transform_indices = @transform_1, window_bounds = array<i64: 128, 128>}, {pipeline_mode = #tpu.pipeline_mode<synchronous>, transform_indices = @transform_2, window_bounds = array<i64: 1, 128>}, {transform_indices = @transform_3, window_bounds = array<i64: 1, 256, 128>}]} {
    %c0 = arith.constant 0 : index
    %c0_0 = arith.constant 0 : index
    %c0_1 = arith.constant 0 : index
    %c0_2 = arith.constant 0 : index
    %0 = vector.load %arg2[%c0, %c0_0, %c0_1, %c0_2] : memref<1x17x17x32xbf16, #tpu.memory_space<vmem>>, vector<1x16x16x32xbf16>
    %1 = vector.shape_cast %0 : vector<1x16x16x32xbf16> to vector<16x16x32xbf16>
    %c0_3 = arith.constant 0 : index
    %c0_4 = arith.constant 0 : index
    %c1 = arith.constant 1 : index
    %c0_5 = arith.constant 0 : index
    %2 = vector.load %arg2[%c0_3, %c0_4, %c1, %c0_5] : memref<1x17x17x32xbf16, #tpu.memory_space<vmem>>, vector<1x16x16x32xbf16>
    %3 = vector.shape_cast %2 : vector<1x16x16x32xbf16> to vector<16x16x32xbf16>
    %c0_6 = arith.constant 0 : index
    %c1_7 = arith.constant 1 : index
    %c0_8 = arith.constant 0 : index
    %c0_9 = arith.constant 0 : index
    %4 = vector.load %arg2[%c0_6, %c1_7, %c0_8, %c0_9] : memref<1x17x17x32xbf16, #tpu.memory_space<vmem>>, vector<1x16x16x32xbf16>
    %5 = vector.shape_cast %4 : vector<1x16x16x32xbf16> to vector<16x16x32xbf16>
    %c0_10 = arith.constant 0 : index
    %c1_11 = arith.constant 1 : index
    %c1_12 = arith.constant 1 : index
    %c0_13 = arith.constant 0 : index
    %6 = vector.load %arg2[%c0_10, %c1_11, %c1_12, %c0_13] : memref<1x17x17x32xbf16, #tpu.memory_space<vmem>>, vector<1x16x16x32xbf16>
    %7 = vector.shape_cast %6 : vector<1x16x16x32xbf16> to vector<16x16x32xbf16>
    %8 = tpu.concatenate %1, %3, %5, %7 in 2 : vector<16x16x32xbf16>, vector<16x16x32xbf16>, vector<16x16x32xbf16>, vector<16x16x32xbf16> -> vector<16x16x128xbf16>
    %9 = vector.shape_cast %8 : vector<16x16x128xbf16> to vector<256x128xbf16>
    %c0_14 = arith.constant 0 : index
    %c0_15 = arith.constant 0 : index
    %10 = vector.load %arg3[%c0_14, %c0_15] : memref<128x128xbf16, #tpu.memory_space<vmem>>, vector<128x128xbf16>
    %cst = arith.constant dense<0.000000e+00> : vector<256x128xf32>
    %11 = tpu.matmul %9, %10, %cst {dimension_numbers = #tpu.dot_dimension_numbers<[1], [0], [0], [1], [0, 0, 1, 1], [], []>} : vector<256x128xbf16>, vector<128x128xbf16>, vector<256x128xf32> -> vector<256x128xf32>
    %c0_16 = arith.constant 0 : index
    %c0_17 = arith.constant 0 : index
    %12 = vector.load %arg4[%c0_16, %c0_17] : memref<1x128xf32, #tpu.memory_space<vmem>>, vector<1x128xf32>
    %13 = vector.broadcast %12 : vector<1x128xf32> to vector<256x128xf32>
    %14 = arith.addf %11, %13 : vector<256x128xf32>
    %cst_18 = arith.constant 0.000000e+00 : f32
    %15 = vector.broadcast %cst_18 : f32 to vector<256x128xf32>
    %16 = arith.cmpf oge, %14, %15 : vector<256x128xf32>
    %cst_19 = arith.constant 2.000000e-01 : f32
    %17 = vector.broadcast %cst_19 : f32 to vector<256x128xf32>
    %18 = arith.mulf %14, %17 : vector<256x128xf32>
    %19 = arith.select %16, %14, %18 : vector<256x128xi1>, vector<256x128xf32>
    %20 = arith.truncf %19 : vector<256x128xf32> to vector<256x128xbf16>
    %c0_20 = arith.constant 0 : index
    %c0_21 = arith.constant 0 : index
    %c0_22 = arith.constant 0 : index
    %21 = vector.load %arg5[%c0_20, %c0_21, %c0_22] : memref<1x256x128xbf16, #tpu.memory_space<vmem>>, vector<1x256x128xbf16>
    %22 = vector.shape_cast %21 : vector<1x256x128xbf16> to vector<256x128xbf16>
    %23 = vector.shape_cast %20 : vector<256x128xbf16> to vector<1x256x128xbf16>
    tpu.vector_store %arg5[%c0_20, %c0_21, %c0_22], %23 {strides = array<i32>} : memref<1x256x128xbf16, #tpu.memory_space<vmem>>, vector<1x256x128xbf16>,
    return
  }
  func.func @transform_0(%arg0: i32, %arg1: i32) -> (i32, i32, i32, i32) {
    %c0_i32 = arith.constant 0 : i32
    %c0_i32_0 = arith.constant 0 : i32
    %c0_i32_1 = arith.constant 0 : i32
    %c0_i32_2 = arith.constant 0 : i32
    return %arg0, %c0_i32, %c0_i32_0, %c0_i32_1 : i32, i32, i32, i32
  }
  func.func @transform_1(%arg0: i32, %arg1: i32) -> (i32, i32) {
    %c0_i32 = arith.constant 0 : i32
    %c0_i32_0 = arith.constant 0 : i32
    %c0_i32_1 = arith.constant 0 : i32
    return %c0_i32, %c0_i32_0 : i32, i32
  }
  func.func @transform_2(%arg0: i32, %arg1: i32) -> (i32, i32) {
    %c0_i32 = arith.constant 0 : i32
    %c0_i32_0 = arith.constant 0 : i32
    %c0_i32_1 = arith.constant 0 : i32
    return %c0_i32, %c0_i32_0 : i32, i32
  }
  func.func @transform_3(%arg0: i32, %arg1: i32) -> (i32, i32, i32) {
    %c0_i32 = arith.constant 0 : i32
    %c0_i32_0 = arith.constant 0 : i32
    return %arg0, %arg1, %c0_i32 : i32, i32, i32
  }
}

module attributes {stable_mosaic.version = 11 : i64} {
  func.func @kernel(%arg0: i32, %arg1: i32, %arg2: memref<1x9x9x512xbf16, #tpu.memory_space<vmem>>, %arg3: memref<2048x128xbf16, #tpu.memory_space<vmem>>, %arg4: memref<1x128xf32, #tpu.memory_space<vmem>>, %arg5: memref<1x64x128xbf16, #tpu.memory_space<vmem>>) attributes {dimension_semantics = [#tpu.dimension_semantics<parallel>, #tpu.dimension_semantics<parallel>], iteration_bounds = array<i64: 2, 1>, scalar_prefetch = 0 : i64, scratch_operands = 0 : i64, tpu.core_type = #tpu.core_type<tc>, window_params = [{transform_indices = @transform_0, window_bounds = array<i64: 1, 9, 9, 512>}, {pipeline_mode = #tpu.pipeline_mode<synchronous>, transform_indices = @transform_1, window_bounds = array<i64: 2048, 128>}, {pipeline_mode = #tpu.pipeline_mode<synchronous>, transform_indices = @transform_2, window_bounds = array<i64: 1, 128>}, {transform_indices = @transform_3, window_bounds = array<i64: 1, 64, 128>}]} {
    %c0 = arith.constant 0 : index
    %c0_0 = arith.constant 0 : index
    %c0_1 = arith.constant 0 : index
    %c0_2 = arith.constant 0 : index
    %0 = vector.load %arg2[%c0, %c0_0, %c0_1, %c0_2] : memref<1x9x9x512xbf16, #tpu.memory_space<vmem>>, vector<1x8x8x512xbf16>
    %1 = vector.shape_cast %0 : vector<1x8x8x512xbf16> to vector<8x8x512xbf16>
    %c0_3 = arith.constant 0 : index
    %c0_4 = arith.constant 0 : index
    %c1 = arith.constant 1 : index
    %c0_5 = arith.constant 0 : index
    %2 = vector.load %arg2[%c0_3, %c0_4, %c1, %c0_5] : memref<1x9x9x512xbf16, #tpu.memory_space<vmem>>, vector<1x8x8x512xbf16>
    %3 = vector.shape_cast %2 : vector<1x8x8x512xbf16> to vector<8x8x512xbf16>
    %c0_6 = arith.constant 0 : index
    %c1_7 = arith.constant 1 : index
    %c0_8 = arith.constant 0 : index
    %c0_9 = arith.constant 0 : index
    %4 = vector.load %arg2[%c0_6, %c1_7, %c0_8, %c0_9] : memref<1x9x9x512xbf16, #tpu.memory_space<vmem>>, vector<1x8x8x512xbf16>
    %5 = vector.shape_cast %4 : vector<1x8x8x512xbf16> to vector<8x8x512xbf16>
    %c0_10 = arith.constant 0 : index
    %c1_11 = arith.constant 1 : index
    %c1_12 = arith.constant 1 : index
    %c0_13 = arith.constant 0 : index
    %6 = vector.load %arg2[%c0_10, %c1_11, %c1_12, %c0_13] : memref<1x9x9x512xbf16, #tpu.memory_space<vmem>>, vector<1x8x8x512xbf16>
    %7 = vector.shape_cast %6 : vector<1x8x8x512xbf16> to vector<8x8x512xbf16>
    %8 = tpu.concatenate %1, %3, %5, %7 in 2 : vector<8x8x512xbf16>, vector<8x8x512xbf16>, vector<8x8x512xbf16>, vector<8x8x512xbf16> -> vector<8x8x2048xbf16>
    %9 = vector.shape_cast %8 : vector<8x8x2048xbf16> to vector<64x2048xbf16>
    %c0_14 = arith.constant 0 : index
    %c0_15 = arith.constant 0 : index
    %10 = vector.load %arg3[%c0_14, %c0_15] : memref<2048x128xbf16, #tpu.memory_space<vmem>>, vector<2048x128xbf16>
    %cst = arith.constant dense<0.000000e+00> : vector<64x128xf32>
    %11 = tpu.matmul %9, %10, %cst {dimension_numbers = #tpu.dot_dimension_numbers<[1], [0], [0], [1], [0, 0, 1, 1], [], []>} : vector<64x2048xbf16>, vector<2048x128xbf16>, vector<64x128xf32> -> vector<64x128xf32>
    %c0_16 = arith.constant 0 : index
    %c0_17 = arith.constant 0 : index
    %12 = vector.load %arg4[%c0_16, %c0_17] : memref<1x128xf32, #tpu.memory_space<vmem>>, vector<1x128xf32>
    %13 = vector.broadcast %12 : vector<1x128xf32> to vector<64x128xf32>
    %14 = arith.addf %11, %13 : vector<64x128xf32>
    %cst_18 = arith.constant 0.000000e+00 : f32
    %15 = vector.broadcast %cst_18 : f32 to vector<64x128xf32>
    %16 = arith.cmpf oge, %14, %15 : vector<64x128xf32>
    %cst_19 = arith.constant 2.000000e-01 : f32
    %17 = vector.broadcast %cst_19 : f32 to vector<64x128xf32>
    %18 = arith.mulf %14, %17 : vector<64x128xf32>
    %19 = arith.select %16, %14, %18 : vector<64x128xi1>, vector<64x128xf32>
    %20 = arith.truncf %19 : vector<64x128xf32> to vector<64x128xbf16>
    %c0_20 = arith.constant 0 : index
    %c0_21 = arith.constant 0 : index
    %c0_22 = arith.constant 0 : index
    %21 = vector.load %arg5[%c0_20, %c0_21, %c0_22] : memref<1x64x128xbf16, #tpu.memory_space<vmem>>, vector<1x64x128xbf16>
    %22 = vector.shape_cast %21 : vector<1x64x128xbf16> to vector<64x128xbf16>
    %23 = vector.shape_cast %20 : vector<64x128xbf16> to vector<1x64x128xbf16>
    tpu.vector_store %arg5[%c0_20, %c0_21, %c0_22], %23 {strides = array<i32>} : memref<1x64x128xbf16, #tpu.memory_space<vmem>>, vector<1x64x128xbf16>,
    return
  }
  func.func @transform_0(%arg0: i32, %arg1: i32) -> (i32, i32, i32, i32) {
    %c0_i32 = arith.constant 0 : i32
    %c0_i32_0 = arith.constant 0 : i32
    %c0_i32_1 = arith.constant 0 : i32
    %c0_i32_2 = arith.constant 0 : i32
    return %arg0, %c0_i32, %c0_i32_0, %c0_i32_1 : i32, i32, i32, i32
  }
  func.func @transform_1(%arg0: i32, %arg1: i32) -> (i32, i32) {
    %c0_i32 = arith.constant 0 : i32
    %c0_i32_0 = arith.constant 0 : i32
    %c0_i32_1 = arith.constant 0 : i32
    return %c0_i32, %c0_i32_0 : i32, i32
  }
  func.func @transform_2(%arg0: i32, %arg1: i32) -> (i32, i32) {
    %c0_i32 = arith.constant 0 : i32
    %c0_i32_0 = arith.constant 0 : i32
    %c0_i32_1 = arith.constant 0 : i32
    return %c0_i32, %c0_i32_0 : i32, i32
  }
  func.func @transform_3(%arg0: i32, %arg1: i32) -> (i32, i32, i32) {
    %c0_i32 = arith.constant 0 : i32
    %c0_i32_0 = arith.constant 0 : i32
    return %arg0, %arg1, %c0_i32 : i32, i32, i32
  }
}

module attributes {stable_mosaic.version = 11 : i64} {
  func.func @kernel(%arg0: i32, %arg1: i32, %arg2: memref<1x5x5x512xbf16, #tpu.memory_space<vmem>>, %arg3: memref<2048x128xbf16, #tpu.memory_space<vmem>>, %arg4: memref<1x128xf32, #tpu.memory_space<vmem>>, %arg5: memref<1x16x128xbf16, #tpu.memory_space<vmem>>) attributes {dimension_semantics = [#tpu.dimension_semantics<parallel>, #tpu.dimension_semantics<parallel>], iteration_bounds = array<i64: 2, 1>, scalar_prefetch = 0 : i64, scratch_operands = 0 : i64, tpu.core_type = #tpu.core_type<tc>, window_params = [{transform_indices = @transform_0, window_bounds = array<i64: 1, 5, 5, 512>}, {pipeline_mode = #tpu.pipeline_mode<synchronous>, transform_indices = @transform_1, window_bounds = array<i64: 2048, 128>}, {pipeline_mode = #tpu.pipeline_mode<synchronous>, transform_indices = @transform_2, window_bounds = array<i64: 1, 128>}, {transform_indices = @transform_3, window_bounds = array<i64: 1, 16, 128>}]} {
    %c0 = arith.constant 0 : index
    %c0_0 = arith.constant 0 : index
    %c0_1 = arith.constant 0 : index
    %c0_2 = arith.constant 0 : index
    %0 = vector.load %arg2[%c0, %c0_0, %c0_1, %c0_2] : memref<1x5x5x512xbf16, #tpu.memory_space<vmem>>, vector<1x4x4x512xbf16>
    %1 = vector.shape_cast %0 : vector<1x4x4x512xbf16> to vector<4x4x512xbf16>
    %c0_3 = arith.constant 0 : index
    %c0_4 = arith.constant 0 : index
    %c1 = arith.constant 1 : index
    %c0_5 = arith.constant 0 : index
    %2 = vector.load %arg2[%c0_3, %c0_4, %c1, %c0_5] : memref<1x5x5x512xbf16, #tpu.memory_space<vmem>>, vector<1x4x4x512xbf16>
    %3 = vector.shape_cast %2 : vector<1x4x4x512xbf16> to vector<4x4x512xbf16>
    %c0_6 = arith.constant 0 : index
    %c1_7 = arith.constant 1 : index
    %c0_8 = arith.constant 0 : index
    %c0_9 = arith.constant 0 : index
    %4 = vector.load %arg2[%c0_6, %c1_7, %c0_8, %c0_9] : memref<1x5x5x512xbf16, #tpu.memory_space<vmem>>, vector<1x4x4x512xbf16>
    %5 = vector.shape_cast %4 : vector<1x4x4x512xbf16> to vector<4x4x512xbf16>
    %c0_10 = arith.constant 0 : index
    %c1_11 = arith.constant 1 : index
    %c1_12 = arith.constant 1 : index
    %c0_13 = arith.constant 0 : index
    %6 = vector.load %arg2[%c0_10, %c1_11, %c1_12, %c0_13] : memref<1x5x5x512xbf16, #tpu.memory_space<vmem>>, vector<1x4x4x512xbf16>
    %7 = vector.shape_cast %6 : vector<1x4x4x512xbf16> to vector<4x4x512xbf16>
    %8 = tpu.concatenate %1, %3, %5, %7 in 2 : vector<4x4x512xbf16>, vector<4x4x512xbf16>, vector<4x4x512xbf16>, vector<4x4x512xbf16> -> vector<4x4x2048xbf16>
    %9 = vector.shape_cast %8 : vector<4x4x2048xbf16> to vector<16x2048xbf16>
    %c0_14 = arith.constant 0 : index
    %c0_15 = arith.constant 0 : index
    %10 = vector.load %arg3[%c0_14, %c0_15] : memref<2048x128xbf16, #tpu.memory_space<vmem>>, vector<2048x128xbf16>
    %cst = arith.constant dense<0.000000e+00> : vector<16x128xf32>
    %11 = tpu.matmul %9, %10, %cst {dimension_numbers = #tpu.dot_dimension_numbers<[1], [0], [0], [1], [0, 0, 1, 1], [], []>} : vector<16x2048xbf16>, vector<2048x128xbf16>, vector<16x128xf32> -> vector<16x128xf32>
    %c0_16 = arith.constant 0 : index
    %c0_17 = arith.constant 0 : index
    %12 = vector.load %arg4[%c0_16, %c0_17] : memref<1x128xf32, #tpu.memory_space<vmem>>, vector<1x128xf32>
    %13 = vector.broadcast %12 : vector<1x128xf32> to vector<16x128xf32>
    %14 = arith.addf %11, %13 : vector<16x128xf32>
    %cst_18 = arith.constant 0.000000e+00 : f32
    %15 = vector.broadcast %cst_18 : f32 to vector<16x128xf32>
    %16 = arith.cmpf oge, %14, %15 : vector<16x128xf32>
    %cst_19 = arith.constant 2.000000e-01 : f32
    %17 = vector.broadcast %cst_19 : f32 to vector<16x128xf32>
    %18 = arith.mulf %14, %17 : vector<16x128xf32>
    %19 = arith.select %16, %14, %18 : vector<16x128xi1>, vector<16x128xf32>
    %20 = arith.truncf %19 : vector<16x128xf32> to vector<16x128xbf16>
    %c0_20 = arith.constant 0 : index
    %c0_21 = arith.constant 0 : index
    %c0_22 = arith.constant 0 : index
    %21 = vector.load %arg5[%c0_20, %c0_21, %c0_22] : memref<1x16x128xbf16, #tpu.memory_space<vmem>>, vector<1x16x128xbf16>
    %22 = vector.shape_cast %21 : vector<1x16x128xbf16> to vector<16x128xbf16>
    %23 = vector.shape_cast %20 : vector<16x128xbf16> to vector<1x16x128xbf16>
    tpu.vector_store %arg5[%c0_20, %c0_21, %c0_22], %23 {strides = array<i32>} : memref<1x16x128xbf16, #tpu.memory_space<vmem>>, vector<1x16x128xbf16>,
    return
  }
  func.func @transform_0(%arg0: i32, %arg1: i32) -> (i32, i32, i32, i32) {
    %c0_i32 = arith.constant 0 : i32
    %c0_i32_0 = arith.constant 0 : i32
    %c0_i32_1 = arith.constant 0 : i32
    %c0_i32_2 = arith.constant 0 : i32
    return %arg0, %c0_i32, %c0_i32_0, %c0_i32_1 : i32, i32, i32, i32
  }
  func.func @transform_1(%arg0: i32, %arg1: i32) -> (i32, i32) {
    %c0_i32 = arith.constant 0 : i32
    %c0_i32_0 = arith.constant 0 : i32
    %c0_i32_1 = arith.constant 0 : i32
    return %c0_i32, %c0_i32_0 : i32, i32
  }
  func.func @transform_2(%arg0: i32, %arg1: i32) -> (i32, i32) {
    %c0_i32 = arith.constant 0 : i32
    %c0_i32_0 = arith.constant 0 : i32
    %c0_i32_1 = arith.constant 0 : i32
    return %c0_i32, %c0_i32_0 : i32, i32
  }
  func.func @transform_3(%arg0: i32, %arg1: i32) -> (i32, i32, i32) {
    %c0_i32 = arith.constant 0 : i32
    %c0_i32_0 = arith.constant 0 : i32
    return %arg0, %arg1, %c0_i32 : i32, i32, i32
  }
}

module attributes {stable_mosaic.version = 11 : i64} {
  func.func @kernel(%arg0: i32, %arg1: i32, %arg2: memref<1x6x6x128xbf16, #tpu.memory_space<vmem>>, %arg3: memref<2048x128xbf16, #tpu.memory_space<vmem>>, %arg4: memref<1x128xf32, #tpu.memory_space<vmem>>, %arg5: memref<1x9x128xf32, #tpu.memory_space<vmem>>) attributes {dimension_semantics = [#tpu.dimension_semantics<parallel>, #tpu.dimension_semantics<parallel>], iteration_bounds = array<i64: 2, 1>, scalar_prefetch = 0 : i64, scratch_operands = 0 : i64, tpu.core_type = #tpu.core_type<tc>, window_params = [{transform_indices = @transform_0, window_bounds = array<i64: 1, 6, 6, 128>}, {pipeline_mode = #tpu.pipeline_mode<synchronous>, transform_indices = @transform_1, window_bounds = array<i64: 2048, 128>}, {pipeline_mode = #tpu.pipeline_mode<synchronous>, transform_indices = @transform_2, window_bounds = array<i64: 1, 128>}, {transform_indices = @transform_3, window_bounds = array<i64: 1, 9, 128>}]} {
    %c0 = arith.constant 0 : index
    %c0_0 = arith.constant 0 : index
    %c0_1 = arith.constant 0 : index
    %c0_2 = arith.constant 0 : index
    %0 = vector.load %arg2[%c0, %c0_0, %c0_1, %c0_2] : memref<1x6x6x128xbf16, #tpu.memory_space<vmem>>, vector<1x3x3x128xbf16>
    %1 = vector.shape_cast %0 : vector<1x3x3x128xbf16> to vector<3x3x128xbf16>
    %c0_3 = arith.constant 0 : index
    %c0_4 = arith.constant 0 : index
    %c1 = arith.constant 1 : index
    %c0_5 = arith.constant 0 : index
    %2 = vector.load %arg2[%c0_3, %c0_4, %c1, %c0_5] : memref<1x6x6x128xbf16, #tpu.memory_space<vmem>>, vector<1x3x3x128xbf16>
    %3 = vector.shape_cast %2 : vector<1x3x3x128xbf16> to vector<3x3x128xbf16>
    %c0_6 = arith.constant 0 : index
    %c0_7 = arith.constant 0 : index
    %c2 = arith.constant 2 : index
    %c0_8 = arith.constant 0 : index
    %4 = vector.load %arg2[%c0_6, %c0_7, %c2, %c0_8] : memref<1x6x6x128xbf16, #tpu.memory_space<vmem>>, vector<1x3x3x128xbf16>
    %5 = vector.shape_cast %4 : vector<1x3x3x128xbf16> to vector<3x3x128xbf16>
    %c0_9 = arith.constant 0 : index
    %c0_10 = arith.constant 0 : index
    %c3 = arith.constant 3 : index
    %c0_11 = arith.constant 0 : index
    %6 = vector.load %arg2[%c0_9, %c0_10, %c3, %c0_11] : memref<1x6x6x128xbf16, #tpu.memory_space<vmem>>, vector<1x3x3x128xbf16>
    %7 = vector.shape_cast %6 : vector<1x3x3x128xbf16> to vector<3x3x128xbf16>
    %c0_12 = arith.constant 0 : index
    %c1_13 = arith.constant 1 : index
    %c0_14 = arith.constant 0 : index
    %c0_15 = arith.constant 0 : index
    %8 = vector.load %arg2[%c0_12, %c1_13, %c0_14, %c0_15] : memref<1x6x6x128xbf16, #tpu.memory_space<vmem>>, vector<1x3x3x128xbf16>
    %9 = vector.shape_cast %8 : vector<1x3x3x128xbf16> to vector<3x3x128xbf16>
    %c0_16 = arith.constant 0 : index
    %c1_17 = arith.constant 1 : index
    %c1_18 = arith.constant 1 : index
    %c0_19 = arith.constant 0 : index
    %10 = vector.load %arg2[%c0_16, %c1_17, %c1_18, %c0_19] : memref<1x6x6x128xbf16, #tpu.memory_space<vmem>>, vector<1x3x3x128xbf16>
    %11 = vector.shape_cast %10 : vector<1x3x3x128xbf16> to vector<3x3x128xbf16>
    %c0_20 = arith.constant 0 : index
    %c1_21 = arith.constant 1 : index
    %c2_22 = arith.constant 2 : index
    %c0_23 = arith.constant 0 : index
    %12 = vector.load %arg2[%c0_20, %c1_21, %c2_22, %c0_23] : memref<1x6x6x128xbf16, #tpu.memory_space<vmem>>, vector<1x3x3x128xbf16>
    %13 = vector.shape_cast %12 : vector<1x3x3x128xbf16> to vector<3x3x128xbf16>
    %c0_24 = arith.constant 0 : index
    %c1_25 = arith.constant 1 : index
    %c3_26 = arith.constant 3 : index
    %c0_27 = arith.constant 0 : index
    %14 = vector.load %arg2[%c0_24, %c1_25, %c3_26, %c0_27] : memref<1x6x6x128xbf16, #tpu.memory_space<vmem>>, vector<1x3x3x128xbf16>
    %15 = vector.shape_cast %14 : vector<1x3x3x128xbf16> to vector<3x3x128xbf16>
    %c0_28 = arith.constant 0 : index
    %c2_29 = arith.constant 2 : index
    %c0_30 = arith.constant 0 : index
    %c0_31 = arith.constant 0 : index
    %16 = vector.load %arg2[%c0_28, %c2_29, %c0_30, %c0_31] : memref<1x6x6x128xbf16, #tpu.memory_space<vmem>>, vector<1x3x3x128xbf16>
    %17 = vector.shape_cast %16 : vector<1x3x3x128xbf16> to vector<3x3x128xbf16>
    %c0_32 = arith.constant 0 : index
    %c2_33 = arith.constant 2 : index
    %c1_34 = arith.constant 1 : index
    %c0_35 = arith.constant 0 : index
    %18 = vector.load %arg2[%c0_32, %c2_33, %c1_34, %c0_35] : memref<1x6x6x128xbf16, #tpu.memory_space<vmem>>, vector<1x3x3x128xbf16>
    %19 = vector.shape_cast %18 : vector<1x3x3x128xbf16> to vector<3x3x128xbf16>
    %c0_36 = arith.constant 0 : index
    %c2_37 = arith.constant 2 : index
    %c2_38 = arith.constant 2 : index
    %c0_39 = arith.constant 0 : index
    %20 = vector.load %arg2[%c0_36, %c2_37, %c2_38, %c0_39] : memref<1x6x6x128xbf16, #tpu.memory_space<vmem>>, vector<1x3x3x128xbf16>
    %21 = vector.shape_cast %20 : vector<1x3x3x128xbf16> to vector<3x3x128xbf16>
    %c0_40 = arith.constant 0 : index
    %c2_41 = arith.constant 2 : index
    %c3_42 = arith.constant 3 : index
    %c0_43 = arith.constant 0 : index
    %22 = vector.load %arg2[%c0_40, %c2_41, %c3_42, %c0_43] : memref<1x6x6x128xbf16, #tpu.memory_space<vmem>>, vector<1x3x3x128xbf16>
    %23 = vector.shape_cast %22 : vector<1x3x3x128xbf16> to vector<3x3x128xbf16>
    %c0_44 = arith.constant 0 : index
    %c3_45 = arith.constant 3 : index
    %c0_46 = arith.constant 0 : index
    %c0_47 = arith.constant 0 : index
    %24 = vector.load %arg2[%c0_44, %c3_45, %c0_46, %c0_47] : memref<1x6x6x128xbf16, #tpu.memory_space<vmem>>, vector<1x3x3x128xbf16>
    %25 = vector.shape_cast %24 : vector<1x3x3x128xbf16> to vector<3x3x128xbf16>
    %c0_48 = arith.constant 0 : index
    %c3_49 = arith.constant 3 : index
    %c1_50 = arith.constant 1 : index
    %c0_51 = arith.constant 0 : index
    %26 = vector.load %arg2[%c0_48, %c3_49, %c1_50, %c0_51] : memref<1x6x6x128xbf16, #tpu.memory_space<vmem>>, vector<1x3x3x128xbf16>
    %27 = vector.shape_cast %26 : vector<1x3x3x128xbf16> to vector<3x3x128xbf16>
    %c0_52 = arith.constant 0 : index
    %c3_53 = arith.constant 3 : index
    %c2_54 = arith.constant 2 : index
    %c0_55 = arith.constant 0 : index
    %28 = vector.load %arg2[%c0_52, %c3_53, %c2_54, %c0_55] : memref<1x6x6x128xbf16, #tpu.memory_space<vmem>>, vector<1x3x3x128xbf16>
    %29 = vector.shape_cast %28 : vector<1x3x3x128xbf16> to vector<3x3x128xbf16>
    %c0_56 = arith.constant 0 : index
    %c3_57 = arith.constant 3 : index
    %c3_58 = arith.constant 3 : index
    %c0_59 = arith.constant 0 : index
    %30 = vector.load %arg2[%c0_56, %c3_57, %c3_58, %c0_59] : memref<1x6x6x128xbf16, #tpu.memory_space<vmem>>, vector<1x3x3x128xbf16>
    %31 = vector.shape_cast %30 : vector<1x3x3x128xbf16> to vector<3x3x128xbf16>
    %32 = tpu.concatenate %1, %3, %5, %7, %9, %11, %13, %15, %17, %19, %21, %23, %25, %27, %29, %31 in 2 : vector<3x3x128xbf16>, vector<3x3x128xbf16>, vector<3x3x128xbf16>, vector<3x3x128xbf16>, vector<3x3x128xbf16>, vector<3x3x128xbf16>, vector<3x3x128xbf16>, vector<3x3x128xbf16>, vector<3x3x128xbf16>, vector<3x3x128xbf16>, vector<3x3x128xbf16>, vector<3x3x128xbf16>, vector<3x3x128xbf16>, vector<3x3x128xbf16>, vector<3x3x128xbf16>, vector<3x3x128xbf16> -> vector<3x3x2048xbf16>
    %33 = vector.shape_cast %32 : vector<3x3x2048xbf16> to vector<9x2048xbf16>
    %c0_60 = arith.constant 0 : index
    %c0_61 = arith.constant 0 : index
    %34 = vector.load %arg3[%c0_60, %c0_61] : memref<2048x128xbf16, #tpu.memory_space<vmem>>, vector<2048x128xbf16>
    %cst = arith.constant dense<0.000000e+00> : vector<9x128xf32>
    %35 = tpu.matmul %33, %34, %cst {dimension_numbers = #tpu.dot_dimension_numbers<[1], [0], [0], [1], [0, 0, 1, 1], [], []>} : vector<9x2048xbf16>, vector<2048x128xbf16>, vector<9x128xf32> -> vector<9x128xf32>
    %c0_62 = arith.constant 0 : index
    %c0_63 = arith.constant 0 : index
    %36 = vector.load %arg4[%c0_62, %c0_63] : memref<1x128xf32, #tpu.memory_space<vmem>>, vector<1x128xf32>
    %37 = vector.broadcast %36 : vector<1x128xf32> to vector<9x128xf32>
    %38 = arith.addf %35, %37 : vector<9x128xf32>
    %c0_64 = arith.constant 0 : index
    %c0_65 = arith.constant 0 : index
    %c0_66 = arith.constant 0 : index
    %39 = vector.load %arg5[%c0_64, %c0_65, %c0_66] : memref<1x9x128xf32, #tpu.memory_space<vmem>>, vector<1x9x128xf32>
    %40 = vector.shape_cast %39 : vector<1x9x128xf32> to vector<9x128xf32>
    %41 = vector.shape_cast %38 : vector<9x128xf32> to vector<1x9x128xf32>
    tpu.vector_store %arg5[%c0_64, %c0_65, %c0_66], %41 {strides = array<i32>} : memref<1x9x128xf32, #tpu.memory_space<vmem>>, vector<1x9x128xf32>,
    return
  }
  func.func @transform_0(%arg0: i32, %arg1: i32) -> (i32, i32, i32, i32) {
    %c0_i32 = arith.constant 0 : i32
    %c0_i32_0 = arith.constant 0 : i32
    %c0_i32_1 = arith.constant 0 : i32
    %c0_i32_2 = arith.constant 0 : i32
    return %arg0, %c0_i32, %c0_i32_0, %c0_i32_1 : i32, i32, i32, i32
  }
  func.func @transform_1(%arg0: i32, %arg1: i32) -> (i32, i32) {
    %c0_i32 = arith.constant 0 : i32
    %c0_i32_0 = arith.constant 0 : i32
    %c0_i32_1 = arith.constant 0 : i32
    return %c0_i32, %c0_i32_0 : i32, i32
  }
  func.func @transform_2(%arg0: i32, %arg1: i32) -> (i32, i32) {
    %c0_i32 = arith.constant 0 : i32
    %c0_i32_0 = arith.constant 0 : i32
    %c0_i32_1 = arith.constant 0 : i32
    return %c0_i32, %c0_i32_0 : i32, i32
  }
  func.func @transform_3(%arg0: i32, %arg1: i32) -> (i32, i32, i32) {
    %c0_i32 = arith.constant 0 : i32
    %c0_i32_0 = arith.constant 0 : i32
    return %arg0, %arg1, %c0_i32 : i32, i32, i32
  }
}

module attributes {stable_mosaic.version = 11 : i64} {
  func.func @kernel(%arg0: i32, %arg1: memref<1x4x17x17x8xf32, #tpu.memory_space<vmem>>, %arg2: memref<1x16x16x8xf32, #tpu.memory_space<vmem>>) attributes {dimension_semantics = [#tpu.dimension_semantics<parallel>], iteration_bounds = array<i64: 2>, scalar_prefetch = 0 : i64, scratch_operands = 0 : i64, tpu.core_type = #tpu.core_type<tc>, window_params = [{transform_indices = @transform_0, window_bounds = array<i64: 1, 4, 17, 17, 8>}, {transform_indices = @transform_1, window_bounds = array<i64: 1, 16, 16, 8>}]} {
    %c0 = arith.constant 0 : index
    %c0_0 = arith.constant 0 : index
    %c0_1 = arith.constant 0 : index
    %c0_2 = arith.constant 0 : index
    %c0_3 = arith.constant 0 : index
    %0 = vector.load %arg1[%c0, %c0_0, %c0_1, %c0_2, %c0_3] : memref<1x4x17x17x8xf32, #tpu.memory_space<vmem>>, vector<1x1x16x16x8xf32>
    %1 = vector.shape_cast %0 : vector<1x1x16x16x8xf32> to vector<16x16x8xf32>
    %c0_4 = arith.constant 0 : index
    %c1 = arith.constant 1 : index
    %c0_5 = arith.constant 0 : index
    %c0_6 = arith.constant 0 : index
    %c0_7 = arith.constant 0 : index
    %2 = vector.load %arg1[%c0_4, %c1, %c0_5, %c0_6, %c0_7] : memref<1x4x17x17x8xf32, #tpu.memory_space<vmem>>, vector<1x1x16x16x8xf32>
    %3 = vector.shape_cast %2 : vector<1x1x16x16x8xf32> to vector<16x16x8xf32>
    %4 = arith.addf %1, %3 : vector<16x16x8xf32>
    %c0_8 = arith.constant 0 : index
    %c0_9 = arith.constant 0 : index
    %c0_10 = arith.constant 0 : index
    %c1_11 = arith.constant 1 : index
    %c0_12 = arith.constant 0 : index
    %5 = vector.load %arg1[%c0_8, %c0_9, %c0_10, %c1_11, %c0_12] : memref<1x4x17x17x8xf32, #tpu.memory_space<vmem>>, vector<1x1x16x16x8xf32>
    %6 = vector.shape_cast %5 : vector<1x1x16x16x8xf32> to vector<16x16x8xf32>
    %7 = arith.addf %4, %6 : vector<16x16x8xf32>
    %c0_13 = arith.constant 0 : index
    %c2 = arith.constant 2 : index
    %c0_14 = arith.constant 0 : index
    %c0_15 = arith.constant 0 : index
    %c0_16 = arith.constant 0 : index
    %8 = vector.load %arg1[%c0_13, %c2, %c0_14, %c0_15, %c0_16] : memref<1x4x17x17x8xf32, #tpu.memory_space<vmem>>, vector<1x1x16x16x8xf32>
    %9 = vector.shape_cast %8 : vector<1x1x16x16x8xf32> to vector<16x16x8xf32>
    %10 = arith.addf %7, %9 : vector<16x16x8xf32>
    %c0_17 = arith.constant 0 : index
    %c3 = arith.constant 3 : index
    %c0_18 = arith.constant 0 : index
    %c0_19 = arith.constant 0 : index
    %c0_20 = arith.constant 0 : index
    %11 = vector.load %arg1[%c0_17, %c3, %c0_18, %c0_19, %c0_20] : memref<1x4x17x17x8xf32, #tpu.memory_space<vmem>>, vector<1x1x16x16x8xf32>
    %12 = vector.shape_cast %11 : vector<1x1x16x16x8xf32> to vector<16x16x8xf32>
    %13 = arith.addf %10, %12 : vector<16x16x8xf32>
    %c0_21 = arith.constant 0 : index
    %c2_22 = arith.constant 2 : index
    %c0_23 = arith.constant 0 : index
    %c1_24 = arith.constant 1 : index
    %c0_25 = arith.constant 0 : index
    %14 = vector.load %arg1[%c0_21, %c2_22, %c0_23, %c1_24, %c0_25] : memref<1x4x17x17x8xf32, #tpu.memory_space<vmem>>, vector<1x1x16x16x8xf32>
    %15 = vector.shape_cast %14 : vector<1x1x16x16x8xf32> to vector<16x16x8xf32>
    %16 = arith.addf %13, %15 : vector<16x16x8xf32>
    %c0_26 = arith.constant 0 : index
    %c0_27 = arith.constant 0 : index
    %c1_28 = arith.constant 1 : index
    %c0_29 = arith.constant 0 : index
    %c0_30 = arith.constant 0 : index
    %17 = vector.load %arg1[%c0_26, %c0_27, %c1_28, %c0_29, %c0_30] : memref<1x4x17x17x8xf32, #tpu.memory_space<vmem>>, vector<1x1x16x16x8xf32>
    %18 = vector.shape_cast %17 : vector<1x1x16x16x8xf32> to vector<16x16x8xf32>
    %19 = arith.addf %16, %18 : vector<16x16x8xf32>
    %c0_31 = arith.constant 0 : index
    %c1_32 = arith.constant 1 : index
    %c1_33 = arith.constant 1 : index
    %c0_34 = arith.constant 0 : index
    %c0_35 = arith.constant 0 : index
    %20 = vector.load %arg1[%c0_31, %c1_32, %c1_33, %c0_34, %c0_35] : memref<1x4x17x17x8xf32, #tpu.memory_space<vmem>>, vector<1x1x16x16x8xf32>
    %21 = vector.shape_cast %20 : vector<1x1x16x16x8xf32> to vector<16x16x8xf32>
    %22 = arith.addf %19, %21 : vector<16x16x8xf32>
    %c0_36 = arith.constant 0 : index
    %c0_37 = arith.constant 0 : index
    %c1_38 = arith.constant 1 : index
    %c1_39 = arith.constant 1 : index
    %c0_40 = arith.constant 0 : index
    %23 = vector.load %arg1[%c0_36, %c0_37, %c1_38, %c1_39, %c0_40] : memref<1x4x17x17x8xf32, #tpu.memory_space<vmem>>, vector<1x1x16x16x8xf32>
    %24 = vector.shape_cast %23 : vector<1x1x16x16x8xf32> to vector<16x16x8xf32>
    %25 = arith.addf %22, %24 : vector<16x16x8xf32>
    %26 = tpu.iota {dimensions = array<i32: 0>} : vector<16x16x8xi32>
    %27 = tpu.iota {dimensions = array<i32: 1>} : vector<16x16x8xi32>
    %c0_i32 = arith.constant 0 : i32
    %28 = vector.broadcast %c0_i32 : i32 to vector<16x16x8xi32>
    %29 = arith.cmpi eq, %26, %28 : vector<16x16x8xi32>
    %cst = arith.constant 2.000000e+00 : f32
    %cst_41 = arith.constant 3.000000e+00 : f32
    %30 = vector.broadcast %cst : f32 to vector<16x16x8xf32>
    %31 = vector.broadcast %cst_41 : f32 to vector<16x16x8xf32>
    %32 = arith.select %29, %30, %31 : vector<16x16x8xi1>, vector<16x16x8xf32>
    %c0_i32_42 = arith.constant 0 : i32
    %33 = vector.broadcast %c0_i32_42 : i32 to vector<16x16x8xi32>
    %34 = arith.cmpi eq, %27, %33 : vector<16x16x8xi32>
    %cst_43 = arith.constant 2.000000e+00 : f32
    %cst_44 = arith.constant 3.000000e+00 : f32
    %35 = vector.broadcast %cst_43 : f32 to vector<16x16x8xf32>
    %36 = vector.broadcast %cst_44 : f32 to vector<16x16x8xf32>
    %37 = arith.select %34, %35, %36 : vector<16x16x8xi1>, vector<16x16x8xf32>
    %38 = arith.mulf %32, %37 : vector<16x16x8xf32>
    %39 = arith.divf %25, %38 : vector<16x16x8xf32>
    %c0_45 = arith.constant 0 : index
    %c0_46 = arith.constant 0 : index
    %c0_47 = arith.constant 0 : index
    %c0_48 = arith.constant 0 : index
    %40 = vector.load %arg2[%c0_45, %c0_46, %c0_47, %c0_48] : memref<1x16x16x8xf32, #tpu.memory_space<vmem>>, vector<1x16x16x8xf32>
    %41 = vector.shape_cast %40 : vector<1x16x16x8xf32> to vector<16x16x8xf32>
    %42 = vector.shape_cast %39 : vector<16x16x8xf32> to vector<1x16x16x8xf32>
    tpu.vector_store %arg2[%c0_45, %c0_46, %c0_47, %c0_48], %42 {strides = array<i32>} : memref<1x16x16x8xf32, #tpu.memory_space<vmem>>, vector<1x16x16x8xf32>,
    return
  }
  func.func @transform_0(%arg0: i32) -> (i32, i32, i32, i32, i32) {
    %c0_i32 = arith.constant 0 : i32
    %c0_i32_0 = arith.constant 0 : i32
    %c0_i32_1 = arith.constant 0 : i32
    %c0_i32_2 = arith.constant 0 : i32
    %c0_i32_3 = arith.constant 0 : i32
    return %arg0, %c0_i32, %c0_i32_0, %c0_i32_1, %c0_i32_2 : i32, i32, i32, i32, i32
  }
  func.func @transform_1(%arg0: i32) -> (i32, i32, i32, i32) {
    %c0_i32 = arith.constant 0 : i32
    %c0_i32_0 = arith.constant 0 : i32
    %c0_i32_1 = arith.constant 0 : i32
    %c0_i32_2 = arith.constant 0 : i32
    return %arg0, %c0_i32, %c0_i32_0, %c0_i32_1 : i32, i32, i32, i32
  }
}

module attributes {stable_mosaic.version = 11 : i64} {
  func.func @kernel(%arg0: i32, %arg1: i32, %arg2: memref<1x9x9x32xbf16, #tpu.memory_space<vmem>>, %arg3: memref<128x128xbf16, #tpu.memory_space<vmem>>, %arg4: memref<1x128xf32, #tpu.memory_space<vmem>>, %arg5: memref<1x64x128xbf16, #tpu.memory_space<vmem>>) attributes {dimension_semantics = [#tpu.dimension_semantics<parallel>, #tpu.dimension_semantics<parallel>], iteration_bounds = array<i64: 2, 1>, scalar_prefetch = 0 : i64, scratch_operands = 0 : i64, tpu.core_type = #tpu.core_type<tc>, window_params = [{transform_indices = @transform_0, window_bounds = array<i64: 1, 9, 9, 32>}, {pipeline_mode = #tpu.pipeline_mode<synchronous>, transform_indices = @transform_1, window_bounds = array<i64: 128, 128>}, {pipeline_mode = #tpu.pipeline_mode<synchronous>, transform_indices = @transform_2, window_bounds = array<i64: 1, 128>}, {transform_indices = @transform_3, window_bounds = array<i64: 1, 64, 128>}]} {
    %c0 = arith.constant 0 : index
    %c0_0 = arith.constant 0 : index
    %c0_1 = arith.constant 0 : index
    %c0_2 = arith.constant 0 : index
    %0 = vector.load %arg2[%c0, %c0_0, %c0_1, %c0_2] : memref<1x9x9x32xbf16, #tpu.memory_space<vmem>>, vector<1x8x8x32xbf16>
    %1 = vector.shape_cast %0 : vector<1x8x8x32xbf16> to vector<8x8x32xbf16>
    %c0_3 = arith.constant 0 : index
    %c0_4 = arith.constant 0 : index
    %c1 = arith.constant 1 : index
    %c0_5 = arith.constant 0 : index
    %2 = vector.load %arg2[%c0_3, %c0_4, %c1, %c0_5] : memref<1x9x9x32xbf16, #tpu.memory_space<vmem>>, vector<1x8x8x32xbf16>
    %3 = vector.shape_cast %2 : vector<1x8x8x32xbf16> to vector<8x8x32xbf16>
    %c0_6 = arith.constant 0 : index
    %c1_7 = arith.constant 1 : index
    %c0_8 = arith.constant 0 : index
    %c0_9 = arith.constant 0 : index
    %4 = vector.load %arg2[%c0_6, %c1_7, %c0_8, %c0_9] : memref<1x9x9x32xbf16, #tpu.memory_space<vmem>>, vector<1x8x8x32xbf16>
    %5 = vector.shape_cast %4 : vector<1x8x8x32xbf16> to vector<8x8x32xbf16>
    %c0_10 = arith.constant 0 : index
    %c1_11 = arith.constant 1 : index
    %c1_12 = arith.constant 1 : index
    %c0_13 = arith.constant 0 : index
    %6 = vector.load %arg2[%c0_10, %c1_11, %c1_12, %c0_13] : memref<1x9x9x32xbf16, #tpu.memory_space<vmem>>, vector<1x8x8x32xbf16>
    %7 = vector.shape_cast %6 : vector<1x8x8x32xbf16> to vector<8x8x32xbf16>
    %8 = tpu.concatenate %1, %3, %5, %7 in 2 : vector<8x8x32xbf16>, vector<8x8x32xbf16>, vector<8x8x32xbf16>, vector<8x8x32xbf16> -> vector<8x8x128xbf16>
    %9 = vector.shape_cast %8 : vector<8x8x128xbf16> to vector<64x128xbf16>
    %c0_14 = arith.constant 0 : index
    %c0_15 = arith.constant 0 : index
    %10 = vector.load %arg3[%c0_14, %c0_15] : memref<128x128xbf16, #tpu.memory_space<vmem>>, vector<128x128xbf16>
    %cst = arith.constant dense<0.000000e+00> : vector<64x128xf32>
    %11 = tpu.matmul %9, %10, %cst {dimension_numbers = #tpu.dot_dimension_numbers<[1], [0], [0], [1], [0, 0, 1, 1], [], []>} : vector<64x128xbf16>, vector<128x128xbf16>, vector<64x128xf32> -> vector<64x128xf32>
    %c0_16 = arith.constant 0 : index
    %c0_17 = arith.constant 0 : index
    %12 = vector.load %arg4[%c0_16, %c0_17] : memref<1x128xf32, #tpu.memory_space<vmem>>, vector<1x128xf32>
    %13 = vector.broadcast %12 : vector<1x128xf32> to vector<64x128xf32>
    %14 = arith.addf %11, %13 : vector<64x128xf32>
    %cst_18 = arith.constant 0.000000e+00 : f32
    %15 = vector.broadcast %cst_18 : f32 to vector<64x128xf32>
    %16 = arith.cmpf oge, %14, %15 : vector<64x128xf32>
    %cst_19 = arith.constant 2.000000e-01 : f32
    %17 = vector.broadcast %cst_19 : f32 to vector<64x128xf32>
    %18 = arith.mulf %14, %17 : vector<64x128xf32>
    %19 = arith.select %16, %14, %18 : vector<64x128xi1>, vector<64x128xf32>
    %20 = arith.truncf %19 : vector<64x128xf32> to vector<64x128xbf16>
    %c0_20 = arith.constant 0 : index
    %c0_21 = arith.constant 0 : index
    %c0_22 = arith.constant 0 : index
    %21 = vector.load %arg5[%c0_20, %c0_21, %c0_22] : memref<1x64x128xbf16, #tpu.memory_space<vmem>>, vector<1x64x128xbf16>
    %22 = vector.shape_cast %21 : vector<1x64x128xbf16> to vector<64x128xbf16>
    %23 = vector.shape_cast %20 : vector<64x128xbf16> to vector<1x64x128xbf16>
    tpu.vector_store %arg5[%c0_20, %c0_21, %c0_22], %23 {strides = array<i32>} : memref<1x64x128xbf16, #tpu.memory_space<vmem>>, vector<1x64x128xbf16>,
    return
  }
  func.func @transform_0(%arg0: i32, %arg1: i32) -> (i32, i32, i32, i32) {
    %c0_i32 = arith.constant 0 : i32
    %c0_i32_0 = arith.constant 0 : i32
    %c0_i32_1 = arith.constant 0 : i32
    %c0_i32_2 = arith.constant 0 : i32
    return %arg0, %c0_i32, %c0_i32_0, %c0_i32_1 : i32, i32, i32, i32
  }
  func.func @transform_1(%arg0: i32, %arg1: i32) -> (i32, i32) {
    %c0_i32 = arith.constant 0 : i32
    %c0_i32_0 = arith.constant 0 : i32
    %c0_i32_1 = arith.constant 0 : i32
    return %c0_i32, %c0_i32_0 : i32, i32
  }
  func.func @transform_2(%arg0: i32, %arg1: i32) -> (i32, i32) {
    %c0_i32 = arith.constant 0 : i32
    %c0_i32_0 = arith.constant 0 : i32
    %c0_i32_1 = arith.constant 0 : i32
    return %c0_i32, %c0_i32_0 : i32, i32
  }
  func.func @transform_3(%arg0: i32, %arg1: i32) -> (i32, i32, i32) {
    %c0_i32 = arith.constant 0 : i32
    %c0_i32_0 = arith.constant 0 : i32
    return %arg0, %arg1, %c0_i32 : i32, i32, i32
  }
}

module attributes {stable_mosaic.version = 11 : i64} {
  func.func @kernel(%arg0: i32, %arg1: i32, %arg2: memref<1x3x3x512xbf16, #tpu.memory_space<vmem>>, %arg3: memref<2048x128xbf16, #tpu.memory_space<vmem>>, %arg4: memref<1x128xf32, #tpu.memory_space<vmem>>, %arg5: memref<1x4x128xbf16, #tpu.memory_space<vmem>>) attributes {dimension_semantics = [#tpu.dimension_semantics<parallel>, #tpu.dimension_semantics<parallel>], iteration_bounds = array<i64: 2, 1>, scalar_prefetch = 0 : i64, scratch_operands = 0 : i64, tpu.core_type = #tpu.core_type<tc>, window_params = [{transform_indices = @transform_0, window_bounds = array<i64: 1, 3, 3, 512>}, {pipeline_mode = #tpu.pipeline_mode<synchronous>, transform_indices = @transform_1, window_bounds = array<i64: 2048, 128>}, {pipeline_mode = #tpu.pipeline_mode<synchronous>, transform_indices = @transform_2, window_bounds = array<i64: 1, 128>}, {transform_indices = @transform_3, window_bounds = array<i64: 1, 4, 128>}]} {
    %c0 = arith.constant 0 : index
    %c0_0 = arith.constant 0 : index
    %c0_1 = arith.constant 0 : index
    %c0_2 = arith.constant 0 : index
    %0 = vector.load %arg2[%c0, %c0_0, %c0_1, %c0_2] : memref<1x3x3x512xbf16, #tpu.memory_space<vmem>>, vector<1x2x2x512xbf16>
    %1 = vector.shape_cast %0 : vector<1x2x2x512xbf16> to vector<2x2x512xbf16>
    %c0_3 = arith.constant 0 : index
    %c0_4 = arith.constant 0 : index
    %c1 = arith.constant 1 : index
    %c0_5 = arith.constant 0 : index
    %2 = vector.load %arg2[%c0_3, %c0_4, %c1, %c0_5] : memref<1x3x3x512xbf16, #tpu.memory_space<vmem>>, vector<1x2x2x512xbf16>
    %3 = vector.shape_cast %2 : vector<1x2x2x512xbf16> to vector<2x2x512xbf16>
    %c0_6 = arith.constant 0 : index
    %c1_7 = arith.constant 1 : index
    %c0_8 = arith.constant 0 : index
    %c0_9 = arith.constant 0 : index
    %4 = vector.load %arg2[%c0_6, %c1_7, %c0_8, %c0_9] : memref<1x3x3x512xbf16, #tpu.memory_space<vmem>>, vector<1x2x2x512xbf16>
    %5 = vector.shape_cast %4 : vector<1x2x2x512xbf16> to vector<2x2x512xbf16>
    %c0_10 = arith.constant 0 : index
    %c1_11 = arith.constant 1 : index
    %c1_12 = arith.constant 1 : index
    %c0_13 = arith.constant 0 : index
    %6 = vector.load %arg2[%c0_10, %c1_11, %c1_12, %c0_13] : memref<1x3x3x512xbf16, #tpu.memory_space<vmem>>, vector<1x2x2x512xbf16>
    %7 = vector.shape_cast %6 : vector<1x2x2x512xbf16> to vector<2x2x512xbf16>
    %8 = tpu.concatenate %1, %3, %5, %7 in 2 : vector<2x2x512xbf16>, vector<2x2x512xbf16>, vector<2x2x512xbf16>, vector<2x2x512xbf16> -> vector<2x2x2048xbf16>
    %9 = vector.shape_cast %8 : vector<2x2x2048xbf16> to vector<4x2048xbf16>
    %c0_14 = arith.constant 0 : index
    %c0_15 = arith.constant 0 : index
    %10 = vector.load %arg3[%c0_14, %c0_15] : memref<2048x128xbf16, #tpu.memory_space<vmem>>, vector<2048x128xbf16>
    %cst = arith.constant dense<0.000000e+00> : vector<4x128xf32>
    %11 = tpu.matmul %9, %10, %cst {dimension_numbers = #tpu.dot_dimension_numbers<[1], [0], [0], [1], [0, 0, 1, 1], [], []>} : vector<4x2048xbf16>, vector<2048x128xbf16>, vector<4x128xf32> -> vector<4x128xf32>
    %c0_16 = arith.constant 0 : index
    %c0_17 = arith.constant 0 : index
    %12 = vector.load %arg4[%c0_16, %c0_17] : memref<1x128xf32, #tpu.memory_space<vmem>>, vector<1x128xf32>
    %13 = vector.broadcast %12 : vector<1x128xf32> to vector<4x128xf32>
    %14 = arith.addf %11, %13 : vector<4x128xf32>
    %cst_18 = arith.constant 0.000000e+00 : f32
    %15 = vector.broadcast %cst_18 : f32 to vector<4x128xf32>
    %16 = arith.cmpf oge, %14, %15 : vector<4x128xf32>
    %cst_19 = arith.constant 2.000000e-01 : f32
    %17 = vector.broadcast %cst_19 : f32 to vector<4x128xf32>
    %18 = arith.mulf %14, %17 : vector<4x128xf32>
    %19 = arith.select %16, %14, %18 : vector<4x128xi1>, vector<4x128xf32>
    %20 = arith.truncf %19 : vector<4x128xf32> to vector<4x128xbf16>
    %c0_20 = arith.constant 0 : index
    %c0_21 = arith.constant 0 : index
    %c0_22 = arith.constant 0 : index
    %21 = vector.load %arg5[%c0_20, %c0_21, %c0_22] : memref<1x4x128xbf16, #tpu.memory_space<vmem>>, vector<1x4x128xbf16>
    %22 = vector.shape_cast %21 : vector<1x4x128xbf16> to vector<4x128xbf16>
    %23 = vector.shape_cast %20 : vector<4x128xbf16> to vector<1x4x128xbf16>
    tpu.vector_store %arg5[%c0_20, %c0_21, %c0_22], %23 {strides = array<i32>} : memref<1x4x128xbf16, #tpu.memory_space<vmem>>, vector<1x4x128xbf16>,
    return
  }
  func.func @transform_0(%arg0: i32, %arg1: i32) -> (i32, i32, i32, i32) {
    %c0_i32 = arith.constant 0 : i32
    %c0_i32_0 = arith.constant 0 : i32
    %c0_i32_1 = arith.constant 0 : i32
    %c0_i32_2 = arith.constant 0 : i32
    return %arg0, %c0_i32, %c0_i32_0, %c0_i32_1 : i32, i32, i32, i32
  }
  func.func @transform_1(%arg0: i32, %arg1: i32) -> (i32, i32) {
    %c0_i32 = arith.constant 0 : i32
    %c0_i32_0 = arith.constant 0 : i32
    %c0_i32_1 = arith.constant 0 : i32
    return %c0_i32, %c0_i32_0 : i32, i32
  }
  func.func @transform_2(%arg0: i32, %arg1: i32) -> (i32, i32) {
    %c0_i32 = arith.constant 0 : i32
    %c0_i32_0 = arith.constant 0 : i32
    %c0_i32_1 = arith.constant 0 : i32
    return %c0_i32, %c0_i32_0 : i32, i32
  }
  func.func @transform_3(%arg0: i32, %arg1: i32) -> (i32, i32, i32) {
    %c0_i32 = arith.constant 0 : i32
    %c0_i32_0 = arith.constant 0 : i32
    return %arg0, %arg1, %c0_i32 : i32, i32, i32
  }
}

module attributes {stable_mosaic.version = 11 : i64} {
  func.func @kernel(%arg0: i32, %arg1: i32, %arg2: memref<1x4x4x128xbf16, #tpu.memory_space<vmem>>, %arg3: memref<2048x128xbf16, #tpu.memory_space<vmem>>, %arg4: memref<1x128xf32, #tpu.memory_space<vmem>>, %arg5: memref<1x1x128xf32, #tpu.memory_space<vmem>>) attributes {dimension_semantics = [#tpu.dimension_semantics<parallel>, #tpu.dimension_semantics<parallel>], iteration_bounds = array<i64: 2, 1>, scalar_prefetch = 0 : i64, scratch_operands = 0 : i64, tpu.core_type = #tpu.core_type<tc>, window_params = [{transform_indices = @transform_0, window_bounds = array<i64: 1, 4, 4, 128>}, {pipeline_mode = #tpu.pipeline_mode<synchronous>, transform_indices = @transform_1, window_bounds = array<i64: 2048, 128>}, {pipeline_mode = #tpu.pipeline_mode<synchronous>, transform_indices = @transform_2, window_bounds = array<i64: 1, 128>}, {transform_indices = @transform_3, window_bounds = array<i64: 1, 1, 128>}]} {
    %c0 = arith.constant 0 : index
    %c0_0 = arith.constant 0 : index
    %c0_1 = arith.constant 0 : index
    %c0_2 = arith.constant 0 : index
    %0 = vector.load %arg2[%c0, %c0_0, %c0_1, %c0_2] : memref<1x4x4x128xbf16, #tpu.memory_space<vmem>>, vector<1x1x1x128xbf16>
    %1 = vector.shape_cast %0 : vector<1x1x1x128xbf16> to vector<1x1x128xbf16>
    %c0_3 = arith.constant 0 : index
    %c0_4 = arith.constant 0 : index
    %c1 = arith.constant 1 : index
    %c0_5 = arith.constant 0 : index
    %2 = vector.load %arg2[%c0_3, %c0_4, %c1, %c0_5] : memref<1x4x4x128xbf16, #tpu.memory_space<vmem>>, vector<1x1x1x128xbf16>
    %3 = vector.shape_cast %2 : vector<1x1x1x128xbf16> to vector<1x1x128xbf16>
    %c0_6 = arith.constant 0 : index
    %c0_7 = arith.constant 0 : index
    %c2 = arith.constant 2 : index
    %c0_8 = arith.constant 0 : index
    %4 = vector.load %arg2[%c0_6, %c0_7, %c2, %c0_8] : memref<1x4x4x128xbf16, #tpu.memory_space<vmem>>, vector<1x1x1x128xbf16>
    %5 = vector.shape_cast %4 : vector<1x1x1x128xbf16> to vector<1x1x128xbf16>
    %c0_9 = arith.constant 0 : index
    %c0_10 = arith.constant 0 : index
    %c3 = arith.constant 3 : index
    %c0_11 = arith.constant 0 : index
    %6 = vector.load %arg2[%c0_9, %c0_10, %c3, %c0_11] : memref<1x4x4x128xbf16, #tpu.memory_space<vmem>>, vector<1x1x1x128xbf16>
    %7 = vector.shape_cast %6 : vector<1x1x1x128xbf16> to vector<1x1x128xbf16>
    %c0_12 = arith.constant 0 : index
    %c1_13 = arith.constant 1 : index
    %c0_14 = arith.constant 0 : index
    %c0_15 = arith.constant 0 : index
    %8 = vector.load %arg2[%c0_12, %c1_13, %c0_14, %c0_15] : memref<1x4x4x128xbf16, #tpu.memory_space<vmem>>, vector<1x1x1x128xbf16>
    %9 = vector.shape_cast %8 : vector<1x1x1x128xbf16> to vector<1x1x128xbf16>
    %c0_16 = arith.constant 0 : index
    %c1_17 = arith.constant 1 : index
    %c1_18 = arith.constant 1 : index
    %c0_19 = arith.constant 0 : index
    %10 = vector.load %arg2[%c0_16, %c1_17, %c1_18, %c0_19] : memref<1x4x4x128xbf16, #tpu.memory_space<vmem>>, vector<1x1x1x128xbf16>
    %11 = vector.shape_cast %10 : vector<1x1x1x128xbf16> to vector<1x1x128xbf16>
    %c0_20 = arith.constant 0 : index
    %c1_21 = arith.constant 1 : index
    %c2_22 = arith.constant 2 : index
    %c0_23 = arith.constant 0 : index
    %12 = vector.load %arg2[%c0_20, %c1_21, %c2_22, %c0_23] : memref<1x4x4x128xbf16, #tpu.memory_space<vmem>>, vector<1x1x1x128xbf16>
    %13 = vector.shape_cast %12 : vector<1x1x1x128xbf16> to vector<1x1x128xbf16>
    %c0_24 = arith.constant 0 : index
    %c1_25 = arith.constant 1 : index
    %c3_26 = arith.constant 3 : index
    %c0_27 = arith.constant 0 : index
    %14 = vector.load %arg2[%c0_24, %c1_25, %c3_26, %c0_27] : memref<1x4x4x128xbf16, #tpu.memory_space<vmem>>, vector<1x1x1x128xbf16>
    %15 = vector.shape_cast %14 : vector<1x1x1x128xbf16> to vector<1x1x128xbf16>
    %c0_28 = arith.constant 0 : index
    %c2_29 = arith.constant 2 : index
    %c0_30 = arith.constant 0 : index
    %c0_31 = arith.constant 0 : index
    %16 = vector.load %arg2[%c0_28, %c2_29, %c0_30, %c0_31] : memref<1x4x4x128xbf16, #tpu.memory_space<vmem>>, vector<1x1x1x128xbf16>
    %17 = vector.shape_cast %16 : vector<1x1x1x128xbf16> to vector<1x1x128xbf16>
    %c0_32 = arith.constant 0 : index
    %c2_33 = arith.constant 2 : index
    %c1_34 = arith.constant 1 : index
    %c0_35 = arith.constant 0 : index
    %18 = vector.load %arg2[%c0_32, %c2_33, %c1_34, %c0_35] : memref<1x4x4x128xbf16, #tpu.memory_space<vmem>>, vector<1x1x1x128xbf16>
    %19 = vector.shape_cast %18 : vector<1x1x1x128xbf16> to vector<1x1x128xbf16>
    %c0_36 = arith.constant 0 : index
    %c2_37 = arith.constant 2 : index
    %c2_38 = arith.constant 2 : index
    %c0_39 = arith.constant 0 : index
    %20 = vector.load %arg2[%c0_36, %c2_37, %c2_38, %c0_39] : memref<1x4x4x128xbf16, #tpu.memory_space<vmem>>, vector<1x1x1x128xbf16>
    %21 = vector.shape_cast %20 : vector<1x1x1x128xbf16> to vector<1x1x128xbf16>
    %c0_40 = arith.constant 0 : index
    %c2_41 = arith.constant 2 : index
    %c3_42 = arith.constant 3 : index
    %c0_43 = arith.constant 0 : index
    %22 = vector.load %arg2[%c0_40, %c2_41, %c3_42, %c0_43] : memref<1x4x4x128xbf16, #tpu.memory_space<vmem>>, vector<1x1x1x128xbf16>
    %23 = vector.shape_cast %22 : vector<1x1x1x128xbf16> to vector<1x1x128xbf16>
    %c0_44 = arith.constant 0 : index
    %c3_45 = arith.constant 3 : index
    %c0_46 = arith.constant 0 : index
    %c0_47 = arith.constant 0 : index
    %24 = vector.load %arg2[%c0_44, %c3_45, %c0_46, %c0_47] : memref<1x4x4x128xbf16, #tpu.memory_space<vmem>>, vector<1x1x1x128xbf16>
    %25 = vector.shape_cast %24 : vector<1x1x1x128xbf16> to vector<1x1x128xbf16>
    %c0_48 = arith.constant 0 : index
    %c3_49 = arith.constant 3 : index
    %c1_50 = arith.constant 1 : index
    %c0_51 = arith.constant 0 : index
    %26 = vector.load %arg2[%c0_48, %c3_49, %c1_50, %c0_51] : memref<1x4x4x128xbf16, #tpu.memory_space<vmem>>, vector<1x1x1x128xbf16>
    %27 = vector.shape_cast %26 : vector<1x1x1x128xbf16> to vector<1x1x128xbf16>
    %c0_52 = arith.constant 0 : index
    %c3_53 = arith.constant 3 : index
    %c2_54 = arith.constant 2 : index
    %c0_55 = arith.constant 0 : index
    %28 = vector.load %arg2[%c0_52, %c3_53, %c2_54, %c0_55] : memref<1x4x4x128xbf16, #tpu.memory_space<vmem>>, vector<1x1x1x128xbf16>
    %29 = vector.shape_cast %28 : vector<1x1x1x128xbf16> to vector<1x1x128xbf16>
    %c0_56 = arith.constant 0 : index
    %c3_57 = arith.constant 3 : index
    %c3_58 = arith.constant 3 : index
    %c0_59 = arith.constant 0 : index
    %30 = vector.load %arg2[%c0_56, %c3_57, %c3_58, %c0_59] : memref<1x4x4x128xbf16, #tpu.memory_space<vmem>>, vector<1x1x1x128xbf16>
    %31 = vector.shape_cast %30 : vector<1x1x1x128xbf16> to vector<1x1x128xbf16>
    %32 = tpu.concatenate %1, %3, %5, %7, %9, %11, %13, %15, %17, %19, %21, %23, %25, %27, %29, %31 in 2 : vector<1x1x128xbf16>, vector<1x1x128xbf16>, vector<1x1x128xbf16>, vector<1x1x128xbf16>, vector<1x1x128xbf16>, vector<1x1x128xbf16>, vector<1x1x128xbf16>, vector<1x1x128xbf16>, vector<1x1x128xbf16>, vector<1x1x128xbf16>, vector<1x1x128xbf16>, vector<1x1x128xbf16>, vector<1x1x128xbf16>, vector<1x1x128xbf16>, vector<1x1x128xbf16>, vector<1x1x128xbf16> -> vector<1x1x2048xbf16>
    %33 = vector.shape_cast %32 : vector<1x1x2048xbf16> to vector<1x2048xbf16>
    %c0_60 = arith.constant 0 : index
    %c0_61 = arith.constant 0 : index
    %34 = vector.load %arg3[%c0_60, %c0_61] : memref<2048x128xbf16, #tpu.memory_space<vmem>>, vector<2048x128xbf16>
    %cst = arith.constant dense<0.000000e+00> : vector<1x128xf32>
    %35 = tpu.matmul %33, %34, %cst {dimension_numbers = #tpu.dot_dimension_numbers<[1], [0], [0], [1], [0, 0, 1, 1], [], []>} : vector<1x2048xbf16>, vector<2048x128xbf16>, vector<1x128xf32> -> vector<1x128xf32>
    %c0_62 = arith.constant 0 : index
    %c0_63 = arith.constant 0 : index
    %36 = vector.load %arg4[%c0_62, %c0_63] : memref<1x128xf32, #tpu.memory_space<vmem>>, vector<1x128xf32>
    %37 = arith.addf %35, %36 : vector<1x128xf32>
    %c0_64 = arith.constant 0 : index
    %c0_65 = arith.constant 0 : index
    %c0_66 = arith.constant 0 : index
    %38 = vector.load %arg5[%c0_64, %c0_65, %c0_66] : memref<1x1x128xf32, #tpu.memory_space<vmem>>, vector<1x1x128xf32>
    %39 = vector.shape_cast %38 : vector<1x1x128xf32> to vector<1x128xf32>
    %40 = vector.shape_cast %37 : vector<1x128xf32> to vector<1x1x128xf32>
    tpu.vector_store %arg5[%c0_64, %c0_65, %c0_66], %40 {strides = array<i32>} : memref<1x1x128xf32, #tpu.memory_space<vmem>>, vector<1x1x128xf32>,
    return
  }
  func.func @transform_0(%arg0: i32, %arg1: i32) -> (i32, i32, i32, i32) {
    %c0_i32 = arith.constant 0 : i32
    %c0_i32_0 = arith.constant 0 : i32
    %c0_i32_1 = arith.constant 0 : i32
    %c0_i32_2 = arith.constant 0 : i32
    return %arg0, %c0_i32, %c0_i32_0, %c0_i32_1 : i32, i32, i32, i32
  }
  func.func @transform_1(%arg0: i32, %arg1: i32) -> (i32, i32) {
    %c0_i32 = arith.constant 0 : i32
    %c0_i32_0 = arith.constant 0 : i32
    %c0_i32_1 = arith.constant 0 : i32
    return %c0_i32, %c0_i32_0 : i32, i32
  }
  func.func @transform_2(%arg0: i32, %arg1: i32) -> (i32, i32) {
    %c0_i32 = arith.constant 0 : i32
    %c0_i32_0 = arith.constant 0 : i32
    %c0_i32_1 = arith.constant 0 : i32
    return %c0_i32, %c0_i32_0 : i32, i32
  }
  func.func @transform_3(%arg0: i32, %arg1: i32) -> (i32, i32, i32) {
    %c0_i32 = arith.constant 0 : i32
    %c0_i32_0 = arith.constant 0 : i32
    return %arg0, %arg1, %c0_i32 : i32, i32, i32
  }
}

</mosaic_0001>

<bundles_post_ra>
// kernel: multiscale_discriminator_pallas.9
= control target key start
LH: loop header
LB: loop body
LE: loop exit
PB: predicated region body
PF: predicated region fallthrough
CT: control target
= control target key end

     0   :  { %s2239_s12 = smov 0   ;;  %s2241_s13 = smov 0   ;;  %s2657_s0 = inlined_call_operand.vmem [shape: bf16[2,17,17,32], index: 0, kind: input, shape index: {}]   ;;  %s2658_s1 = inlined_call_operand.vmem [shape: bf16[128,128], index: 1, kind: input, shape index: {}]   ;;  %s2659_s2 = inlined_call_operand.vmem [shape: f32[1,128], index: 2, kind: input, shape index: {}]   ;;  %s2660_s3 = inlined_call_operand.vmem [shape: bf16[2,256,128], index: 3, kind: output, shape index: {}]  }
   0x1   :  { %s2243_s14 = smov 0  }
   0x2 LB: > { %s25_s15 = sadd.s32 1, %s2210_s13  ;;  %p1717_p0 = scmp.ge.s32.totalorder %s2214_s14, 1  ;;  %s2214_s14 = sphi %s2243_s14, %s13_s14   ;;  %s2210_s13 = sphi %s2241_s13, %s2662_s13   ;;  %s2206_s12 = sphi %s2239_s12, %s2661_s12  }
   0x3   : > { %p27_p1 = scmp.ge.s32.totalorder %s25_s15, 2  ;;  %p151_p2 = scmp.lt.s32.totalorder %s2214_s14, 3 }
   0x5   : > { %s2664_s15 = smov (%p27_p1, %s25_s15), 0  ;;  %p152_p3 = pnand %p1717_p0, %p151_p2 }
   0x6   : > { %p179_p4 = scmp.lt.s32.totalorder (!%p152_p3), %s2206_s12, 1  ;;  %v2184_v0 = vld [vmem:[%s2658_s1] sm:$0xff] (!%p152_p3)   ;;  %v2185_v1 = vld [vmem:[%s2658_s1 + $0x8] sm:$0xff] (!%p152_p3)   ;;  %v2186_v2 = vld [vmem:[%s2658_s1 + $0x10] sm:$0xff] (!%p152_p3)   ;;  %vm420_vm0 = vsmask.f32 (!%p152_p3), 7424 }
   0x7   : > { %155 = sbr.rel (%p152_p3) target bundleno = 454 (0x1c6), region = 32  ;;  %2028 = vmatprep.subr.bf16.mxu0 (!%p152_p3), %v2184_v0  ;;  %2076 = vmatprep.subr.bf16.mxu1 (!%p152_p3), %v2184_v0  ;;  %v2187_v4 = vld [vmem:[%s2658_s1 + $0x18] sm:$0xff] (!%p152_p3)   ;;  %s2216_s28 = smov (!%p152_p3), 64   ;;  %v2188_v12 = vld [vmem:[%s2658_s1 + $0x20] sm:$0xff] (!%p152_p3)   ;;  %vm1029_vm1 = vcmask (!%p152_p3), 261120   ;;  %vm1095_vm2 = vcmask (!%p152_p3), 785408  }
   0x8   : > { %2029 = vmatpush3.bf16.msra.mxu0 (!%p152_p3), %v2184_v0  ;;  %2084 = vmatpush3.bf16.msra.mxu1 (!%p152_p3), %v2184_v0  ;;  %s2217_s4 = smov (!%p152_p3), 32   ;;  %s2218_s5 = smov (!%p152_p3), 96   ;;  %vm1062_vm3 = vcmask (!%p152_p3), 523264  }
   0x9   : > { %2030 = vmatprep.subr.bf16.mxu0 (!%p152_p3), %v2185_v1  ;;  %2077 = vmatprep.subr.bf16.mxu1 (!%p152_p3), %v2185_v1 }
   0xc   : > { %2031 = vmatpush3.bf16.msra.mxu0 (!%p152_p3), %v2185_v1  ;;  %2085 = vmatpush3.bf16.msra.mxu1 (!%p152_p3), %v2185_v1 }
   0xd   : > { %2032 = vmatprep.subr.bf16.mxu0 (!%p152_p3), %v2186_v2  ;;  %2078 = vmatprep.subr.bf16.mxu1 (!%p152_p3), %v2186_v2 }
   0xe   : > { %s2666_s12 = smov (!%p179_p4, %s2206_s12), 1 }
   0xf   : > { %s2092_s20 = smul.u32 204, %s2666_s12  ;;  %s1876_s18 = sshll.u32 %s2666_s12, 7 }
  0x10   : > { %2033 = vmatpush3.bf16.msra.mxu0 %v2186_v2  ;;  %2086 = vmatpush3.bf16.msra.mxu1 %v2186_v2  ;;  %s2602_s21 = scalar_lea.vmem %s2660_s3, %s1876_s18 }
  0x11   : > { %s2272_s25 = scalar_lea.vmem %s2657_s0, %s2092_s20  ;;  %2034 = vmatprep.subr.bf16.mxu0 %v2187_v4  ;;  %2079 = vmatprep.subr.bf16.mxu1 %v2187_v4 }
  0x12   : > { %v2275_v3 = vld [vmem:[%s2272_s25 + $0x6c] sm:$0xff]   ;;  %v2287_v7 = vld [vmem:[%s2272_s25 + $0x78] sm:$0xff]   ;;  %v2125_v14 = vld [vmem:[%s2272_s25 + $0x14] ss:$0 sps:$4 sm:$0x11]  }
  0x13   : > { %v2281_v5 = vld [vmem:[%s2272_s25 + $0xc] sm:$0xff]   ;;  %741 = vrot.lane.b32.xlu1 %v2275_v3, %s2216_s28  ;;  %v904_v6 = vshll.u32 %v2275_v3, 16  ;;  %v2293_v9 = vld [vmem:[%s2272_s25 + $0x18] sm:$0xff]   ;;  %v916_v10 = vshll.u32 %v2287_v7, 16  ;;  %v441_v17 = vshll.u32 %v2125_v14, 16  ;;  %v2311_v18 = vld [vmem:[%s2272_s25] sm:$0xff]  }
  0x14   : > { %725 = vrot.lane.b32.xlu0 %v2281_v5, %s2216_s28  ;;  %v808_v8 = vshll.u32 %v2281_v5, 16  ;;  %v2297_v11 = vld [vmem:[%s2272_s25 + $0xc] sm:$0xff]   ;;  %v820_v13 = vshll.u32 %v2293_v9, 16  ;;  %v2127_v20 = vld [vmem:[%s2272_s25 + $0x8] ss:$0 sps:$4 sm:$0x11]   ;;  %2035 = vmatpush3.bf16.msra.mxu0 %v2187_v4 }
  0x15   : > { %v434_v15 = vshrl.u32 %v2297_v11, 16  ;;  %v436_v16 = vshll.u32 %v2297_v11, 16  ;;  %v443_v21 = vrot.slane %v441_v17, 1  ;;  %v422_v22 = vshrl.u32 %v2311_v18, 16  ;;  %v2317_v24 = vld [vmem:[%s2272_s25 + $0x6c] sm:$0xff]   ;;  %2087 = vmatpush3.bf16.msra.mxu1 %v2187_v4  ;;  %2036 = vmatprep.subr.bf16.mxu0 %v2188_v12  ;;  %v2323_v31 = vld [vmem:[%s2272_s25 + $0x60] sm:$0xff]  }
  0x16   : > { %v424_v23 = vshll.u32 %v2311_v18, 16  ;;  %v429_v26 = vshll.u32 %v2127_v20, 16  ;;  %v2129_v27 = vld [vmem:[%s2272_s25 + $0x74] ss:$0 sps:$4 sm:$0x11]   ;;  %2080 = vmatprep.subr.bf16.mxu1 %v2188_v12  ;;  %v530_v29 = vshrl.u32 %v2317_v24, 16 }
  0x17   : > { %743 = vrot.lane.b32.xlu1 %v2287_v7, %s2216_s28  ;;  %v438_v19 = vrot.slane %v436_v16, 1  ;;  %v532_v30 = vshll.u32 %v2317_v24, 16  ;;  %v537_v34 = vshll.u32 %v2129_v27, 16  ;;  %v2131_v37 = vld [vmem:[%s2272_s25 + $0x68] ss:$0 sps:$4 sm:$0x11]  }
  0x18   : > { %727 = vrot.lane.b32.xlu0 %v2293_v9, %s2216_s28  ;;  %v426_v28 = vrot.slane %v424_v23, 1  ;;  %v431_v33 = vrot.slane %v429_v26, 1  ;;  %v518_v38 = vshrl.u32 %v2323_v31, 16  ;;  %v520_v39 = vshll.u32 %v2323_v31, 16  ;;  %2037 = vmatpush3.bf16.msra.mxu0 %v2188_v12  ;;  %v2340_v58 = vld [vmem:[%s2272_s25 + $0x78] sm:$0xff]   ;;  %v2358_v16 = vld [vmem:[%s2272_s25 + $0x84] sm:$0xff]  }
  0x19   : > { %v439_v25 = vor.u32 %v438_v19, %v434_v15  ;;  %v534_v36 = vrot.slane %v532_v30, 1  ;;  %v539_v40 = vrot.slane %v537_v34, 1  ;;  %v2132_v41 = vld [vmem:[%s2272_s25 + $0x74] ss:$0 sps:$4 sm:$0x11]   ;;  %v902_v42 = vshrl.u32 %v2275_v3, 16  ;;  %2088 = vmatpush3.bf16.msra.mxu1 %v2188_v12 }
  0x1a   : > { %v427_v35 = vor.u32 %v426_v28, %v422_v22  ;;  %v906_v43 = vrot.slane %v904_v6, 1  ;;  %v522_v46 = vrot.slane %v520_v39, 1  ;;  %v525_v47 = vshll.u32 %v2131_v37, 16  ;;  %v2133_v50 = vld [vmem:[%s2272_s25 + $0x14] ss:$0 sps:$4 sm:$0x11]  }
  0x1b   : > { %v444_v32 = vsel %vm420_vm0, %v439_v25, %v443_v21  ;;  %v535_v45 = vor.u32 %v534_v36, %v530_v29  ;;  %v909_v49 = vshll.u32 %v2132_v41, 16  ;;  %v806_v51 = vshrl.u32 %v2281_v5, 16  ;;  %v2134_v56 = vld [vmem:[%s2272_s25 + $0x80] ss:$0 sps:$4 sm:$0x11]   ;;  %v2346_v63 = vld [vmem:[%s2272_s25 + $0x18] sm:$0xff]  }
  0x1c   : > { %615 = vrot.lane.b32.xlu1 %v444_v32, %s2217_s4  ;;  %v432_v44 = vsel %vm420_vm0, %v427_v35, %v431_v33  ;;  %v907_v48 = vor.u32 %v906_v43, %v902_v42  ;;  %v810_v52 = vrot.slane %v808_v8, 1  ;;  %v523_v54 = vor.u32 %v522_v46, %v518_v38  ;;  %v2135_v2 = vld [vmem:[%s2272_s25 + $0x20] ss:$0 sps:$4 sm:$0x11]   ;;  %v2374_v35 = vld [vmem:[%s2272_s25 + $0x24] sm:$0xff]  }
  0x1d   : > { %613 = vrot.lane.b32.xlu0 %v432_v44, %s2217_s4  ;;  %v540_v53 = vsel %vm420_vm0, %v535_v45, %v539_v40  ;;  %v527_v55 = vrot.slane %v525_v47, 1  ;;  %v914_v57 = vshrl.u32 %v2287_v7, 16  ;;  %v911_v59 = vrot.slane %v909_v49, 1  ;;  %v2139_v23 = vld [vmem:[%s2272_s25 + $0x20] ss:$0 sps:$4 sm:$0x11]  }
  0x1e   : > { %v811_v60 = vor.u32 %v810_v52, %v806_v51  ;;  %v813_v61 = vshll.u32 %v2133_v50, 16  ;;  %v918_v62 = vrot.slane %v916_v10, 1  ;;  %v921_v1 = vshll.u32 %v2134_v56, 16  ;;  %v2141_v33 = vld [vmem:[%s2272_s25 + $0x8c] ss:$0 sps:$4 sm:$0x11]  }
  0x1f   : > { %v528_v0 = vsel %vm420_vm0, %v523_v54, %v527_v55  ;;  %v818_v3 = vshrl.u32 %v2293_v9, 16  ;;  %v822_v4 = vrot.slane %v820_v13, 1  ;;  %v912_v5 = vsel %vm420_vm0, %v907_v48, %v911_v59  ;;  %v2137_v13 = vld [vmem:[%s2272_s25 + $0x80] ss:$0 sps:$4 sm:$0x11]   ;;  %v2144_v46 = vld [vmem:[%s2272_s25 + $0x84] sm:$0xff]  }
  0x20   : > { %631 = vrot.lane.b32.xlu1 %v540_v53, %s2217_s4  ;;  %v815_v6 = vrot.slane %v813_v61, 1  ;;  %v919_v7 = vor.u32 %v918_v62, %v914_v57  ;;  %v542_v8 = vshrl.u32 %v2340_v58, 16  ;;  %v923_v10 = vrot.slane %v921_v1, 1  ;;  %v2143_v41 = vld [vmem:[%s2272_s25 + $0x2c] ss:$0 sps:$4 sm:$0x11]  }
  0x21   : > { %629 = vrot.lane.b32.xlu0 %v528_v0, %s2217_s4  ;;  %v823_v12 = vor.u32 %v822_v4, %v818_v3  ;;  %v825_v14 = vshll.u32 %v2135_v2, 16  ;;  %v544_v15 = vshll.u32 %v2340_v58, 16  ;;  %v446_v17 = vshrl.u32 %v2346_v63, 16  ;;  %v2145_v50 = vld [vmem:[%s2272_s25 + $0x24] sm:$0xff]   ;;  %v2146_v51 = vld [vmem:[%s2272_s25 + $0x90] sm:$0xff]  }
  0x22   : > { %v816_v9 = vsel %vm420_vm0, %v811_v60, %v815_v6  ;;  %v924_v19 = vsel %vm420_vm0, %v919_v7, %v923_v10  ;;  %v549_v22 = vshll.u32 %v2137_v13, 16  ;;  %v448_v25 = vshll.u32 %v2346_v63, 16  ;;  %v2147_v53 = vld [vmem:[%s2272_s25 + $0x30] sm:$0xff]   ;;  %v2148_v1 = vld [vmem:[%s2272_s25 + $0x8c] ss:$0 sps:$4 sm:$0x11]  }
  0x23   : > { %v827_v20 = vrot.slane %v825_v14, 1  ;;  %v546_v21 = vrot.slane %v544_v15, 1  ;;  %v554_v26 = vshrl.u32 %v2358_v16, 16  ;;  %v453_v32 = vshll.u32 %v2139_v23, 16 }
  0x24   : > { %1013 = vrot.lane.b32.xlu1 %v912_v5, %s2218_s5  ;;  %v551_v29 = vrot.slane %v549_v22, 1  ;;  %v450_v30 = vrot.slane %v448_v25, 1  ;;  %v556_v34 = vshll.u32 %v2358_v16, 16  ;;  %v561_v39 = vshll.u32 %v2141_v33, 16  ;;  %v2402_v22 = vld [vmem:[%s2272_s25 + $0x30] sm:$0xff]  }
  0x25   : > { %997 = vrot.lane.b32.xlu0 %v816_v9, %s2218_s5  ;;  %v828_v27 = vsel %vm420_vm0, %v823_v12, %v827_v20  ;;  %v547_v28 = vor.u32 %v546_v21, %v542_v8  ;;  %v455_v38 = vrot.slane %v453_v32, 1  ;;  %v458_v42 = vshrl.u32 %v2374_v35, 16  ;;  %v2149_v3 = vld [vmem:[%s2272_s25 + $0x2c] ss:$0 sps:$4 sm:$0x11]  }
  0x26   : > { %v451_v37 = vor.u32 %v450_v30, %v446_v17  ;;  %v558_v40 = vrot.slane %v556_v34, 1  ;;  %v460_v43 = vshll.u32 %v2374_v35, 16  ;;  %v563_v45 = vrot.slane %v561_v39, 1  ;;  %v2150_v6 = vld [vmem:[%s2272_s25 + $0x98] ss:$0 sps:$4 sm:$0x11]  }
  0x27   : > { %v552_v36 = vsel %vm420_vm0, %v547_v28, %v551_v29  ;;  %v465_v49 = vshll.u32 %v2143_v41, 16  ;;  %v928_v52 = vshll.u32 %v2144_v46, 16  ;;  %v832_v57 = vshll.u32 %v2145_v50, 16  ;;  %v2151_v12 = vld [vmem:[%s2272_s25 + $0x38] ss:$0 sps:$4 sm:$0x11]  }
  0x28   : > { %1015 = vrot.lane.b32.xlu1 %v924_v19, %s2218_s5  ;;  %v456_v44 = vsel %vm420_vm0, %v451_v37, %v455_v38  ;;  %v559_v47 = vor.u32 %v558_v40, %v554_v26  ;;  %v462_v48 = vrot.slane %v460_v43, 1  ;;  %v940_v59 = vshll.u32 %v2146_v51, 16  ;;  %v2398_v17 = vld [vmem:[%s2272_s25 + $0x90] sm:$0xff]   ;;  %v2153_v26 = vld [vmem:[%s2272_s25 + $0x98] ss:$0 sps:$4 sm:$0x11]  }
  0x29   : > { %999 = vrot.lane.b32.xlu0 %v828_v27, %s2218_s5  ;;  %v467_v56 = vrot.slane %v465_v49, 1  ;;  %v844_v60 = vshll.u32 %v2147_v53, 16  ;;  %v926_v61 = vshrl.u32 %v2144_v46, 16  ;;  %v930_v62 = vrot.slane %v928_v52, 1 }
  0x2a   : > { %v564_v54 = vsel %vm420_vm0, %v559_v47, %v563_v45  ;;  %v463_v55 = vor.u32 %v462_v48, %v458_v42  ;;  %v830_v2 = vshrl.u32 %v2145_v50, 16  ;;  %v834_v4 = vrot.slane %v832_v57, 1  ;;  %v2155_v38 = vld [vmem:[%s2272_s25 + $0x38] ss:$0 sps:$4 sm:$0x11]  }
  0x2b   : > { %v933_v5 = vshll.u32 %v2148_v1, 16  ;;  %v938_v7 = vshrl.u32 %v2146_v51, 16  ;;  %v942_v8 = vrot.slane %v940_v59, 1  ;;  %v837_v10 = vshll.u32 %v2149_v3, 16  ;;  %v2161_v3 = vld [vmem:[%s2272_s25 + $0x3c] sm:$0xff]  }
  0x2c   : > { %633 = vrot.lane.b32.xlu1 %v552_v36, %s2217_s4  ;;  %v468_v0 = vsel %vm420_vm0, %v463_v55, %v467_v56  ;;  %v931_v14 = vor.u32 %v930_v62, %v926_v61  ;;  %v945_v9 = vshll.u32 %v2150_v6, 16  ;;  %v842_v13 = vshrl.u32 %v2147_v53, 16  ;;  %v2411_v36 = vld [vmem:[%s2272_s25 + $0x9c] sm:$0xff]   ;;  %v2157_v45 = vld [vmem:[%s2272_s25 + $0xa4] ss:$0 sps:$4 sm:$0x11]  }
  0x2d   : > { %617 = vrot.lane.b32.xlu0 %v456_v44, %s2217_s4  ;;  %v935_v15 = vrot.slane %v933_v5, 1  ;;  %v839_v19 = vrot.slane %v837_v10, 1  ;;  %v846_v20 = vrot.slane %v844_v60, 1  ;;  %v849_v21 = vshll.u32 %v2151_v12, 16  ;;  %v2160_v61 = vld [vmem:[%s2272_s25 + $0x9c] sm:$0xff]  }
  0x2e   : > { %v835_v23 = vor.u32 %v834_v4, %v830_v2  ;;  %v947_v25 = vrot.slane %v945_v9, 1  ;;  %v943_v27 = vor.u32 %v942_v8, %v938_v7  ;;  %v566_v29 = vshrl.u32 %v2398_v17, 16  ;;  %v2159_v56 = vld [vmem:[%s2272_s25 + $0x44] ss:$0 sps:$4 sm:$0x11]   ;;  %v2162_v4 = vld [vmem:[%s2272_s25 + $0xa8] sm:$0xff]  }
  0x2f   : > { %v851_v28 = vrot.slane %v849_v21, 1  ;;  %v936_v30 = vsel %vm420_vm0, %v931_v14, %v935_v15  ;;  %v568_v32 = vshll.u32 %v2398_v17, 16  ;;  %v573_v33 = vshll.u32 %v2153_v26, 16  ;;  %v2163_v8 = vld [vmem:[%s2272_s25 + $0x48] sm:$0xff]  }
  0x30   : > { %635 = vrot.lane.b32.xlu1 %v564_v54, %s2217_s4  ;;  %v470_v34 = vshrl.u32 %v2402_v22, 16  ;;  %v847_v37 = vor.u32 %v846_v20, %v842_v13  ;;  %v472_v39 = vshll.u32 %v2402_v22, 16  ;;  %v840_v40 = vsel %vm420_vm0, %v835_v23, %v839_v19  ;;  %v2164_v9 = vld [vmem:[%s2272_s25 + $0xa4] ss:$0 sps:$4 sm:$0x11]  }
  0x31   : > { %619 = vrot.lane.b32.xlu0 %v468_v0, %s2217_s4  ;;  %v570_v41 = vrot.slane %v568_v32, 1  ;;  %v575_v42 = vrot.slane %v573_v33, 1  ;;  %v477_v44 = vshll.u32 %v2155_v38, 16  ;;  %v948_v47 = vsel %vm420_vm0, %v943_v27, %v947_v25  ;;  %v2165_v13 = vld [vmem:[%s2272_s25 + $0x44] ss:$0 sps:$4 sm:$0x11]  }
  0x32   : > { %v474_v43 = vrot.slane %v472_v39, 1  ;;  %v580_v49 = vshll.u32 %v2411_v36, 16  ;;  %v489_v2 = vshll.u32 %v2159_v56, 16  ;;  %v952_v10 = vshll.u32 %v2160_v61, 16  ;;  %v2447_v33 = vld [vmem:[%s2272_s25 + $0xa8] sm:$0xff]  }
  0x33   : > { %v571_v48 = vor.u32 %v570_v41, %v566_v29  ;;  %v479_v52 = vrot.slane %v477_v44, 1  ;;  %v856_v12 = vshll.u32 %v2161_v3, 16  ;;  %v964_v15 = vshll.u32 %v2162_v4, 16  ;;  %v2166_v23 = vld [vmem:[%s2272_s25 + $0xb0] ss:$0 sps:$4 sm:$0x11]  }
  0x34   : > { %745 = vrot.lane.b32.xlu1 %v2144_v46, %s2216_s28  ;;  %v578_v46 = vshrl.u32 %v2411_v36, 16  ;;  %v475_v54 = vor.u32 %v474_v43, %v470_v34  ;;  %v582_v55 = vrot.slane %v580_v49, 1  ;;  %v491_v7 = vrot.slane %v489_v2, 1  ;;  %v2169_v38 = vld [vmem:[%s2272_s25 + $0xb0] ss:$0 sps:$4 sm:$0x11]  }
  0x35   : > { %729 = vrot.lane.b32.xlu0 %v2145_v50, %s2216_s28  ;;  %v2423_v50 = vld [vmem:[%s2272_s25 + $0x3c] sm:$0xff]   ;;  %v576_v62 = vsel %vm420_vm0, %v571_v48, %v575_v42  ;;  %v868_v20 = vshll.u32 %v2163_v8, 16  ;;  %v950_v21 = vshrl.u32 %v2160_v61, 16  ;;  %v954_v25 = vrot.slane %v952_v10, 1  ;;  %v2453_v39 = vld [vmem:[%s2272_s25 + $0x48] sm:$0xff]  }
  0x36   : > { %v482_v57 = vshrl.u32 %v2423_v50, 16  ;;  %v484_v59 = vshll.u32 %v2423_v50, 16  ;;  %v583_v0 = vor.u32 %v582_v55, %v578_v46  ;;  %v480_v5 = vsel %vm420_vm0, %v475_v54, %v479_v52  ;;  %v2458_v46 = vld [vmem:[%s2272_s25 + $0xb4] sm:$0xff]   ;;  %v2171_v49 = vld [vmem:[%s2272_s25 + $0x50] ss:$0 sps:$4 sm:$0x11]  }
  0x37   : > { %v957_v26 = vshll.u32 %v2164_v9, 16  ;;  %v854_v27 = vshrl.u32 %v2161_v3, 16  ;;  %v861_v29 = vshll.u32 %v2165_v13, 16  ;;  %v966_v32 = vrot.slane %v964_v15, 1 }
  0x38   : > { %747 = vrot.lane.b32.xlu1 %v2146_v51, %s2216_s28  ;;  %v852_v51 = vsel %vm420_vm0, %v847_v37, %v851_v28  ;;  %v486_v1 = vrot.slane %v484_v59, 1  ;;  %v858_v28 = vrot.slane %v856_v12, 1  ;;  %v969_v34 = vshll.u32 %v2166_v23, 16  ;;  %v2167_v37 = vld [vmem:[%s2272_s25 + $0x50] ss:$0 sps:$4 sm:$0x11]  }
  0x39   : > { %731 = vrot.lane.b32.xlu0 %v2147_v53, %s2216_s28  ;;  %v585_v53 = vshll.u32 %v2157_v45, 16  ;;  %v866_v41 = vshrl.u32 %v2163_v8, 16  ;;  %v955_v42 = vor.u32 %v954_v25, %v950_v21  ;;  %v863_v43 = vrot.slane %v861_v29, 1  ;;  %v2176_v25 = vld [vmem:[%s2272_s25 + $0xb4] sm:$0xff]  }
  0x3a   : > { %v487_v6 = vor.u32 %v486_v1, %v482_v57  ;;  %v870_v44 = vrot.slane %v868_v20, 1  ;;  %v592_v45 = vshll.u32 %v2447_v33, 16  ;;  %v873_v48 = vshll.u32 %v2167_v37, 16  ;;  %v2173_v57 = vld [vmem:[%s2272_s25 + $0xbc] ss:$0 sps:$4 sm:$0x11]  }
  0x3b   : > { %v587_v60 = vrot.slane %v585_v53, 1  ;;  %v496_v52 = vshll.u32 %v2453_v39, 16  ;;  %v590_v54 = vshrl.u32 %v2447_v33, 16  ;;  %v597_v56 = vshll.u32 %v2169_v38, 16  ;;  %v2177_v29 = vld [vmem:[%s2272_s25 + $0x54] sm:$0xff]   ;;  %v2178_v38 = vld [vmem:[%s2272_s25 + $0xc0] sm:$0xff]  }
  0x3c   : > { %1017 = vrot.lane.b32.xlu1 %v936_v30, %s2218_s5  ;;  %v492_v19 = vsel %vm420_vm0, %v487_v6, %v491_v7  ;;  %v962_v30 = vshrl.u32 %v2162_v4, 16  ;;  %v594_v55 = vrot.slane %v592_v45, 1  ;;  %v501_v1 = vshll.u32 %v2171_v49, 16 }
  0x3d   : > { %1001 = vrot.lane.b32.xlu0 %v840_v40, %s2218_s5  ;;  %v588_v14 = vsel %vm420_vm0, %v583_v0, %v587_v60  ;;  %v959_v40 = vrot.slane %v957_v26, 1  ;;  %v604_v60 = vshll.u32 %v2458_v46, 16  ;;  %v875_v0 = vrot.slane %v873_v48, 1  ;;  %v2181_v48 = vld [vmem:[%s2272_s25 + $0x5c] ss:$0 sps:$4 sm:$0x11]  }
  0x3e   : > { %v967_v53 = vor.u32 %v966_v32, %v962_v30  ;;  %v871_v2 = vor.u32 %v870_v44, %v866_v41  ;;  %v599_v10 = vrot.slane %v597_v56, 1  ;;  %v595_v12 = vor.u32 %v594_v55, %v590_v54  ;;  %v2180_v41 = vld [vmem:[%s2272_s25 + $0xbc] ss:$0 sps:$4 sm:$0x11]  }
  0x3f   : > { %v960_v59 = vsel %vm420_vm0, %v955_v42, %v959_v40  ;;  %v609_v15 = vshll.u32 %v2173_v57, 16  ;;  %v503_v9 = vrot.slane %v501_v1, 1  ;;  %v976_v37 = vshll.u32 %v2176_v25, 16  ;;  %v2189_v42 = vld [vmem:[%s2658_s1 + $0x28] sm:$0xff]   ;;  %v2191_v55 = vld [vmem:[%s2658_s1 + $0x38] sm:$0xff]  }
  0x40   : > { %1019 = vrot.lane.b32.xlu1 %v948_v47, %s2218_s5  ;;  %v859_v47 = vor.u32 %v858_v28, %v854_v27  ;;  %v600_v26 = vsel %vm420_vm0, %v595_v12, %v599_v10  ;;  %v880_v44 = vshll.u32 %v2177_v29, 16  ;;  %2038 = vmatprep.subr.bf16.mxu0 %v2189_v42  ;;  %v974_v49 = vshrl.u32 %v2176_v25, 16  ;;  %v2182_v54 = vld [vmem:[%s2272_s25 + $0xc8] ss:$0 sps:$4 sm:$0x11]  }
  0x41   : > { %1003 = vrot.lane.b32.xlu0 %v852_v51, %s2218_s5  ;;  %v971_v51 = vrot.slane %v969_v34, 1  ;;  %v611_v28 = vrot.slane %v609_v15, 1  ;;  %2081 = vmatprep.subr.bf16.mxu1 %v2189_v42  ;;  %v878_v56 = vshrl.u32 %v2177_v29, 16 }
  0x42   : > { %2039 = vmatpush3.bf16.msra.mxu0 %v2189_v42  ;;  %2089 = vmatpush3.bf16.msra.mxu1 %v2189_v42  ;;  %v882_v57 = vrot.slane %v880_v44, 1 }
  0x43   : > { %v972_v7 = vsel %vm420_vm0, %v967_v53, %v971_v51  ;;  %v978_v51 = vrot.slane %v976_v37, 1  ;;  %v981_v53 = vshll.u32 %v2180_v41, 16 }
  0x44   : > { %637 = vrot.lane.b32.xlu1 %v576_v62, %s2217_s4  ;;  %v864_v62 = vsel %vm420_vm0, %v859_v47, %v863_v43  ;;  %v2190_v43 = vld [vmem:[%s2658_s1 + $0x30] sm:$0xff]   ;;  %v2179_v47 = vld [vmem:[%s2272_s25 + $0x60] sm:$0xff]  }
  0x45   : > { %621 = vrot.lane.b32.xlu0 %v480_v5, %s2217_s4  ;;  %v2175_v5 = vld [vmem:[%s2272_s25 + $0x5c] ss:$0 sps:$4 sm:$0x11]   ;;  %2040 = vmatprep.subr.bf16.mxu0 %v2190_v43  ;;  %v983_v1 = vrot.slane %v981_v53, 1 }
  0x46   : > { %v513_v23 = vshll.u32 %v2175_v5, 16  ;;  %2082 = vmatprep.subr.bf16.mxu1 %v2190_v43  ;;  %2041 = vmatpush3.bf16.msra.mxu0 %v2190_v43  ;;  %v883_v5 = vor.u32 %v882_v57, %v878_v56 }
  0x47   : > { %2090 = vmatpush3.bf16.msra.mxu1 %v2190_v43  ;;  %2042 = vmatprep.subr.bf16.mxu0 %v2191_v55 }
  0x48   : > { %639 = vrot.lane.b32.xlu1 %v588_v14, %s2217_s4  ;;  %v606_v14 = vrot.slane %v604_v60, 1  ;;  %v515_v34 = vrot.slane %v513_v23, 1  ;;  %v885_v60 = vshll.u32 %v2181_v48, 16  ;;  %2083 = vmatprep.subr.bf16.mxu1 %v2191_v55 }
  0x49   : > { %623 = vrot.lane.b32.xlu0 %v492_v19, %s2217_s4  ;;  %v876_v19 = vsel %vm420_vm0, %v871_v2, %v875_v0  ;;  %v979_v0 = vor.u32 %v978_v51, %v974_v49  ;;  %v986_v2 = vshrl.u32 %v2178_v38, 16 }
  0x4a   : > { %2043 = vmatpush3.bf16.msra.mxu0 %v2191_v55 }
  0x4b   : > { %2091 = vmatpush3.bf16.msra.mxu1 %v2191_v55 }
  0x4c   : > { %749 = vrot.lane.b32.xlu1 %v2160_v61, %s2216_s28  ;;  %v2469_v61 = vld [vmem:[%s2272_s25 + $0x54] sm:$0xff]  }
  0x4d   : > { %733 = vrot.lane.b32.xlu0 %v2161_v3, %s2216_s28  ;;  %v494_v3 = vshrl.u32 %v2453_v39, 16  ;;  %v508_v6 = vshll.u32 %v2469_v61, 16  ;;  %v506_v13 = vshrl.u32 %v2469_v61, 16 }
  0x4f   : > { %v510_v21 = vrot.slane %v508_v6, 1  ;;  %v887_v6 = vrot.slane %v885_v60, 1 }
  0x50   : > { %751 = vrot.lane.b32.xlu1 %v2162_v4, %s2216_s28  ;;  %v498_v4 = vrot.slane %v496_v52, 1  ;;  %v988_v52 = vshll.u32 %v2178_v38, 16 }
  0x51   : > { %735 = vrot.lane.b32.xlu0 %v2163_v8, %s2216_s28  ;;  %v602_v8 = vshrl.u32 %v2458_v46, 16  ;;  %v511_v32 = vor.u32 %v510_v21, %v506_v13 }
  0x52   : > { %v499_v20 = vor.u32 %v498_v4, %v494_v3  ;;  %v990_v3 = vrot.slane %v988_v52, 1  ;;  %v993_v4 = vshll.u32 %v2182_v54, 16 }
  0x53   : > { %v607_v27 = vor.u32 %v606_v14, %v602_v8  ;;  %v516_v45 = vsel %vm420_vm0, %v511_v32, %v515_v34  ;;  %v984_v8 = vsel %vm420_vm0, %v979_v0, %v983_v1 }
  0x54   : > { %1021 = vrot.lane.b32.xlu1 %v960_v59, %s2218_s5  ;;  %v504_v30 = vsel %vm420_vm0, %v499_v20, %v503_v9  ;;  %v892_v59 = vshll.u32 %v2179_v47, 16  ;;  %v991_v14 = vor.u32 %v990_v3, %v986_v2  ;;  %v995_v15 = vrot.slane %v993_v4, 1 }
  0x55   : > { %1005 = vrot.lane.b32.xlu0 %v864_v62, %s2218_s5  ;;  %v612_v40 = vsel %vm420_vm0, %v607_v27, %v611_v28  ;;  %v2183_v62 = vld [vmem:[%s2272_s25 + $0x68] ss:$0 sps:$4 sm:$0x11]   ;;  %v888_v9 = vsel %vm420_vm0, %v883_v5, %v887_v6 }
  0x56   : > { %v894_v10 = vrot.slane %v892_v59, 1  ;;  %v897_v12 = vshll.u32 %v2183_v62, 16  ;;  %v996_v20 = vsel %vm420_vm0, %v991_v14, %v995_v15 }
  0x58   : > { %1023 = vrot.lane.b32.xlu1 %v972_v7, %s2218_s5  ;;  %v890_v7 = vshrl.u32 %v2179_v47, 16 }
  0x59   : > { %1007 = vrot.lane.b32.xlu0 %v876_v19, %s2218_s5  ;;  %v899_v19 = vrot.slane %v897_v12, 1 }
  0x5a   : > { %v895_v13 = vor.u32 %v894_v10, %v890_v7 }
  0x5c   : > { %641 = vrot.lane.b32.xlu1 %v600_v26, %s2217_s4  ;;  %v900_v21 = vsel %vm420_vm0, %v895_v13, %v899_v19 }
  0x5d   : > { %625 = vrot.lane.b32.xlu0 %v504_v30, %s2217_s4 }
  0x60   : > { %643 = vrot.lane.b32.xlu1 %v612_v40, %s2217_s4 }
  0x61   : > { %627 = vrot.lane.b32.xlu0 %v516_v45, %s2217_s4 }
  0x64   : > { %753 = vrot.lane.b32.xlu1 %v2176_v25, %s2216_s28 }
  0x65   : > { %737 = vrot.lane.b32.xlu0 %v2177_v29, %s2216_s28 }
  0x68   : > { %755 = vrot.lane.b32.xlu1 %v2178_v38, %s2216_s28 }
  0x69   : > { %739 = vrot.lane.b32.xlu0 %v2179_v47, %s2216_s28 }
  0x6c   : > { %1025 = vrot.lane.b32.xlu1 %v984_v8, %s2218_s5 }
  0x6d   : > { %1009 = vrot.lane.b32.xlu0 %v888_v9, %s2218_s5 }
  0x70   : > { %1027 = vrot.lane.b32.xlu1 %v996_v20, %s2218_s5 }
  0x71   : > { %1011 = vrot.lane.b32.xlu0 %v900_v21, %s2218_s5 }
  0x85   : > { %v742_v23 = vpop.permute.xlu1 %741 }
  0x86   : > { %v726_v25 = vpop.permute.xlu0 %725 }
  0x89   : > { %v744_v26 = vpop.permute.xlu1 %743 }
  0x8a   : > { %v728_v27 = vpop.permute.xlu0 %727 }
  0x8e   : > { %v616_v28 = vpop.permute.xlu1 %615 }
  0x8f   : > { %v614_v29 = vpop.permute.xlu0 %613  ;;  %v1033_v45 = vsel %vm1029_vm1, %v2297_v11, %v616_v28 }
  0x90   : > { %v1031_v34 = vsel %vm1029_vm1, %v2311_v18, %v614_v29 }
  0x91   : > { %v1064_v44 = vsel %vm1062_vm3, %v1031_v34, %v726_v25 }
  0x92   : > { %v632_v30 = vpop.permute.xlu1 %631 }
  0x93   : > { %v630_v32 = vpop.permute.xlu0 %629  ;;  %v1049_v41 = vsel %vm1029_vm1, %v2317_v24, %v632_v30  ;;  %v1066_v24 = vsel %vm1062_vm3, %v1033_v45, %v728_v27 }
  0x94   : > { %v1047_v37 = vsel %vm1029_vm1, %v2323_v31, %v630_v32  ;;  %v1082_v47 = vsel %vm1062_vm3, %v1049_v41, %v744_v26 }
  0x95   : > { %v1080_v40 = vsel %vm1062_vm3, %v1047_v37, %v742_v23 }
  0x96   : > { %v1014_v38 = vpop.permute.xlu1 %1013 }
  0x97   : > { %v1121_v42 = vsel %vm1095_vm2, %v1080_v40, %v1014_v38  ;;  %v998_v43 = vpop.permute.xlu0 %997 }
  0x98   : > { %2060 = vmatprep.mubr.bf16.mxu1 %v1121_v42  ;;  %v1097_v18 = vsel %vm1095_vm2, %v1064_v44, %v998_v43 }
  0x99   : > { %2044 = vmatprep.mubr.bf16.mxu0 %v1097_v18 }
  0x9a   : > { %v1016_v31 = vpop.permute.xlu1 %1015 }
  0x9b   : > { %v1124_v48 = vsel %vm1095_vm2, %v1082_v47, %v1016_v31  ;;  %v1000_v49 = vpop.permute.xlu0 %999 }
  0x9c   : > { %2061 = vmatmul.mubr.bf16.vlgmr.msra.gmra.mrb[0].mxu1 %v1124_v48  ;;  %v1100_v51 = vsel %vm1095_vm2, %v1066_v24, %v1000_v49 }
  0x9d   : > { %2045 = vmatmul.mubr.bf16.vlgmr.msra.gmra.mrb[0].mxu0 %v1100_v51 }
  0x9e   : > { %v634_v52 = vpop.permute.xlu1 %633 }
  0x9f   : > { %v618_v53 = vpop.permute.xlu0 %617  ;;  %v1051_v60 = vsel %vm1029_vm1, %v2340_v58, %v634_v52 }
  0xa0   : > { %v1035_v1 = vsel %vm1029_vm1, %v2346_v63, %v618_v53 }
  0xa2   : > { %v636_v54 = vpop.permute.xlu1 %635 }
  0xa3   : > { %v620_v55 = vpop.permute.xlu0 %619  ;;  %v1053_v5 = vsel %vm1029_vm1, %v2358_v16, %v636_v54 }
  0xa4   : > { %v1037_v10 = vsel %vm1029_vm1, %v2374_v35, %v620_v55 }
  0xa6   : > { %v746_v11 = vpop.permute.xlu1 %745 }
  0xa7   : > { %v730_v56 = vpop.permute.xlu0 %729  ;;  %v1084_v62 = vsel %vm1062_vm3, %v1051_v60, %v746_v11 }
  0xa8   : > { %v1068_v3 = vsel %vm1062_vm3, %v1035_v1, %v730_v56 }
  0xaa   : > { %v748_v57 = vpop.permute.xlu1 %747 }
  0xab   : > { %v732_v59 = vpop.permute.xlu0 %731  ;;  %v1086_v7 = vsel %vm1062_vm3, %v1053_v5, %v748_v57 }
  0xac   : > { %v1070_v12 = vsel %vm1062_vm3, %v1037_v10, %v732_v59 }
  0xae   : > { %v1018_v0 = vpop.permute.xlu1 %1017 }
  0xaf   : > { %v1127_v2 = vsel %vm1095_vm2, %v1084_v62, %v1018_v0  ;;  %v1002_v4 = vpop.permute.xlu0 %1001 }
  0xb0   : > { %2064 = vmatprep.mubr.bf16.mxu1 %v1127_v2  ;;  %v1103_v6 = vsel %vm1095_vm2, %v1068_v3, %v1002_v4 }
  0xb1   : > { %2048 = vmatprep.mubr.bf16.mxu0 %v1103_v6 }
  0xb2   : > { %v1020_v58 = vpop.permute.xlu1 %1019 }
  0xb3   : > { %v1130_v63 = vsel %vm1095_vm2, %v1086_v7, %v1020_v58  ;;  %v1004_v8 = vpop.permute.xlu0 %1003 }
  0xb4   : > { %2065 = vmatmul.mubr.bf16.gmra.mrb[4].mxu1 %v1130_v63  ;;  %v1106_v14 = vsel %vm1095_vm2, %v1070_v12, %v1004_v8 }
  0xb5   : > { %2049 = vmatmul.mubr.bf16.gmra.mrb[4].mxu0 %v1106_v14 }
  0xb6   : > { %v638_v15 = vpop.permute.xlu1 %637 }
  0xb7   : > { %v622_v16 = vpop.permute.xlu0 %621  ;;  %v1055_v35 = vsel %vm1029_vm1, %v2398_v17, %v638_v15 }
  0xb8   : > { %v1039_v27 = vsel %vm1029_vm1, %v2402_v22, %v622_v16 }
  0xba   : > { %v640_v9 = vpop.permute.xlu1 %639 }
  0xbb   : > { %v624_v13 = vpop.permute.xlu0 %623  ;;  %v1057_v32 = vsel %vm1029_vm1, %v2411_v36, %v640_v9 }
  0xbc   : > { %v1041_v38 = vsel %vm1029_vm1, %v2423_v50, %v624_v13 }
  0xbe   : > { %v750_v19 = vpop.permute.xlu1 %749 }
  0xbf   : > { %v734_v20 = vpop.permute.xlu0 %733  ;;  %v1088_v25 = vsel %vm1062_vm3, %v1055_v35, %v750_v19 }
  0xc0   : > { %v1072_v29 = vsel %vm1062_vm3, %v1039_v27, %v734_v20 }
  0xc2   : > { %v752_v21 = vpop.permute.xlu1 %751 }
  0xc3   : > { %v736_v23 = vpop.permute.xlu0 %735  ;;  %v1090_v37 = vsel %vm1062_vm3, %v1057_v32, %v752_v21 }
  0xc4   : > { %v1074_v40 = vsel %vm1062_vm3, %v1041_v38, %v736_v23 }
  0xc6   : > { %v1022_v26 = vpop.permute.xlu1 %1021 }
  0xc7   : > { %v1133_v28 = vsel %vm1095_vm2, %v1088_v25, %v1022_v26  ;;  %v1006_v30 = vpop.permute.xlu0 %1005 }
  0xc8   : > { %2068 = vmatprep.mubr.bf16.mxu1 %v1133_v28  ;;  %v1109_v34 = vsel %vm1095_vm2, %v1072_v29, %v1006_v30 }
  0xc9   : > { %2052 = vmatprep.mubr.bf16.mxu0 %v1109_v34 }
  0xca   : > { %v1024_v17 = vpop.permute.xlu1 %1023 }
  0xcb   : > { %v1136_v22 = vsel %vm1095_vm2, %v1090_v37, %v1024_v17  ;;  %v1008_v41 = vpop.permute.xlu0 %1007 }
  0xcc   : > { %2069 = vmatmul.mubr.bf16.gmra.mrb[8].mxu1 %v1136_v22  ;;  %v1112_v42 = vsel %vm1095_vm2, %v1074_v40, %v1008_v41 }
  0xcd   : > { %2053 = vmatmul.mubr.bf16.gmra.mrb[8].mxu0 %v1112_v42 }
  0xce   : > { %v642_v43 = vpop.permute.xlu1 %641 }
  0xcf   : > { %v626_v36 = vpop.permute.xlu0 %625  ;;  %v1059_v50 = vsel %vm1029_vm1, %v2447_v33, %v642_v43 }
  0xd0   : > { %v1043_v51 = vsel %vm1029_vm1, %v2453_v39, %v626_v36 }
  0xd2   : > { %v644_v44 = vpop.permute.xlu1 %643 }
  0xd3   : > { %v628_v45 = vpop.permute.xlu0 %627  ;;  %v1061_v55 = vsel %vm1029_vm1, %v2458_v46, %v644_v44  ;;  %v2588_v46 = vld [vmem:[%s2659_s2] ss:$0 sm:$0xff] }
  0xd4   : > { %v1045_v57 = vsel %vm1029_vm1, %v2469_v61, %v628_v45 }
  0xd6   : > { %v754_v18 = vpop.permute.xlu1 %753 }
  0xd7   : > { %v738_v31 = vpop.permute.xlu0 %737  ;;  %v1092_v49 = vsel %vm1062_vm3, %v1059_v50, %v754_v18 }
  0xd8   : > { %v1076_v53 = vsel %vm1062_vm3, %v1043_v51, %v738_v31 }
  0xda   : > { %v756_v47 = vpop.permute.xlu1 %755 }
  0xdb   : > { %v740_v48 = vpop.permute.xlu0 %739  ;;  %v1094_v56 = vsel %vm1062_vm3, %v1061_v55, %v756_v47 }
  0xdc   : > { %v1078_v59 = vsel %vm1062_vm3, %v1045_v57, %v740_v48 }
  0xde   : > { %v1026_v24 = vpop.permute.xlu1 %1025 }
  0xdf   : > { %v1139_v52 = vsel %vm1095_vm2, %v1092_v49, %v1026_v24  ;;  %v1010_v54 = vpop.permute.xlu0 %1009 }
  0xe0   : > { %2072 = vmatprep.mubr.bf16.mxu1 %v1139_v52  ;;  %v1115_v11 = vsel %vm1095_vm2, %v1076_v53, %v1010_v54 }
  0xe1   : > { %2056 = vmatprep.mubr.bf16.mxu0 %v1115_v11 }
  0xe2   : > { %v1028_v33 = vpop.permute.xlu1 %1027 }
  0xe3   : > { %v1142_v39 = vsel %vm1095_vm2, %v1094_v56, %v1028_v33  ;;  %v1012_v60 = vpop.permute.xlu0 %1011 }
  0xe4   : > { %2073 = vmatmul.mubr.bf16.gmra.mrb[12].mxu1 %v1142_v39  ;;  %v1118_v62 = vsel %vm1095_vm2, %v1078_v59, %v1012_v60 }
  0xe5   : > { %2057 = vmatmul.mubr.bf16.gmra.mrb[12].mxu0 %v1118_v62 }
 0x16f   : > { %v2062_v0 = vpop.f32.mrb[0].mxu1 }
 0x170   : > { %v1322_v1 = vadd.f32 %v2062_v0, %v2588_v46  ;;  %v1313_v2 = vpop.f32.mrb[1].mxu1  ;;  %v2046_v3 = vpop.f32.mrb[0].mxu0 }
 0x171   : > { %v1314_v61 = vadd.f32 %v2588_v46, %v1313_v2  ;;  %v2063_v4 = vpop.f32.mrb[2].mxu1  ;;  %v1258_v5 = vadd.f32 %v2046_v3, %v2588_v46  ;;  %v1249_v7 = vpop.f32.mrb[1].mxu0 }
 0x172   : > { %v1426_v6 = vmul.f32 0.2, %v1322_v1  ;;  %v1325_v58 = vadd.f32 %v2063_v4, %v2588_v46  ;;  %v1316_v10 = vpop.f32.mrb[3].mxu1  ;;  %vm1394_vm4 = vcmp.ge.f32.partialorder %v1322_v1, 0.0  ;;  %v1250_v63 = vadd.f32 %v2588_v46, %v1249_v7  ;;  %v2047_v12 = vpop.f32.mrb[2].mxu0 }
 0x173   : > { %v1317_v8 = vadd.f32 %v2588_v46, %v1316_v10  ;;  %v1410_v14 = vmul.f32 0.2, %v1258_v5  ;;  %v1261_v15 = vadd.f32 %v2047_v12, %v2588_v46  ;;  %v1252_v16 = vpop.f32.mrb[3].mxu0  ;;  %vm1378_vm5 = vcmp.ge.f32.partialorder %v1258_v5, 0.0 }
 0x174   : > { %vm1392_vm6 = vcmp.ge.f32.partialorder %v1314_v61, 0.0  ;;  %v1424_v9 = vmul.f32 0.2, %v1314_v61  ;;  %vm1395_vm7 = vcmp.ge.f32.partialorder %v1325_v58, 0.0  ;;  %v1458_v13 = vsel %vm1394_vm4, %v1322_v1, %v1426_v6 }
 0x175   : > { %vm1379_vm8 = vcmp.ge.f32.partialorder %v1261_v15, 0.0  ;;  %v1411_v19 = vmul.f32 0.2, %v1261_v15  ;;  %v1427_v20 = vmul.f32 0.2, %v1325_v58  ;;  %v1253_v23 = vadd.f32 %v2588_v46, %v1252_v16 }
 0x176   : > { %v1408_v21 = vmul.f32 0.2, %v1250_v63  ;;  %vm1393_vm9 = vcmp.ge.f32.partialorder %v1317_v8, 0.0  ;;  %v1425_v35 = vmul.f32 0.2, %v1317_v8  ;;  %v1442_v25 = vsel %vm1378_vm5, %v1258_v5, %v1410_v14 }
 0x177   : > { %vm1376_vm10 = vcmp.ge.f32.partialorder %v1250_v63, 0.0  ;;  %v1443_v26 = vsel %vm1379_vm8, %v1261_v15, %v1411_v19  ;;  %v1459_v27 = vsel %vm1395_vm7, %v1325_v58, %v1427_v20  ;;  %vm1377_vm11 = vcmp.ge.f32.partialorder %v1253_v23, 0.0 }
 0x178   : > { %v1917_v28 = vpack.c.bf16 %v1443_v26, %v1442_v25  ;;  %v1957_v29 = vpack.c.bf16 %v1459_v27, %v1458_v13  ;;  %v1409_v30 = vmul.f32 0.2, %v1253_v23  ;;  %v1456_v32 = vsel %vm1392_vm6, %v1314_v61, %v1424_v9 }
 0x179   : > { %v1457_v34 = vsel %vm1393_vm9, %v1317_v8, %v1425_v35  ;;  %v1440_v37 = vsel %vm1376_vm10, %v1250_v63, %v1408_v21 }
 0x17a   : > { %1989 = vst [vmem:[%s2602_s21 + $0x8] sm:$0xff] %v1917_v28   ;;  %1997 = vst [vmem:[%s2602_s21 + $0x48] sm:$0xff] %v1957_v29   ;;  %v1441_v17 = vsel %vm1377_vm11, %v1253_v23, %v1409_v30  ;;  %v1952_v38 = vpack.c.bf16 %v1457_v34, %v1456_v32 }
 0x17b   : > { %v1912_v22 = vpack.c.bf16 %v1441_v17, %v1440_v37 }
 0x17c   : > { %1996 = vst [vmem:[%s2602_s21 + $0x40] sm:$0xff] %v1952_v38  }
 0x17d   : > { %1913 = vst [vmem:[%s2602_s21] sm:$0xff] %v1912_v22  }
 0x187   : > { %v2066_v40 = vpop.f32.mrb[4].mxu1 }
 0x188   : > { %v1338_v41 = vadd.f32 %v2066_v40, %v2588_v46  ;;  %v1329_v42 = vpop.f32.mrb[5].mxu1  ;;  %v2050_v43 = vpop.f32.mrb[4].mxu0 }
 0x189   : > { %v1330_v36 = vadd.f32 %v2588_v46, %v1329_v42  ;;  %v2067_v44 = vpop.f32.mrb[6].mxu1  ;;  %v1274_v45 = vadd.f32 %v2050_v43, %v2588_v46  ;;  %v1265_v31 = vpop.f32.mrb[5].mxu0 }
 0x18a   : > { %v1430_v18 = vmul.f32 0.2, %v1338_v41  ;;  %v1341_v47 = vadd.f32 %v2067_v44, %v2588_v46  ;;  %v1332_v48 = vpop.f32.mrb[7].mxu1  ;;  %vm1398_vm12 = vcmp.ge.f32.partialorder %v1338_v41, 0.0  ;;  %v1266_v50 = vadd.f32 %v2588_v46, %v1265_v31  ;;  %v2051_v49 = vpop.f32.mrb[6].mxu0 }
 0x18b   : > { %v1333_v24 = vadd.f32 %v2588_v46, %v1332_v48  ;;  %v1414_v51 = vmul.f32 0.2, %v1274_v45  ;;  %v1277_v52 = vadd.f32 %v2051_v49, %v2588_v46  ;;  %v1268_v53 = vpop.f32.mrb[7].mxu0  ;;  %vm1382_vm13 = vcmp.ge.f32.partialorder %v1274_v45, 0.0 }
 0x18c   : > { %vm1396_vm14 = vcmp.ge.f32.partialorder %v1330_v36, 0.0  ;;  %v1428_v54 = vmul.f32 0.2, %v1330_v36  ;;  %vm1399_vm15 = vcmp.ge.f32.partialorder %v1341_v47, 0.0  ;;  %v1462_v55 = vsel %vm1398_vm12, %v1338_v41, %v1430_v18 }
 0x18d   : > { %vm1383_vm0 = vcmp.ge.f32.partialorder %v1277_v52, 0.0  ;;  %v1415_v11 = vmul.f32 0.2, %v1277_v52  ;;  %v1431_v56 = vmul.f32 0.2, %v1341_v47  ;;  %v1269_v57 = vadd.f32 %v2588_v46, %v1268_v53 }
 0x18e   : > { %v1412_v33 = vmul.f32 0.2, %v1266_v50  ;;  %vm1397_vm1 = vcmp.ge.f32.partialorder %v1333_v24, 0.0  ;;  %v1429_v39 = vmul.f32 0.2, %v1333_v24  ;;  %v1446_v59 = vsel %vm1382_vm13, %v1274_v45, %v1414_v51 }
 0x18f   : > { %vm1380_vm2 = vcmp.ge.f32.partialorder %v1266_v50, 0.0  ;;  %v1447_v60 = vsel %vm1383_vm0, %v1277_v52, %v1415_v11  ;;  %v1463_v62 = vsel %vm1399_vm15, %v1341_v47, %v1431_v56  ;;  %vm1381_vm3 = vcmp.ge.f32.partialorder %v1269_v57, 0.0 }
 0x190   : > { %v1927_v0 = vpack.c.bf16 %v1447_v60, %v1446_v59  ;;  %v1967_v1 = vpack.c.bf16 %v1463_v62, %v1462_v55  ;;  %v1413_v2 = vmul.f32 0.2, %v1269_v57  ;;  %v1460_v3 = vsel %vm1396_vm14, %v1330_v36, %v1428_v54 }
 0x191   : > { %v1461_v61 = vsel %vm1397_vm1, %v1333_v24, %v1429_v39  ;;  %v1444_v4 = vsel %vm1380_vm2, %v1266_v50, %v1412_v33 }
 0x192   : > { %1991 = vst [vmem:[%s2602_s21 + $0x18] sm:$0xff] %v1927_v0   ;;  %1999 = vst [vmem:[%s2602_s21 + $0x58] sm:$0xff] %v1967_v1   ;;  %v1445_v5 = vsel %vm1381_vm3, %v1269_v57, %v1413_v2  ;;  %v1962_v6 = vpack.c.bf16 %v1461_v61, %v1460_v3 }
 0x193   : > { %v1922_v7 = vpack.c.bf16 %v1445_v5, %v1444_v4 }
 0x194   : > { %1998 = vst [vmem:[%s2602_s21 + $0x50] sm:$0xff] %v1962_v6  }
 0x195   : > { %1990 = vst [vmem:[%s2602_s21 + $0x10] sm:$0xff] %v1922_v7  }
 0x19f   : > { %v2070_v58 = vpop.f32.mrb[8].mxu1 }
 0x1a0   : > { %v1354_v10 = vadd.f32 %v2070_v58, %v2588_v46  ;;  %v1345_v63 = vpop.f32.mrb[9].mxu1  ;;  %v2054_v12 = vpop.f32.mrb[8].mxu0 }
 0x1a1   : > { %v1346_v8 = vadd.f32 %v2588_v46, %v1345_v63  ;;  %v2071_v14 = vpop.f32.mrb[10].mxu1  ;;  %v1290_v15 = vadd.f32 %v2054_v12, %v2588_v46  ;;  %v1281_v9 = vpop.f32.mrb[9].mxu0 }
 0x1a2   : > { %v1434_v16 = vmul.f32 0.2, %v1354_v10  ;;  %v1357_v13 = vadd.f32 %v2071_v14, %v2588_v46  ;;  %v1348_v19 = vpop.f32.mrb[11].mxu1  ;;  %vm1402_vm4 = vcmp.ge.f32.partialorder %v1354_v10, 0.0  ;;  %v1282_v20 = vadd.f32 %v2588_v46, %v1281_v9  ;;  %v2055_v21 = vpop.f32.mrb[10].mxu0 }
 0x1a3   : > { %v1349_v23 = vadd.f32 %v2588_v46, %v1348_v19  ;;  %v1418_v35 = vmul.f32 0.2, %v1290_v15  ;;  %v1293_v25 = vadd.f32 %v2055_v21, %v2588_v46  ;;  %v1284_v26 = vpop.f32.mrb[11].mxu0  ;;  %vm1386_vm5 = vcmp.ge.f32.partialorder %v1290_v15, 0.0 }
 0x1a4   : > { %vm1400_vm6 = vcmp.ge.f32.partialorder %v1346_v8, 0.0  ;;  %v1432_v27 = vmul.f32 0.2, %v1346_v8  ;;  %vm1403_vm7 = vcmp.ge.f32.partialorder %v1357_v13, 0.0  ;;  %v1466_v28 = vsel %vm1402_vm4, %v1354_v10, %v1434_v16 }
 0x1a5   : > { %vm1387_vm8 = vcmp.ge.f32.partialorder %v1293_v25, 0.0  ;;  %v1419_v29 = vmul.f32 0.2, %v1293_v25  ;;  %v1435_v30 = vmul.f32 0.2, %v1357_v13  ;;  %v1285_v34 = vadd.f32 %v2588_v46, %v1284_v26 }
 0x1a6   : > { %v1416_v32 = vmul.f32 0.2, %v1282_v20  ;;  %vm1401_vm9 = vcmp.ge.f32.partialorder %v1349_v23, 0.0  ;;  %v1433_v37 = vmul.f32 0.2, %v1349_v23  ;;  %v1450_v17 = vsel %vm1386_vm5, %v1290_v15, %v1418_v35 }
 0x1a7   : > { %vm1384_vm10 = vcmp.ge.f32.partialorder %v1282_v20, 0.0  ;;  %v1451_v38 = vsel %vm1387_vm8, %v1293_v25, %v1419_v29  ;;  %v1467_v22 = vsel %vm1403_vm7, %v1357_v13, %v1435_v30  ;;  %vm1385_vm11 = vcmp.ge.f32.partialorder %v1285_v34, 0.0 }
 0x1a8   : > { %v1937_v40 = vpack.c.bf16 %v1451_v38, %v1450_v17  ;;  %v1977_v41 = vpack.c.bf16 %v1467_v22, %v1466_v28  ;;  %v1417_v42 = vmul.f32 0.2, %v1285_v34  ;;  %v1464_v43 = vsel %vm1400_vm6, %v1346_v8, %v1432_v27 }
 0x1a9   : > { %v1465_v36 = vsel %vm1401_vm9, %v1349_v23, %v1433_v37  ;;  %v1448_v44 = vsel %vm1384_vm10, %v1282_v20, %v1416_v32 }
 0x1aa   : > { %1993 = vst [vmem:[%s2602_s21 + $0x28] sm:$0xff] %v1937_v40   ;;  %2001 = vst [vmem:[%s2602_s21 + $0x68] sm:$0xff] %v1977_v41   ;;  %v1449_v45 = vsel %vm1385_vm11, %v1285_v34, %v1417_v42  ;;  %v1972_v18 = vpack.c.bf16 %v1465_v36, %v1464_v43 }
 0x1ab   : > { %v1932_v31 = vpack.c.bf16 %v1449_v45, %v1448_v44 }
 0x1ac   : > { %2000 = vst [vmem:[%s2602_s21 + $0x60] sm:$0xff] %v1972_v18  }
 0x1ad   : > { %1992 = vst [vmem:[%s2602_s21 + $0x20] sm:$0xff] %v1932_v31  }
 0x1b7   : > { %v2074_v47 = vpop.f32.mrb[12].mxu1 }
 0x1b8   : > { %v1370_v48 = vadd.f32 %v2074_v47, %v2588_v46  ;;  %v1361_v50 = vpop.f32.mrb[13].mxu1  ;;  %v2058_v49 = vpop.f32.mrb[12].mxu0 }
 0x1b9   : > { %v1362_v24 = vadd.f32 %v2588_v46, %v1361_v50  ;;  %v2075_v51 = vpop.f32.mrb[14].mxu1  ;;  %v1306_v52 = vadd.f32 %v2058_v49, %v2588_v46  ;;  %v1297_v54 = vpop.f32.mrb[13].mxu0 }
 0x1ba   : > { %v1438_v53 = vmul.f32 0.2, %v1370_v48  ;;  %v1373_v55 = vadd.f32 %v2075_v51, %v2588_v46  ;;  %v1364_v11 = vpop.f32.mrb[15].mxu1  ;;  %vm1406_vm12 = vcmp.ge.f32.partialorder %v1370_v48, 0.0  ;;  %v1298_v56 = vadd.f32 %v2588_v46, %v1297_v54  ;;  %v2059_v33 = vpop.f32.mrb[14].mxu0 }
 0x1bb   : > { %v1365_v57 = vadd.f32 %v2588_v46, %v1364_v11  ;;  %v1422_v39 = vmul.f32 0.2, %v1306_v52  ;;  %v1309_v59 = vadd.f32 %v2059_v33, %v2588_v46  ;;  %v1300_v60 = vpop.f32.mrb[15].mxu0  ;;  %vm1390_vm13 = vcmp.ge.f32.partialorder %v1306_v52, 0.0 }
 0x1bc   : > { %vm1404_vm14 = vcmp.ge.f32.partialorder %v1362_v24, 0.0  ;;  %v1436_v62 = vmul.f32 0.2, %v1362_v24  ;;  %vm1407_vm15 = vcmp.ge.f32.partialorder %v1373_v55, 0.0  ;;  %v1470_v0 = vsel %vm1406_vm12, %v1370_v48, %v1438_v53 }
 0x1bd   : > { %vm1391_vm0 = vcmp.ge.f32.partialorder %v1309_v59, 0.0  ;;  %v1423_v1 = vmul.f32 0.2, %v1309_v59  ;;  %v1439_v2 = vmul.f32 0.2, %v1373_v55  ;;  %v1301_v61 = vadd.f32 %v2588_v46, %v1300_v60 }
 0x1be   : > { %v1420_v3 = vmul.f32 0.2, %v1298_v56  ;;  %vm1405_vm1 = vcmp.ge.f32.partialorder %v1365_v57, 0.0  ;;  %v1437_v4 = vmul.f32 0.2, %v1365_v57  ;;  %v1454_v5 = vsel %vm1390_vm13, %v1306_v52, %v1422_v39 }
 0x1bf   : > { %vm1388_vm2 = vcmp.ge.f32.partialorder %v1298_v56, 0.0  ;;  %v1455_v6 = vsel %vm1391_vm0, %v1309_v59, %v1423_v1  ;;  %v1471_v7 = vsel %vm1407_vm15, %v1373_v55, %v1439_v2  ;;  %vm1389_vm3 = vcmp.ge.f32.partialorder %v1301_v61, 0.0 }
 0x1c0   : > { %v1947_v58 = vpack.c.bf16 %v1455_v6, %v1454_v5  ;;  %v1987_v10 = vpack.c.bf16 %v1471_v7, %v1470_v0  ;;  %v1421_v63 = vmul.f32 0.2, %v1301_v61  ;;  %v1468_v12 = vsel %vm1404_vm14, %v1362_v24, %v1436_v62 }
 0x1c1   : > { %v1469_v8 = vsel %vm1405_vm1, %v1365_v57, %v1437_v4  ;;  %v1452_v14 = vsel %vm1388_vm2, %v1298_v56, %v1420_v3 }
 0x1c2   : > { %1995 = vst [vmem:[%s2602_s21 + $0x38] sm:$0xff] %v1947_v58   ;;  %2003 = vst [vmem:[%s2602_s21 + $0x78] sm:$0xff] %v1987_v10   ;;  %v1453_v15 = vsel %vm1389_vm3, %v1301_v61, %v1421_v63  ;;  %v1982_v46 = vpack.c.bf16 %v1469_v8, %v1468_v12 }
 0x1c3   : > { %v1942_v16 = vpack.c.bf16 %v1453_v15, %v1452_v14 }
 0x1c4   : > { %2002 = vst [vmem:[%s2602_s21 + $0x70] sm:$0xff] %v1982_v46  }
 0x1c5   : > { %1994 = vst [vmem:[%s2602_s21 + $0x30] sm:$0xff] %v1942_v16  }
 0x1c6 PF: > { %s13_s14 = sadd.s32 1, %s2214_s14   ;;  %s2661_s12 = smov %s2210_s13 }
 0x1c7   : > { %p10_p5 = scmp.ge.s32.totalorder %s13_s14, 4   ;;  %s2662_s13 = smov %s2664_s15 }
 0x1c9   :  { %12 = sbr.rel (!%p10_p5) target bundleno = 2 (0x2), region = 63 }

// kernel: multiscale_discriminator_pallas.10
= control target key start
LH: loop header
LB: loop body
LE: loop exit
PB: predicated region body
PF: predicated region fallthrough
CT: control target
= control target key end

     0   :  { %s3786_s12 = smov 0   ;;  %s3788_s13 = smov 0   ;;  %s4477_s0 = inlined_call_operand.vmem [shape: bf16[2,9,9,512], index: 0, kind: input, shape index: {}]   ;;  %s4478_s1 = inlined_call_operand.vmem [shape: bf16[2048,128], index: 1, kind: input, shape index: {}]   ;;  %s4479_s2 = inlined_call_operand.vmem [shape: f32[1,128], index: 2, kind: input, shape index: {}]   ;;  %s4480_s3 = inlined_call_operand.vmem [shape: bf16[2,64,128], index: 3, kind: output, shape index: {}]  }
   0x1   :  { %s3790_s14 = smov 0  }
   0x2 LB: > { %s25_s15 = sadd.s32 1, %s3760_s13  ;;  %p2856_p0 = scmp.ge.s32.totalorder %s3764_s14, 1  ;;  %s3764_s14 = sphi %s3790_s14, %s13_s14   ;;  %s3760_s13 = sphi %s3788_s13, %s4482_s13   ;;  %s3756_s12 = sphi %s3786_s12, %s4481_s12  }
   0x3   : > { %p27_p1 = scmp.ge.s32.totalorder %s25_s15, 2  ;;  %p151_p2 = scmp.lt.s32.totalorder %s3764_s14, 3 }
   0x5   : > { %s4484_s15 = smov (%p27_p1, %s25_s15), 0  ;;  %p152_p3 = pnand %p2856_p0, %p151_p2 }
   0x6   : > { %v3536_v0 = vld [vmem:[%s4478_s1 + $0x40] sm:$0xff] (!%p152_p3)   ;;  %v3540_v4 = vld [vmem:[%s4478_s1 + $0x48] sm:$0xff] (!%p152_p3)   ;;  %v3544_v8 = vld [vmem:[%s4478_s1 + $0x50] sm:$0xff] (!%p152_p3)   ;;  %p179_p4 = scmp.lt.s32.totalorder (!%p152_p3), %s3756_s12, 1 }
   0x7   : > { %155 = sbr.rel (%p152_p3) target bundleno = 394 (0x18a), region = 32  ;;  %v3537_v1 = vld [vmem:[%s4478_s1 + $0xc0] sm:$0xff] (!%p152_p3)   ;;  %3191 = vmatprep.subr.bf16.mxu0 (!%p152_p3), %v3536_v0  ;;  %v3541_v5 = vld [vmem:[%s4478_s1 + $0xc8] sm:$0xff] (!%p152_p3)   ;;  %v3545_v9 = vld [vmem:[%s4478_s1 + $0xd0] sm:$0xff] (!%p152_p3)  }
   0x8   : > { %v3538_v2 = vld [vmem:[%s4478_s1] sm:$0xff] (!%p152_p3)   ;;  %3231 = vmatprep.subr.bf16.mxu1 (!%p152_p3), %v3537_v1  ;;  %v3542_v6 = vld [vmem:[%s4478_s1 + $0x8] sm:$0xff] (!%p152_p3)   ;;  %v3546_v10 = vld [vmem:[%s4478_s1 + $0x10] sm:$0xff] (!%p152_p3)  }
   0x9   : > { %v3539_v3 = vld [vmem:[%s4478_s1 + $0x80] sm:$0xff] (!%p152_p3)   ;;  %3192 = vmatpush3.bf16.msra.mxu0 (!%p152_p3), %v3538_v2  ;;  %v3543_v7 = vld [vmem:[%s4478_s1 + $0x88] sm:$0xff] (!%p152_p3)   ;;  %v3547_v11 = vld [vmem:[%s4478_s1 + $0x90] sm:$0xff] (!%p152_p3)  }
   0xa   : > { %3232 = vmatpush3.bf16.msra.mxu1 (!%p152_p3), %v3539_v3  ;;  %3193 = vmatprep.subr.bf16.mxu0 (!%p152_p3), %v3540_v4  ;;  %v3548_v12 = vld [vmem:[%s4478_s1 + $0x58] sm:$0xff] (!%p152_p3)   ;;  %v3552_v16 = vld [vmem:[%s4478_s1 + $0x60] sm:$0xff] (!%p152_p3)   ;;  %v3556_v20 = vld [vmem:[%s4478_s1 + $0x68] sm:$0xff] (!%p152_p3)  }
   0xb   : > { %3233 = vmatprep.subr.bf16.mxu1 (!%p152_p3), %v3541_v5  ;;  %v3549_v13 = vld [vmem:[%s4478_s1 + $0xd8] sm:$0xff] (!%p152_p3)   ;;  %v3553_v17 = vld [vmem:[%s4478_s1 + $0xe0] sm:$0xff] (!%p152_p3)   ;;  %v3557_v21 = vld [vmem:[%s4478_s1 + $0xe8] sm:$0xff] (!%p152_p3)  }
   0xc   : > { %v3550_v14 = vld [vmem:[%s4478_s1 + $0x18] sm:$0xff] (!%p152_p3)   ;;  %v3554_v18 = vld [vmem:[%s4478_s1 + $0x20] sm:$0xff] (!%p152_p3)   ;;  %v3558_v22 = vld [vmem:[%s4478_s1 + $0x28] sm:$0xff] (!%p152_p3)  }
   0xd   : > { %3194 = vmatpush3.bf16.msra.mxu0 (!%p152_p3), %v3542_v6  ;;  %v3551_v15 = vld [vmem:[%s4478_s1 + $0x98] sm:$0xff] (!%p152_p3)   ;;  %v3555_v19 = vld [vmem:[%s4478_s1 + $0xa0] sm:$0xff] (!%p152_p3)   ;;  %v3559_v23 = vld [vmem:[%s4478_s1 + $0xa8] sm:$0xff] (!%p152_p3)  }
   0xe   : > { %3234 = vmatpush3.bf16.msra.mxu1 %v3543_v7  ;;  %3195 = vmatprep.subr.bf16.mxu0 %v3544_v8  ;;  %s4486_s12 = smov (!%p179_p4, %s3756_s12), 1  ;;  %v3560_v24 = vld [vmem:[%s4478_s1 + $0x70] sm:$0xff]   ;;  %v3564_v28 = vld [vmem:[%s4478_s1 + $0x78] sm:$0xff]   ;;  %v3576_v40 = vld [vmem:[%s4478_s1 + $0x140] sm:$0xff]  }
   0xf   : > { %3235 = vmatprep.subr.bf16.mxu1 %v3545_v9  ;;  %v3561_v25 = vld [vmem:[%s4478_s1 + $0xf0] sm:$0xff]   ;;  %s3511_s22 = smul.u32 288, %s4486_s12  ;;  %v3565_v29 = vld [vmem:[%s4478_s1 + $0xf8] sm:$0xff]   ;;  %v3577_v41 = vld [vmem:[%s4478_s1 + $0x1c0] sm:$0xff]   ;;  %s3159_s5 = sshll.u32 %s4486_s12, 5 }
  0x10   : > { %v3562_v26 = vld [vmem:[%s4478_s1 + $0x30] sm:$0xff]   ;;  %v3566_v30 = vld [vmem:[%s4478_s1 + $0x38] sm:$0xff]   ;;  %v3578_v42 = vld [vmem:[%s4478_s1 + $0x100] sm:$0xff]   ;;  %s4456_s9 = scalar_lea.vmem %s4480_s3, %s3159_s5 }
  0x11   : > { %3196 = vmatpush3.bf16.msra.mxu0 %v3546_v10  ;;  %v3563_v27 = vld [vmem:[%s4478_s1 + $0xb0] sm:$0xff]   ;;  %s3904_s6 = scalar_lea.vmem %s4477_s0, %s3511_s22  ;;  %v3567_v31 = vld [vmem:[%s4478_s1 + $0xb8] sm:$0xff]   ;;  %v3579_v44 = vld [vmem:[%s4478_s1 + $0x180] sm:$0xff]  }
  0x12   : > { %3236 = vmatpush3.bf16.msra.mxu1 %v3547_v11  ;;  %3197 = vmatprep.subr.bf16.mxu0 %v3548_v12  ;;  %v195_v32 = vld [vmem:[%s3904_s6] sm:$0xff]  ;;  %v3918_v35 = vld [vmem:[%s3904_s6 + $0x8] sm:$0xff]  ;;  %v211_v43 = vld [vmem:[%s3904_s6 + $0x10] sm:$0x11] }
  0x13   : > { %3237 = vmatprep.subr.bf16.mxu1 %v3549_v13  ;;  %v3914_v33 = vld [vmem:[%s3904_s6 + $0x20] sm:$0xff]  ;;  %v3921_v36 = vld [vmem:[%s3904_s6 + $0x28] sm:$0xff]  ;;  %v213_v45 = vld [vmem:[%s3904_s6 + $0x30] sm:$0x11]  ;;  %v3948_v48 = vcombine.low %v195_v32, %v211_v43  ;;  %v3960_v53 = vcombine.high %v195_v32, %v211_v43 }
  0x14   : > { %v2958_v34 = vcombine.high %v195_v32, %v3914_v33  ;;  %v2957_v37 = vcombine.low %v195_v32, %v3914_v33  ;;  %v2960_v38 = vcombine.high %v3918_v35, %v3921_v36  ;;  %v2959_v39 = vcombine.low %v3918_v35, %v3921_v36  ;;  %v3580_v46 = vld [vmem:[%s4478_s1 + $0x148] sm:$0xff]   ;;  %v212_v50 = vld [vmem:[%s3904_s6 + $0x18] sm:$0x11]  ;;  %v3958_v52 = vld [vmem:[%s3904_s6 + $0x40] sm:$0xff] }
  0x15   : > { %3198 = vmatpush3.bf16.msra.mxu0 %v3550_v14  ;;  %v3581_v47 = vld [vmem:[%s4478_s1 + $0x1c8] sm:$0xff]   ;;  %v3963_v54 = vcombine.low %v3914_v33, %v213_v45  ;;  %v389_v55 = vshrl.u32 %v3948_v48, 16  ;;  %v3967_v56 = vld [vmem:[%s3904_s6 + $0x60] sm:$0xff]  ;;  %v214_v59 = vld [vmem:[%s3904_s6 + $0x38] sm:$0x11]  ;;  %v391_v1 = vshll.u32 %v3948_v48, 16  ;;  %v3992_v3 = vcombine.high %v3914_v33, %v213_v45 }
  0x16   : > { %3238 = vmatpush3.bf16.msra.mxu1 %v3551_v15  ;;  %3199 = vmatprep.subr.bf16.mxu0 %v3552_v16  ;;  %v3582_v49 = vld [vmem:[%s4478_s1 + $0x108] sm:$0xff]   ;;  %v2974_v60 = vcombine.high %v3958_v52, %v3967_v56  ;;  %v2973_v62 = vcombine.low %v3958_v52, %v3967_v56  ;;  %v3584_v0 = vld [vmem:[%s4478_s1 + $0x150] sm:$0xff]   ;;  %v4000_v7 = vcombine.high %v3918_v35, %v212_v50  ;;  %v3588_v9 = vld [vmem:[%s4478_s1 + $0x158] sm:$0xff]   ;;  %v398_v10 = vshll.u32 %v3960_v53, 16 }
  0x17   : > { %3239 = vmatprep.subr.bf16.mxu1 %v3553_v17  ;;  %2219 = vmatprep.mubr.bf16.mxu0 %v2958_v34  ;;  %v3583_v51 = vld [vmem:[%s4478_s1 + $0x188] sm:$0xff]   ;;  %v3585_v2 = vld [vmem:[%s4478_s1 + $0x1d0] sm:$0xff]   ;;  %v417_v4 = vshrl.u32 %v3963_v54, 16  ;;  %v419_v6 = vshll.u32 %v3963_v54, 16  ;;  %v2899_v11 = vcombine.high %v3921_v36, %v214_v59  ;;  %v3589_v12 = vld [vmem:[%s4478_s1 + $0x1d8] sm:$0xff]   ;;  %v396_v13 = vshrl.u32 %v3960_v53, 16 }
  0x18   : > { %2284 = vmatprep.mubr.bf16.mxu1 %v2960_v38  ;;  %v3970_v57 = vld [vmem:[%s3904_s6 + $0x48] sm:$0xff]  ;;  %v3586_v5 = vld [vmem:[%s4478_s1 + $0x110] sm:$0xff]   ;;  %v3590_v14 = vld [vmem:[%s4478_s1 + $0x118] sm:$0xff]   ;;  %v426_v15 = vshll.u32 %v3992_v3, 16  ;;  %v412_v17 = vshll.u32 %v4000_v7, 16  ;;  %v2898_v34 = vcombine.low %v3921_v36, %v214_v59  ;;  %v393_v45 = vrot.slane %v391_v1, 1 }
  0x19   : > { %3200 = vmatpush3.bf16.msra.mxu0 %v3554_v18  ;;  %v3973_v58 = vld [vmem:[%s3904_s6 + $0x68] sm:$0xff]  ;;  %v3587_v8 = vld [vmem:[%s4478_s1 + $0x190] sm:$0xff]   ;;  %v3591_v16 = vld [vmem:[%s4478_s1 + $0x198] sm:$0xff]  }
  0x1a   : > { %3240 = vmatpush3.bf16.msra.mxu1 %v3555_v19  ;;  %3201 = vmatprep.subr.bf16.mxu0 %v3556_v20  ;;  %v2976_v61 = vcombine.high %v3970_v57, %v3973_v58  ;;  %v2975_v63 = vcombine.low %v3970_v57, %v3973_v58  ;;  %v4023_v18 = vld [vmem:[%s3904_s6 + $0x80] sm:$0xff]  ;;  %v4029_v20 = vld [vmem:[%s3904_s6 + $0x88] sm:$0xff]  ;;  %v428_v32 = vrot.slane %v426_v15, 1  ;;  %v414_v38 = vrot.slane %v412_v17, 1  ;;  %v3605_v48 = vld [vmem:[%s4478_s1 + $0x1f8] sm:$0xff]  }
  0x1b   : > { %3241 = vmatprep.subr.bf16.mxu1 %v3557_v21  ;;  %v4026_v19 = vld [vmem:[%s3904_s6 + $0xa0] sm:$0xff]  ;;  %v400_v21 = vrot.slane %v398_v10, 1  ;;  %v433_v43 = vshll.u32 %v2898_v34, 16  ;;  %v3599_v53 = vld [vmem:[%s4478_s1 + $0x1a8] sm:$0xff]   ;;  %v3601_v10 = vld [vmem:[%s4478_s1 + $0x1f0] sm:$0xff]  }
  0x1c   : > { %v4071_v59 = vld [vmem:[%s3904_s6 + $0xc0] sm:$0xff]  ;;  %v3606_v54 = vld [vmem:[%s4478_s1 + $0x138] sm:$0xff]  }
  0x1d   : > { %3202 = vmatpush3.bf16.msra.mxu0 %v3558_v22  ;;  %v424_v22 = vshrl.u32 %v3992_v3, 16  ;;  %v4082_v3 = vld [vmem:[%s3904_s6 + $0xe8] sm:$0xff] }
  0x1e   : > { %3242 = vmatpush3.bf16.msra.mxu1 %v3559_v23  ;;  %3203 = vmatprep.subr.bf16.mxu0 %v3560_v24  ;;  %v410_v23 = vshrl.u32 %v4000_v7, 16  ;;  %v2990_v24 = vcombine.high %v4023_v18, %v4026_v19 }
  0x1f   : > { %3243 = vmatprep.subr.bf16.mxu1 %v3561_v25  ;;  %v4036_v25 = vld [vmem:[%s3904_s6 + $0xa8] sm:$0xff] }
  0x21   : > { %3204 = vmatpush3.bf16.msra.mxu0 %v3562_v26  ;;  %v2989_v26 = vcombine.low %v4023_v18, %v4026_v19 }
  0x22   : > { %3244 = vmatpush3.bf16.msra.mxu1 %v3563_v27  ;;  %3205 = vmatprep.subr.bf16.mxu0 %v3564_v28  ;;  %v440_v27 = vshll.u32 %v2899_v11, 16  ;;  %v2894_v28 = vcombine.low %v3918_v35, %v212_v50  ;;  %v3594_v35 = vld [vmem:[%s4478_s1 + $0x120] sm:$0xff]   ;;  %v421_v50 = vrot.slane %v419_v6, 1  ;;  %v435_v6 = vrot.slane %v433_v43, 1 }
  0x23   : > { %3245 = vmatprep.subr.bf16.mxu1 %v3565_v29  ;;  %v2992_v29 = vcombine.high %v4029_v20, %v4036_v25 }
  0x24   : > { %v442_v36 = vrot.slane %v440_v27, 1  ;;  %v422_v15 = vor.u32 %v421_v50, %v417_v4  ;;  %v3610_v27 = vld [vmem:[%s4478_s1 + $0x200] sm:$0xff]  }
  0x25   : > { %3206 = vmatpush3.bf16.msra.mxu0 %v3566_v30  ;;  %v2991_v30 = vcombine.low %v4029_v20, %v4036_v25 }
  0x26   : > { %3246 = vmatpush3.bf16.msra.mxu1 %v3567_v31  ;;  %3271 = vmatprep.subr.bf16.mxu0 %v3576_v40  ;;  %v3592_v31 = vld [vmem:[%s4478_s1 + $0x160] sm:$0xff]  }
  0x27   : > { %3311 = vmatprep.subr.bf16.mxu1 %v3577_v41  ;;  %v3595_v40 = vld [vmem:[%s4478_s1 + $0x1a0] sm:$0xff]   ;;  %v405_v41 = vshll.u32 %v2894_v28, 16 }
  0x28   : > { %2220 = vmatmul.mubr.bf16.vlgmr.msra.gmra.mrb[0].mxu0 %v2957_v37  ;;  %v3593_v37 = vld [vmem:[%s4478_s1 + $0x1e0] sm:$0xff]  }
  0x29   : > { %2285 = vmatmul.mubr.bf16.vlgmr.msra.gmra.mrb[0].mxu1 %v2959_v39  ;;  %3272 = vmatpush3.bf16.msra.mxu0 %v3578_v42  ;;  %v438_v39 = vshrl.u32 %v2899_v11, 16  ;;  %v3596_v42 = vld [vmem:[%s4478_s1 + $0x168] sm:$0xff]  }
  0x2a   : > { %3312 = vmatpush3.bf16.msra.mxu1 %v3579_v44  ;;  %3273 = vmatprep.subr.bf16.mxu0 %v3580_v46  ;;  %v3597_v44 = vld [vmem:[%s4478_s1 + $0x1e8] sm:$0xff]  }
  0x2b   : > { %3313 = vmatprep.subr.bf16.mxu1 %v3581_v47  ;;  %2227 = vmatprep.mubr.bf16.mxu0 %v2974_v60  ;;  %v3598_v46 = vld [vmem:[%s4478_s1 + $0x128] sm:$0xff]   ;;  %v401_v47 = vor.u32 %v400_v21, %v396_v13  ;;  %v4074_v60 = vld [vmem:[%s3904_s6 + $0xe0] sm:$0xff] }
  0x2c   : > { %2292 = vmatprep.mubr.bf16.mxu1 %v2976_v61  ;;  %v415_v61 = vor.u32 %v414_v38, %v410_v23  ;;  %v3006_v1 = vcombine.high %v4071_v59, %v4074_v60 }
  0x2d   : > { %3274 = vmatpush3.bf16.msra.mxu0 %v3582_v49  ;;  %v429_v49 = vor.u32 %v428_v32, %v424_v22  ;;  %v3604_v22 = vld [vmem:[%s4478_s1 + $0x178] sm:$0xff]   ;;  %v3615_v32 = vld [vmem:[%s4478_s1 + $0x288] sm:$0xff]  }
  0x2e   : > { %3314 = vmatpush3.bf16.msra.mxu1 %v3583_v51  ;;  %3275 = vmatprep.subr.bf16.mxu0 %v3584_v0  ;;  %v403_v51 = vshrl.u32 %v2894_v28, 16  ;;  %v431_v0 = vshrl.u32 %v2898_v34, 16  ;;  %v3611_v28 = vld [vmem:[%s4478_s1 + $0x280] sm:$0xff]   ;;  %v215_v34 = vld [vmem:[%s3904_s6 + $0x50] sm:$0x11] }
  0x2f   : > { %3315 = vmatprep.subr.bf16.mxu1 %v3585_v2  ;;  %v4079_v2 = vld [vmem:[%s3904_s6 + $0xc8] sm:$0xff]  ;;  %v2962_v11 = vcombine.low %v401_v47, %v429_v49  ;;  %v2901_v38 = vcombine.high %v3958_v52, %v215_v34 }
  0x30   : > { %2228 = vmatmul.mubr.bf16.gmra.mrb[4].mxu0 %v2973_v62  ;;  %v443_v62 = vor.u32 %v442_v36, %v438_v39  ;;  %v3008_v7 = vcombine.high %v4079_v2, %v4082_v3  ;;  %v436_v21 = vor.u32 %v435_v6, %v431_v0  ;;  %v218_v39 = vld [vmem:[%s3904_s6 + $0x78] sm:$0x11]  ;;  %v3626_v6 = vld [vmem:[%s4478_s1 + $0x210] sm:$0xff]  }
  0x31   : > { %2293 = vmatmul.mubr.bf16.gmra.mrb[4].mxu1 %v2975_v63  ;;  %3276 = vmatpush3.bf16.msra.mxu0 %v3586_v5  ;;  %v407_v63 = vrot.slane %v405_v41, 1  ;;  %v3005_v5 = vcombine.low %v4071_v59, %v4074_v60 }
  0x32   : > { %3316 = vmatpush3.bf16.msra.mxu1 %v3587_v8  ;;  %3277 = vmatprep.subr.bf16.mxu0 %v3588_v9  ;;  %v3007_v8 = vcombine.low %v4079_v2, %v4082_v3  ;;  %v3600_v9 = vld [vmem:[%s4478_s1 + $0x170] sm:$0xff]   ;;  %v2964_v13 = vcombine.low %v415_v61, %v443_v62 }
  0x33   : > { %3317 = vmatprep.subr.bf16.mxu1 %v3589_v12  ;;  %2235 = vmatprep.mubr.bf16.mxu0 %v2990_v24  ;;  %v3602_v12 = vld [vmem:[%s4478_s1 + $0x130] sm:$0xff]   ;;  %v408_v17 = vor.u32 %v407_v63, %v403_v51  ;;  %v3608_v24 = vld [vmem:[%s4478_s1 + $0x240] sm:$0xff]  }
  0x34   : > { %2300 = vmatprep.mubr.bf16.mxu1 %v2992_v29  ;;  %v3612_v29 = vld [vmem:[%s4478_s1 + $0x248] sm:$0xff]  }
  0x35   : > { %3278 = vmatpush3.bf16.msra.mxu0 %v3590_v14  ;;  %v394_v14 = vor.u32 %v393_v45, %v389_v55  ;;  %v3607_v55 = vld [vmem:[%s4478_s1 + $0x1b8] sm:$0xff]   ;;  %v2963_v23 = vcombine.low %v408_v17, %v436_v21  ;;  %v452_v45 = vshrl.u32 %v2901_v38, 16 }
  0x36   : > { %3318 = vmatpush3.bf16.msra.mxu1 %v3591_v16  ;;  %3279 = vmatprep.subr.bf16.mxu0 %v3592_v31  ;;  %v3603_v16 = vld [vmem:[%s4478_s1 + $0x1b0] sm:$0xff]   ;;  %v3614_v31 = vld [vmem:[%s4478_s1 + $0x208] sm:$0xff]  }
  0x37   : > { %3319 = vmatprep.subr.bf16.mxu1 %v3593_v37  ;;  %v2961_v4 = vcombine.low %v394_v14, %v422_v15  ;;  %v217_v37 = vld [vmem:[%s3904_s6 + $0x70] sm:$0x11] }
  0x38   : > { %2236 = vmatmul.mubr.bf16.gmra.mrb[8].mxu0 %v2989_v26  ;;  %v3609_v26 = vld [vmem:[%s4478_s1 + $0x2c0] sm:$0xff]   ;;  %v2905_v36 = vcombine.high %v3967_v56, %v217_v37  ;;  %v2904_v43 = vcombine.low %v3967_v56, %v217_v37  ;;  %v3627_v15 = vld [vmem:[%s4478_s1 + $0x290] sm:$0xff]  }
  0x39   : > { %2301 = vmatmul.mubr.bf16.gmra.mrb[8].mxu1 %v2991_v30  ;;  %3280 = vmatpush3.bf16.msra.mxu0 %v3594_v35  ;;  %v3613_v30 = vld [vmem:[%s4478_s1 + $0x2c8] sm:$0xff]   ;;  %v216_v35 = vld [vmem:[%s3904_s6 + $0x58] sm:$0x11] }
  0x3a   : > { %3320 = vmatpush3.bf16.msra.mxu1 %v3595_v40  ;;  %3281 = vmatprep.subr.bf16.mxu0 %v3596_v42  ;;  %v2900_v40 = vcombine.low %v3958_v52, %v215_v34  ;;  %v2903_v41 = vcombine.high %v3970_v57, %v216_v35  ;;  %v2907_v42 = vcombine.high %v3973_v58, %v218_v39  ;;  %v480_v50 = vshrl.u32 %v2905_v36, 16 }
  0x3b   : > { %3321 = vmatprep.subr.bf16.mxu1 %v3597_v44  ;;  %2243 = vmatprep.mubr.bf16.mxu0 %v3006_v1  ;;  %v3624_v44 = vld [vmem:[%s4478_s1 + $0x250] sm:$0xff]   ;;  %v482_v51 = vshll.u32 %v2905_v36, 16  ;;  %v2902_v14 = vcombine.low %v3970_v57, %v216_v35  ;;  %v220_v36 = vld [vmem:[%s3904_s6 + $0x98] sm:$0x11] }
  0x3c   : > { %2308 = vmatprep.mubr.bf16.mxu1 %v3008_v7  ;;  %v445_v47 = vshrl.u32 %v2900_v40, 16  ;;  %v447_v49 = vshll.u32 %v2900_v40, 16  ;;  %v468_v61 = vshll.u32 %v2903_v41, 16  ;;  %v494_v63 = vshrl.u32 %v2907_v42, 16  ;;  %v221_v40 = vld [vmem:[%s3904_s6 + $0xb0] sm:$0x11] }
  0x3d   : > { %3282 = vmatpush3.bf16.msra.mxu0 %v3598_v46  ;;  %v454_v46 = vshll.u32 %v2901_v38, 16  ;;  %v496_v0 = vshll.u32 %v2907_v42, 16  ;;  %v484_v7 = vrot.slane %v482_v51, 1  ;;  %v3640_v38 = vld [vmem:[%s4478_s1 + $0x260] sm:$0xff]  }
  0x3e   : > { %3322 = vmatpush3.bf16.msra.mxu1 %v3599_v53  ;;  %3283 = vmatprep.subr.bf16.mxu0 %v3600_v9  ;;  %v466_v53 = vshrl.u32 %v2903_v41, 16  ;;  %v449_v1 = vrot.slane %v447_v49, 1  ;;  %v473_v9 = vshrl.u32 %v2904_v43, 16  ;;  %v2912_v49 = vcombine.low %v4026_v19, %v221_v40 }
  0x3f   : > { %3323 = vmatprep.subr.bf16.mxu1 %v3601_v10  ;;  %v456_v62 = vrot.slane %v454_v46, 1  ;;  %v475_v10 = vshll.u32 %v2904_v43, 16  ;;  %v2913_v43 = vcombine.high %v4026_v19, %v221_v40  ;;  %v3656_v40 = vld [vmem:[%s4478_s1 + $0x270] sm:$0xff]  }
  0x40   : > { %2244 = vmatmul.mubr.bf16.gmra.mrb[12].mxu0 %v3005_v5  ;;  %v3625_v5 = vld [vmem:[%s4478_s1 + $0x2d0] sm:$0xff]  }
  0x41   : > { %2309 = vmatmul.mubr.bf16.gmra.mrb[12].mxu1 %v3007_v8  ;;  %3284 = vmatpush3.bf16.msra.mxu0 %v3602_v12  ;;  %v470_v8 = vrot.slane %v468_v61, 1  ;;  %v498_v12 = vrot.slane %v496_v0, 1  ;;  %v477_v21 = vrot.slane %v475_v10, 1  ;;  %v538_v0 = vshll.u32 %v2913_v43, 16 }
  0x42   : > { %3324 = vmatpush3.bf16.msra.mxu1 %v3603_v16  ;;  %2349 = vmatprep.mubr.bf16.mxu0 %v2962_v11  ;;  %v457_v11 = vor.u32 %v456_v62, %v452_v45  ;;  %v485_v16 = vor.u32 %v484_v7, %v480_v50  ;;  %v2911_v45 = vcombine.high %v4029_v20, %v220_v36  ;;  %v3641_v50 = vld [vmem:[%s4478_s1 + $0x2e0] sm:$0xff]   ;;  %v536_v62 = vshrl.u32 %v2913_v43, 16  ;;  %v225_v43 = vld [vmem:[%s3904_s6 + $0xf0] sm:$0x11] }
  0x43   : > { %3285 = vmatprep.subr.bf16.mxu0 %v3604_v22  ;;  %2414 = vmatprep.mubr.bf16.mxu1 %v2964_v13  ;;  %v450_v13 = vor.u32 %v449_v1, %v445_v47  ;;  %v471_v17 = vor.u32 %v470_v8, %v466_v53  ;;  %v2906_v22 = vcombine.low %v3973_v58, %v218_v39  ;;  %v219_v39 = vld [vmem:[%s3904_s6 + $0x90] sm:$0x11] }
  0x44   : > { %3325 = vmatprep.subr.bf16.mxu1 %v3605_v48  ;;  %v3628_v48 = vld [vmem:[%s4478_s1 + $0x258] sm:$0xff]   ;;  %v2909_v42 = vcombine.high %v4023_v18, %v219_v39  ;;  %v2908_v47 = vcombine.low %v4023_v18, %v219_v39  ;;  %v522_v1 = vshrl.u32 %v2911_v45, 16 }
  0x45   : > { %3286 = vmatpush3.bf16.msra.mxu0 %v3606_v54  ;;  %v499_v54 = vor.u32 %v498_v12, %v494_v63  ;;  %v3642_v63 = vld [vmem:[%s4478_s1 + $0x220] sm:$0xff]  }
  0x46   : > { %3326 = vmatpush3.bf16.msra.mxu1 %v3607_v55  ;;  %3351 = vmatprep.subr.bf16.mxu0 %v3608_v24  ;;  %v459_v55 = vshrl.u32 %v2902_v14, 16  ;;  %v478_v24 = vor.u32 %v477_v21, %v473_v9  ;;  %v508_v53 = vshrl.u32 %v2909_v42, 16  ;;  %v510_v61 = vshll.u32 %v2909_v42, 16  ;;  %v223_v42 = vld [vmem:[%s3904_s6 + $0xd0] sm:$0x11] }
  0x47   : > { %3391 = vmatprep.subr.bf16.mxu1 %v3609_v26  ;;  %v487_v26 = vshrl.u32 %v2906_v22, 16  ;;  %v501_v9 = vshrl.u32 %v2908_v47, 16  ;;  %v503_v10 = vshll.u32 %v2908_v47, 16  ;;  %v2910_v21 = vcombine.low %v4029_v20, %v220_v36 }
  0x48   : > { %2350 = vmatmul.mubr.bf16.vlgmr.msra.gmra.mrb[16].mxu0 %v2961_v4  ;;  %v461_v4 = vshll.u32 %v2902_v14, 16  ;;  %v2977_v34 = vcombine.low %v450_v13, %v478_v24  ;;  %v512_v7 = vrot.slane %v510_v61, 1  ;;  %v529_v13 = vshrl.u32 %v2912_v49, 16  ;;  %v3645_v24 = vld [vmem:[%s4478_s1 + $0x2e8] sm:$0xff]  }
  0x49   : > { %2415 = vmatmul.mubr.bf16.vlgmr.msra.gmra.mrb[16].mxu1 %v2963_v23  ;;  %3352 = vmatpush3.bf16.msra.mxu0 %v3610_v27  ;;  %v2978_v23 = vcombine.low %v457_v11, %v485_v16  ;;  %v489_v27 = vshll.u32 %v2906_v22, 16  ;;  %v540_v11 = vrot.slane %v538_v0, 1  ;;  %v531_v14 = vshll.u32 %v2912_v49, 16  ;;  %v3643_v22 = vld [vmem:[%s4478_s1 + $0x2a0] sm:$0xff]   ;;  %v224_v49 = vld [vmem:[%s3904_s6 + $0xd8] sm:$0x11] }
  0x4a   : > { %3392 = vmatpush3.bf16.msra.mxu1 %v3611_v28  ;;  %3353 = vmatprep.subr.bf16.mxu0 %v3612_v29  ;;  %v3629_v28 = vld [vmem:[%s4478_s1 + $0x2d8] sm:$0xff]   ;;  %v2921_v47 = vcombine.high %v4074_v60, %v225_v43 }
  0x4b   : > { %3393 = vmatprep.subr.bf16.mxu1 %v3613_v30  ;;  %v3630_v29 = vld [vmem:[%s4478_s1 + $0x218] sm:$0xff]   ;;  %v2980_v30 = vcombine.low %v471_v17, %v499_v54  ;;  %2357 = vmatprep.mubr.bf16.mxu0 %v2978_v23  ;;  %v491_v37 = vrot.slane %v489_v27, 1  ;;  %v505_v17 = vrot.slane %v503_v10, 1  ;;  %v541_v54 = vor.u32 %v540_v11, %v536_v62  ;;  %v3658_v10 = vld [vmem:[%s4478_s1 + $0x230] sm:$0xff]  }
  0x4c   : > { %v2916_v62 = vcombine.low %v4071_v59, %v223_v42 }
  0x4d   : > { %3354 = vmatpush3.bf16.msra.mxu0 %v3614_v31  ;;  %v463_v31 = vrot.slane %v461_v4, 1  ;;  %2422 = vmatprep.mubr.bf16.mxu1 %v2980_v30  ;;  %v492_v41 = vor.u32 %v491_v37, %v487_v26  ;;  %v533_v4 = vrot.slane %v531_v14, 1  ;;  %v506_v27 = vor.u32 %v505_v17, %v501_v9  ;;  %v3646_v37 = vld [vmem:[%s4478_s1 + $0x228] sm:$0xff]  }
  0x4e   : > { %3394 = vmatpush3.bf16.msra.mxu1 %v3615_v32  ;;  %3355 = vmatprep.subr.bf16.mxu0 %v3624_v44  ;;  %v3631_v32 = vld [vmem:[%s4478_s1 + $0x298] sm:$0xff]   ;;  %v2920_v14 = vcombine.low %v4074_v60, %v225_v43  ;;  %v557_v17 = vshrl.u32 %v2916_v62, 16  ;;  %v3664_v43 = vld [vmem:[%s4478_s1 + $0x340] sm:$0xff]  }
  0x4f   : > { %3395 = vmatprep.subr.bf16.mxu1 %v3625_v5  ;;  %v464_v35 = vor.u32 %v463_v31, %v459_v55  ;;  %v222_v44 = vld [vmem:[%s3904_s6 + $0xb8] sm:$0x11]  ;;  %v524_v5 = vshll.u32 %v2911_v45, 16  ;;  %v534_v31 = vor.u32 %v533_v4, %v529_v13 }
  0x50   : > { %2358 = vmatmul.mubr.bf16.gmra.mrb[20].mxu0 %v2977_v34  ;;  %v2915_v46 = vcombine.high %v4036_v25, %v222_v44  ;;  %v2914_v23 = vcombine.low %v4036_v25, %v222_v44  ;;  %v3657_v44 = vld [vmem:[%s4478_s1 + $0x2f0] sm:$0xff]  }
  0x51   : > { %3356 = vmatpush3.bf16.msra.mxu0 %v3626_v6  ;;  %v2979_v51 = vcombine.low %v464_v35, %v492_v41  ;;  %v526_v12 = vrot.slane %v524_v5, 1  ;;  %v2993_v36 = vcombine.low %v506_v27, %v534_v31  ;;  %v594_v5 = vshll.u32 %v2921_v47, 16 }
  0x52   : > { %3396 = vmatpush3.bf16.msra.mxu1 %v3627_v15  ;;  %3357 = vmatprep.subr.bf16.mxu0 %v3628_v48  ;;  %v550_v6 = vshrl.u32 %v2915_v46, 16  ;;  %v552_v8 = vshll.u32 %v2915_v46, 16  ;;  %v513_v15 = vor.u32 %v512_v7, %v508_v53  ;;  %v3644_v48 = vld [vmem:[%s4478_s1 + $0x268] sm:$0xff]   ;;  %v545_v34 = vshll.u32 %v2914_v23, 16 }
  0x53   : > { %3397 = vmatprep.subr.bf16.mxu1 %v3629_v28  ;;  %2423 = vmatmul.mubr.bf16.gmra.mrb[20].mxu1 %v2979_v51  ;;  %v527_v55 = vor.u32 %v526_v12, %v522_v1  ;;  %v515_v28 = vshrl.u32 %v2910_v21, 16  ;;  %v2917_v46 = vcombine.high %v4071_v59, %v223_v42  ;;  %v2919_v53 = vcombine.high %v4079_v2, %v224_v49 }
  0x54   : > { %v554_v16 = vrot.slane %v552_v8, 1  ;;  %v2994_v30 = vcombine.low %v513_v15, %v541_v54  ;;  %v547_v41 = vrot.slane %v545_v34, 1  ;;  %v592_v1 = vshrl.u32 %v2921_v47, 16  ;;  %v3659_v15 = vld [vmem:[%s4478_s1 + $0x2b0] sm:$0xff]   ;;  %v3661_v34 = vld [vmem:[%s4478_s1 + $0x2f8] sm:$0xff]  }
  0x55   : > { %3358 = vmatpush3.bf16.msra.mxu0 %v3630_v29  ;;  %v517_v29 = vshll.u32 %v2910_v21, 16  ;;  %v566_v0 = vshll.u32 %v2917_v46, 16  ;;  %v578_v7 = vshrl.u32 %v2919_v53, 16  ;;  %v580_v8 = vshll.u32 %v2919_v53, 16  ;;  %v4259_v53 = vld [vmem:[%s3904_s6 + $0x28] sm:$0xff] }
  0x56   : > { %3398 = vmatpush3.bf16.msra.mxu1 %v3631_v32  ;;  %3359 = vmatprep.subr.bf16.mxu0 %v3640_v38  ;;  %v555_v26 = vor.u32 %v554_v16, %v550_v6  ;;  %v543_v32 = vshrl.u32 %v2914_v23, 16  ;;  %v3647_v38 = vld [vmem:[%s4478_s1 + $0x2a8] sm:$0xff]   ;;  %v596_v12 = vrot.slane %v594_v5, 1  ;;  %v559_v21 = vshll.u32 %v2916_v62, 16 }
  0x57   : > { %3399 = vmatprep.subr.bf16.mxu1 %v3641_v50  ;;  %v519_v39 = vrot.slane %v517_v29, 1  ;;  %2365 = vmatprep.mubr.bf16.mxu0 %v2994_v30  ;;  %v226_v50 = vld [vmem:[%s3904_s6 + $0xf8] sm:$0x11]  ;;  %v568_v11 = vrot.slane %v566_v0, 1  ;;  %v582_v16 = vrot.slane %v580_v8, 1  ;;  %v585_v23 = vshrl.u32 %v2920_v14, 16 }
  0x58   : > { %v2996_v35 = vcombine.low %v527_v55, %v555_v26  ;;  %2366 = vmatmul.mubr.bf16.gmra.mrb[24].mxu0 %v2993_v36  ;;  %v548_v51 = vor.u32 %v547_v41, %v543_v32  ;;  %v2923_v61 = vcombine.high %v4082_v3, %v226_v50  ;;  %v597_v55 = vor.u32 %v596_v12, %v592_v1  ;;  %v3663_v36 = vld [vmem:[%s4478_s1 + $0x2b8] sm:$0xff]   ;;  %v3667_v1 = vld [vmem:[%s4478_s1 + $0x380] sm:$0xff]   ;;  %v3674_v12 = vld [vmem:[%s4478_s1 + $0x310] sm:$0xff]  }
  0x59   : > { %3360 = vmatpush3.bf16.msra.mxu0 %v3642_v63  ;;  %v520_v45 = vor.u32 %v519_v39, %v515_v28  ;;  %v564_v63 = vshrl.u32 %v2917_v46, 16  ;;  %v561_v26 = vrot.slane %v559_v21, 1  ;;  %v587_v27 = vshll.u32 %v2920_v14, 16  ;;  %v3665_v46 = vld [vmem:[%s4478_s1 + $0x3c0] sm:$0xff]  }
  0x5a   : > { %3400 = vmatpush3.bf16.msra.mxu1 %v3643_v22  ;;  %3361 = vmatprep.subr.bf16.mxu0 %v3644_v48  ;;  %v606_v9 = vshrl.u32 %v2923_v61, 16  ;;  %v608_v13 = vshll.u32 %v2923_v61, 16  ;;  %v2918_v22 = vcombine.low %v4079_v2, %v224_v49  ;;  %v3660_v48 = vld [vmem:[%s4478_s1 + $0x278] sm:$0xff]   ;;  %v2922_v28 = vcombine.low %v4082_v3, %v226_v50 }
  0x5b   : > { %3401 = vmatprep.subr.bf16.mxu1 %v3645_v24  ;;  %2430 = vmatprep.mubr.bf16.mxu1 %v2996_v35  ;;  %v2995_v6 = vcombine.low %v520_v45, %v548_v51  ;;  %v569_v54 = vor.u32 %v568_v11, %v564_v63  ;;  %v583_v24 = vor.u32 %v582_v16, %v578_v7  ;;  %v589_v35 = vrot.slane %v587_v27, 1  ;;  %v4264_v63 = vld [vmem:[%s3904_s6 + $0x20] sm:$0xff]  ;;  %v3668_v7 = vld [vmem:[%s4478_s1 + $0x348] sm:$0xff]  }
  0x5c   : > { %v610_v4 = vrot.slane %v608_v13, 1  ;;  %v571_v31 = vshrl.u32 %v2918_v22, 16  ;;  %v573_v32 = vshll.u32 %v2918_v22, 16  ;;  %v599_v39 = vshrl.u32 %v2922_v28, 16  ;;  %v3675_v13 = vld [vmem:[%s4478_s1 + $0x390] sm:$0xff]   ;;  %v3679_v22 = vld [vmem:[%s4478_s1 + $0x398] sm:$0xff]  }
  0x5d   : > { %3362 = vmatpush3.bf16.msra.mxu0 %v3646_v37  ;;  %2431 = vmatmul.mubr.bf16.gmra.mrb[24].mxu1 %v2995_v6  ;;  %v3010_v29 = vcombine.low %v569_v54, %v597_v55  ;;  %v3662_v37 = vld [vmem:[%s4478_s1 + $0x238] sm:$0xff]   ;;  %v2966_v49 = vcombine.high %v3914_v33, %v3958_v52  ;;  %v2968_v61 = vcombine.high %v4259_v53, %v3970_v57  ;;  %v3666_v33 = vld [vmem:[%s4478_s1 + $0x300] sm:$0xff]  }
  0x5e   : > { %3402 = vmatpush3.bf16.msra.mxu1 %v3647_v38  ;;  %3363 = vmatprep.subr.bf16.mxu0 %v3656_v40  ;;  %v611_v30 = vor.u32 %v610_v4, %v606_v9  ;;  %v562_v38 = vor.u32 %v561_v26, %v557_v17  ;;  %v601_v40 = vshll.u32 %v2922_v28, 16  ;;  %v575_v42 = vrot.slane %v573_v32, 1  ;;  %v3672_v9 = vld [vmem:[%s4478_s1 + $0x350] sm:$0xff]   ;;  %v3677_v17 = vld [vmem:[%s4478_s1 + $0x3d8] sm:$0xff]   ;;  %v3681_v54 = vld [vmem:[%s4478_s1 + $0x3e0] sm:$0xff]  }
  0x5f   : > { %3403 = vmatprep.subr.bf16.mxu1 %v3657_v44  ;;  %2373 = vmatprep.mubr.bf16.mxu0 %v3010_v29  ;;  %v590_v44 = vor.u32 %v589_v35, %v585_v23  ;;  %v2965_v0 = vcombine.low %v4264_v63, %v3958_v52  ;;  %v2982_v5 = vcombine.high %v3967_v56, %v4023_v18  ;;  %v3669_v52 = vld [vmem:[%s4478_s1 + $0x3c8] sm:$0xff]   ;;  %v4337_v55 = vld [vmem:[%s3904_s6 + $0x100] sm:$0xff]  ;;  %v3688_v29 = vld [vmem:[%s4478_s1 + $0x370] sm:$0xff]  }
  0x60   : > { %v3012_v41 = vcombine.low %v583_v24, %v611_v30  ;;  %v603_v45 = vrot.slane %v601_v40, 1  ;;  %v576_v47 = vor.u32 %v575_v42, %v571_v31  ;;  %v2967_v6 = vcombine.low %v4259_v53, %v3970_v57  ;;  %v3670_v56 = vld [vmem:[%s4478_s1 + $0x308] sm:$0xff]   ;;  %v3682_v24 = vld [vmem:[%s4478_s1 + $0x320] sm:$0xff]   ;;  %v3690_v35 = vld [vmem:[%s4478_s1 + $0x330] sm:$0xff]  }
  0x61   : > { %3364 = vmatpush3.bf16.msra.mxu0 %v3658_v10  ;;  %v3009_v50 = vcombine.low %v562_v38, %v590_v44  ;;  %v2984_v8 = vcombine.high %v3973_v58, %v4029_v20  ;;  %v3671_v57 = vld [vmem:[%s4478_s1 + $0x388] sm:$0xff]   ;;  %v3673_v58 = vld [vmem:[%s4478_s1 + $0x3d0] sm:$0xff]   ;;  %v4299_v10 = vld [vmem:[%s3904_s6 + $0x60] sm:$0xff]  ;;  %v2998_v14 = vcombine.high %v4026_v19, %v4071_v59  ;;  %v3000_v21 = vcombine.high %v4036_v25, %v4079_v2 }
  0x62   : > { %3404 = vmatpush3.bf16.msra.mxu1 %v3659_v15  ;;  %3365 = vmatprep.subr.bf16.mxu0 %v3660_v48  ;;  %v604_v51 = vor.u32 %v603_v45, %v599_v39  ;;  %v2981_v11 = vcombine.low %v4299_v10, %v4023_v18  ;;  %v4312_v15 = vld [vmem:[%s3904_s6 + $0x68] sm:$0xff]  ;;  %v3676_v18 = vld [vmem:[%s4478_s1 + $0x358] sm:$0xff]   ;;  %v3680_v48 = vld [vmem:[%s4478_s1 + $0x360] sm:$0xff]   ;;  %v2997_v4 = vcombine.low %v4026_v19, %v4071_v59 }
  0x63   : > { %3405 = vmatprep.subr.bf16.mxu1 %v3661_v34  ;;  %2438 = vmatprep.mubr.bf16.mxu1 %v3012_v41  ;;  %v2983_v16 = vcombine.low %v4312_v15, %v4029_v20  ;;  %v3678_v20 = vld [vmem:[%s4478_s1 + $0x318] sm:$0xff]   ;;  %v4342_v23 = vld [vmem:[%s3904_s6 + $0x108] sm:$0xff]  ;;  %v3014_v26 = vcombine.high %v4074_v60, %v4337_v55  ;;  %v2999_v27 = vcombine.low %v4036_v25, %v4079_v2  ;;  %v3683_v19 = vld [vmem:[%s4478_s1 + $0x3a0] sm:$0xff]  }
  0x64   : > { %2374 = vmatmul.mubr.bf16.gmra.mrb[28].mxu0 %v3009_v50  ;;  %v3011_v62 = vcombine.low %v576_v47, %v604_v51  ;;  %v3684_v28 = vld [vmem:[%s4478_s1 + $0x368] sm:$0xff]   ;;  %v3016_v59 = vcombine.high %v4082_v3, %v4342_v23  ;;  %v3013_v31 = vcombine.low %v4074_v60, %v4337_v55  ;;  %v3015_v32 = vcombine.low %v4082_v3, %v4342_v23  ;;  %v3689_v34 = vld [vmem:[%s4478_s1 + $0x3f0] sm:$0xff]   ;;  %v3732_v60 = vld [vmem:[%s3904_s6 + $0x40] sm:$0xff] }
  0x65   : > { %3366 = vmatpush3.bf16.msra.mxu0 %v3662_v37  ;;  %2479 = vmatprep.mubr.bf16.mxu0 %v2966_v49  ;;  %v3685_v25 = vld [vmem:[%s4478_s1 + $0x3e8] sm:$0xff]   ;;  %v2876_v37 = vld [vmem:[%s3904_s6 + $0x30] sm:$0x11]  ;;  %v2877_v3 = vld [vmem:[%s3904_s6 + $0x38] sm:$0x11] }
  0x66   : > { %3406 = vmatpush3.bf16.msra.mxu1 %v3663_v36  ;;  %3431 = vmatprep.subr.bf16.mxu0 %v3664_v43  ;;  %v3686_v2 = vld [vmem:[%s4478_s1 + $0x328] sm:$0xff]   ;;  %v2878_v38 = vld [vmem:[%s3904_s6 + $0x50] sm:$0x11]  ;;  %v2924_v39 = vcombine.low %v4264_v63, %v2876_v37  ;;  %v2925_v40 = vcombine.high %v4264_v63, %v2876_v37  ;;  %v2879_v42 = vld [vmem:[%s3904_s6 + $0x58] sm:$0x11]  ;;  %v2926_v44 = vcombine.low %v4259_v53, %v2877_v3 }
  0x67   : > { %3471 = vmatprep.subr.bf16.mxu1 %v3665_v46  ;;  %2439 = vmatmul.mubr.bf16.gmra.mrb[28].mxu1 %v3011_v62  ;;  %v3687_v30 = vld [vmem:[%s4478_s1 + $0x3a8] sm:$0xff]   ;;  %v2928_v36 = vcombine.low %v3732_v60, %v2878_v38  ;;  %v2929_v41 = vcombine.high %v3732_v60, %v2878_v38  ;;  %v3692_v43 = vld [vmem:[%s4478_s1 + $0x378] sm:$0xff]   ;;  %v2927_v45 = vcombine.high %v4259_v53, %v2877_v3  ;;  %v3691_v50 = vld [vmem:[%s4478_s1 + $0x3b0] sm:$0xff]  }
  0x68   : > { %2544 = vmatprep.mubr.bf16.mxu1 %v2968_v61  ;;  %v3733_v46 = vld [vmem:[%s3904_s6 + $0x48] sm:$0xff]  ;;  %v741_v51 = vshrl.u32 %v2924_v39, 16  ;;  %v743_v61 = vshll.u32 %v2924_v39, 16  ;;  %v748_v62 = vshrl.u32 %v2925_v40, 16  ;;  %v750_v63 = vshll.u32 %v2925_v40, 16 }
  0x69   : > { %v2930_v47 = vcombine.low %v3733_v46, %v2879_v42  ;;  %v2931_v49 = vcombine.high %v3733_v46, %v2879_v42  ;;  %v771_v53 = vshll.u32 %v2928_v36, 16  ;;  %v3735_v40 = vld [vmem:[%s3904_s6 + $0x88] sm:$0xff] }
  0x6c   : > { %2480 = vmatmul.mubr.bf16.vlgmr.msra.gmra.mrb[32].mxu0 %v2965_v0  ;;  %v3693_v0 = vld [vmem:[%s4478_s1 + $0x3f8] sm:$0xff]  }
  0x6d   : > { %3432 = vmatpush3.bf16.msra.mxu0 %v3666_v33  ;;  %2487 = vmatprep.mubr.bf16.mxu0 %v2982_v5  ;;  %v769_v33 = vshrl.u32 %v2928_v36, 16  ;;  %v778_v5 = vshll.u32 %v2929_v41, 16 }
  0x6e   : > { %3433 = vmatprep.subr.bf16.mxu0 %v3668_v7  ;;  %v745_v7 = vrot.slane %v743_v61, 1 }
  0x6f   : > { %2545 = vmatmul.mubr.bf16.vlgmr.msra.gmra.mrb[32].mxu1 %v2967_v6  ;;  %v3694_v6 = vld [vmem:[%s4478_s1 + $0x338] sm:$0xff]  }
  0x70   : > { %3472 = vmatpush3.bf16.msra.mxu1 %v3667_v1  ;;  %2552 = vmatprep.mubr.bf16.mxu1 %v2984_v8  ;;  %v776_v1 = vshrl.u32 %v2929_v41, 16  ;;  %v755_v8 = vshrl.u32 %v2926_v44, 16 }
  0x71   : > { %3473 = vmatprep.subr.bf16.mxu1 %v3669_v52  ;;  %3434 = vmatpush3.bf16.msra.mxu0 %v3670_v56  ;;  %v752_v52 = vrot.slane %v750_v63, 1  ;;  %v757_v56 = vshll.u32 %v2926_v44, 16 }
  0x72   : > { %3435 = vmatprep.subr.bf16.mxu0 %v3672_v9  ;;  %v780_v9 = vrot.slane %v778_v5, 1 }
  0x74   : > { %3474 = vmatpush3.bf16.msra.mxu1 %v3671_v57  ;;  %2488 = vmatmul.mubr.bf16.gmra.mrb[36].mxu0 %v2981_v11  ;;  %v773_v57 = vrot.slane %v771_v53, 1  ;;  %v764_v11 = vshll.u32 %v2927_v45, 16 }
  0x75   : > { %3475 = vmatprep.subr.bf16.mxu1 %v3673_v58  ;;  %3436 = vmatpush3.bf16.msra.mxu0 %v3674_v12  ;;  %v762_v58 = vshrl.u32 %v2927_v45, 16  ;;  %v2880_v12 = vld [vmem:[%s3904_s6 + $0x70] sm:$0x11] }
  0x76   : > { %2495 = vmatprep.mubr.bf16.mxu0 %v2998_v14  ;;  %3437 = vmatprep.subr.bf16.mxu0 %v3676_v18  ;;  %v753_v14 = vor.u32 %v752_v52, %v748_v62  ;;  %v783_v18 = vshrl.u32 %v2930_v47, 16 }
  0x77   : > { %2553 = vmatmul.mubr.bf16.gmra.mrb[36].mxu1 %v2983_v16  ;;  %v759_v16 = vrot.slane %v757_v56, 1  ;;  %v2886_v56 = vld [vmem:[%s3904_s6 + $0xd0] sm:$0x11] }
  0x78   : > { %3476 = vmatpush3.bf16.msra.mxu1 %v3675_v13  ;;  %2560 = vmatprep.mubr.bf16.mxu1 %v3000_v21  ;;  %v3695_v13 = vld [vmem:[%s4478_s1 + $0x3b8] sm:$0xff]   ;;  %v2882_v21 = vld [vmem:[%s3904_s6 + $0x90] sm:$0x11] }
  0x79   : > { %3477 = vmatprep.subr.bf16.mxu1 %v3677_v17  ;;  %3438 = vmatpush3.bf16.msra.mxu0 %v3678_v20  ;;  %v785_v17 = vshll.u32 %v2930_v47, 16  ;;  %v781_v20 = vor.u32 %v780_v9, %v776_v1 }
  0x7a   : > { %3439 = vmatprep.subr.bf16.mxu0 %v3680_v48  ;;  %v790_v48 = vshrl.u32 %v2931_v49, 16 }
  0x7c   : > { %3478 = vmatpush3.bf16.msra.mxu1 %v3679_v22  ;;  %2496 = vmatmul.mubr.bf16.gmra.mrb[40].mxu0 %v2997_v4  ;;  %v766_v22 = vrot.slane %v764_v11, 1  ;;  %v2881_v4 = vld [vmem:[%s3904_s6 + $0x78] sm:$0x11] }
  0x7d   : > { %3479 = vmatprep.subr.bf16.mxu1 %v3681_v54  ;;  %3440 = vmatpush3.bf16.msra.mxu0 %v3682_v24  ;;  %v792_v54 = vshll.u32 %v2931_v49, 16  ;;  %v787_v24 = vrot.slane %v785_v17, 1  ;;  %v2935_v37 = vcombine.high %v4312_v15, %v2881_v4  ;;  %v2934_v63 = vcombine.low %v4312_v15, %v2881_v4 }
  0x7e   : > { %2503 = vmatprep.mubr.bf16.mxu0 %v3014_v26  ;;  %3441 = vmatprep.subr.bf16.mxu0 %v3684_v28  ;;  %v746_v26 = vor.u32 %v745_v7, %v741_v51  ;;  %v760_v28 = vor.u32 %v759_v16, %v755_v8 }
  0x7f   : > { %2561 = vmatmul.mubr.bf16.gmra.mrb[40].mxu1 %v2999_v27  ;;  %v774_v27 = vor.u32 %v773_v57, %v769_v33  ;;  %v818_v42 = vshrl.u32 %v2935_v37, 16  ;;  %v820_v45 = vshll.u32 %v2935_v37, 16  ;;  %v813_v15 = vshll.u32 %v2934_v63, 16 }
  0x80   : > { %3480 = vmatpush3.bf16.msra.mxu1 %v3683_v19  ;;  %2568 = vmatprep.mubr.bf16.mxu1 %v3016_v59  ;;  %v2883_v19 = vld [vmem:[%s3904_s6 + $0x98] sm:$0x11]  ;;  %v2970_v59 = vcombine.low %v753_v14, %v781_v20  ;;  %v3736_v14 = vld [vmem:[%s3904_s6 + $0xa0] sm:$0xff] }
  0x81   : > { %3481 = vmatprep.subr.bf16.mxu1 %v3685_v25  ;;  %3442 = vmatpush3.bf16.msra.mxu0 %v3686_v2  ;;  %v767_v25 = vor.u32 %v766_v22, %v762_v58  ;;  %v794_v2 = vrot.slane %v792_v54, 1  ;;  %v2939_v60 = vcombine.high %v3735_v40, %v2883_v19  ;;  %v822_v62 = vrot.slane %v820_v45, 1  ;;  %v3737_v22 = vld [vmem:[%s3904_s6 + $0xc0] sm:$0xff]  ;;  %v2887_v54 = vld [vmem:[%s3904_s6 + $0xd8] sm:$0x11] }
  0x82   : > { %3443 = vmatprep.subr.bf16.mxu0 %v3688_v29  ;;  %v2933_v29 = vcombine.high %v4299_v10, %v2880_v12  ;;  %v815_v20 = vrot.slane %v813_v15, 1 }
  0x83   : > { %v795_v38 = vor.u32 %v794_v2, %v790_v48  ;;  %v846_v46 = vshrl.u32 %v2939_v60, 16  ;;  %v848_v49 = vshll.u32 %v2939_v60, 16  ;;  %v823_v7 = vor.u32 %v822_v62, %v818_v42 }
  0x84   : > { %3482 = vmatpush3.bf16.msra.mxu1 %v3687_v30  ;;  %2504 = vmatmul.mubr.bf16.gmra.mrb[44].mxu0 %v3013_v31  ;;  %v2969_v30 = vcombine.low %v746_v26, %v774_v27  ;;  %v788_v31 = vor.u32 %v787_v24, %v783_v18  ;;  %v806_v39 = vshll.u32 %v2933_v29, 16  ;;  %v2885_v18 = vld [vmem:[%s3904_s6 + $0xb8] sm:$0x11]  ;;  %v2945_v48 = vcombine.high %v3737_v22, %v2886_v56 }
  0x85   : > { %3483 = vmatprep.subr.bf16.mxu1 %v3689_v34  ;;  %3444 = vmatpush3.bf16.msra.mxu0 %v3690_v35  ;;  %v804_v35 = vshrl.u32 %v2933_v29, 16  ;;  %v850_v53 = vrot.slane %v848_v49, 1 }
  0x86   : > { %3445 = vmatprep.subr.bf16.mxu0 %v3692_v43  ;;  %2609 = vmatprep.mubr.bf16.mxu0 %v2970_v59  ;;  %v2971_v36 = vcombine.low %v760_v28, %v788_v31  ;;  %v2972_v43 = vcombine.low %v767_v25, %v795_v38  ;;  %v808_v44 = vrot.slane %v806_v39, 1  ;;  %v890_v59 = vshll.u32 %v2945_v48, 16  ;;  %v3738_v25 = vld [vmem:[%s3904_s6 + $0xa8] sm:$0xff] }
  0x87   : > { %2569 = vmatmul.mubr.bf16.gmra.mrb[44].mxu1 %v3015_v32  ;;  %v3734_v32 = vld [vmem:[%s3904_s6 + $0x80] sm:$0xff]  ;;  %v851_v9 = vor.u32 %v850_v53, %v846_v46  ;;  %v2943_v2 = vcombine.high %v3738_v25, %v2885_v18 }
  0x88   : > { %3484 = vmatpush3.bf16.msra.mxu1 %v3691_v50  ;;  %v2937_v34 = vcombine.high %v3734_v32, %v2882_v21  ;;  %v2932_v50 = vcombine.low %v4299_v10, %v2880_v12  ;;  %v2936_v51 = vcombine.low %v3734_v32, %v2882_v21  ;;  %2674 = vmatprep.mubr.bf16.mxu1 %v2972_v43  ;;  %v811_v10 = vshrl.u32 %v2934_v63, 16  ;;  %v3739_v32 = vld [vmem:[%s3904_s6 + $0xc8] sm:$0xff] }
  0x89   : > { %3485 = vmatprep.subr.bf16.mxu1 %v3693_v0  ;;  %3446 = vmatpush3.bf16.msra.mxu0 %v3694_v6  ;;  %v809_v61 = vor.u32 %v808_v44, %v804_v35  ;;  %v2938_v0 = vcombine.low %v3735_v40, %v2883_v19  ;;  %v2884_v6 = vld [vmem:[%s3904_s6 + $0xb0] sm:$0x11]  ;;  %v2988_v17 = vcombine.low %v823_v7, %v851_v9  ;;  %v888_v19 = vshrl.u32 %v2945_v48, 16 }
  0x8a   : > { %v832_v41 = vshrl.u32 %v2937_v34, 16  ;;  %v834_v3 = vshll.u32 %v2937_v34, 16  ;;  %v797_v1 = vshrl.u32 %v2932_v50, 16  ;;  %v799_v5 = vshll.u32 %v2932_v50, 16  ;;  %v2888_v50 = vld [vmem:[%s3904_s6 + $0xf0] sm:$0x11] }
  0x8b   : > { %v825_v52 = vshrl.u32 %v2936_v51, 16  ;;  %v827_v8 = vshll.u32 %v2936_v51, 16  ;;  %v839_v12 = vshrl.u32 %v2938_v0, 16  ;;  %v2941_v16 = vcombine.high %v3736_v14, %v2884_v6 }
  0x8c   : > { %3486 = vmatpush3.bf16.msra.mxu1 %v3695_v13  ;;  %2610 = vmatmul.mubr.bf16.vlgmr.msra.gmra.mrb[48].mxu0 %v2969_v30  ;;  %v836_v47 = vrot.slane %v834_v3, 1  ;;  %v801_v58 = vrot.slane %v799_v5, 1  ;;  %v841_v13 = vshll.u32 %v2938_v0, 16  ;;  %v816_v28 = vor.u32 %v815_v20, %v811_v10  ;;  %v2890_v0 = vld [vmem:[%s3904_s6 + $0x110] sm:$0x11]  ;;  %v3741_v20 = vld [vmem:[%s3904_s6 + $0xe8] sm:$0xff] }
  0x8d   : > { %v829_v11 = vrot.slane %v827_v8, 1  ;;  %v860_v26 = vshrl.u32 %v2941_v16, 16  ;;  %v862_v27 = vshll.u32 %v2941_v16, 16  ;;  %v2947_v34 = vcombine.high %v3739_v32, %v2887_v54  ;;  %v3740_v8 = vld [vmem:[%s3904_s6 + $0xe0] sm:$0xff] }
  0x8e   : > { %v837_v33 = vor.u32 %v836_v47, %v832_v41  ;;  %v802_v21 = vor.u32 %v801_v58, %v797_v1  ;;  %v843_v24 = vrot.slane %v841_v13, 1  ;;  %v892_v37 = vrot.slane %v890_v59, 1 }
  0x8f   : > { %2675 = vmatmul.mubr.bf16.vlgmr.msra.gmra.mrb[48].mxu1 %v2971_v36  ;;  %v830_v4 = vor.u32 %v829_v11, %v825_v52  ;;  %v864_v31 = vrot.slane %v862_v27, 1  ;;  %v874_v38 = vshrl.u32 %v2943_v2, 16  ;;  %v876_v35 = vshll.u32 %v2943_v2, 16  ;;  %v2891_v11 = vld [vmem:[%s3904_s6 + $0x118] sm:$0x11] }
  0x90   : > { %v2986_v57 = vcombine.low %v809_v61, %v837_v33  ;;  %2682 = vmatprep.mubr.bf16.mxu1 %v2988_v17  ;;  %v844_v30 = vor.u32 %v843_v24, %v839_v12  ;;  %v2940_v39 = vcombine.low %v3736_v14, %v2884_v6  ;;  %v902_v36 = vshrl.u32 %v2947_v34, 16 }
  0x91   : > { %v2985_v29 = vcombine.low %v802_v21, %v830_v4  ;;  %v865_v60 = vor.u32 %v864_v31, %v860_v26  ;;  %v904_v41 = vshll.u32 %v2947_v34, 16  ;;  %v893_v3 = vor.u32 %v892_v37, %v888_v19 }
  0x92   : > { %2617 = vmatprep.mubr.bf16.mxu0 %v2986_v57  ;;  %v2987_v40 = vcombine.low %v816_v28, %v844_v30  ;;  %v878_v42 = vrot.slane %v876_v35, 1  ;;  %v2944_v43 = vcombine.low %v3737_v22, %v2886_v56  ;;  %v853_v44 = vshrl.u32 %v2940_v39, 16  ;;  %v2889_v56 = vld [vmem:[%s3904_s6 + $0xf8] sm:$0x11] }
  0x93   : > { %v906_v45 = vrot.slane %v904_v41, 1  ;;  %v855_v46 = vshll.u32 %v2940_v39, 16  ;;  %v2942_v47 = vcombine.low %v3738_v25, %v2885_v18  ;;  %v2946_v49 = vcombine.low %v3739_v32, %v2887_v54 }
  0x94   : > { %2618 = vmatmul.mubr.bf16.gmra.mrb[52].mxu0 %v2985_v29  ;;  %v3002_v51 = vcombine.low %v865_v60, %v893_v3  ;;  %v879_v61 = vor.u32 %v878_v42, %v874_v38  ;;  %v881_v62 = vshrl.u32 %v2944_v43, 16  ;;  %v883_v63 = vshll.u32 %v2944_v43, 16 }
  0x95   : > { %v907_v33 = vor.u32 %v906_v45, %v902_v36  ;;  %v857_v53 = vrot.slane %v855_v46, 1  ;;  %v867_v1 = vshrl.u32 %v2942_v47, 16  ;;  %v869_v5 = vshll.u32 %v2942_v47, 16 }
  0x96   : > { %2625 = vmatprep.mubr.bf16.mxu0 %v3002_v51  ;;  %v885_v6 = vrot.slane %v883_v63, 1  ;;  %v895_v7 = vshrl.u32 %v2946_v49, 16  ;;  %v897_v52 = vshll.u32 %v2946_v49, 16  ;;  %v2949_v10 = vcombine.high %v3740_v8, %v2888_v50 }
  0x97   : > { %2683 = vmatmul.mubr.bf16.gmra.mrb[52].mxu1 %v2987_v40  ;;  %v3004_v57 = vcombine.low %v879_v61, %v907_v33  ;;  %v858_v9 = vor.u32 %v857_v53, %v853_v44  ;;  %v871_v58 = vrot.slane %v869_v5, 1  ;;  %v2953_v15 = vcombine.high %v4337_v55, %v2890_v0 }
  0x98   : > { %v886_v12 = vor.u32 %v885_v6, %v881_v62  ;;  %v899_v13 = vrot.slane %v897_v52, 1  ;;  %v916_v14 = vshrl.u32 %v2949_v10, 16  ;;  %v918_v16 = vshll.u32 %v2949_v10, 16 }
  0x99   : > { %2690 = vmatprep.mubr.bf16.mxu1 %v3004_v57  ;;  %v872_v18 = vor.u32 %v871_v58, %v867_v1  ;;  %v944_v17 = vshrl.u32 %v2953_v15, 16  ;;  %v946_v21 = vshll.u32 %v2953_v15, 16  ;;  %v2951_v22 = vcombine.high %v3741_v20, %v2889_v56  ;;  %v2956_v1 = vld [vmem:[%s4479_s2] ss:$0 sm:$0xff] }
  0x9a   : > { %v3001_v48 = vcombine.low %v858_v9, %v886_v12  ;;  %v900_v54 = vor.u32 %v899_v13, %v895_v7  ;;  %v920_v4 = vrot.slane %v918_v16, 1  ;;  %v2955_v24 = vcombine.high %v4342_v23, %v2891_v11 }
  0x9b   : > { %v948_v26 = vrot.slane %v946_v21, 1  ;;  %v930_v27 = vshrl.u32 %v2951_v22, 16  ;;  %v932_v28 = vshll.u32 %v2951_v22, 16  ;;  %v2948_v19 = vcombine.low %v3740_v8, %v2888_v50 }
  0x9c   : > { %2626 = vmatmul.mubr.bf16.gmra.mrb[56].mxu0 %v3001_v48  ;;  %v3003_v59 = vcombine.low %v872_v18, %v900_v54  ;;  %v921_v25 = vor.u32 %v920_v4, %v916_v14  ;;  %v958_v2 = vshrl.u32 %v2955_v24, 16  ;;  %v960_v29 = vshll.u32 %v2955_v24, 16 }
  0x9d   : > { %v949_v30 = vor.u32 %v948_v26, %v944_v17  ;;  %v934_v31 = vrot.slane %v932_v28, 1  ;;  %v2952_v32 = vcombine.low %v4337_v55, %v2890_v0  ;;  %v909_v34 = vshrl.u32 %v2948_v19, 16 }
  0x9e   : > { %v962_v37 = vrot.slane %v960_v29, 1  ;;  %v911_v38 = vshll.u32 %v2948_v19, 16  ;;  %v2950_v35 = vcombine.low %v3741_v20, %v2889_v56  ;;  %v2954_v39 = vcombine.low %v4342_v23, %v2891_v11 }
  0x9f   : > { %2691 = vmatmul.mubr.bf16.gmra.mrb[56].mxu1 %v3003_v59  ;;  %v3018_v40 = vcombine.low %v921_v25, %v949_v30  ;;  %v935_v60 = vor.u32 %v934_v31, %v930_v27  ;;  %v937_v36 = vshrl.u32 %v2952_v32, 16  ;;  %v939_v41 = vshll.u32 %v2952_v32, 16 }
  0xa0   : > { %v963_v3 = vor.u32 %v962_v37, %v958_v2  ;;  %v913_v42 = vrot.slane %v911_v38, 1  ;;  %v923_v43 = vshrl.u32 %v2950_v35, 16  ;;  %v925_v44 = vshll.u32 %v2950_v35, 16 }
  0xa1   : > { %2633 = vmatprep.mubr.bf16.mxu0 %v3018_v40  ;;  %v941_v45 = vrot.slane %v939_v41, 1  ;;  %v951_v46 = vshrl.u32 %v2954_v39, 16  ;;  %v953_v47 = vshll.u32 %v2954_v39, 16 }
  0xa2   : > { %v3020_v55 = vcombine.low %v935_v60, %v963_v3  ;;  %v914_v49 = vor.u32 %v913_v42, %v909_v34  ;;  %v927_v50 = vrot.slane %v925_v44, 1 }
  0xa3   : > { %v942_v51 = vor.u32 %v941_v45, %v937_v36  ;;  %v955_v61 = vrot.slane %v953_v47, 1 }
  0xa4   : > { %2698 = vmatprep.mubr.bf16.mxu1 %v3020_v55  ;;  %v928_v62 = vor.u32 %v927_v50, %v923_v43 }
  0xa5   : > { %v3017_v23 = vcombine.low %v914_v49, %v942_v51  ;;  %v956_v63 = vor.u32 %v955_v61, %v951_v46 }
  0xa7   : > { %2634 = vmatmul.mubr.bf16.gmra.mrb[60].mxu0 %v3017_v23  ;;  %v3019_v0 = vcombine.low %v928_v62, %v956_v63 }
  0xa9   : > { %2699 = vmatmul.mubr.bf16.gmra.mrb[60].mxu1 %v3019_v0 }
  0xfb   : > { %v3207_v33 = vpop.f32.mrb[0].mxu0 }
  0xfc   : > { %v3247_v53 = vpop.f32.mrb[0].mxu1  ;;  %v3208_v5 = vpop.f32.mrb[1].mxu0 }
  0xfd   : > { %v3209_v6 = vadd.f32 %v3208_v5, %v3207_v33  ;;  %v3248_v7 = vpop.f32.mrb[1].mxu1  ;;  %v3210_v52 = vpop.f32.mrb[2].mxu0 }
  0xfe   : > { %v3249_v8 = vadd.f32 %v3248_v7, %v3247_v53  ;;  %v3250_v10 = vpop.f32.mrb[2].mxu1  ;;  %v3211_v56 = vpop.f32.mrb[3].mxu0 }
  0xff   : > { %v2222_v57 = vadd.f32 %v3209_v6, %v2956_v1  ;;  %v3212_v9 = vadd.f32 %v3211_v56, %v3210_v52  ;;  %v3251_v58 = vpop.f32.mrb[3].mxu1 }
 0x100   : > { %v3252_v15 = vadd.f32 %v3251_v58, %v3250_v10 }
 0x101   : > { %v2287_v11 = vadd.f32 %v3249_v8, %v2222_v57  ;;  %v2225_v12 = vadd.f32 %v3212_v9, %v2956_v1 }
 0x103   : > { %v4437_v13 = vadd.f32 %v3252_v15, %v2225_v12  ;;  %v3213_v14 = vpop.f32.mrb[4].mxu0 }
 0x104   : > { %v3253_v16 = vpop.f32.mrb[4].mxu1  ;;  %v3214_v18 = vpop.f32.mrb[5].mxu0 }
 0x105   : > { %v3254_v17 = vpop.f32.mrb[5].mxu1  ;;  %v3215_v21 = vadd.f32 %v3214_v18, %v3213_v14  ;;  %v3216_v22 = vpop.f32.mrb[6].mxu0 }
 0x106   : > { %v3255_v20 = vadd.f32 %v3254_v17, %v3253_v16  ;;  %v3256_v48 = vpop.f32.mrb[6].mxu1  ;;  %v3217_v54 = vpop.f32.mrb[7].mxu0 }
 0x107   : > { %v3257_v4 = vpop.f32.mrb[7].mxu1  ;;  %v2230_v24 = vadd.f32 %v3215_v21, %v2956_v1  ;;  %v3218_v26 = vadd.f32 %v3217_v54, %v3216_v22 }
 0x108   : > { %v3258_v27 = vadd.f32 %v3257_v4, %v3256_v48 }
 0x109   : > { %v2295_v28 = vadd.f32 %v3255_v20, %v2230_v24  ;;  %v2233_v19 = vadd.f32 %v3218_v26, %v2956_v1 }
 0x10b   : > { %v2298_v59 = vadd.f32 %v3258_v27, %v2233_v19  ;;  %v3219_v25 = vpop.f32.mrb[8].mxu0 }
 0x10c   : > { %v3259_v2 = vpop.f32.mrb[8].mxu1  ;;  %v3220_v29 = vpop.f32.mrb[9].mxu0 }
 0x10d   : > { %v3221_v30 = vadd.f32 %v3220_v29, %v3219_v25  ;;  %v3260_v31 = vpop.f32.mrb[9].mxu1  ;;  %v3222_v32 = vpop.f32.mrb[10].mxu0 }
 0x10e   : > { %v3261_v34 = vadd.f32 %v3260_v31, %v3259_v2  ;;  %v3262_v37 = vpop.f32.mrb[10].mxu1  ;;  %v3223_v38 = vpop.f32.mrb[11].mxu0 }
 0x10f   : > { %v2238_v35 = vadd.f32 %v3221_v30, %v2956_v1  ;;  %v3224_v39 = vadd.f32 %v3223_v38, %v3222_v32  ;;  %v3263_v40 = vpop.f32.mrb[11].mxu1 }
 0x110   : > { %v3264_v60 = vadd.f32 %v3263_v40, %v3262_v37 }
 0x111   : > { %v2303_v36 = vadd.f32 %v3261_v34, %v2238_v35  ;;  %v2241_v41 = vadd.f32 %v3224_v39, %v2956_v1 }
 0x113   : > { %v2306_v3 = vadd.f32 %v3264_v60, %v2241_v41  ;;  %v3225_v42 = vpop.f32.mrb[12].mxu0 }
 0x114   : > { %v3265_v43 = vpop.f32.mrb[12].mxu1  ;;  %v3226_v44 = vpop.f32.mrb[13].mxu0 }
 0x115   : > { %v3227_v45 = vadd.f32 %v3226_v44, %v3225_v42  ;;  %v3266_v46 = vpop.f32.mrb[13].mxu1  ;;  %v3228_v47 = vpop.f32.mrb[14].mxu0 }
 0x116   : > { %v3267_v55 = vadd.f32 %v3266_v46, %v3265_v43  ;;  %v3268_v49 = vpop.f32.mrb[14].mxu1  ;;  %v3229_v50 = vpop.f32.mrb[15].mxu0 }
 0x117   : > { %v2246_v51 = vadd.f32 %v3227_v45, %v2956_v1  ;;  %v3230_v61 = vadd.f32 %v3229_v50, %v3228_v47  ;;  %v3269_v62 = vpop.f32.mrb[15].mxu1 }
 0x118   : > { %v3270_v23 = vadd.f32 %v3269_v62, %v3268_v49 }
 0x119   : > { %v2311_v63 = vadd.f32 %v3267_v55, %v2246_v51  ;;  %v2249_v0 = vadd.f32 %v3230_v61, %v2956_v1 }
 0x11b   : > { %v2314_v33 = vadd.f32 %v3270_v23, %v2249_v0  ;;  %v3287_v53 = vpop.f32.mrb[16].mxu0 }
 0x11c   : > { %v3327_v5 = vpop.f32.mrb[16].mxu1  ;;  %v3288_v6 = vpop.f32.mrb[17].mxu0 }
 0x11d   : > { %v3289_v7 = vadd.f32 %v3288_v6, %v3287_v53  ;;  %v3328_v52 = vpop.f32.mrb[17].mxu1  ;;  %v3290_v8 = vpop.f32.mrb[18].mxu0 }
 0x11e   : > { %v3329_v10 = vadd.f32 %v3328_v52, %v3327_v5  ;;  %v3330_v56 = vpop.f32.mrb[18].mxu1  ;;  %v3291_v57 = vpop.f32.mrb[19].mxu0 }
 0x11f   : > { %v2352_v9 = vadd.f32 %v3289_v7, %v2287_v11  ;;  %v3292_v58 = vadd.f32 %v3291_v57, %v3290_v8  ;;  %v3331_v15 = vpop.f32.mrb[19].mxu1 }
 0x120   : > { %v3332_v12 = vadd.f32 %v3331_v15, %v3330_v56 }
 0x121   : > { %v2417_v14 = vadd.f32 %v3329_v10, %v2352_v9  ;;  %v2355_v16 = vadd.f32 %v3292_v58, %v4437_v13 }
 0x123   : > { %v2420_v18 = vadd.f32 %v3332_v12, %v2355_v16  ;;  %v3293_v17 = vpop.f32.mrb[20].mxu0 }
 0x124   : > { %v3294_v1 = vpop.f32.mrb[21].mxu0 }
 0x125   : > { %v3295_v21 = vadd.f32 %v3294_v1, %v3293_v17  ;;  %v3296_v20 = vpop.f32.mrb[22].mxu0 }
 0x126   : > { %v3297_v22 = vpop.f32.mrb[23].mxu0  ;;  %v3333_v48 = vpop.f32.mrb[20].mxu1 }
 0x127   : > { %v2360_v54 = vadd.f32 %v3295_v21, %v2295_v28  ;;  %v3298_v4 = vadd.f32 %v3297_v22, %v3296_v20  ;;  %v3334_v24 = vpop.f32.mrb[21].mxu1 }
 0x128   : > { %v3335_v26 = vadd.f32 %v3334_v24, %v3333_v48  ;;  %v3336_v27 = vpop.f32.mrb[22].mxu1 }
 0x129   : > { %v2363_v19 = vadd.f32 %v3298_v4, %v2298_v59  ;;  %v3337_v11 = vpop.f32.mrb[23].mxu1 }
 0x12a   : > { %v2425_v25 = vadd.f32 %v3335_v26, %v2360_v54  ;;  %v3338_v2 = vadd.f32 %v3337_v11, %v3336_v27 }
 0x12b   : > { %v3299_v30 = vpop.f32.mrb[24].mxu0 }
 0x12c   : > { %v2428_v29 = vadd.f32 %v3338_v2, %v2363_v19  ;;  %v3300_v31 = vpop.f32.mrb[25].mxu0 }
 0x12d   : > { %v3301_v13 = vadd.f32 %v3300_v31, %v3299_v30  ;;  %v3302_v32 = vpop.f32.mrb[26].mxu0 }
 0x12e   : > { %v3303_v34 = vpop.f32.mrb[27].mxu0 }
 0x12f   : > { %v2368_v38 = vadd.f32 %v3301_v13, %v2303_v36  ;;  %v3304_v35 = vadd.f32 %v3303_v34, %v3302_v32 }
 0x130   : > { %v3339_v37 = vpop.f32.mrb[24].mxu1 }
 0x131   : > { %v3340_v39 = vpop.f32.mrb[25].mxu1  ;;  %v2371_v60 = vadd.f32 %v3304_v35, %v2306_v3 }
 0x132   : > { %v3341_v40 = vadd.f32 %v3340_v39, %v3339_v37  ;;  %v3342_v28 = vpop.f32.mrb[26].mxu1 }
 0x133   : > { %v3343_v41 = vpop.f32.mrb[27].mxu1 }
 0x134   : > { %v2433_v42 = vadd.f32 %v3341_v40, %v2368_v38  ;;  %v3344_v43 = vadd.f32 %v3343_v41, %v3342_v28 }
 0x136   : > { %v2436_v59 = vadd.f32 %v3344_v43, %v2371_v60 }
 0x137   : > { %v3305_v44 = vpop.f32.mrb[28].mxu0 }
 0x138   : > { %v3306_v45 = vpop.f32.mrb[29].mxu0 }
 0x139   : > { %v3307_v47 = vadd.f32 %v3306_v45, %v3305_v44  ;;  %v3308_v55 = vpop.f32.mrb[30].mxu0 }
 0x13a   : > { %v3345_v46 = vpop.f32.mrb[28].mxu1  ;;  %v3309_v50 = vpop.f32.mrb[31].mxu0 }
 0x13b   : > { %v3346_v49 = vpop.f32.mrb[29].mxu1  ;;  %v2376_v51 = vadd.f32 %v3307_v47, %v2311_v63  ;;  %v3310_v36 = vadd.f32 %v3309_v50, %v3308_v55 }
 0x13c   : > { %v3347_v61 = vadd.f32 %v3346_v49, %v3345_v46  ;;  %v3348_v62 = vpop.f32.mrb[30].mxu1 }
 0x13d   : > { %v3349_v23 = vpop.f32.mrb[31].mxu1  ;;  %v2379_v53 = vadd.f32 %v3310_v36, %v2314_v33 }
 0x13e   : > { %v2441_v0 = vadd.f32 %v3347_v61, %v2376_v51  ;;  %v3350_v5 = vadd.f32 %v3349_v23, %v3348_v62 }
 0x13f   : > { %v3367_v6 = vpop.f32.mrb[32].mxu0 }
 0x140   : > { %v2444_v3 = vadd.f32 %v3350_v5, %v2379_v53  ;;  %v3368_v7 = vpop.f32.mrb[33].mxu0 }
 0x141   : > { %v3369_v8 = vadd.f32 %v3368_v7, %v3367_v6  ;;  %v3370_v10 = vpop.f32.mrb[34].mxu0 }
 0x142   : > { %v3407_v52 = vpop.f32.mrb[32].mxu1  ;;  %v3371_v57 = vpop.f32.mrb[35].mxu0 }
 0x143   : > { %v3408_v56 = vpop.f32.mrb[33].mxu1  ;;  %v2482_v9 = vadd.f32 %v3369_v8, %v2417_v14  ;;  %v3372_v12 = vadd.f32 %v3371_v57, %v3370_v10 }
 0x144   : > { %v3409_v58 = vadd.f32 %v3408_v56, %v3407_v52  ;;  %v3410_v15 = vpop.f32.mrb[34].mxu1 }
 0x145   : > { %v3411_v63 = vpop.f32.mrb[35].mxu1  ;;  %v2485_v17 = vadd.f32 %v3372_v12, %v2420_v18 }
 0x146   : > { %v2547_v16 = vadd.f32 %v3409_v58, %v2482_v9  ;;  %v3412_v1 = vadd.f32 %v3411_v63, %v3410_v15 }
 0x147   : > { %v3373_v20 = vpop.f32.mrb[36].mxu0 }
 0x148   : > { %v2550_v21 = vadd.f32 %v3412_v1, %v2485_v17  ;;  %v3374_v33 = vpop.f32.mrb[37].mxu0 }
 0x149   : > { %v3375_v48 = vadd.f32 %v3374_v33, %v3373_v20  ;;  %v3376_v54 = vpop.f32.mrb[38].mxu0 }
 0x14a   : > { %v3413_v22 = vpop.f32.mrb[36].mxu1  ;;  %v3377_v24 = vpop.f32.mrb[39].mxu0 }
 0x14b   : > { %v3414_v4 = vpop.f32.mrb[37].mxu1  ;;  %v2490_v26 = vadd.f32 %v3375_v48, %v2425_v25  ;;  %v3378_v11 = vadd.f32 %v3377_v24, %v3376_v54 }
 0x14c   : > { %v3415_v27 = vadd.f32 %v3414_v4, %v3413_v22  ;;  %v3416_v19 = vpop.f32.mrb[38].mxu1 }
 0x14d   : > { %v3417_v14 = vpop.f32.mrb[39].mxu1  ;;  %v2493_v30 = vadd.f32 %v3378_v11, %v2428_v29 }
 0x14e   : > { %v4440_v2 = vadd.f32 %v3415_v27, %v2490_v26  ;;  %v3418_v31 = vadd.f32 %v3417_v14, %v3416_v19 }
 0x14f   : > { %v3379_v18 = vpop.f32.mrb[40].mxu0 }
 0x150   : > { %v4442_v13 = vadd.f32 %v3418_v31, %v2493_v30  ;;  %v3380_v32 = vpop.f32.mrb[41].mxu0 }
 0x151   : > { %v3381_v37 = vadd.f32 %v3380_v32, %v3379_v18  ;;  %v3382_v38 = vpop.f32.mrb[42].mxu0 }
 0x152   : > { %v3419_v34 = vpop.f32.mrb[40].mxu1  ;;  %v3383_v39 = vpop.f32.mrb[43].mxu0 }
 0x153   : > { %v3420_v35 = vpop.f32.mrb[41].mxu1  ;;  %v2498_v40 = vadd.f32 %v3381_v37, %v2433_v42  ;;  %v3384_v60 = vadd.f32 %v3383_v39, %v3382_v38 }
 0x154   : > { %v3421_v28 = vadd.f32 %v3420_v35, %v3419_v34  ;;  %v3422_v25 = vpop.f32.mrb[42].mxu1 }
 0x155   : > { %v3423_v41 = vpop.f32.mrb[43].mxu1  ;;  %v2501_v44 = vadd.f32 %v3384_v60, %v2436_v59 }
 0x156   : > { %v4444_v43 = vadd.f32 %v3421_v28, %v2498_v40  ;;  %v3424_v45 = vadd.f32 %v3423_v41, %v3422_v25 }
 0x157   : > { %v3385_v46 = vpop.f32.mrb[44].mxu0 }
 0x158   : > { %v4446_v29 = vadd.f32 %v3424_v45, %v2501_v44  ;;  %v3386_v47 = vpop.f32.mrb[45].mxu0 }
 0x159   : > { %v3387_v49 = vadd.f32 %v3386_v47, %v3385_v46  ;;  %v3388_v50 = vpop.f32.mrb[46].mxu0 }
 0x15a   : > { %v3425_v55 = vpop.f32.mrb[44].mxu1  ;;  %v3389_v61 = vpop.f32.mrb[47].mxu0 }
 0x15b   : > { %v3426_v51 = vpop.f32.mrb[45].mxu1  ;;  %v2506_v62 = vadd.f32 %v3387_v49, %v2441_v0  ;;  %v3390_v23 = vadd.f32 %v3389_v61, %v3388_v50 }
 0x15c   : > { %v3427_v36 = vadd.f32 %v3426_v51, %v3425_v55  ;;  %v3428_v42 = vpop.f32.mrb[46].mxu1 }
 0x15d   : > { %v3429_v53 = vpop.f32.mrb[47].mxu1  ;;  %v2509_v6 = vadd.f32 %v3390_v23, %v2444_v3 }
 0x15e   : > { %v4448_v5 = vadd.f32 %v3427_v36, %v2506_v62  ;;  %v3430_v7 = vadd.f32 %v3429_v53, %v3428_v42 }
 0x15f   : > { %v3447_v52 = vpop.f32.mrb[48].mxu0 }
 0x160   : > { %v4450_v59 = vadd.f32 %v3430_v7, %v2509_v6  ;;  %v3448_v8 = vpop.f32.mrb[49].mxu0 }
 0x161   : > { %v3449_v10 = vadd.f32 %v3448_v8, %v3447_v52  ;;  %v3450_v56 = vpop.f32.mrb[50].mxu0 }
 0x162   : > { %v3451_v57 = vpop.f32.mrb[51].mxu0  ;;  %v3487_v9 = vpop.f32.mrb[48].mxu1 }
 0x163   : > { %v2612_v58 = vadd.f32 %v3449_v10, %v2547_v16  ;;  %v3452_v15 = vadd.f32 %v3451_v57, %v3450_v56  ;;  %v3488_v0 = vpop.f32.mrb[49].mxu1 }
 0x164   : > { %v3489_v12 = vadd.f32 %v3488_v0, %v3487_v9  ;;  %v3490_v63 = vpop.f32.mrb[50].mxu1 }
 0x165   : > { %v2615_v17 = vadd.f32 %v3452_v15, %v2550_v21  ;;  %v3491_v1 = vpop.f32.mrb[51].mxu1 }
 0x166   : > { %v2677_v20 = vadd.f32 %v3489_v12, %v2612_v58  ;;  %v3492_v33 = vadd.f32 %v3491_v1, %v3490_v63 }
 0x167   : > { %v3453_v54 = vpop.f32.mrb[52].mxu0 }
 0x168   : > { %v2715_v3 = vmul.f32 0.2, %v2677_v20  ;;  %v2680_v22 = vadd.f32 %v3492_v33, %v2615_v17  ;;  %vm2707_vm0 = vcmp.ge.f32.partialorder %v2677_v20, 0.0  ;;  %v3454_v24 = vpop.f32.mrb[53].mxu0 }
 0x169   : > { %v3455_v27 = vadd.f32 %v3454_v24, %v3453_v54  ;;  %v3456_v19 = vpop.f32.mrb[54].mxu0 }
 0x16a   : > { %vm2708_vm1 = vcmp.ge.f32.partialorder %v2680_v22, 0.0  ;;  %v2716_v48 = vmul.f32 0.2, %v2680_v22  ;;  %v2723_v4 = vsel %vm2707_vm0, %v2677_v20, %v2715_v3  ;;  %v3493_v26 = vpop.f32.mrb[52].mxu1  ;;  %v3457_v14 = vpop.f32.mrb[55].mxu0 }
 0x16b   : > { %v3494_v11 = vpop.f32.mrb[53].mxu1  ;;  %v2620_v30 = vadd.f32 %v3455_v27, %v4440_v2  ;;  %v3458_v32 = vadd.f32 %v3457_v14, %v3456_v19 }
 0x16c   : > { %v2724_v16 = vsel %vm2708_vm1, %v2680_v22, %v2716_v48  ;;  %v3495_v31 = vadd.f32 %v3494_v11, %v3493_v26  ;;  %v3496_v18 = vpop.f32.mrb[54].mxu1 }
 0x16d   : > { %v3171_v21 = vpack.c.bf16 %v2724_v16, %v2723_v4  ;;  %v3497_v34 = vpop.f32.mrb[55].mxu1  ;;  %v2623_v38 = vadd.f32 %v3458_v32, %v4442_v13 }
 0x16e   : > { %v2685_v37 = vadd.f32 %v3495_v31, %v2620_v30  ;;  %v3498_v35 = vadd.f32 %v3497_v34, %v3496_v18 }
 0x16f   : > { %3172 = vst [vmem:[%s4456_s9] sm:$0xff] %v3171_v21   ;;  %v3459_v25 = vpop.f32.mrb[56].mxu0 }
 0x170   : > { %v2717_v39 = vmul.f32 0.2, %v2685_v37  ;;  %v2688_v40 = vadd.f32 %v3498_v35, %v2623_v38  ;;  %vm2709_vm2 = vcmp.ge.f32.partialorder %v2685_v37, 0.0  ;;  %v3460_v44 = vpop.f32.mrb[57].mxu0 }
 0x171   : > { %v3461_v46 = vadd.f32 %v3460_v44, %v3459_v25  ;;  %v3462_v47 = vpop.f32.mrb[58].mxu0 }
 0x172   : > { %vm2710_vm3 = vcmp.ge.f32.partialorder %v2688_v40, 0.0  ;;  %v2718_v28 = vmul.f32 0.2, %v2688_v40  ;;  %v2725_v60 = vsel %vm2709_vm2, %v2685_v37, %v2717_v39  ;;  %v3499_v2 = vpop.f32.mrb[56].mxu1  ;;  %v3463_v49 = vpop.f32.mrb[59].mxu0 }
 0x173   : > { %v3500_v55 = vpop.f32.mrb[57].mxu1  ;;  %v2628_v13 = vadd.f32 %v3461_v46, %v4444_v43  ;;  %v3464_v61 = vadd.f32 %v3463_v49, %v3462_v47 }
 0x174   : > { %v2726_v41 = vsel %vm2710_vm3, %v2688_v40, %v2718_v28  ;;  %v3501_v50 = vadd.f32 %v3500_v55, %v3499_v2  ;;  %v3502_v51 = vpop.f32.mrb[58].mxu1 }
 0x175   : > { %v3176_v45 = vpack.c.bf16 %v2726_v41, %v2725_v60  ;;  %v3503_v62 = vpop.f32.mrb[59].mxu1  ;;  %v2631_v42 = vadd.f32 %v3464_v61, %v4446_v29 }
 0x176   : > { %v2693_v36 = vadd.f32 %v3501_v50, %v2628_v13  ;;  %v3504_v23 = vadd.f32 %v3503_v62, %v3502_v51 }
 0x177   : > { %3188 = vst [vmem:[%s4456_s9 + $0x8] sm:$0xff] %v3176_v45  }
 0x178   : > { %v2719_v53 = vmul.f32 0.2, %v2693_v36  ;;  %v2696_v6 = vadd.f32 %v3504_v23, %v2631_v42  ;;  %vm2711_vm4 = vcmp.ge.f32.partialorder %v2693_v36, 0.0 }
 0x17a   : > { %vm2712_vm5 = vcmp.ge.f32.partialorder %v2696_v6, 0.0  ;;  %v2720_v7 = vmul.f32 0.2, %v2696_v6  ;;  %v3465_v52 = vpop.f32.mrb[60].mxu0  ;;  %v2727_v8 = vsel %vm2711_vm4, %v2693_v36, %v2719_v53 }
 0x17b   : > { %v3466_v56 = vpop.f32.mrb[61].mxu0 }
 0x17c   : > { %v2728_v10 = vsel %vm2712_vm5, %v2696_v6, %v2720_v7  ;;  %v3505_v43 = vpop.f32.mrb[60].mxu1  ;;  %v3467_v9 = vadd.f32 %v3466_v56, %v3465_v52  ;;  %v3468_v58 = vpop.f32.mrb[62].mxu0 }
 0x17d   : > { %v3181_v57 = vpack.c.bf16 %v2728_v10, %v2727_v8  ;;  %v3506_v15 = vpop.f32.mrb[61].mxu1  ;;  %v3469_v0 = vpop.f32.mrb[63].mxu0 }
 0x17e   : > { %v2636_v29 = vadd.f32 %v3467_v9, %v4448_v5  ;;  %v3507_v12 = vadd.f32 %v3506_v15, %v3505_v43  ;;  %v3508_v63 = vpop.f32.mrb[62].mxu1  ;;  %v3470_v17 = vadd.f32 %v3469_v0, %v3468_v58 }
 0x17f   : > { %3189 = vst [vmem:[%s4456_s9 + $0x10] sm:$0xff] %v3181_v57   ;;  %v3509_v1 = vpop.f32.mrb[63].mxu1 }
 0x180   : > { %v2701_v20 = vadd.f32 %v3507_v12, %v2636_v29  ;;  %v2639_v33 = vadd.f32 %v3470_v17, %v4450_v59  ;;  %v3510_v3 = vadd.f32 %v3509_v1, %v3508_v63 }
 0x182   : > { %v2721_v22 = vmul.f32 0.2, %v2701_v20  ;;  %v2704_v48 = vadd.f32 %v3510_v3, %v2639_v33  ;;  %vm2713_vm6 = vcmp.ge.f32.partialorder %v2701_v20, 0.0 }
 0x184   : > { %vm2714_vm7 = vcmp.ge.f32.partialorder %v2704_v48, 0.0  ;;  %v2722_v54 = vmul.f32 0.2, %v2704_v48  ;;  %v2729_v4 = vsel %vm2713_vm6, %v2701_v20, %v2721_v22 }
 0x186   : > { %v2730_v16 = vsel %vm2714_vm7, %v2704_v48, %v2722_v54 }
 0x187   : > { %v3186_v24 = vpack.c.bf16 %v2730_v16, %v2729_v4 }
 0x189   : > { %3190 = vst [vmem:[%s4456_s9 + $0x18] sm:$0xff] %v3186_v24  }
 0x18a PF: > { %s13_s14 = sadd.s32 1, %s3764_s14   ;;  %s4481_s12 = smov %s3760_s13 }
 0x18b   : > { %p10_p5 = scmp.ge.s32.totalorder %s13_s14, 4   ;;  %s4482_s13 = smov %s4484_s15 }
 0x18d   :  { %12 = sbr.rel (!%p10_p5) target bundleno = 2 (0x2), region = 63 }

// kernel: multiscale_discriminator_pallas.11
= control target key start
LH: loop header
LB: loop body
LE: loop exit
PB: predicated region body
PF: predicated region fallthrough
CT: control target
= control target key end

     0   :  { %s3168_s12 = smov 0   ;;  %s3170_s13 = smov 0   ;;  %s3692_s0 = inlined_call_operand.vmem [shape: bf16[2,5,5,512], index: 0, kind: input, shape index: {}]   ;;  %s3693_s1 = inlined_call_operand.vmem [shape: bf16[2048,128], index: 1, kind: input, shape index: {}]   ;;  %s3694_s2 = inlined_call_operand.vmem [shape: f32[1,128], index: 2, kind: input, shape index: {}]   ;;  %s3695_s3 = inlined_call_operand.vmem [shape: bf16[2,16,128], index: 3, kind: output, shape index: {}]  }
   0x1   :  { %s3172_s14 = smov 0  }
   0x2 LB: > { %s25_s15 = sadd.s32 1, %s3141_s13  ;;  %p2504_p0 = scmp.ge.s32.totalorder %s3145_s14, 1  ;;  %s3145_s14 = sphi %s3172_s14, %s13_s14   ;;  %s3141_s13 = sphi %s3170_s13, %s3697_s13   ;;  %s3137_s12 = sphi %s3168_s12, %s3696_s12  }
   0x3   : > { %p27_p1 = scmp.ge.s32.totalorder %s25_s15, 2  ;;  %p151_p2 = scmp.lt.s32.totalorder %s3145_s14, 3 }
   0x5   : > { %s3699_s15 = smov (%p27_p1, %s25_s15), 0  ;;  %p152_p3 = pnand %p2504_p0, %p151_p2 }
   0x6   : > { %v2963_v0 = vld [vmem:[%s3693_s1 + $0x40] sm:$0xff] (!%p152_p3)   ;;  %v2967_v4 = vld [vmem:[%s3693_s1 + $0x48] sm:$0xff] (!%p152_p3)   ;;  %v2971_v8 = vld [vmem:[%s3693_s1 + $0x50] sm:$0xff] (!%p152_p3)   ;;  %p179_p4 = scmp.lt.s32.totalorder (!%p152_p3), %s3137_s12, 1  ;;  %v634_v28 = vlaneseq (!%p152_p3)  ;;  %v3147_v36 = vmov (!%p152_p3), 1983009808  }
   0x7   : > { %155 = sbr.rel (%p152_p3) target bundleno = 380 (0x17c), region = 32  ;;  %v2964_v1 = vld [vmem:[%s3693_s1 + $0xc0] sm:$0xff] (!%p152_p3)   ;;  %2761 = vmatprep.subr.bf16.mxu0 (!%p152_p3), %v2963_v0  ;;  %v2968_v5 = vld [vmem:[%s3693_s1 + $0xc8] sm:$0xff] (!%p152_p3)   ;;  %v2972_v9 = vld [vmem:[%s3693_s1 + $0xd0] sm:$0xff] (!%p152_p3)   ;;  %v632_v37 = vunpack.c.l.s4 (!%p152_p3), %v3147_v36 }
   0x8   : > { %v2965_v2 = vld [vmem:[%s3693_s1] sm:$0xff] (!%p152_p3)   ;;  %2783 = vmatprep.subr.bf16.mxu1 (!%p152_p3), %v2964_v1  ;;  %v2969_v6 = vld [vmem:[%s3693_s1 + $0x8] sm:$0xff] (!%p152_p3)   ;;  %v2973_v10 = vld [vmem:[%s3693_s1 + $0x10] sm:$0xff] (!%p152_p3)   ;;  %v635_v33 = vshrl.u32 (!%p152_p3), %v634_v28, 7 }
   0x9   : > { %v2966_v3 = vld [vmem:[%s3693_s1 + $0x80] sm:$0xff] (!%p152_p3)   ;;  %2762 = vmatpush3.bf16.msra.mxu0 (!%p152_p3), %v2965_v2  ;;  %v2970_v7 = vld [vmem:[%s3693_s1 + $0x88] sm:$0xff] (!%p152_p3)   ;;  %v2974_v11 = vld [vmem:[%s3693_s1 + $0x90] sm:$0xff] (!%p152_p3)   ;;  %v633_v40 = vunpack.c.0.s8 (!%p152_p3), %v632_v37 }
   0xa   : > { %2784 = vmatpush3.bf16.msra.mxu1 (!%p152_p3), %v2966_v3  ;;  %2763 = vmatprep.subr.bf16.mxu0 (!%p152_p3), %v2967_v4  ;;  %v2975_v12 = vld [vmem:[%s3693_s1 + $0x58] sm:$0xff] (!%p152_p3)   ;;  %v2979_v16 = vld [vmem:[%s3693_s1 + $0x60] sm:$0xff] (!%p152_p3)   ;;  %v2983_v20 = vld [vmem:[%s3693_s1 + $0x68] sm:$0xff] (!%p152_p3)  }
   0xb   : > { %2785 = vmatprep.subr.bf16.mxu1 (!%p152_p3), %v2968_v5  ;;  %v2976_v13 = vld [vmem:[%s3693_s1 + $0xd8] sm:$0xff] (!%p152_p3)   ;;  %v2980_v17 = vld [vmem:[%s3693_s1 + $0xe0] sm:$0xff] (!%p152_p3)   ;;  %v2984_v21 = vld [vmem:[%s3693_s1 + $0xe8] sm:$0xff] (!%p152_p3)   ;;  %v3316_v47 = vsub.s32 (!%p152_p3), %v633_v40, %v635_v33 }
   0xc   : > { %v2977_v14 = vld [vmem:[%s3693_s1 + $0x18] sm:$0xff] (!%p152_p3)   ;;  %v2981_v18 = vld [vmem:[%s3693_s1 + $0x20] sm:$0xff] (!%p152_p3)   ;;  %v2985_v22 = vld [vmem:[%s3693_s1 + $0x28] sm:$0xff] (!%p152_p3)  }
   0xd   : > { %2764 = vmatpush3.bf16.msra.mxu0 (!%p152_p3), %v2969_v6  ;;  %v2978_v15 = vld [vmem:[%s3693_s1 + $0x98] sm:$0xff] (!%p152_p3)   ;;  %v2982_v19 = vld [vmem:[%s3693_s1 + $0xa0] sm:$0xff] (!%p152_p3)   ;;  %v2986_v23 = vld [vmem:[%s3693_s1 + $0xa8] sm:$0xff] (!%p152_p3)  }
   0xe   : > { %2786 = vmatpush3.bf16.msra.mxu1 %v2970_v7  ;;  %2765 = vmatprep.subr.bf16.mxu0 %v2971_v8  ;;  %s3701_s12 = smov (!%p179_p4, %s3137_s12), 1  ;;  %v2987_v24 = vld [vmem:[%s3693_s1 + $0x70] sm:$0xff]   ;;  %v2991_v29 = vld [vmem:[%s3693_s1 + $0x78] sm:$0xff]   ;;  %v2995_v42 = vld [vmem:[%s3693_s1 + $0x140] sm:$0xff]  }
   0xf   : > { %2787 = vmatprep.subr.bf16.mxu1 %v2972_v9  ;;  %v2988_v25 = vld [vmem:[%s3693_s1 + $0xf0] sm:$0xff]   ;;  %s2937_s22 = smul.u32 80, %s3701_s12  ;;  %v2992_v30 = vld [vmem:[%s3693_s1 + $0xf8] sm:$0xff]   ;;  %v2996_v43 = vld [vmem:[%s3693_s1 + $0x1c0] sm:$0xff]   ;;  %s2737_s5 = sshll.u32 %s3701_s12, 3 }
  0x10   : > { %v2989_v26 = vld [vmem:[%s3693_s1 + $0x30] sm:$0xff]   ;;  %v2993_v31 = vld [vmem:[%s3693_s1 + $0x38] sm:$0xff]   ;;  %v2997_v59 = vld [vmem:[%s3693_s1 + $0x100] sm:$0xff]   ;;  %s192_s9 = scalar_lea.vmem %s3695_s3, %s2737_s5 }
  0x11   : > { %2766 = vmatpush3.bf16.msra.mxu0 %v2973_v10  ;;  %v2990_v27 = vld [vmem:[%s3693_s1 + $0xb0] sm:$0xff]   ;;  %s3286_s6 = scalar_lea.vmem %s3692_s0, %s2937_s22  ;;  %v2994_v32 = vld [vmem:[%s3693_s1 + $0xb8] sm:$0xff]   ;;  %v2999_v61 = vld [vmem:[%s3693_s1 + $0x148] sm:$0xff]  }
  0x12   : > { %2788 = vmatpush3.bf16.msra.mxu1 %v2974_v11  ;;  %2767 = vmatprep.subr.bf16.mxu0 %v2975_v12  ;;  %v2745_v34 = vld.sshfl [vmem:[%s3286_s6] sm:$0xf pattern:$0x76325410]  ;;  %v3000_v1 = vld [vmem:[%s3693_s1 + $0x1c8] sm:$0xff]   ;;  %v3003_v3 = vld [vmem:[%s3693_s1 + $0x150] sm:$0xff]  }
  0x13   : > { %2789 = vmatprep.subr.bf16.mxu1 %v2976_v13  ;;  %v3296_v35 = vld.sshfl [vmem:[%s3286_s6 + $0x10] sm:$0xf pattern:$0x76325410]  ;;  %v2998_v62 = vld [vmem:[%s3693_s1 + $0x180] sm:$0xff]   ;;  %v3001_v2 = vld [vmem:[%s3693_s1 + $0x108] sm:$0xff]  }
  0x14   : > { %v3299_v38 = vld.sshfl [vmem:[%s3286_s6 + $0x20] sm:$0xf pattern:$0x76325410]  ;;  %v2589_v41 = vcombine.low %v2745_v34, %v3296_v35  ;;  %v3002_v4 = vld [vmem:[%s3693_s1 + $0x188] sm:$0xff]   ;;  %v3004_v5 = vld [vmem:[%s3693_s1 + $0x1d0] sm:$0xff]  }
  0x15   : > { %2768 = vmatpush3.bf16.msra.mxu0 %v2977_v14  ;;  %v3302_v39 = vld.sshfl [vmem:[%s3286_s6 + $0x30] sm:$0xf pattern:$0x76325410]  ;;  %v2597_v44 = vcombine.low %v3296_v35, %v3299_v38  ;;  %v3007_v7 = vld [vmem:[%s3693_s1 + $0x158] sm:$0xff]   ;;  %v3011_v11 = vld [vmem:[%s3693_s1 + $0x160] sm:$0xff]  }
  0x16   : > { %2790 = vmatpush3.bf16.msra.mxu1 %v2978_v15  ;;  %2769 = vmatprep.subr.bf16.mxu0 %v2979_v16  ;;  %v2591_v45 = vcombine.low %v3299_v38, %v3302_v39  ;;  %v2746_v46 = vld.sshfl [vmem:[%s3286_s6 + $0x8] sm:$0xf pattern:$0x76325410]  ;;  %v1157_v51 = vrot.slane %v2589_v41, %v3316_v47  ;;  %v3005_v6 = vld [vmem:[%s3693_s1 + $0x110] sm:$0xff]   ;;  %v3008_v9 = vld [vmem:[%s3693_s1 + $0x1d8] sm:$0xff]  }
  0x17   : > { %2791 = vmatprep.subr.bf16.mxu1 %v2980_v17  ;;  %v3319_v48 = vld.sshfl [vmem:[%s3286_s6 + $0x18] sm:$0xf pattern:$0x76325410]  ;;  %v3006_v8 = vld [vmem:[%s3693_s1 + $0x190] sm:$0xff]   ;;  %v3012_v13 = vld [vmem:[%s3693_s1 + $0x1e0] sm:$0xff]  }
  0x18   : > { %v3322_v49 = vld.sshfl [vmem:[%s3286_s6 + $0x28] sm:$0xf pattern:$0x76325410]  ;;  %v2590_v50 = vcombine.low %v2746_v46, %v3319_v48  ;;  %v1171_v52 = vrot.slane %v2591_v45, %v3316_v47  ;;  %v3009_v10 = vld [vmem:[%s3693_s1 + $0x118] sm:$0xff]   ;;  %v3013_v14 = vld [vmem:[%s3693_s1 + $0x120] sm:$0xff]  }
  0x19   : > { %2770 = vmatpush3.bf16.msra.mxu0 %v2981_v18  ;;  %v3328_v53 = vld.sshfl [vmem:[%s3286_s6 + $0x38] sm:$0xf pattern:$0x76325410]  ;;  %v2598_v54 = vcombine.low %v3319_v48, %v3322_v49  ;;  %v3015_v15 = vld [vmem:[%s3693_s1 + $0x168] sm:$0xff]   ;;  %v3014_v16 = vld [vmem:[%s3693_s1 + $0x1a0] sm:$0xff]  }
  0x1a   : > { %2792 = vmatpush3.bf16.msra.mxu1 %v2982_v19  ;;  %2771 = vmatprep.subr.bf16.mxu0 %v2983_v20  ;;  %v2592_v55 = vcombine.low %v3322_v49, %v3328_v53  ;;  %v1164_v56 = vrot.slane %v2590_v50, %v3316_v47  ;;  %v1180_v57 = vcombine.high %v1157_v51, %v1171_v52  ;;  %v3010_v12 = vld [vmem:[%s3693_s1 + $0x198] sm:$0xff]   ;;  %v3016_v17 = vld [vmem:[%s3693_s1 + $0x1e8] sm:$0xff]   ;;  %v3019_v19 = vld [vmem:[%s3693_s1 + $0x170] sm:$0xff]  }
  0x1b   : > { %2793 = vmatprep.subr.bf16.mxu1 %v2984_v21  ;;  %v1179_v58 = vcombine.low %v1157_v51, %v1171_v52  ;;  %v3017_v18 = vld [vmem:[%s3693_s1 + $0x128] sm:$0xff]   ;;  %v3020_v21 = vld [vmem:[%s3693_s1 + $0x1f0] sm:$0xff]   ;;  %v3026_v36 = vld [vmem:[%s3693_s1 + $0x1b8] sm:$0xff]  }
  0x1c   : > { %v1178_v60 = vrot.slane %v2592_v55, %v3316_v47  ;;  %2107 = vmatprep.mubr.bf16.mxu0 %v1180_v57  ;;  %v3018_v20 = vld [vmem:[%s3693_s1 + $0x1a8] sm:$0xff]   ;;  %v205_v28 = vld [vmem:[%s3286_s6 + $0x10] sm:$0x77]  ;;  %v3056_v35 = vld [vmem:[%s3693_s1 + $0x2d8] sm:$0xff]  }
  0x1d   : > { %2772 = vmatpush3.bf16.msra.mxu0 %v2985_v22  ;;  %v3021_v22 = vld [vmem:[%s3693_s1 + $0x130] sm:$0xff]   ;;  %v2544_v33 = vcombine.low %v205_v28, %v205_v28  ;;  %v2545_v34 = vcombine.high %v205_v28, %v205_v28 }
  0x1e   : > { %2794 = vmatpush3.bf16.msra.mxu1 %v2986_v23  ;;  %2773 = vmatprep.subr.bf16.mxu0 %v2987_v24  ;;  %v1182_v63 = vcombine.high %v1164_v56, %v1178_v60  ;;  %v1181_v0 = vcombine.low %v1164_v56, %v1178_v60  ;;  %v3023_v23 = vld [vmem:[%s3693_s1 + $0x178] sm:$0xff]   ;;  %v3022_v24 = vld [vmem:[%s3693_s1 + $0x1b0] sm:$0xff]  }
  0x1f   : > { %2795 = vmatprep.subr.bf16.mxu1 %v2988_v25  ;;  %v3024_v25 = vld [vmem:[%s3693_s1 + $0x1f8] sm:$0xff]   ;;  %v337_v51 = vshrl.u32 %v2544_v33, 16  ;;  %v339_v52 = vshll.u32 %v2544_v33, 16  ;;  %v344_v55 = vshrl.u32 %v2545_v34, 16  ;;  %v346_v56 = vshll.u32 %v2545_v34, 16  ;;  %v3069_v49 = vld [vmem:[%s3693_s1 + $0x230] sm:$0xff]  }
  0x20   : > { %2148 = vmatprep.mubr.bf16.mxu1 %v1182_v63  ;;  %v3044_v63 = vld [vmem:[%s3693_s1 + $0x2c0] sm:$0xff]  }
  0x21   : > { %2774 = vmatpush3.bf16.msra.mxu0 %v2989_v26  ;;  %v3025_v26 = vld [vmem:[%s3693_s1 + $0x138] sm:$0xff]  }
  0x22   : > { %2796 = vmatpush3.bf16.msra.mxu1 %v2990_v27  ;;  %2775 = vmatprep.subr.bf16.mxu0 %v2991_v29  ;;  %v203_v27 = vld [vmem:[%s3286_s6] sm:$0x77] }
  0x23   : > { %2797 = vmatprep.subr.bf16.mxu1 %v2992_v30  ;;  %v207_v29 = vld [vmem:[%s3286_s6 + $0x20] sm:$0x77]  ;;  %v209_v30 = vld [vmem:[%s3286_s6 + $0x30] sm:$0x77] }
  0x24   : > { %v2548_v37 = vcombine.low %v207_v29, %v207_v29  ;;  %v2549_v40 = vcombine.high %v207_v29, %v207_v29  ;;  %v2552_v41 = vcombine.low %v209_v30, %v209_v30 }
  0x25   : > { %2776 = vmatpush3.bf16.msra.mxu0 %v2993_v31  ;;  %v2540_v31 = vcombine.low %v203_v27, %v203_v27 }
  0x26   : > { %2798 = vmatpush3.bf16.msra.mxu1 %v2994_v32  ;;  %2805 = vmatprep.subr.bf16.mxu0 %v2995_v42  ;;  %v2541_v32 = vcombine.high %v203_v27, %v203_v27  ;;  %v2553_v42 = vcombine.high %v209_v30, %v209_v30  ;;  %v367_v60 = vshll.u32 %v2548_v37, 16 }
  0x27   : > { %2827 = vmatprep.subr.bf16.mxu1 %v2996_v43  ;;  %v309_v43 = vshrl.u32 %v2540_v31, 16  ;;  %v311_v45 = vshll.u32 %v2540_v31, 16 }
  0x28   : > { %2108 = vmatmul.mubr.bf16.vlgmr.msra.gmra.mrb[0].mxu0 %v1179_v58  ;;  %v316_v46 = vshrl.u32 %v2541_v32, 16  ;;  %v318_v50 = vshll.u32 %v2541_v32, 16 }
  0x29   : > { %2806 = vmatpush3.bf16.msra.mxu0 %v2997_v59  ;;  %2149 = vmatmul.mubr.bf16.vlgmr.msra.gmra.mrb[0].mxu1 %v1181_v0  ;;  %v313_v57 = vrot.slane %v311_v45, 1  ;;  %v365_v59 = vshrl.u32 %v2548_v37, 16  ;;  %v341_v0 = vrot.slane %v339_v52, 1 }
  0x2a   : > { %2807 = vmatprep.subr.bf16.mxu0 %v2999_v61  ;;  %2828 = vmatpush3.bf16.msra.mxu1 %v2998_v62  ;;  %v320_v58 = vrot.slane %v318_v50, 1  ;;  %v204_v61 = vld [vmem:[%s3286_s6 + $0x8] sm:$0x77]  ;;  %v3043_v62 = vld [vmem:[%s3693_s1 + $0x240] sm:$0xff]  }
  0x2b   : > { %2829 = vmatprep.subr.bf16.mxu1 %v3000_v1  ;;  %v348_v1 = vrot.slane %v346_v56, 1 }
  0x2d   : > { %2808 = vmatpush3.bf16.msra.mxu0 %v3001_v2  ;;  %v372_v2 = vshrl.u32 %v2549_v40, 16 }
  0x2e   : > { %2809 = vmatprep.subr.bf16.mxu0 %v3003_v3  ;;  %2830 = vmatpush3.bf16.msra.mxu1 %v3002_v4  ;;  %v374_v3 = vshll.u32 %v2549_v40, 16  ;;  %v206_v4 = vld [vmem:[%s3286_s6 + $0x18] sm:$0x77] }
  0x2f   : > { %2831 = vmatprep.subr.bf16.mxu1 %v3004_v5  ;;  %v314_v5 = vor.u32 %v313_v57, %v309_v43  ;;  %v2547_v30 = vcombine.high %v206_v4, %v206_v4 }
  0x31   : > { %2810 = vmatpush3.bf16.msra.mxu0 %v3005_v6  ;;  %v321_v6 = vor.u32 %v320_v58, %v316_v46 }
  0x32   : > { %2811 = vmatprep.subr.bf16.mxu0 %v3007_v7  ;;  %2832 = vmatpush3.bf16.msra.mxu1 %v3006_v8  ;;  %v369_v7 = vrot.slane %v367_v60, 1  ;;  %v393_v8 = vshrl.u32 %v2552_v41, 16 }
  0x33   : > { %2833 = vmatprep.subr.bf16.mxu1 %v3008_v9  ;;  %v342_v9 = vor.u32 %v341_v0, %v337_v51 }
  0x35   : > { %2812 = vmatpush3.bf16.msra.mxu0 %v3009_v10  ;;  %v349_v10 = vor.u32 %v348_v1, %v344_v55  ;;  %v358_v55 = vshrl.u32 %v2547_v30, 16 }
  0x36   : > { %2813 = vmatprep.subr.bf16.mxu0 %v3011_v11  ;;  %2834 = vmatpush3.bf16.msra.mxu1 %v3010_v12  ;;  %v376_v11 = vrot.slane %v374_v3, 1  ;;  %v395_v12 = vshll.u32 %v2552_v41, 16 }
  0x37   : > { %2835 = vmatprep.subr.bf16.mxu1 %v3012_v13  ;;  %v208_v13 = vld [vmem:[%s3286_s6 + $0x28] sm:$0x77] }
  0x38   : > { %v2550_v32 = vcombine.low %v208_v13, %v208_v13  ;;  %v2551_v33 = vcombine.high %v208_v13, %v208_v13 }
  0x39   : > { %2814 = vmatpush3.bf16.msra.mxu0 %v3013_v14  ;;  %v210_v14 = vld [vmem:[%s3286_s6 + $0x38] sm:$0x77] }
  0x3a   : > { %2815 = vmatprep.subr.bf16.mxu0 %v3015_v15  ;;  %2836 = vmatpush3.bf16.msra.mxu1 %v3014_v16  ;;  %v370_v15 = vor.u32 %v369_v7, %v365_v59  ;;  %v400_v16 = vshrl.u32 %v2553_v42, 16  ;;  %v2554_v34 = vcombine.low %v210_v14, %v210_v14  ;;  %v2555_v40 = vcombine.high %v210_v14, %v210_v14 }
  0x3b   : > { %2837 = vmatprep.subr.bf16.mxu1 %v3016_v17  ;;  %v402_v17 = vshll.u32 %v2553_v42, 16  ;;  %v360_v59 = vshll.u32 %v2547_v30, 16 }
  0x3c   : > { %v407_v7 = vshrl.u32 %v2554_v34, 16  ;;  %v416_v14 = vshll.u32 %v2555_v40, 16 }
  0x3d   : > { %2816 = vmatpush3.bf16.msra.mxu0 %v3017_v18  ;;  %v629_v18 = vcombine.low %v314_v5, %v321_v6  ;;  %v362_v3 = vrot.slane %v360_v59, 1  ;;  %v388_v6 = vshll.u32 %v2551_v33, 16  ;;  %v2759_v59 = vld.sshfl [vmem:[%s3286_s6 + $0x40] sm:$0xf pattern:$0x76325410] }
  0x3e   : > { %2817 = vmatprep.subr.bf16.mxu0 %v3019_v19  ;;  %2838 = vmatpush3.bf16.msra.mxu1 %v3018_v20  ;;  %v377_v19 = vor.u32 %v376_v11, %v372_v2  ;;  %v397_v20 = vrot.slane %v395_v12, 1  ;;  %v414_v11 = vshrl.u32 %v2555_v40, 16 }
  0x3f   : > { %2839 = vmatprep.subr.bf16.mxu1 %v3020_v21  ;;  %v697_v21 = vcombine.low %v342_v9, %v349_v10  ;;  %v363_v9 = vor.u32 %v362_v3, %v358_v55  ;;  %v409_v10 = vshll.u32 %v2554_v34, 16  ;;  %v390_v13 = vrot.slane %v388_v6, 1  ;;  %v3050_v55 = vld [vmem:[%s3693_s1 + $0x288] sm:$0xff]   ;;  %v3073_v6 = vld [vmem:[%s3693_s1 + $0x238] sm:$0xff]  }
  0x40   : > { %v398_v27 = vor.u32 %v397_v20, %v393_v8  ;;  %v765_v29 = vcombine.low %v370_v15, %v377_v19  ;;  %v3045_v20 = vld [vmem:[%s3693_s1 + $0x200] sm:$0xff]  }
  0x41   : > { %2818 = vmatpush3.bf16.msra.mxu0 %v3021_v22  ;;  %v2542_v22 = vcombine.low %v204_v61, %v204_v61  ;;  %v705_v28 = vrot.slane %v697_v21, %v3316_v47 }
  0x42   : > { %2819 = vmatprep.subr.bf16.mxu0 %v3023_v23  ;;  %2840 = vmatpush3.bf16.msra.mxu1 %v3022_v24  ;;  %v404_v23 = vrot.slane %v402_v17, 1  ;;  %v637_v24 = vrot.slane %v629_v18, %v3316_v47  ;;  %v411_v17 = vrot.slane %v409_v10, 1 }
  0x43   : > { %2841 = vmatprep.subr.bf16.mxu1 %v3024_v25  ;;  %v2543_v25 = vcombine.high %v204_v61, %v204_v61  ;;  %v323_v41 = vshrl.u32 %v2542_v22, 16  ;;  %v325_v43 = vshll.u32 %v2542_v22, 16  ;;  %v379_v61 = vshrl.u32 %v2550_v32, 16 }
  0x44   : > { %v405_v31 = vor.u32 %v404_v23, %v400_v16  ;;  %v2593_v37 = vcombine.low %v637_v24, %v705_v28  ;;  %v418_v22 = vrot.slane %v416_v14, 1  ;;  %v3047_v24 = vld [vmem:[%s3693_s1 + $0x248] sm:$0xff]   ;;  %v3070_v14 = vld [vmem:[%s3693_s1 + $0x2b0] sm:$0xff]  }
  0x45   : > { %2820 = vmatpush3.bf16.msra.mxu0 %v3025_v26  ;;  %v2546_v26 = vcombine.low %v206_v4, %v206_v4  ;;  %v330_v45 = vshrl.u32 %v2543_v25, 16  ;;  %v332_v46 = vshll.u32 %v2543_v25, 16  ;;  %v327_v57 = vrot.slane %v325_v43, 1  ;;  %v3046_v43 = vld [vmem:[%s3693_s1 + $0x280] sm:$0xff]  }
  0x46   : > { %2842 = vmatpush3.bf16.msra.mxu1 %v3026_v36  ;;  %2849 = vmatprep.subr.bf16.mxu0 %v3043_v62  ;;  %v773_v36 = vrot.slane %v765_v29, %v3316_v47  ;;  %v833_v42 = vcombine.low %v398_v27, %v405_v31  ;;  %v1193_v50 = vrot.slane %v2593_v37, %v3316_v47  ;;  %v381_v62 = vshll.u32 %v2550_v32, 16  ;;  %v3049_v29 = vld [vmem:[%s3693_s1 + $0x208] sm:$0xff]  }
  0x47   : > { %2871 = vmatprep.subr.bf16.mxu1 %v3044_v63  ;;  %v351_v51 = vshrl.u32 %v2546_v26, 16  ;;  %v353_v52 = vshll.u32 %v2546_v26, 16  ;;  %v334_v58 = vrot.slane %v332_v46, 1  ;;  %v386_v63 = vshrl.u32 %v2551_v33, 16  ;;  %v3051_v33 = vld [vmem:[%s3693_s1 + $0x250] sm:$0xff]  }
  0x48   : > { %v841_v56 = vrot.slane %v833_v42, %v3316_v47  ;;  %v328_v1 = vor.u32 %v327_v57, %v323_v41  ;;  %v383_v5 = vrot.slane %v381_v62, 1  ;;  %v412_v25 = vor.u32 %v411_v17, %v407_v7  ;;  %v3055_v41 = vld [vmem:[%s3693_s1 + $0x258] sm:$0xff]   ;;  %v3061_v57 = vld [vmem:[%s3693_s1 + $0x220] sm:$0xff]  }
  0x49   : > { %v355_v60 = vrot.slane %v353_v52, 1  ;;  %v335_v2 = vor.u32 %v334_v58, %v330_v45  ;;  %v391_v21 = vor.u32 %v390_v13, %v386_v63  ;;  %v419_v27 = vor.u32 %v418_v22, %v414_v11  ;;  %v3057_v45 = vld [vmem:[%s3693_s1 + $0x218] sm:$0xff]   ;;  %v3048_v52 = vld [vmem:[%s3693_s1 + $0x2c8] sm:$0xff]   ;;  %v3075_v7 = vld [vmem:[%s3693_s1 + $0x340] sm:$0xff]  }
  0x4a   : > { %v2595_v0 = vcombine.low %v773_v36, %v841_v56  ;;  %v384_v12 = vor.u32 %v383_v5, %v379_v61  ;;  %v3053_v36 = vld [vmem:[%s3693_s1 + $0x210] sm:$0xff]   ;;  %v3063_v58 = vld [vmem:[%s3693_s1 + $0x268] sm:$0xff]   ;;  %v2599_v62 = vcombine.low %v3302_v39, %v2759_v59  ;;  %v1229_v63 = vrot.slane %v2597_v44, %v3316_v47  ;;  %v3058_v44 = vld [vmem:[%s3693_s1 + $0x298] sm:$0xff]  }
  0x4b   : > { %v356_v4 = vor.u32 %v355_v60, %v351_v51  ;;  %v630_v15 = vcombine.low %v328_v1, %v335_v2  ;;  %v834_v31 = vcombine.low %v412_v25, %v419_v27  ;;  %v3059_v51 = vld [vmem:[%s3693_s1 + $0x260] sm:$0xff]   ;;  %v3052_v56 = vld [vmem:[%s3693_s1 + $0x2d0] sm:$0xff]   ;;  %v3065_v61 = vld [vmem:[%s3693_s1 + $0x228] sm:$0xff]   ;;  %v3512_v2 = vrot.slane %v2598_v54, %v3316_v47 }
  0x4c   : > { %v1207_v8 = vrot.slane %v2595_v0, %v3316_v47  ;;  %v766_v28 = vcombine.low %v384_v12, %v391_v21  ;;  %v3054_v60 = vld [vmem:[%s3693_s1 + $0x290] sm:$0xff]   ;;  %v2760_v0 = vld.sshfl [vmem:[%s3286_s6 + $0x48] sm:$0xf pattern:$0x76325410]  ;;  %v1243_v3 = vrot.slane %v2599_v62, %v3316_v47  ;;  %v3071_v54 = vld [vmem:[%s3693_s1 + $0x278] sm:$0xff]  }
  0x4d   : > { %v698_v18 = vcombine.low %v356_v4, %v363_v9  ;;  %v644_v23 = vrot.slane %v630_v15, %v3316_v47  ;;  %v848_v34 = vrot.slane %v834_v31, %v3316_v47  ;;  %v2600_v1 = vcombine.low %v3328_v53, %v2760_v0  ;;  %v3067_v39 = vld [vmem:[%s3693_s1 + $0x270] sm:$0xff]   ;;  %v3060_v4 = vld [vmem:[%s3693_s1 + $0x2e0] sm:$0xff]   ;;  %v3066_v9 = vld [vmem:[%s3693_s1 + $0x2a8] sm:$0xff]  }
  0x4e   : > { %v1216_v16 = vcombine.high %v1193_v50, %v1207_v8  ;;  %v1215_v19 = vcombine.low %v1193_v50, %v1207_v8  ;;  %v780_v30 = vrot.slane %v766_v28, %v3316_v47  ;;  %v1252_v48 = vcombine.high %v1229_v63, %v1243_v3  ;;  %v3062_v5 = vld [vmem:[%s3693_s1 + $0x2a0] sm:$0xff]   ;;  %v3064_v8 = vld [vmem:[%s3693_s1 + $0x2e8] sm:$0xff]   ;;  %v3068_v13 = vld [vmem:[%s3693_s1 + $0x2f0] sm:$0xff]  }
  0x4f   : > { %v712_v26 = vrot.slane %v698_v18, %v3316_v47  ;;  %v1250_v38 = vrot.slane %v2600_v1, %v3316_v47  ;;  %v1251_v10 = vcombine.low %v1229_v63, %v1243_v3  ;;  %v3077_v11 = vld [vmem:[%s3693_s1 + $0x300] sm:$0xff]   ;;  %v3079_v12 = vld [vmem:[%s3693_s1 + $0x348] sm:$0xff]   ;;  %v3072_v17 = vld [vmem:[%s3693_s1 + $0x2f8] sm:$0xff]  }
  0x50   : > { %2189 = vmatprep.mubr.bf16.mxu0 %v1216_v16  ;;  %v2596_v37 = vcombine.low %v780_v30, %v848_v34  ;;  %v3081_v15 = vld [vmem:[%s3693_s1 + $0x308] sm:$0xff]   ;;  %v3083_v16 = vld [vmem:[%s3693_s1 + $0x350] sm:$0xff]   ;;  %v3074_v18 = vld [vmem:[%s3693_s1 + $0x2b8] sm:$0xff]  }
  0x51   : > { %2190 = vmatmul.mubr.bf16.vlgmr.msra.gmra.mrb[4].mxu0 %v1215_v19  ;;  %v2594_v32 = vcombine.low %v644_v23, %v712_v26  ;;  %v1254_v53 = vcombine.high %v3512_v2, %v1250_v38  ;;  %v3085_v19 = vld [vmem:[%s3693_s1 + $0x310] sm:$0xff]   ;;  %v3076_v21 = vld [vmem:[%s3693_s1 + $0x3c0] sm:$0xff]   ;;  %v1253_v23 = vcombine.low %v3512_v2, %v1250_v38  ;;  %v3080_v26 = vld [vmem:[%s3693_s1 + $0x3c8] sm:$0xff]  }
  0x52   : > { %2850 = vmatpush3.bf16.msra.mxu0 %v3045_v20  ;;  %v1214_v42 = vrot.slane %v2596_v37, %v3316_v47  ;;  %2271 = vmatprep.mubr.bf16.mxu0 %v1252_v48  ;;  %v3087_v20 = vld [vmem:[%s3693_s1 + $0x358] sm:$0xff]   ;;  %v3078_v22 = vld [vmem:[%s3693_s1 + $0x380] sm:$0xff]   ;;  %v3082_v27 = vld [vmem:[%s3693_s1 + $0x388] sm:$0xff]  }
  0x53   : > { %2851 = vmatprep.subr.bf16.mxu0 %v3047_v24  ;;  %v1200_v40 = vrot.slane %v2594_v32, %v3316_v47  ;;  %v3089_v24 = vld [vmem:[%s3693_s1 + $0x318] sm:$0xff]   ;;  %v3091_v25 = vld [vmem:[%s3693_s1 + $0x360] sm:$0xff]   ;;  %v3084_v30 = vld [vmem:[%s3693_s1 + $0x3d0] sm:$0xff]  }
  0x54   : > { %v3093_v28 = vld [vmem:[%s3693_s1 + $0x320] sm:$0xff]   ;;  %v2516_v31 = vld [vmem:[%s3286_s6 + $0x10] sm:$0x77]  ;;  %v3090_v2 = vld [vmem:[%s3693_s1 + $0x398] sm:$0xff]  }
  0x55   : > { %v1218_v46 = vcombine.high %v1200_v40, %v1214_v42  ;;  %v1217_v50 = vcombine.low %v1200_v40, %v1214_v42  ;;  %v2518_v32 = vld [vmem:[%s3286_s6 + $0x20] sm:$0x77]  ;;  %v2573_v37 = vcombine.high %v2516_v31, %v2516_v31  ;;  %v3097_v40 = vld [vmem:[%s3693_s1 + $0x328] sm:$0xff]   ;;  %v3103_v48 = vld [vmem:[%s3693_s1 + $0x378] sm:$0xff]  }
  0x56   : > { %2852 = vmatpush3.bf16.msra.mxu0 %v3049_v29  ;;  %v3095_v29 = vld [vmem:[%s3693_s1 + $0x368] sm:$0xff]   ;;  %v2522_v34 = vld [vmem:[%s3286_s6 + $0x40] sm:$0x77]  ;;  %v2577_v42 = vcombine.high %v2518_v32, %v2518_v32 }
  0x57   : > { %2853 = vmatprep.subr.bf16.mxu0 %v3051_v33  ;;  %2230 = vmatprep.mubr.bf16.mxu1 %v1218_v46  ;;  %v2520_v33 = vld [vmem:[%s3286_s6 + $0x30] sm:$0x77]  ;;  %v510_v59 = vshll.u32 %v2573_v37, 16 }
  0x58   : > { %2231 = vmatmul.mubr.bf16.vlgmr.msra.gmra.mrb[4].mxu1 %v1217_v50  ;;  %v3086_v46 = vld [vmem:[%s3693_s1 + $0x390] sm:$0xff]   ;;  %v536_v63 = vshrl.u32 %v2577_v42, 16  ;;  %v538_v0 = vshll.u32 %v2577_v42, 16 }
  0x59   : > { %2872 = vmatpush3.bf16.msra.mxu1 %v3046_v43  ;;  %2312 = vmatprep.mubr.bf16.mxu1 %v1254_v53  ;;  %v2580_v43 = vcombine.low %v2520_v33, %v2520_v33  ;;  %v3099_v50 = vld [vmem:[%s3693_s1 + $0x370] sm:$0xff]   ;;  %v512_v3 = vrot.slane %v510_v59, 1 }
  0x5a   : > { %2854 = vmatpush3.bf16.msra.mxu0 %v3053_v36  ;;  %2873 = vmatprep.subr.bf16.mxu1 %v3048_v52  ;;  %v2572_v36 = vcombine.low %v2516_v31, %v2516_v31  ;;  %v2585_v52 = vcombine.high %v2522_v34, %v2522_v34  ;;  %v540_v53 = vrot.slane %v538_v0, 1 }
  0x5b   : > { %2855 = vmatprep.subr.bf16.mxu0 %v3055_v41  ;;  %v2576_v41 = vcombine.low %v2518_v32, %v2518_v32  ;;  %v557_v1 = vshrl.u32 %v2580_v43, 16  ;;  %v559_v38 = vshll.u32 %v2580_v43, 16 }
  0x5d   : > { %2874 = vmatpush3.bf16.msra.mxu1 %v3050_v55  ;;  %v501_v55 = vshrl.u32 %v2572_v36, 16 }
  0x5e   : > { %2856 = vmatpush3.bf16.msra.mxu0 %v3057_v45  ;;  %2875 = vmatprep.subr.bf16.mxu1 %v3052_v56  ;;  %v2581_v45 = vcombine.high %v2520_v33, %v2520_v33  ;;  %v503_v56 = vshll.u32 %v2572_v36, 16 }
  0x5f   : > { %2857 = vmatprep.subr.bf16.mxu0 %v3059_v51  ;;  %v2584_v51 = vcombine.low %v2522_v34, %v2522_v34 }
  0x60   : > { %v505_v62 = vrot.slane %v503_v56, 1 }
  0x61   : > { %2876 = vmatpush3.bf16.msra.mxu1 %v3054_v60  ;;  %v529_v60 = vshrl.u32 %v2576_v41, 16 }
  0x62   : > { %2858 = vmatpush3.bf16.msra.mxu0 %v3061_v57  ;;  %2877 = vmatprep.subr.bf16.mxu1 %v3056_v35  ;;  %v3088_v57 = vld [vmem:[%s3693_s1 + $0x3d8] sm:$0xff]  }
  0x63   : > { %2859 = vmatprep.subr.bf16.mxu0 %v3063_v58  ;;  %v508_v58 = vshrl.u32 %v2573_v37, 16 }
  0x65   : > { %2878 = vmatpush3.bf16.msra.mxu1 %v3058_v44  ;;  %v564_v44 = vshrl.u32 %v2581_v45, 16 }
  0x66   : > { %2860 = vmatpush3.bf16.msra.mxu0 %v3065_v61  ;;  %2879 = vmatprep.subr.bf16.mxu1 %v3060_v4  ;;  %v531_v61 = vshll.u32 %v2576_v41, 16  ;;  %v585_v4 = vshrl.u32 %v2584_v51, 16 }
  0x67   : > { %2861 = vmatprep.subr.bf16.mxu0 %v3067_v39  ;;  %v3101_v39 = vld [vmem:[%s3693_s1 + $0x330] sm:$0xff]  }
  0x68   : > { %v533_v35 = vrot.slane %v531_v61, 1 }
  0x69   : > { %2880 = vmatpush3.bf16.msra.mxu1 %v3062_v5  ;;  %v2517_v5 = vld [vmem:[%s3286_s6 + $0x18] sm:$0x77] }
  0x6a   : > { %2862 = vmatpush3.bf16.msra.mxu0 %v3069_v49  ;;  %2881 = vmatprep.subr.bf16.mxu1 %v3064_v8  ;;  %v506_v49 = vor.u32 %v505_v62, %v501_v55  ;;  %v534_v8 = vor.u32 %v533_v35, %v529_v60  ;;  %v3100_v55 = vld [vmem:[%s3693_s1 + $0x3f0] sm:$0xff]  }
  0x6b   : > { %2863 = vmatprep.subr.bf16.mxu0 %v3071_v54  ;;  %v566_v54 = vshll.u32 %v2581_v45, 16  ;;  %v3098_v45 = vld [vmem:[%s3693_s1 + $0x3a8] sm:$0xff]  }
  0x6d   : > { %2882 = vmatpush3.bf16.msra.mxu1 %v3066_v9  ;;  %v561_v9 = vrot.slane %v559_v38, 1 }
  0x6e   : > { %2864 = vmatpush3.bf16.msra.mxu0 %v3073_v6  ;;  %2883 = vmatprep.subr.bf16.mxu1 %v3068_v13  ;;  %v3092_v6 = vld [vmem:[%s3693_s1 + $0x3e0] sm:$0xff]   ;;  %v592_v13 = vshrl.u32 %v2585_v52, 16 }
  0x6f   : > { %2893 = vmatprep.subr.bf16.mxu0 %v3075_v7  ;;  %v513_v7 = vor.u32 %v512_v3, %v508_v58  ;;  %v3102_v3 = vld [vmem:[%s3693_s1 + $0x3b0] sm:$0xff]  }
  0x71   : > { %2272 = vmatmul.mubr.bf16.vlgmr.msra.gmra.mrb[8].mxu0 %v1251_v10  ;;  %2884 = vmatpush3.bf16.msra.mxu1 %v3070_v14  ;;  %v587_v10 = vshll.u32 %v2584_v51, 16  ;;  %v594_v14 = vshll.u32 %v2585_v52, 16 }
  0x72   : > { %2894 = vmatpush3.bf16.msra.mxu0 %v3077_v11  ;;  %2885 = vmatprep.subr.bf16.mxu1 %v3072_v17  ;;  %v541_v11 = vor.u32 %v540_v53, %v536_v63  ;;  %v562_v17 = vor.u32 %v561_v9, %v557_v1 }
  0x73   : > { %2895 = vmatprep.subr.bf16.mxu0 %v3079_v12  ;;  %v568_v12 = vrot.slane %v566_v54, 1 }
  0x75   : > { %2886 = vmatpush3.bf16.msra.mxu1 %v3074_v18  ;;  %v589_v18 = vrot.slane %v587_v10, 1 }
  0x76   : > { %2896 = vmatpush3.bf16.msra.mxu0 %v3081_v15  ;;  %2915 = vmatprep.subr.bf16.mxu1 %v3076_v21  ;;  %v2519_v15 = vld [vmem:[%s3286_s6 + $0x28] sm:$0x77]  ;;  %v2574_v21 = vcombine.low %v2517_v5, %v2517_v5 }
  0x77   : > { %2897 = vmatprep.subr.bf16.mxu0 %v3083_v16  ;;  %v3105_v16 = vld [vmem:[%s3693_s1 + $0x338] sm:$0xff]   ;;  %v2578_v31 = vcombine.low %v2519_v15, %v2519_v15  ;;  %v2579_v32 = vcombine.high %v2519_v15, %v2519_v15 }
  0x78   : > { %2313 = vmatmul.mubr.bf16.vlgmr.msra.gmra.mrb[8].mxu1 %v1253_v23  ;;  %v569_v23 = vor.u32 %v568_v12, %v564_v44  ;;  %v515_v43 = vshrl.u32 %v2574_v21, 16  ;;  %v517_v52 = vshll.u32 %v2574_v21, 16 }
  0x79   : > { %2916 = vmatpush3.bf16.msra.mxu1 %v3078_v22  ;;  %v3094_v22 = vld [vmem:[%s3693_s1 + $0x3a0] sm:$0xff]   ;;  %v543_v58 = vshrl.u32 %v2578_v31, 16  ;;  %v545_v59 = vshll.u32 %v2578_v31, 16  ;;  %v550_v63 = vshrl.u32 %v2579_v32, 16 }
  0x7a   : > { %2898 = vmatpush3.bf16.msra.mxu0 %v3085_v19  ;;  %2917 = vmatprep.subr.bf16.mxu1 %v3080_v26  ;;  %v663_v19 = vcombine.low %v506_v49, %v513_v7  ;;  %v2523_v26 = vld [vmem:[%s3286_s6 + $0x48] sm:$0x77]  ;;  %v799_v36 = vcombine.low %v562_v17, %v569_v23  ;;  %v519_v62 = vrot.slane %v517_v52, 1  ;;  %v3104_v49 = vld [vmem:[%s3693_s1 + $0x3f8] sm:$0xff]  }
  0x7b   : > { %2899 = vmatprep.subr.bf16.mxu0 %v3087_v20  ;;  %v2521_v20 = vld [vmem:[%s3286_s6 + $0x38] sm:$0x77]  ;;  %v2586_v41 = vcombine.low %v2523_v26, %v2523_v26  ;;  %v2587_v42 = vcombine.high %v2523_v26, %v2523_v26  ;;  %v547_v1 = vrot.slane %v545_v59, 1 }
  0x7c   : > { %v2582_v37 = vcombine.low %v2521_v20, %v2521_v20  ;;  %v520_v38 = vor.u32 %v519_v62, %v515_v43 }
  0x7d   : > { %2918 = vmatpush3.bf16.msra.mxu1 %v3082_v27  ;;  %v2575_v27 = vcombine.high %v2517_v5, %v2517_v5  ;;  %v548_v54 = vor.u32 %v547_v1, %v543_v58  ;;  %v601_v9 = vshll.u32 %v2586_v41, 16  ;;  %v606_v12 = vshrl.u32 %v2587_v42, 16 }
  0x7e   : > { %2900 = vmatpush3.bf16.msra.mxu0 %v3089_v24  ;;  %2919 = vmatprep.subr.bf16.mxu1 %v3084_v30  ;;  %v596_v24 = vrot.slane %v594_v14, 1  ;;  %v671_v30 = vrot.slane %v663_v19, %v3316_v47  ;;  %v573_v44 = vshll.u32 %v2582_v37, 16  ;;  %v3106_v14 = vld [vmem:[%s3693_s1 + $0x3b8] sm:$0xff]  }
  0x7f   : > { %2901 = vmatprep.subr.bf16.mxu0 %v3091_v25  ;;  %v731_v25 = vcombine.low %v534_v8, %v541_v11  ;;  %v522_v56 = vshrl.u32 %v2575_v27, 16  ;;  %v599_v8 = vshrl.u32 %v2586_v41, 16  ;;  %v603_v17 = vrot.slane %v601_v9, 1  ;;  %v2588_v41 = vld [vmem:[%s3694_s2] ss:$0 sm:$0xff] }
  0x80   : > { %v597_v33 = vor.u32 %v596_v24, %v592_v13  ;;  %v575_v7 = vrot.slane %v573_v44, 1  ;;  %v608_v13 = vshll.u32 %v2587_v42, 16 }
  0x81   : > { %2920 = vmatpush3.bf16.msra.mxu1 %v3086_v46  ;;  %v739_v34 = vrot.slane %v731_v25, %v3316_v47  ;;  %v807_v46 = vrot.slane %v799_v36, %v3316_v47  ;;  %v604_v23 = vor.u32 %v603_v17, %v599_v8 }
  0x82   : > { %2902 = vmatpush3.bf16.msra.mxu0 %v3093_v28  ;;  %2921 = vmatprep.subr.bf16.mxu1 %v3088_v57  ;;  %v3096_v28 = vld [vmem:[%s3693_s1 + $0x3e8] sm:$0xff]   ;;  %v524_v57 = vshll.u32 %v2575_v27, 16 }
  0x83   : > { %2903 = vmatprep.subr.bf16.mxu0 %v3095_v29  ;;  %v590_v29 = vor.u32 %v589_v18, %v585_v4  ;;  %v2601_v51 = vcombine.low %v671_v30, %v739_v34 }
  0x84   : > { %v526_v0 = vrot.slane %v524_v57, 1 }
  0x85   : > { %2922 = vmatpush3.bf16.msra.mxu1 %v3090_v2  ;;  %v1265_v61 = vrot.slane %v2601_v51, %v3316_v47  ;;  %v552_v2 = vshll.u32 %v2579_v32, 16 }
  0x86   : > { %2904 = vmatpush3.bf16.msra.mxu0 %v3097_v40  ;;  %2923 = vmatprep.subr.bf16.mxu1 %v3092_v6  ;;  %v2583_v40 = vcombine.high %v2521_v20, %v2521_v20  ;;  %v527_v53 = vor.u32 %v526_v0, %v522_v56  ;;  %v610_v20 = vrot.slane %v608_v13, 1 }
  0x87   : > { %2905 = vmatprep.subr.bf16.mxu0 %v3099_v50  ;;  %v867_v50 = vcombine.low %v590_v29, %v597_v33  ;;  %v554_v4 = vrot.slane %v552_v2, 1 }
  0x88   : > { %v580_v5 = vshll.u32 %v2583_v40, 16  ;;  %v664_v18 = vcombine.low %v520_v38, %v527_v53  ;;  %v611_v25 = vor.u32 %v610_v20, %v606_v12 }
  0x89   : > { %2924 = vmatpush3.bf16.msra.mxu1 %v3094_v22  ;;  %v875_v60 = vrot.slane %v867_v50, %v3316_v47  ;;  %v555_v10 = vor.u32 %v554_v4, %v550_v63 }
  0x8a   : > { %2906 = vmatpush3.bf16.msra.mxu0 %v3101_v39  ;;  %2925 = vmatprep.subr.bf16.mxu1 %v3096_v28  ;;  %v571_v39 = vshrl.u32 %v2582_v37, 16  ;;  %v582_v11 = vrot.slane %v580_v5, 1  ;;  %v678_v24 = vrot.slane %v664_v18, %v3316_v47  ;;  %v868_v29 = vcombine.low %v604_v23, %v611_v25 }
  0x8b   : > { %2907 = vmatprep.subr.bf16.mxu0 %v3103_v48  ;;  %v2603_v35 = vcombine.low %v807_v46, %v875_v60  ;;  %v578_v48 = vshrl.u32 %v2583_v40, 16  ;;  %v732_v21 = vcombine.low %v548_v54, %v555_v10 }
  0x8c   : > { %v882_v31 = vrot.slane %v868_v29, %v3316_v47 }
  0x8d   : > { %2926 = vmatpush3.bf16.msra.mxu1 %v3098_v45  ;;  %v1279_v6 = vrot.slane %v2603_v35, %v3316_v47  ;;  %v583_v19 = vor.u32 %v582_v11, %v578_v48  ;;  %v746_v26 = vrot.slane %v732_v21, %v3316_v47 }
  0x8e   : > { %2908 = vmatpush3.bf16.msra.mxu0 %v3105_v16  ;;  %2927 = vmatprep.subr.bf16.mxu1 %v3100_v55  ;;  %v576_v16 = vor.u32 %v575_v7, %v571_v39 }
  0x8f   : > { %v1288_v15 = vcombine.high %v1265_v61, %v1279_v6  ;;  %v1287_v22 = vcombine.low %v1265_v61, %v1279_v6  ;;  %v2602_v30 = vcombine.low %v678_v24, %v746_v26 }
  0x90   : > { %v800_v27 = vcombine.low %v576_v16, %v583_v19 }
  0x91   : > { %2928 = vmatpush3.bf16.msra.mxu1 %v3102_v3  ;;  %2353 = vmatprep.mubr.bf16.mxu0 %v1288_v15  ;;  %v1272_v33 = vrot.slane %v2602_v30, %v3316_v47 }
  0x92   : > { %2929 = vmatprep.subr.bf16.mxu1 %v3104_v49  ;;  %2354 = vmatmul.mubr.bf16.vlgmr.msra.gmra.mrb[12].mxu0 %v1287_v22  ;;  %v814_v28 = vrot.slane %v800_v27, %v3316_v47 }
  0x94   : > { %v2604_v32 = vcombine.low %v814_v28, %v882_v31 }
  0x95   : > { %2930 = vmatpush3.bf16.msra.mxu1 %v3106_v14 }
  0x96   : > { %v1286_v34 = vrot.slane %v2604_v32, %v3316_v47 }
  0x98   : > { %v1290_v36 = vcombine.high %v1272_v33, %v1286_v34  ;;  %v1289_v37 = vcombine.low %v1272_v33, %v1286_v34 }
  0x9a   : > { %2394 = vmatprep.mubr.bf16.mxu1 %v1290_v36 }
  0x9b   : > { %2395 = vmatmul.mubr.bf16.vlgmr.msra.gmra.mrb[12].mxu1 %v1289_v37 }
  0xfb   : > { %v2777_v40 = vpop.f32.mrb[0].mxu0 }
  0xfc   : > { %v2778_v42 = vpop.f32.mrb[1].mxu0  ;;  %v2799_v46 = vpop.f32.mrb[0].mxu1 }
  0xfd   : > { %v2779_v43 = vadd.f32 %v2778_v42, %v2777_v40  ;;  %v2780_v45 = vpop.f32.mrb[2].mxu0  ;;  %v2800_v52 = vpop.f32.mrb[1].mxu1 }
  0xfe   : > { %v2781_v50 = vpop.f32.mrb[3].mxu0  ;;  %v2801_v56 = vadd.f32 %v2800_v52, %v2799_v46  ;;  %v2802_v57 = vpop.f32.mrb[2].mxu1 }
  0xff   : > { %v2110_v51 = vadd.f32 %v2779_v43, %v2588_v41  ;;  %v2782_v55 = vadd.f32 %v2781_v50, %v2780_v45  ;;  %v2803_v58 = vpop.f32.mrb[3].mxu1 }
 0x100   : > { %v2804_v60 = vadd.f32 %v2803_v58, %v2802_v57 }
 0x101   : > { %v2113_v47 = vadd.f32 %v2782_v55, %v2588_v41  ;;  %v2151_v59 = vadd.f32 %v2801_v56, %v2110_v51 }
 0x103   : > { %v2154_v61 = vadd.f32 %v2804_v60, %v2113_v47 }
 0x124   : > { %v2821_v62 = vpop.f32.mrb[4].mxu0 }
 0x125   : > { %v2822_v63 = vpop.f32.mrb[5].mxu0 }
 0x126   : > { %v2823_v0 = vadd.f32 %v2822_v63, %v2821_v62  ;;  %v2824_v1 = vpop.f32.mrb[6].mxu0 }
 0x127   : > { %v2825_v2 = vpop.f32.mrb[7].mxu0 }
 0x128   : > { %v2192_v39 = vadd.f32 %v2823_v0, %v2151_v59  ;;  %v2826_v3 = vadd.f32 %v2825_v2, %v2824_v1 }
 0x12a   : > { %v2195_v35 = vadd.f32 %v2826_v3, %v2154_v61 }
 0x12b   : > { %v2843_v38 = vpop.f32.mrb[4].mxu1 }
 0x12c   : > { %v2844_v44 = vpop.f32.mrb[5].mxu1 }
 0x12d   : > { %v2845_v48 = vadd.f32 %v2844_v44, %v2843_v38  ;;  %v2846_v49 = vpop.f32.mrb[6].mxu1 }
 0x12e   : > { %v2847_v53 = vpop.f32.mrb[7].mxu1 }
 0x12f   : > { %v2233_v54 = vadd.f32 %v2845_v48, %v2192_v39  ;;  %v2848_v4 = vadd.f32 %v2847_v53, %v2846_v49 }
 0x131   : > { %v2236_v5 = vadd.f32 %v2848_v4, %v2195_v35 }
 0x144   : > { %v2865_v6 = vpop.f32.mrb[8].mxu0 }
 0x145   : > { %v2866_v7 = vpop.f32.mrb[9].mxu0 }
 0x146   : > { %v2867_v8 = vadd.f32 %v2866_v7, %v2865_v6  ;;  %v2868_v9 = vpop.f32.mrb[10].mxu0 }
 0x147   : > { %v2869_v10 = vpop.f32.mrb[11].mxu0 }
 0x148   : > { %v2274_v11 = vadd.f32 %v2867_v8, %v2233_v54  ;;  %v2870_v12 = vadd.f32 %v2869_v10, %v2868_v9 }
 0x14a   : > { %v2277_v13 = vadd.f32 %v2870_v12, %v2236_v5 }
 0x14b   : > { %v2887_v14 = vpop.f32.mrb[8].mxu1 }
 0x14c   : > { %v2888_v15 = vpop.f32.mrb[9].mxu1 }
 0x14d   : > { %v2889_v16 = vadd.f32 %v2888_v15, %v2887_v14  ;;  %v2890_v17 = vpop.f32.mrb[10].mxu1 }
 0x14e   : > { %v2891_v18 = vpop.f32.mrb[11].mxu1 }
 0x14f   : > { %v2315_v19 = vadd.f32 %v2889_v16, %v2274_v11  ;;  %v2892_v20 = vadd.f32 %v2891_v18, %v2890_v17 }
 0x151   : > { %v2318_v21 = vadd.f32 %v2892_v20, %v2277_v13 }
 0x165   : > { %v2909_v22 = vpop.f32.mrb[12].mxu0 }
 0x166   : > { %v2910_v23 = vpop.f32.mrb[13].mxu0 }
 0x167   : > { %v2911_v24 = vadd.f32 %v2910_v23, %v2909_v22  ;;  %v2912_v25 = vpop.f32.mrb[14].mxu0 }
 0x168   : > { %v2913_v26 = vpop.f32.mrb[15].mxu0 }
 0x169   : > { %v2356_v27 = vadd.f32 %v2911_v24, %v2315_v19  ;;  %v2914_v28 = vadd.f32 %v2913_v26, %v2912_v25 }
 0x16b   : > { %v2359_v29 = vadd.f32 %v2914_v28, %v2318_v21 }
 0x16e   : > { %v2931_v30 = vpop.f32.mrb[12].mxu1 }
 0x16f   : > { %v2932_v31 = vpop.f32.mrb[13].mxu1 }
 0x170   : > { %v2933_v32 = vadd.f32 %v2932_v31, %v2931_v30  ;;  %v2934_v33 = vpop.f32.mrb[14].mxu1 }
 0x171   : > { %v2935_v34 = vpop.f32.mrb[15].mxu1 }
 0x172   : > { %v2397_v36 = vadd.f32 %v2933_v32, %v2356_v27  ;;  %v2936_v37 = vadd.f32 %v2935_v34, %v2934_v33 }
 0x174   : > { %v2405_v40 = vmul.f32 0.2, %v2397_v36  ;;  %v2400_v41 = vadd.f32 %v2936_v37, %v2359_v29  ;;  %vm2403_vm0 = vcmp.ge.f32.partialorder %v2397_v36, 0.0 }
 0x176   : > { %vm2404_vm1 = vcmp.ge.f32.partialorder %v2400_v41, 0.0  ;;  %v2406_v42 = vmul.f32 0.2, %v2400_v41  ;;  %v2407_v43 = vsel %vm2403_vm0, %v2397_v36, %v2405_v40 }
 0x178   : > { %v2408_v45 = vsel %vm2404_vm1, %v2400_v41, %v2406_v42 }
 0x179   : > { %v2743_v46 = vpack.c.bf16 %v2408_v45, %v2407_v43 }
 0x17b   : > { %2744 = vst [vmem:[%s192_s9] sm:$0xff] %v2743_v46  }
 0x17c PF: > { %s13_s14 = sadd.s32 1, %s3145_s14   ;;  %s3696_s12 = smov %s3141_s13 }
 0x17d   : > { %p10_p5 = scmp.ge.s32.totalorder %s13_s14, 4   ;;  %s3697_s13 = smov %s3699_s15 }
 0x17f   :  { %12 = sbr.rel (!%p10_p5) target bundleno = 2 (0x2), region = 63 }

// kernel: multiscale_discriminator_pallas.12
= control target key start
LH: loop header
LB: loop body
LE: loop exit
PB: predicated region body
PF: predicated region fallthrough
CT: control target
= control target key end

     0   :  { %s3191_s12 = smov 0   ;;  %s3193_s13 = smov 0   ;;  %s3903_s0 = inlined_call_operand.vmem [shape: bf16[2,6,6,128], index: 0, kind: input, shape index: {}]   ;;  %s3904_s1 = inlined_call_operand.vmem [shape: bf16[2048,128], index: 1, kind: input, shape index: {}]   ;;  %s3905_s2 = inlined_call_operand.vmem [shape: f32[1,128], index: 2, kind: input, shape index: {}]   ;;  %s3906_s3 = inlined_call_operand.vmem [shape: f32[2,9,128], index: 3, kind: output, shape index: {}]  }
   0x1   :  { %s3195_s14 = smov 0  }
   0x2 LB: > { %s25_s15 = sadd.s32 1, %s3164_s13  ;;  %p2606_p0 = scmp.ge.s32.totalorder %s3168_s14, 1  ;;  %s3168_s14 = sphi %s3195_s14, %s13_s14   ;;  %s3164_s13 = sphi %s3193_s13, %s3908_s13   ;;  %s3160_s12 = sphi %s3191_s12, %s3907_s12  }
   0x3   : > { %p27_p1 = scmp.ge.s32.totalorder %s25_s15, 2  ;;  %p151_p2 = scmp.lt.s32.totalorder %s3168_s14, 3 }
   0x5   : > { %s3910_s15 = smov (%p27_p1, %s25_s15), 0  ;;  %p152_p3 = pnand %p2606_p0, %p151_p2 }
   0x6   : > { %v2994_v0 = vld [vmem:[%s3904_s1 + $0x40] sm:$0xff] (!%p152_p3)   ;;  %v2998_v4 = vld [vmem:[%s3904_s1 + $0x48] sm:$0xff] (!%p152_p3)   ;;  %v3002_v8 = vld [vmem:[%s3904_s1 + $0x50] sm:$0xff] (!%p152_p3)   ;;  %p179_p4 = scmp.lt.s32.totalorder (!%p152_p3), %s3160_s12, 1  ;;  %v493_v39 = vlaneseq (!%p152_p3) }
   0x7   : > { %155 = sbr.rel (%p152_p3) target bundleno = 393 (0x189), region = 32  ;;  %v2995_v1 = vld [vmem:[%s3904_s1 + $0xc0] sm:$0xff] (!%p152_p3)   ;;  %2792 = vmatprep.subr.bf16.mxu0 (!%p152_p3), %v2994_v0  ;;  %v2999_v5 = vld [vmem:[%s3904_s1 + $0xc8] sm:$0xff] (!%p152_p3)   ;;  %v3003_v9 = vld [vmem:[%s3904_s1 + $0xd0] sm:$0xff] (!%p152_p3)  }
   0x8   : > { %v2996_v2 = vld [vmem:[%s3904_s1] sm:$0xff] (!%p152_p3)   ;;  %2814 = vmatprep.subr.bf16.mxu1 (!%p152_p3), %v2995_v1  ;;  %v3000_v6 = vld [vmem:[%s3904_s1 + $0x8] sm:$0xff] (!%p152_p3)   ;;  %v3004_v10 = vld [vmem:[%s3904_s1 + $0x10] sm:$0xff] (!%p152_p3)   ;;  %v3349_v50 = vshrl.u32 (!%p152_p3), %v493_v39, 7 }
   0x9   : > { %v2997_v3 = vld [vmem:[%s3904_s1 + $0x80] sm:$0xff] (!%p152_p3)   ;;  %2793 = vmatpush3.bf16.msra.mxu0 (!%p152_p3), %v2996_v2  ;;  %v3001_v7 = vld [vmem:[%s3904_s1 + $0x88] sm:$0xff] (!%p152_p3)   ;;  %v3005_v11 = vld [vmem:[%s3904_s1 + $0x90] sm:$0xff] (!%p152_p3)  }
   0xa   : > { %2815 = vmatpush3.bf16.msra.mxu1 (!%p152_p3), %v2997_v3  ;;  %2794 = vmatprep.subr.bf16.mxu0 (!%p152_p3), %v2998_v4  ;;  %v3006_v12 = vld [vmem:[%s3904_s1 + $0x58] sm:$0xff] (!%p152_p3)   ;;  %v3010_v16 = vld [vmem:[%s3904_s1 + $0x60] sm:$0xff] (!%p152_p3)   ;;  %v3014_v20 = vld [vmem:[%s3904_s1 + $0x68] sm:$0xff] (!%p152_p3)  }
   0xb   : > { %2816 = vmatprep.subr.bf16.mxu1 (!%p152_p3), %v2999_v5  ;;  %v3007_v13 = vld [vmem:[%s3904_s1 + $0xd8] sm:$0xff] (!%p152_p3)   ;;  %v3011_v17 = vld [vmem:[%s3904_s1 + $0xe0] sm:$0xff] (!%p152_p3)   ;;  %v3015_v21 = vld [vmem:[%s3904_s1 + $0xe8] sm:$0xff] (!%p152_p3)  }
   0xc   : > { %v3008_v14 = vld [vmem:[%s3904_s1 + $0x18] sm:$0xff] (!%p152_p3)   ;;  %v3012_v18 = vld [vmem:[%s3904_s1 + $0x20] sm:$0xff] (!%p152_p3)   ;;  %v3016_v22 = vld [vmem:[%s3904_s1 + $0x28] sm:$0xff] (!%p152_p3)  }
   0xd   : > { %2795 = vmatpush3.bf16.msra.mxu0 (!%p152_p3), %v3000_v6  ;;  %v3009_v15 = vld [vmem:[%s3904_s1 + $0x98] sm:$0xff] (!%p152_p3)   ;;  %v3013_v19 = vld [vmem:[%s3904_s1 + $0xa0] sm:$0xff] (!%p152_p3)   ;;  %v3017_v23 = vld [vmem:[%s3904_s1 + $0xa8] sm:$0xff] (!%p152_p3)  }
   0xe   : > { %2817 = vmatpush3.bf16.msra.mxu1 %v3001_v7  ;;  %2796 = vmatprep.subr.bf16.mxu0 %v3002_v8  ;;  %s3912_s12 = smov (!%p179_p4, %s3160_s12), 1  ;;  %v3018_v24 = vld [vmem:[%s3904_s1 + $0x70] sm:$0xff]   ;;  %v3022_v28 = vld [vmem:[%s3904_s1 + $0x78] sm:$0xff]   ;;  %v3038_v60 = vld [vmem:[%s3904_s1 + $0x140] sm:$0xff]  }
   0xf   : > { %2818 = vmatprep.subr.bf16.mxu1 %v3003_v9  ;;  %v3019_v25 = vld [vmem:[%s3904_s1 + $0xf0] sm:$0xff]   ;;  %s2968_s22 = smul.u32 24, %s3912_s12  ;;  %v3023_v29 = vld [vmem:[%s3904_s1 + $0xf8] sm:$0xff]   ;;  %s2791_s28 = sshll.u32 %s3912_s12, 4 }
  0x10   : > { %v3020_v26 = vld [vmem:[%s3904_s1 + $0x30] sm:$0xff]   ;;  %v3024_v30 = vld [vmem:[%s3904_s1 + $0x38] sm:$0xff]   ;;  %s192_s4 = scalar_lea.vmem %s3906_s3, %s2791_s28 }
  0x11   : > { %2797 = vmatpush3.bf16.msra.mxu0 %v3004_v10  ;;  %v3021_v27 = vld [vmem:[%s3904_s1 + $0xb0] sm:$0xff]   ;;  %s3309_s6 = scalar_lea.vmem %s3903_s0, %s2968_s22  ;;  %v3025_v31 = vld [vmem:[%s3904_s1 + $0xb8] sm:$0xff]  }
  0x12   : > { %2819 = vmatpush3.bf16.msra.mxu1 %v3005_v11  ;;  %2798 = vmatprep.subr.bf16.mxu0 %v3006_v12  ;;  %v3318_v32 = vld [vmem:[%s3309_s6] sm:$0x3]  ;;  %v3321_v33 = vld [vmem:[%s3309_s6 + $0x4] sm:$0x3]  ;;  %v3324_v34 = vld [vmem:[%s3309_s6 + $0x8] sm:$0x3] }
  0x13   : > { %2820 = vmatprep.subr.bf16.mxu1 %v3007_v13  ;;  %v2628_v35 = vcombine.low %v3318_v32, %v3318_v32  ;;  %v2629_v36 = vcombine.low %v3321_v33, %v3321_v33  ;;  %v2630_v37 = vcombine.low %v3324_v34, %v3324_v34  ;;  %v3333_v38 = vld [vmem:[%s3309_s6 + $0x4] sm:$0x3]  ;;  %v3338_v41 = vld [vmem:[%s3309_s6 + $0x8] sm:$0x3]  ;;  %v3341_v44 = vld [vmem:[%s3309_s6 + $0xc] sm:$0x3] }
  0x14   : > { %v2634_v40 = vcombine.low %v3333_v38, %v3333_v38  ;;  %v3344_v46 = vld [vmem:[%s3309_s6] ss:$0 sps:$4 sm:$0x66]   ;;  %v3347_v49 = vld [vmem:[%s3309_s6 + $0x4] ss:$0 sps:$4 sm:$0x66]   ;;  %v2635_v54 = vcombine.low %v3338_v41, %v3338_v41  ;;  %v2636_v0 = vcombine.low %v3341_v44, %v3341_v44 }
  0x15   : > { %2799 = vmatpush3.bf16.msra.mxu0 %v3008_v14  ;;  %v234_v42 = vshll.u32 %v2628_v35, 16  ;;  %v241_v43 = vshll.u32 %v2629_v36, 16  ;;  %v248_v45 = vshll.u32 %v2630_v37, 16  ;;  %v232_v47 = vshrl.u32 %v2628_v35, 16 }
  0x16   : > { %2821 = vmatpush3.bf16.msra.mxu1 %v3009_v15  ;;  %2800 = vmatprep.subr.bf16.mxu0 %v3010_v16  ;;  %v239_v48 = vshrl.u32 %v2629_v36, 16  ;;  %v246_v51 = vshrl.u32 %v2630_v37, 16  ;;  %v3352_v52 = vld [vmem:[%s3309_s6 + $0x8] ss:$0 sps:$4 sm:$0x66]   ;;  %v265_v53 = vshrl.u32 %v3344_v46, 16 }
  0x17   : > { %2822 = vmatprep.subr.bf16.mxu1 %v3011_v17  ;;  %v300_v55 = vshll.u32 %v2634_v40, 16  ;;  %v236_v56 = vrot.slane %v234_v42, 1  ;;  %v243_v57 = vrot.slane %v241_v43, 1  ;;  %v268_v58 = vshll.u32 %v3344_v46, 16 }
  0x18   : > { %v298_v59 = vshrl.u32 %v2634_v40, 16  ;;  %v250_v61 = vrot.slane %v248_v45, 1  ;;  %v267_v62 = vrot.slane %v265_v53, 1  ;;  %v273_v63 = vshrl.u32 %v3347_v49, 16 }
  0x19   : > { %2801 = vmatpush3.bf16.msra.mxu0 %v3012_v18  ;;  %v3035_v1 = vld [vmem:[%s3309_s6 + $0x4] ss:$0 sps:$4 sm:$0x66]   ;;  %v270_v2 = vrot.slane %v268_v58, 2  ;;  %v276_v3 = vshll.u32 %v3347_v49, 16  ;;  %v281_v4 = vshrl.u32 %v3352_v52, 16  ;;  %v237_v11 = vor.u32 %v236_v56, %v232_v47 }
  0x1a   : > { %2823 = vmatpush3.bf16.msra.mxu1 %v3013_v19  ;;  %2802 = vmatprep.subr.bf16.mxu0 %v3014_v20  ;;  %v284_v5 = vshll.u32 %v3352_v52, 16  ;;  %v3036_v6 = vld [vmem:[%s3309_s6 + $0x8] ss:$0 sps:$4 sm:$0x66]   ;;  %v261_v7 = vrot.slane %v3344_v46, 1  ;;  %v275_v8 = vrot.slane %v273_v63, 1  ;;  %v244_v12 = vor.u32 %v243_v57, %v239_v48 }
  0x1b   : > { %2824 = vmatprep.subr.bf16.mxu1 %v3015_v21  ;;  %v302_v9 = vrot.slane %v300_v55, 1  ;;  %v307_v10 = vshll.u32 %v2635_v54, 16  ;;  %v262_v13 = vrot.slane %v3347_v49, 1  ;;  %v278_v14 = vrot.slane %v276_v3, 2  ;;  %v3039_v20 = vld [vmem:[%s3904_s1 + $0x1c0] sm:$0xff]  }
  0x1c   : > { %v3037_v15 = vld [vmem:[%s3309_s6 + $0xc] ss:$0 sps:$4 sm:$0x66]   ;;  %v3372_v16 = vor.u32 %v250_v61, %v246_v51  ;;  %v263_v17 = vrot.slane %v3352_v52, 1  ;;  %v305_v18 = vshrl.u32 %v2635_v54, 16  ;;  %v314_v19 = vshll.u32 %v2636_v0, 16 }
  0x1d   : > { %2803 = vmatpush3.bf16.msra.mxu0 %v3016_v22  ;;  %v271_v21 = vor.u32 %v270_v2, %v267_v62  ;;  %v283_v22 = vrot.slane %v281_v4, 1  ;;  %v347_v35 = vshrl.u32 %v3037_v15, 16  ;;  %v327_v37 = vrot.slane %v3035_v1, 1 }
  0x1e   : > { %2825 = vmatpush3.bf16.msra.mxu1 %v3017_v23  ;;  %2804 = vmatprep.subr.bf16.mxu0 %v3018_v24  ;;  %v286_v23 = vrot.slane %v284_v5, 2  ;;  %v303_v24 = vor.u32 %v302_v9, %v298_v59  ;;  %v316_v36 = vrot.slane %v314_v19, 1  ;;  %v350_v40 = vshll.u32 %v3037_v15, 16 }
  0x1f   : > { %2826 = vmatprep.subr.bf16.mxu1 %v3019_v25  ;;  %v279_v25 = vor.u32 %v278_v14, %v275_v8  ;;  %v349_v46 = vrot.slane %v347_v35, 1  ;;  %v328_v48 = vrot.slane %v3036_v6, 1  ;;  %v3170_v54 = vmov 1966171168  }
  0x20   : > { %v352_v49 = vrot.slane %v350_v40, 2  ;;  %v287_v51 = vor.u32 %v286_v23, %v283_v22  ;;  %v491_v55 = vunpack.c.l.s4 %v3170_v54  ;;  %v329_v57 = vrot.slane %v3037_v15, 1 }
  0x21   : > { %2805 = vmatpush3.bf16.msra.mxu0 %v3020_v26  ;;  %v309_v26 = vrot.slane %v307_v10, 1  ;;  %v486_v59 = vcombine.low %v3318_v32, %v237_v11  ;;  %v488_v61 = vcombine.low %v3333_v38, %v303_v24  ;;  %v750_v5 = vcombine.low %v3324_v34, %v3372_v16 }
  0x22   : > { %2827 = vmatpush3.bf16.msra.mxu1 %v3021_v27  ;;  %2806 = vmatprep.subr.bf16.mxu0 %v3022_v28  ;;  %v312_v27 = vshrl.u32 %v2636_v0, 16  ;;  %v331_v28 = vshrl.u32 %v3035_v1, 16  ;;  %v353_v58 = vor.u32 %v352_v49, %v349_v46  ;;  %v492_v63 = vunpack.c.0.s8 %v491_v55 }
  0x23   : > { %2828 = vmatprep.subr.bf16.mxu1 %v3023_v29  ;;  %v334_v29 = vshll.u32 %v3035_v1, 16  ;;  %v310_v47 = vor.u32 %v309_v26, %v305_v18  ;;  %v618_v0 = vcombine.low %v3321_v33, %v244_v12  ;;  %v619_v1 = vcombine.low %v262_v13, %v279_v25 }
  0x24   : > { %v333_v39 = vrot.slane %v331_v28, 1  ;;  %v317_v56 = vor.u32 %v316_v36, %v312_v27  ;;  %v3383_v4 = vsub.s32 %v492_v63, %v3349_v50 }
  0x25   : > { %2807 = vmatpush3.bf16.msra.mxu0 %v3024_v30  ;;  %v339_v30 = vshrl.u32 %v3036_v6, 16  ;;  %v336_v42 = vrot.slane %v334_v29, 2  ;;  %v620_v2 = vcombine.low %v3338_v41, %v310_v47 }
  0x26   : > { %2829 = vmatpush3.bf16.msra.mxu1 %v3025_v31  ;;  %2836 = vmatprep.subr.bf16.mxu0 %v3038_v60  ;;  %v342_v31 = vshll.u32 %v3036_v6, 16  ;;  %v487_v60 = vcombine.low %v261_v7, %v271_v21  ;;  %v751_v6 = vcombine.low %v263_v17, %v287_v51  ;;  %v752_v32 = vcombine.low %v3341_v44, %v317_v56 }
  0x27   : > { %2858 = vmatprep.subr.bf16.mxu1 %v3039_v20  ;;  %v341_v43 = vrot.slane %v339_v30, 1  ;;  %v337_v52 = vor.u32 %v336_v42, %v333_v39  ;;  %v753_v7 = vcombine.low %v329_v57, %v353_v58  ;;  %v496_v38 = vrot.slane %v486_v59, %v3383_v4 }
  0x28   : > { %v344_v45 = vrot.slane %v342_v31, 2  ;;  %v503_v8 = vrot.slane %v487_v60, %v3383_v4  ;;  %v510_v33 = vrot.slane %v488_v61, %v3383_v4  ;;  %v628_v41 = vrot.slane %v618_v0, %v3383_v4 }
  0x29   : > { %v489_v62 = vcombine.low %v327_v37, %v337_v52  ;;  %v635_v50 = vrot.slane %v619_v1, %v3383_v4  ;;  %v642_v10 = vrot.slane %v620_v2, %v3383_v4  ;;  %v760_v27 = vrot.slane %v750_v5, %v3383_v4 }
  0x2a   : > { %v345_v53 = vor.u32 %v344_v45, %v341_v43  ;;  %v518_v11 = vcombine.low %v496_v38, %v503_v8  ;;  %v519_v12 = vcombine.high %v496_v38, %v503_v8  ;;  %v767_v28 = vrot.slane %v751_v6, %v3383_v4 }
  0x2b   : > { %v517_v9 = vrot.slane %v489_v62, %v3383_v4  ;;  %v650_v14 = vcombine.low %v628_v41, %v635_v50  ;;  %v651_v15 = vcombine.high %v628_v41, %v635_v50  ;;  %v774_v31 = vrot.slane %v752_v32, %v3383_v4  ;;  %v3041_v50 = vld [vmem:[%s3904_s1 + $0x180] sm:$0xff]  }
  0x2c   : > { %v621_v3 = vcombine.low %v328_v48, %v345_v53  ;;  %v535_v18 = vrot.slane %v519_v12, %v3383_v4  ;;  %v528_v25 = vrot.slane %v518_v11, %v3383_v4  ;;  %v781_v35 = vrot.slane %v753_v7, %v3383_v4 }
  0x2d   : > { %v520_v44 = vcombine.low %v510_v33, %v517_v9  ;;  %v521_v13 = vcombine.high %v510_v33, %v517_v9  ;;  %v660_v21 = vrot.slane %v650_v14, %v3383_v4  ;;  %v667_v22 = vrot.slane %v651_v15, %v3383_v4  ;;  %v3040_v33 = vld [vmem:[%s3904_s1 + $0x100] sm:$0xff]   ;;  %v3044_v15 = vld [vmem:[%s3904_s1 + $0x108] sm:$0xff]  }
  0x2e   : > { %v649_v34 = vrot.slane %v621_v3, %v3383_v4  ;;  %v782_v37 = vcombine.low %v760_v27, %v767_v28  ;;  %v783_v39 = vcombine.high %v760_v27, %v767_v28  ;;  %v784_v40 = vcombine.low %v774_v31, %v781_v35  ;;  %v3054_v27 = vld [vmem:[%s3904_s1 + $0x160] sm:$0xff]  }
  0x2f   : > { %v542_v19 = vrot.slane %v520_v44, %v3383_v4  ;;  %v549_v20 = vrot.slane %v521_v13, %v3383_v4  ;;  %v785_v42 = vcombine.high %v774_v31, %v781_v35  ;;  %v3042_v44 = vld [vmem:[%s3904_s1 + $0x148] sm:$0xff]   ;;  %v3055_v28 = vld [vmem:[%s3904_s1 + $0x1e0] sm:$0xff]  }
  0x30   : > { %v652_v16 = vcombine.low %v642_v10, %v649_v34  ;;  %v653_v17 = vcombine.high %v642_v10, %v649_v34  ;;  %v792_v46 = vrot.slane %v782_v37, %v3383_v4  ;;  %v799_v47 = vrot.slane %v783_v39, %v3383_v4  ;;  %v3043_v13 = vld [vmem:[%s3904_s1 + $0x1c8] sm:$0xff]   ;;  %v3062_v39 = vld [vmem:[%s3904_s1 + $0x170] sm:$0xff]  }
  0x31   : > { %v551_v26 = vcombine.low %v535_v18, %v549_v20  ;;  %v550_v36 = vcombine.low %v528_v25, %v542_v19  ;;  %v806_v48 = vrot.slane %v784_v40, %v3383_v4  ;;  %v813_v49 = vrot.slane %v785_v42, %v3383_v4  ;;  %v3046_v19 = vld [vmem:[%s3904_s1 + $0x150] sm:$0xff]   ;;  %v3058_v31 = vld [vmem:[%s3904_s1 + $0x168] sm:$0xff]  }
  0x32   : > { %v674_v23 = vrot.slane %v652_v16, %v3383_v4  ;;  %v681_v24 = vrot.slane %v653_v17, %v3383_v4  ;;  %v3045_v16 = vld [vmem:[%s3904_s1 + $0x188] sm:$0xff]   ;;  %v3047_v20 = vld [vmem:[%s3904_s1 + $0x1d0] sm:$0xff]  }
  0x33   : > { %v814_v54 = vcombine.low %v792_v46, %v806_v48  ;;  %v815_v55 = vcombine.low %v799_v47, %v813_v49  ;;  %v3059_v35 = vld [vmem:[%s3904_s1 + $0x1e8] sm:$0xff]   ;;  %v3063_v40 = vld [vmem:[%s3904_s1 + $0x1f0] sm:$0xff]   ;;  %v3067_v47 = vld [vmem:[%s3904_s1 + $0x1f8] sm:$0xff]  }
  0x34   : > { %v682_v29 = vcombine.low %v660_v21, %v674_v23  ;;  %v683_v30 = vcombine.low %v667_v22, %v681_v24  ;;  %v3048_v21 = vld [vmem:[%s3904_s1 + $0x110] sm:$0xff]   ;;  %v3050_v23 = vld [vmem:[%s3904_s1 + $0x158] sm:$0xff]   ;;  %v3061_v37 = vld [vmem:[%s3904_s1 + $0x1a8] sm:$0xff]  }
  0x35   : > { %v898_v58 = vunpack.i.l.s16 %v815_v55  ;;  %v3049_v22 = vld [vmem:[%s3904_s1 + $0x190] sm:$0xff]   ;;  %v3051_v24 = vld [vmem:[%s3904_s1 + $0x1d8] sm:$0xff]   ;;  %v3536_v55 = vld [vmem:[%s3309_s6 + $0x8] sm:$0x3] }
  0x36   : > { %v890_v43 = vunpack.i.h.s16 %v682_v29  ;;  %v2653_v45 = vpack.i.b16 %v682_v29, %v551_v26  ;;  %v3053_v26 = vld [vmem:[%s3904_s1 + $0x198] sm:$0xff]   ;;  %v3056_v29 = vld [vmem:[%s3904_s1 + $0x120] sm:$0xff]   ;;  %v3064_v42 = vld [vmem:[%s3904_s1 + $0x130] sm:$0xff]  }
  0x37   : > { %v1177_v62 = vcombine.high %v898_v58, %v898_v58  ;;  %v1212_v63 = vrot.slane %v898_v58, %v3383_v4  ;;  %v3068_v48 = vld [vmem:[%s3904_s1 + $0x138] sm:$0xff]   ;;  %v3073_v58 = vld [vmem:[%s3904_s1 + $0x280] sm:$0xff]  }
  0x38   : > { %v2655_v51 = vpack.i.b16 %v683_v30, %v890_v43  ;;  %v2657_v52 = vcombine.low %v528_v25, %v2653_v45  ;;  %v1174_v53 = vcombine.high %v550_v36, %v2653_v45  ;;  %v3052_v25 = vld [vmem:[%s3904_s1 + $0x118] sm:$0xff]   ;;  %v3057_v30 = vld [vmem:[%s3904_s1 + $0x1a0] sm:$0xff]   ;;  %v3060_v36 = vld [vmem:[%s3904_s1 + $0x128] sm:$0xff]  }
  0x39   : > { %v1224_v3 = vcombine.high %v1212_v63, %v1212_v63  ;;  %v1260_v32 = vrot.slane %v1212_v63, %v3383_v4  ;;  %v3425_v7 = vrot.slane %v1177_v62, %v3383_v4  ;;  %v3065_v43 = vld [vmem:[%s3904_s1 + $0x1b0] sm:$0xff]   ;;  %v3069_v49 = vld [vmem:[%s3904_s1 + $0x1b8] sm:$0xff]  }
  0x3a   : > { %v2658_v56 = vcombine.low %v2655_v51, %v792_v46  ;;  %v1184_v57 = vrot.slane %v2657_v52, %v3383_v4  ;;  %v1176_v60 = vcombine.high %v2655_v51, %v814_v54  ;;  %v3415_v61 = vrot.slane %v1174_v53, %v3383_v4  ;;  %v3066_v46 = vld [vmem:[%s3904_s1 + $0x178] sm:$0xff]   ;;  %v3070_v53 = vld [vmem:[%s3904_s1 + $0x240] sm:$0xff]  }
  0x3b   : > { %v1274_v8 = vrot.slane %v1224_v3, %v3383_v4  ;;  %v1225_v10 = vcombine.high %v3425_v7, %v3425_v7  ;;  %v1267_v52 = vrot.slane %v3425_v7, %v3383_v4  ;;  %v3071_v54 = vld [vmem:[%s3904_s1 + $0x2c0] sm:$0xff]  }
  0x3c   : > { %v1198_v59 = vrot.slane %v2658_v56, %v3383_v4  ;;  %v3419_v2 = vrot.slane %v1176_v60, %v3383_v4  ;;  %v3539_v56 = vld [vmem:[%s3309_s6 + $0xc] sm:$0x3]  ;;  %v2640_v60 = vcombine.low %v3536_v55, %v3536_v55 }
  0x3d   : > { %v1281_v14 = vrot.slane %v1225_v10, %v3383_v4  ;;  %v3582_v10 = vld [vmem:[%s3309_s6 + $0x8] ss:$0 sps:$4 sm:$0x66]  }
  0x3e   : > { %v1221_v0 = vcombine.high %v1184_v57, %v1198_v59  ;;  %v1220_v1 = vcombine.low %v1184_v57, %v1198_v59  ;;  %v1223_v38 = vcombine.high %v3415_v61, %v3419_v2  ;;  %v1222_v45 = vcombine.low %v3415_v61, %v3419_v2  ;;  %v3072_v57 = vld [vmem:[%s3904_s1 + $0x200] sm:$0xff]   ;;  %v3548_v59 = vld [vmem:[%s3309_s6 + $0x10] sm:$0x3] }
  0x3f   : > { %v2641_v61 = vcombine.low %v3539_v56, %v3539_v56  ;;  %v3561_v2 = vld [vmem:[%s3309_s6 + $0x10] sm:$0x3]  ;;  %v2642_v3 = vcombine.low %v3548_v59, %v3548_v59  ;;  %v364_v7 = vshrl.u32 %v2640_v60, 16 }
  0x40   : > { %v1246_v5 = vrot.slane %v1221_v0, %v3383_v4  ;;  %v1232_v6 = vrot.slane %v1220_v1, %v3383_v4  ;;  %v1253_v34 = vrot.slane %v1223_v38, %v3383_v4  ;;  %v1239_v51 = vrot.slane %v1222_v45, %v3383_v4  ;;  %v3074_v0 = vld [vmem:[%s3904_s1 + $0x248] sm:$0xff]  }
  0x41   : > { %v3558_v1 = vld [vmem:[%s3309_s6 + $0xc] sm:$0x3]  ;;  %v366_v38 = vshll.u32 %v2640_v60, 16 }
  0x42   : > { %v1282_v9 = vcombine.low %v1232_v6, %v1260_v32  ;;  %v1283_v41 = vcombine.high %v1232_v6, %v1260_v32  ;;  %v1286_v11 = vcombine.low %v1246_v5, %v1274_v8  ;;  %v1287_v12 = vcombine.high %v1246_v5, %v1274_v8  ;;  %v3566_v5 = vld [vmem:[%s3309_s6 + $0x14] sm:$0x3]  ;;  %v3075_v32 = vld [vmem:[%s3904_s1 + $0x2c8] sm:$0xff]  }
  0x43   : > { %v1288_v17 = vcombine.low %v1253_v34, %v1281_v14  ;;  %v1289_v18 = vcombine.high %v1253_v34, %v1281_v14  ;;  %v1284_v62 = vcombine.low %v1239_v51, %v1267_v52  ;;  %v1285_v63 = vcombine.high %v1239_v51, %v1267_v52  ;;  %v3590_v14 = vld [vmem:[%s3309_s6 + $0x10] ss:$0 sps:$4 sm:$0x66]  }
  0x44   : > { %2223 = vmatprep.mubr.bf16.mxu0 %v1286_v11  ;;  %2264 = vmatprep.mubr.bf16.mxu1 %v1287_v12  ;;  %v3570_v6 = vcombine.low %v3558_v1, %v3558_v1  ;;  %v373_v8 = vshll.u32 %v2641_v61, 16  ;;  %v368_v34 = vrot.slane %v366_v38, 1  ;;  %v378_v12 = vshrl.u32 %v2642_v3, 16  ;;  %v3087_v38 = vld [vmem:[%s3904_s1 + $0x2e0] sm:$0xff]  }
  0x45   : > { %2224 = vmatmul.mubr.bf16.vlgmr.msra.gmra.mrb[0].mxu0 %v1282_v9  ;;  %2265 = vmatmul.mubr.bf16.vlgmr.msra.gmra.mrb[0].mxu1 %v1283_v41  ;;  %v3077_v9 = vld [vmem:[%s3904_s1 + $0x288] sm:$0xff]   ;;  %v371_v41 = vshrl.u32 %v2641_v61, 16 }
  0x46   : > { %2837 = vmatpush3.bf16.msra.mxu0 %v3040_v33  ;;  %2859 = vmatpush3.bf16.msra.mxu1 %v3041_v50  ;;  %v3076_v33 = vld [vmem:[%s3904_s1 + $0x208] sm:$0xff]   ;;  %v380_v50 = vshll.u32 %v2642_v3, 16  ;;  %v375_v11 = vrot.slane %v373_v8, 1 }
  0x47   : > { %2838 = vmatprep.subr.bf16.mxu0 %v3042_v44  ;;  %2860 = vmatprep.subr.bf16.mxu1 %v3043_v13  ;;  %v3585_v44 = vld [vmem:[%s3309_s6 + $0xc] ss:$0 sps:$4 sm:$0x66]   ;;  %v2647_v13 = vcombine.low %v3561_v2, %v3561_v2 }
  0x48   : > { %2305 = vmatprep.mubr.bf16.mxu0 %v1288_v17  ;;  %2346 = vmatprep.mubr.bf16.mxu1 %v1289_v18  ;;  %v430_v17 = vshrl.u32 %v3570_v6, 16  ;;  %v432_v18 = vshll.u32 %v3570_v6, 16 }
  0x4a   : > { %2839 = vmatpush3.bf16.msra.mxu0 %v3044_v15  ;;  %2861 = vmatpush3.bf16.msra.mxu1 %v3045_v16  ;;  %v397_v15 = vshrl.u32 %v3582_v10, 16  ;;  %v3595_v16 = vcombine.low %v3566_v5, %v3566_v5 }
  0x4b   : > { %2840 = vmatprep.subr.bf16.mxu0 %v3046_v19  ;;  %2862 = vmatprep.subr.bf16.mxu1 %v3047_v20  ;;  %v3078_v19 = vld [vmem:[%s3904_s1 + $0x250] sm:$0xff]  }
  0x4c   : > { %v3079_v20 = vld [vmem:[%s3904_s1 + $0x2d0] sm:$0xff]  }
  0x4e   : > { %2841 = vmatpush3.bf16.msra.mxu0 %v3048_v21  ;;  %2863 = vmatpush3.bf16.msra.mxu1 %v3049_v22  ;;  %v3605_v21 = vor.u32 %v368_v34, %v364_v7  ;;  %v382_v22 = vrot.slane %v380_v50, 1 }
  0x4f   : > { %2842 = vmatprep.subr.bf16.mxu0 %v3050_v23  ;;  %2864 = vmatprep.subr.bf16.mxu1 %v3051_v24  ;;  %v393_v23 = vrot.slane %v3582_v10, 1  ;;  %v400_v24 = vshll.u32 %v3582_v10, 16 }
  0x52   : > { %2843 = vmatpush3.bf16.msra.mxu0 %v3052_v25  ;;  %2865 = vmatpush3.bf16.msra.mxu1 %v3053_v26  ;;  %v3080_v25 = vld [vmem:[%s3904_s1 + $0x210] sm:$0xff]  }
  0x53   : > { %2844 = vmatprep.subr.bf16.mxu0 %v3054_v27  ;;  %2866 = vmatprep.subr.bf16.mxu1 %v3055_v28  ;;  %v3081_v26 = vld [vmem:[%s3904_s1 + $0x290] sm:$0xff]   ;;  %v3615_v27 = vor.u32 %v375_v11, %v371_v41  ;;  %v394_v28 = vrot.slane %v3585_v44, 1 }
  0x56   : > { %2845 = vmatpush3.bf16.msra.mxu0 %v3056_v29  ;;  %2867 = vmatpush3.bf16.msra.mxu1 %v3057_v30  ;;  %v3618_v29 = vrot.slane %v397_v15, 1  ;;  %v405_v30 = vshrl.u32 %v3585_v44, 16  ;;  %v3089_v15 = vld [vmem:[%s3904_s1 + $0x2a0] sm:$0xff]  }
  0x57   : > { %2846 = vmatprep.subr.bf16.mxu0 %v3058_v31  ;;  %2868 = vmatprep.subr.bf16.mxu1 %v3059_v35  ;;  %v3622_v31 = vld [vmem:[%s3309_s6 + $0xc] ss:$0 sps:$4 sm:$0x66]   ;;  %v3082_v35 = vld [vmem:[%s3904_s1 + $0x258] sm:$0xff]  }
  0x58   : > { %v3636_v45 = vrot.slane %v405_v30, 1  ;;  %v459_v7 = vrot.slane %v3622_v31, 1  ;;  %v463_v41 = vshrl.u32 %v3622_v31, 16  ;;  %v466_v50 = vshll.u32 %v3622_v31, 16 }
  0x5a   : > { %2847 = vmatpush3.bf16.msra.mxu0 %v3060_v36  ;;  %2869 = vmatpush3.bf16.msra.mxu1 %v3061_v37  ;;  %v3083_v36 = vld [vmem:[%s3904_s1 + $0x2d8] sm:$0xff]   ;;  %v402_v37 = vrot.slane %v400_v24, 2 }
  0x5b   : > { %2848 = vmatprep.subr.bf16.mxu0 %v3062_v39  ;;  %2870 = vmatprep.subr.bf16.mxu1 %v3063_v40  ;;  %v408_v39 = vshll.u32 %v3585_v44, 16  ;;  %v413_v40 = vshrl.u32 %v3590_v14, 16 }
  0x5c   : > { %v403_v60 = vor.u32 %v402_v37, %v3618_v29  ;;  %v3091_v29 = vld [vmem:[%s3904_s1 + $0x2e8] sm:$0xff]   ;;  %v684_v37 = vcombine.low %v3539_v56, %v3615_v27 }
  0x5d   : > { %v410_v51 = vrot.slane %v408_v39, 2  ;;  %v3640_v52 = vrot.slane %v413_v40, 1  ;;  %v3092_v39 = vld [vmem:[%s3904_s1 + $0x228] sm:$0xff]  }
  0x5e   : > { %2849 = vmatpush3.bf16.msra.mxu0 %v3064_v42  ;;  %2871 = vmatpush3.bf16.msra.mxu1 %v3065_v43  ;;  %v416_v42 = vshll.u32 %v3590_v14, 16  ;;  %v3634_v43 = vld [vmem:[%s3309_s6 + $0x10] ss:$0 sps:$4 sm:$0x66]   ;;  %v553_v31 = vcombine.low %v393_v23, %v403_v60  ;;  %v3093_v23 = vld [vmem:[%s3904_s1 + $0x2a8] sm:$0xff]  }
  0x5f   : > { %2850 = vmatprep.subr.bf16.mxu0 %v3066_v46  ;;  %2872 = vmatprep.subr.bf16.mxu1 %v3067_v47  ;;  %v434_v46 = vrot.slane %v432_v18, 1  ;;  %v437_v47 = vshrl.u32 %v2647_v13, 16  ;;  %v411_v3 = vor.u32 %v410_v51, %v3636_v45  ;;  %v471_v34 = vshrl.u32 %v3634_v43, 16 }
  0x60   : > { %v474_v11 = vshll.u32 %v3634_v43, 16  ;;  %v694_v45 = vrot.slane %v684_v37, %v3383_v4 }
  0x61   : > { %v473_v24 = vrot.slane %v471_v34, 1 }
  0x62   : > { %2851 = vmatpush3.bf16.msra.mxu0 %v3068_v48  ;;  %2873 = vmatpush3.bf16.msra.mxu1 %v3069_v49  ;;  %v439_v48 = vshll.u32 %v2647_v13, 16  ;;  %v3638_v49 = vor.u32 %v382_v22, %v378_v12  ;;  %v3088_v13 = vld [vmem:[%s3904_s1 + $0x220] sm:$0xff]   ;;  %v468_v22 = vrot.slane %v466_v50, 2 }
  0x63   : > { %2880 = vmatprep.subr.bf16.mxu0 %v3070_v53  ;;  %2902 = vmatprep.subr.bf16.mxu1 %v3071_v54  ;;  %v3642_v53 = vrot.slane %v416_v42, 2  ;;  %v3645_v54 = vld [vmem:[%s3309_s6 + $0x14] ss:$0 sps:$4 sm:$0x66]   ;;  %v569_v42 = vrot.slane %v553_v31, %v3383_v4 }
  0x64   : > { %v441_v61 = vrot.slane %v439_v48, 1  ;;  %v479_v12 = vshrl.u32 %v3645_v54, 16  ;;  %v482_v18 = vshll.u32 %v3645_v54, 16  ;;  %v461_v51 = vrot.slane %v3645_v54, 1  ;;  %v3097_v54 = vld [vmem:[%s3904_s1 + $0x2b0] sm:$0xff]  }
  0x65   : > { %2306 = vmatmul.mubr.bf16.vlgmr.msra.gmra.mrb[4].mxu0 %v1284_v62  ;;  %2347 = vmatmul.mubr.bf16.vlgmr.msra.gmra.mrb[4].mxu1 %v1285_v63  ;;  %v444_v62 = vshrl.u32 %v3595_v16, 16  ;;  %v446_v63 = vshll.u32 %v3595_v16, 16  ;;  %v419_v6 = vor.u32 %v3642_v53, %v3640_v52 }
  0x66   : > { %2881 = vmatpush3.bf16.msra.mxu0 %v3072_v57  ;;  %2903 = vmatpush3.bf16.msra.mxu1 %v3073_v58  ;;  %v3084_v57 = vld [vmem:[%s3904_s1 + $0x218] sm:$0xff]   ;;  %v442_v8 = vor.u32 %v441_v61, %v437_v47  ;;  %v484_v30 = vrot.slane %v482_v18, 2  ;;  %v395_v47 = vrot.slane %v3590_v14, 1  ;;  %v3096_v14 = vld [vmem:[%s3904_s1 + $0x230] sm:$0xff]  }
  0x67   : > { %2882 = vmatprep.subr.bf16.mxu0 %v3074_v0  ;;  %2904 = vmatprep.subr.bf16.mxu1 %v3075_v32  ;;  %v3085_v58 = vld [vmem:[%s3904_s1 + $0x298] sm:$0xff]   ;;  %v3086_v0 = vld [vmem:[%s3904_s1 + $0x260] sm:$0xff]   ;;  %v435_v32 = vor.u32 %v434_v46, %v430_v17  ;;  %v465_v17 = vrot.slane %v463_v41, 1  ;;  %v3094_v46 = vld [vmem:[%s3904_s1 + $0x270] sm:$0xff]  }
  0x68   : > { %v686_v56 = vcombine.low %v3561_v2, %v442_v8  ;;  %v3095_v2 = vld [vmem:[%s3904_s1 + $0x2f0] sm:$0xff]   ;;  %v3098_v8 = vld [vmem:[%s3904_s1 + $0x278] sm:$0xff]   ;;  %v817_v41 = vcombine.low %v395_v47, %v419_v6 }
  0x6a   : > { %2883 = vmatpush3.bf16.msra.mxu0 %v3076_v33  ;;  %2905 = vmatpush3.bf16.msra.mxu1 %v3077_v9  ;;  %v448_v33 = vrot.slane %v446_v63, 1  ;;  %v460_v9 = vrot.slane %v3634_v43, 1 }
  0x6b   : > { %2884 = vmatprep.subr.bf16.mxu0 %v3078_v19  ;;  %2906 = vmatprep.subr.bf16.mxu1 %v3079_v20  ;;  %v552_v19 = vcombine.low %v3536_v55, %v3605_v21  ;;  %v3090_v20 = vld [vmem:[%s3904_s1 + $0x268] sm:$0xff]   ;;  %v554_v55 = vcombine.low %v3558_v1, %v435_v32  ;;  %v685_v1 = vcombine.low %v394_v28, %v411_v3 }
  0x6c   : > { %v3678_v16 = vor.u32 %v448_v33, %v444_v62 }
  0x6d   : > { %v562_v21 = vrot.slane %v552_v19, %v3383_v4  ;;  %v3700_v10 = vrot.slane %v554_v55, %v3383_v4  ;;  %v701_v48 = vrot.slane %v685_v1, %v3383_v4 }
  0x6e   : > { %2885 = vmatpush3.bf16.msra.mxu0 %v3080_v25  ;;  %2907 = vmatpush3.bf16.msra.mxu1 %v3081_v26  ;;  %v476_v25 = vrot.slane %v474_v11, 2  ;;  %v481_v26 = vrot.slane %v479_v12, 1  ;;  %v3100_v11 = vld [vmem:[%s3904_s1 + $0x238] sm:$0xff]   ;;  %v818_v52 = vcombine.low %v3566_v5, %v3678_v16  ;;  %v833_v12 = vrot.slane %v817_v41, %v3383_v4  ;;  %v3118_v41 = vld [vmem:[%s3904_s1 + $0x348] sm:$0xff]  }
  0x6f   : > { %2886 = vmatprep.subr.bf16.mxu0 %v3082_v35  ;;  %2908 = vmatprep.subr.bf16.mxu1 %v3083_v36  ;;  %v469_v35 = vor.u32 %v468_v22, %v465_v17  ;;  %v584_v44 = vcombine.low %v562_v21, %v569_v42  ;;  %v585_v28 = vcombine.high %v562_v21, %v569_v42  ;;  %v3114_v22 = vld [vmem:[%s3904_s1 + $0x340] sm:$0xff]  }
  0x70   : > { %v477_v36 = vor.u32 %v476_v25, %v473_v24  ;;  %v485_v40 = vor.u32 %v484_v30, %v481_v26  ;;  %v716_v63 = vcombine.low %v694_v45, %v701_v48 }
  0x71   : > { %v555_v43 = vcombine.low %v459_v7, %v469_v35  ;;  %v594_v61 = vrot.slane %v584_v44, %v3383_v4  ;;  %v601_v62 = vrot.slane %v585_v28, %v3383_v4 }
  0x72   : > { %2887 = vmatpush3.bf16.msra.mxu0 %v3084_v57  ;;  %2909 = vmatpush3.bf16.msra.mxu1 %v3085_v58  ;;  %v687_v27 = vcombine.low %v460_v9, %v477_v36  ;;  %v708_v58 = vrot.slane %v686_v56, %v3383_v4  ;;  %v726_v33 = vrot.slane %v716_v63, %v3383_v4 }
  0x73   : > { %2888 = vmatprep.subr.bf16.mxu0 %v3086_v0  ;;  %2910 = vmatprep.subr.bf16.mxu1 %v3087_v38  ;;  %v583_v57 = vrot.slane %v555_v43, %v3383_v4  ;;  %v717_v0 = vcombine.high %v694_v45, %v701_v48  ;;  %v816_v38 = vcombine.low %v3548_v59, %v3638_v49  ;;  %v3099_v59 = vld [vmem:[%s3904_s1 + $0x2f8] sm:$0xff]  }
  0x74   : > { %v715_v60 = vrot.slane %v687_v27, %v3383_v4  ;;  %v819_v53 = vcombine.low %v461_v51, %v485_v40 }
  0x75   : > { %v587_v3 = vcombine.high %v3700_v10, %v583_v57  ;;  %v733_v9 = vrot.slane %v717_v0, %v3383_v4  ;;  %v826_v6 = vrot.slane %v816_v38, %v3383_v4  ;;  %v586_v19 = vcombine.low %v3700_v10, %v583_v57 }
  0x76   : > { %2889 = vmatpush3.bf16.msra.mxu0 %v3088_v13  ;;  %2911 = vmatpush3.bf16.msra.mxu1 %v3089_v15  ;;  %v718_v32 = vcombine.low %v708_v58, %v715_v60  ;;  %v719_v7 = vcombine.high %v708_v58, %v715_v60  ;;  %v3101_v13 = vld [vmem:[%s3904_s1 + $0x2b8] sm:$0xff]   ;;  %v847_v5 = vrot.slane %v819_v53, %v3383_v4  ;;  %v3123_v53 = vld [vmem:[%s3904_s1 + $0x3d0] sm:$0xff]  }
  0x77   : > { %2890 = vmatprep.subr.bf16.mxu0 %v3090_v20  ;;  %2912 = vmatprep.subr.bf16.mxu1 %v3091_v29  ;;  %v615_v49 = vrot.slane %v587_v3, %v3383_v4  ;;  %v840_v20 = vrot.slane %v818_v52, %v3383_v4  ;;  %v848_v16 = vcombine.low %v826_v6, %v833_v12  ;;  %v3115_v29 = vld [vmem:[%s3904_s1 + $0x3c0] sm:$0xff]   ;;  %v3122_v52 = vld [vmem:[%s3904_s1 + $0x350] sm:$0xff]  }
  0x78   : > { %v740_v50 = vrot.slane %v718_v32, %v3383_v4  ;;  %v747_v34 = vrot.slane %v719_v7, %v3383_v4  ;;  %v849_v24 = vcombine.high %v826_v6, %v833_v12  ;;  %v608_v30 = vrot.slane %v586_v19, %v3383_v4  ;;  %v3124_v6 = vld [vmem:[%s3904_s1 + $0x310] sm:$0xff]   ;;  %v3130_v19 = vld [vmem:[%s3904_s1 + $0x360] sm:$0xff]  }
  0x79   : > { %v617_v15 = vcombine.low %v601_v62, %v615_v49  ;;  %v851_v31 = vcombine.high %v840_v20, %v847_v5  ;;  %v858_v55 = vrot.slane %v848_v16, %v3383_v4  ;;  %v850_v21 = vcombine.low %v840_v20, %v847_v5  ;;  %v3125_v12 = vld [vmem:[%s3904_s1 + $0x390] sm:$0xff]   ;;  %v3131_v20 = vld [vmem:[%s3904_s1 + $0x3e0] sm:$0xff]  }
  0x7a   : > { %2891 = vmatpush3.bf16.msra.mxu0 %v3092_v39  ;;  %2913 = vmatpush3.bf16.msra.mxu1 %v3093_v23  ;;  %v748_v17 = vcombine.low %v726_v33, %v740_v50  ;;  %v749_v18 = vcombine.low %v733_v9, %v747_v34  ;;  %v865_v35 = vrot.slane %v849_v24, %v3383_v4  ;;  %v3117_v33 = vld [vmem:[%s3904_s1 + $0x380] sm:$0xff]   ;;  %v3120_v34 = vld [vmem:[%s3904_s1 + $0x308] sm:$0xff]  }
  0x7b   : > { %2892 = vmatprep.subr.bf16.mxu0 %v3094_v46  ;;  %2914 = vmatprep.subr.bf16.mxu1 %v3095_v2  ;;  %v616_v39 = vcombine.low %v594_v61, %v608_v30  ;;  %v879_v40 = vrot.slane %v851_v31, %v3383_v4  ;;  %v872_v42 = vrot.slane %v850_v21, %v3383_v4  ;;  %v3132_v5 = vld [vmem:[%s3904_s1 + $0x320] sm:$0xff]   ;;  %v3135_v24 = vld [vmem:[%s3904_s1 + $0x3e8] sm:$0xff]   ;;  %v3139_v30 = vld [vmem:[%s3904_s1 + $0x3f0] sm:$0xff]  }
  0x7c   : > { %v891_v25 = vunpack.i.h.s16 %v748_v17  ;;  %v2654_v26 = vpack.i.b16 %v748_v17, %v617_v15  ;;  %v3127_v15 = vld [vmem:[%s3904_s1 + $0x3d8] sm:$0xff]   ;;  %v3133_v16 = vld [vmem:[%s3904_s1 + $0x3a0] sm:$0xff]   ;;  %v3141_v21 = vld [vmem:[%s3904_s1 + $0x3b0] sm:$0xff]  }
  0x7d   : > { %v881_v43 = vcombine.low %v865_v35, %v879_v40  ;;  %v880_v56 = vcombine.low %v858_v55, %v872_v42  ;;  %v3128_v17 = vld [vmem:[%s3904_s1 + $0x318] sm:$0xff]  }
  0x7e   : > { %2893 = vmatpush3.bf16.msra.mxu0 %v3096_v14  ;;  %2915 = vmatpush3.bf16.msra.mxu1 %v3097_v54  ;;  %v2656_v36 = vpack.i.b16 %v749_v18, %v891_v25  ;;  %v2659_v37 = vcombine.low %v594_v61, %v2654_v26  ;;  %v1291_v23 = vcombine.high %v616_v39, %v2654_v26  ;;  %v3129_v18 = vld [vmem:[%s3904_s1 + $0x398] sm:$0xff]   ;;  %v3136_v25 = vld [vmem:[%s3904_s1 + $0x328] sm:$0xff]  }
  0x7f   : > { %2894 = vmatprep.subr.bf16.mxu0 %v3098_v8  ;;  %2916 = vmatprep.subr.bf16.mxu1 %v3099_v59  ;;  %v899_v45 = vunpack.i.l.s16 %v881_v43  ;;  %v3116_v8 = vld [vmem:[%s3904_s1 + $0x300] sm:$0xff]   ;;  %v3119_v59 = vld [vmem:[%s3904_s1 + $0x3c8] sm:$0xff]   ;;  %v3142_v35 = vld [vmem:[%s3904_s1 + $0x378] sm:$0xff]  }
  0x80   : > { %v2660_v10 = vcombine.low %v2656_v36, %v858_v55  ;;  %v1301_v1 = vrot.slane %v2659_v37, %v3383_v4  ;;  %v1293_v46 = vcombine.high %v2656_v36, %v880_v56  ;;  %v3773_v47 = vrot.slane %v1291_v23, %v3383_v4  ;;  %v3137_v26 = vld [vmem:[%s3904_s1 + $0x3a8] sm:$0xff]   ;;  %v3140_v55 = vld [vmem:[%s3904_s1 + $0x330] sm:$0xff]   ;;  %v3143_v36 = vld [vmem:[%s3904_s1 + $0x3f8] sm:$0xff]  }
  0x81   : > { %v1329_v48 = vrot.slane %v899_v45, %v3383_v4  ;;  %v1294_v2 = vcombine.high %v899_v45, %v899_v45  ;;  %v3144_v40 = vld [vmem:[%s3904_s1 + $0x338] sm:$0xff]   ;;  %v2652_v43 = vld [vmem:[%s3905_s2] ss:$0 sm:$0xff] }
  0x82   : > { %2895 = vmatpush3.bf16.msra.mxu0 %v3100_v11  ;;  %2917 = vmatpush3.bf16.msra.mxu1 %v3101_v13  ;;  %v1315_v27 = vrot.slane %v2660_v10, %v3383_v4  ;;  %v3777_v51 = vrot.slane %v1293_v46, %v3383_v4  ;;  %v3121_v11 = vld [vmem:[%s3904_s1 + $0x388] sm:$0xff]   ;;  %v3126_v13 = vld [vmem:[%s3904_s1 + $0x358] sm:$0xff]  }
  0x83   : > { %2924 = vmatprep.subr.bf16.mxu0 %v3114_v22  ;;  %2946 = vmatprep.subr.bf16.mxu1 %v3115_v29  ;;  %v1341_v60 = vcombine.high %v1329_v48, %v1329_v48  ;;  %v1377_v14 = vrot.slane %v1329_v48, %v3383_v4  ;;  %v3783_v61 = vrot.slane %v1294_v2, %v3383_v4  ;;  %v3134_v22 = vld [vmem:[%s3904_s1 + $0x368] sm:$0xff]   ;;  %v3138_v29 = vld [vmem:[%s3904_s1 + $0x370] sm:$0xff]   ;;  %v3145_v42 = vld [vmem:[%s3904_s1 + $0x3b8] sm:$0xff]  }
  0x84   : > { %v1338_v44 = vcombine.high %v1301_v1, %v1315_v27  ;;  %v1337_v28 = vcombine.low %v1301_v1, %v1315_v27  ;;  %v1340_v62 = vcombine.high %v3773_v47, %v3777_v51  ;;  %v1339_v31 = vcombine.low %v3773_v47, %v3777_v51 }
  0x85   : > { %v1391_v63 = vrot.slane %v1341_v60, %v3383_v4  ;;  %v1342_v0 = vcombine.high %v3783_v61, %v3783_v61  ;;  %v1384_v39 = vrot.slane %v3783_v61, %v3383_v4 }
  0x86   : > { %v1363_v57 = vrot.slane %v1338_v44, %v3383_v4  ;;  %v1349_v58 = vrot.slane %v1337_v28, %v3383_v4  ;;  %v1370_v32 = vrot.slane %v1340_v62, %v3383_v4  ;;  %v1356_v37 = vrot.slane %v1339_v31, %v3383_v4 }
  0x87   : > { %v1398_v9 = vrot.slane %v1342_v0, %v3383_v4 }
  0x88   : > { %v1399_v54 = vcombine.low %v1349_v58, %v1377_v14  ;;  %v1400_v3 = vcombine.high %v1349_v58, %v1377_v14  ;;  %v1403_v7 = vcombine.low %v1363_v57, %v1391_v63  ;;  %v1404_v38 = vcombine.high %v1363_v57, %v1391_v63 }
  0x89   : > { %v1405_v49 = vcombine.low %v1370_v32, %v1398_v9  ;;  %v1406_v50 = vcombine.high %v1370_v32, %v1398_v9  ;;  %v1401_v10 = vcombine.low %v1356_v37, %v1384_v39  ;;  %v1402_v1 = vcombine.high %v1356_v37, %v1384_v39 }
  0x8a   : > { %2387 = vmatprep.mubr.bf16.mxu0 %v1403_v7  ;;  %2428 = vmatprep.mubr.bf16.mxu1 %v1404_v38 }
  0x8b   : > { %2388 = vmatmul.mubr.bf16.vlgmr.msra.gmra.mrb[8].mxu0 %v1399_v54  ;;  %2429 = vmatmul.mubr.bf16.vlgmr.msra.gmra.mrb[8].mxu1 %v1400_v3 }
  0x8c   : > { %2925 = vmatpush3.bf16.msra.mxu0 %v3116_v8  ;;  %2947 = vmatpush3.bf16.msra.mxu1 %v3117_v33 }
  0x8d   : > { %2926 = vmatprep.subr.bf16.mxu0 %v3118_v41  ;;  %2948 = vmatprep.subr.bf16.mxu1 %v3119_v59 }
  0x8e   : > { %2469 = vmatprep.mubr.bf16.mxu0 %v1405_v49  ;;  %2510 = vmatprep.mubr.bf16.mxu1 %v1406_v50 }
  0x90   : > { %2927 = vmatpush3.bf16.msra.mxu0 %v3120_v34  ;;  %2949 = vmatpush3.bf16.msra.mxu1 %v3121_v11 }
  0x91   : > { %2928 = vmatprep.subr.bf16.mxu0 %v3122_v52  ;;  %2950 = vmatprep.subr.bf16.mxu1 %v3123_v53 }
  0x94   : > { %2929 = vmatpush3.bf16.msra.mxu0 %v3124_v6  ;;  %2951 = vmatpush3.bf16.msra.mxu1 %v3125_v12 }
  0x95   : > { %2930 = vmatprep.subr.bf16.mxu0 %v3126_v13  ;;  %2952 = vmatprep.subr.bf16.mxu1 %v3127_v15 }
  0x98   : > { %2931 = vmatpush3.bf16.msra.mxu0 %v3128_v17  ;;  %2953 = vmatpush3.bf16.msra.mxu1 %v3129_v18 }
  0x99   : > { %2932 = vmatprep.subr.bf16.mxu0 %v3130_v19  ;;  %2954 = vmatprep.subr.bf16.mxu1 %v3131_v20 }
  0x9c   : > { %2933 = vmatpush3.bf16.msra.mxu0 %v3132_v5  ;;  %2955 = vmatpush3.bf16.msra.mxu1 %v3133_v16 }
  0x9d   : > { %2934 = vmatprep.subr.bf16.mxu0 %v3134_v22  ;;  %2956 = vmatprep.subr.bf16.mxu1 %v3135_v24 }
  0xa0   : > { %2935 = vmatpush3.bf16.msra.mxu0 %v3136_v25  ;;  %2957 = vmatpush3.bf16.msra.mxu1 %v3137_v26 }
  0xa1   : > { %2936 = vmatprep.subr.bf16.mxu0 %v3138_v29  ;;  %2958 = vmatprep.subr.bf16.mxu1 %v3139_v30 }
  0xa4   : > { %2937 = vmatpush3.bf16.msra.mxu0 %v3140_v55  ;;  %2959 = vmatpush3.bf16.msra.mxu1 %v3141_v21 }
  0xa5   : > { %2938 = vmatprep.subr.bf16.mxu0 %v3142_v35  ;;  %2960 = vmatprep.subr.bf16.mxu1 %v3143_v36 }
  0xa8   : > { %2939 = vmatpush3.bf16.msra.mxu0 %v3144_v40  ;;  %2961 = vmatpush3.bf16.msra.mxu1 %v3145_v42 }
  0xab   : > { %2470 = vmatmul.mubr.bf16.vlgmr.msra.gmra.mrb[12].mxu0 %v1401_v10  ;;  %2511 = vmatmul.mubr.bf16.vlgmr.msra.gmra.mrb[12].mxu1 %v1402_v1 }
 0x118   : > { %v2808_v23 = vpop.f32.mrb[0].mxu0  ;;  %v2830_v4 = vpop.f32.mrb[0].mxu1 }
 0x119   : > { %v2809_v56 = vpop.f32.mrb[1].mxu0  ;;  %v2831_v27 = vpop.f32.mrb[1].mxu1 }
 0x11a   : > { %v2810_v45 = vadd.f32 %v2809_v56, %v2808_v23  ;;  %v2832_v46 = vadd.f32 %v2831_v27, %v2830_v4  ;;  %v2811_v47 = vpop.f32.mrb[2].mxu0  ;;  %v2833_v44 = vpop.f32.mrb[2].mxu1 }
 0x11b   : > { %v2812_v28 = vpop.f32.mrb[3].mxu0  ;;  %v2834_v48 = vpop.f32.mrb[3].mxu1 }
 0x11c   : > { %v2226_v2 = vadd.f32 %v2810_v45, %v2652_v43  ;;  %v2813_v51 = vadd.f32 %v2812_v28, %v2811_v47  ;;  %v2835_v57 = vadd.f32 %v2834_v48, %v2833_v44 }
 0x11e   : > { %v2267_v58 = vadd.f32 %v2832_v46, %v2226_v2  ;;  %v2229_v60 = vadd.f32 %v2813_v51, %v2652_v43 }
 0x120   : > { %v2270_v14 = vadd.f32 %v2835_v57, %v2229_v60 }
 0x138   : > { %v2852_v61 = vpop.f32.mrb[4].mxu0  ;;  %v2874_v62 = vpop.f32.mrb[4].mxu1 }
 0x139   : > { %v2853_v63 = vpop.f32.mrb[5].mxu0  ;;  %v2875_v0 = vpop.f32.mrb[5].mxu1 }
 0x13a   : > { %v2854_v54 = vadd.f32 %v2853_v63, %v2852_v61  ;;  %v2876_v3 = vadd.f32 %v2875_v0, %v2874_v62  ;;  %v2855_v32 = vpop.f32.mrb[6].mxu0  ;;  %v2877_v7 = vpop.f32.mrb[6].mxu1 }
 0x13b   : > { %v2856_v38 = vpop.f32.mrb[7].mxu0  ;;  %v2878_v8 = vpop.f32.mrb[7].mxu1 }
 0x13c   : > { %v2308_v33 = vadd.f32 %v2854_v54, %v2267_v58  ;;  %v2857_v9 = vadd.f32 %v2856_v38, %v2855_v32  ;;  %v2879_v41 = vadd.f32 %v2878_v8, %v2877_v7 }
 0x13e   : > { %v2349_v59 = vadd.f32 %v2876_v3, %v2308_v33  ;;  %v2311_v49 = vadd.f32 %v2857_v9, %v2270_v14 }
 0x140   : > { %v2352_v50 = vadd.f32 %v2879_v41, %v2311_v49 }
 0x15e   : > { %v2896_v34 = vpop.f32.mrb[8].mxu0  ;;  %v2918_v11 = vpop.f32.mrb[8].mxu1 }
 0x15f   : > { %v2897_v52 = vpop.f32.mrb[9].mxu0  ;;  %v2919_v53 = vpop.f32.mrb[9].mxu1 }
 0x160   : > { %v2898_v6 = vadd.f32 %v2897_v52, %v2896_v34  ;;  %v2920_v12 = vadd.f32 %v2919_v53, %v2918_v11  ;;  %v2899_v13 = vpop.f32.mrb[10].mxu0  ;;  %v2921_v15 = vpop.f32.mrb[10].mxu1 }
 0x161   : > { %v2900_v17 = vpop.f32.mrb[11].mxu0  ;;  %v2922_v18 = vpop.f32.mrb[11].mxu1 }
 0x162   : > { %v2390_v19 = vadd.f32 %v2898_v6, %v2349_v59  ;;  %v2901_v20 = vadd.f32 %v2900_v17, %v2899_v13  ;;  %v2923_v5 = vadd.f32 %v2922_v18, %v2921_v15 }
 0x164   : > { %v2431_v16 = vadd.f32 %v2920_v12, %v2390_v19  ;;  %v2393_v22 = vadd.f32 %v2901_v20, %v2352_v50 }
 0x166   : > { %v2434_v24 = vadd.f32 %v2923_v5, %v2393_v22 }
 0x17e   : > { %v2940_v25 = vpop.f32.mrb[12].mxu0  ;;  %v2962_v26 = vpop.f32.mrb[12].mxu1 }
 0x17f   : > { %v2941_v29 = vpop.f32.mrb[13].mxu0  ;;  %v2963_v30 = vpop.f32.mrb[13].mxu1 }
 0x180   : > { %v2942_v31 = vadd.f32 %v2941_v29, %v2940_v25  ;;  %v2964_v55 = vadd.f32 %v2963_v30, %v2962_v26  ;;  %v2943_v21 = vpop.f32.mrb[14].mxu0  ;;  %v2965_v35 = vpop.f32.mrb[14].mxu1 }
 0x181   : > { %v2944_v36 = vpop.f32.mrb[15].mxu0  ;;  %v2966_v37 = vpop.f32.mrb[15].mxu1 }
 0x182   : > { %v2472_v39 = vadd.f32 %v2942_v31, %v2431_v16  ;;  %v2945_v40 = vadd.f32 %v2944_v36, %v2943_v21  ;;  %v2967_v42 = vadd.f32 %v2966_v37, %v2965_v35 }
 0x184   : > { %v2513_v10 = vadd.f32 %v2964_v55, %v2472_v39  ;;  %v2475_v1 = vadd.f32 %v2945_v40, %v2434_v24 }
 0x186   : > { %2519 = vst [vmem:[%s192_s4] sm:$0xff] %v2513_v10  ;;  %v2516_v23 = vadd.f32 %v2967_v42, %v2475_v1 }
 0x188   : > { %2520 = vst [vmem:[%s192_s4 + $0x8] sm:$0x1] %v2516_v23 }
 0x189 PF: > { %s13_s14 = sadd.s32 1, %s3168_s14   ;;  %s3907_s12 = smov %s3164_s13 }
 0x18a   : > { %p10_p5 = scmp.ge.s32.totalorder %s13_s14, 4   ;;  %s3908_s13 = smov %s3910_s15 }
 0x18c   :  { %12 = sbr.rel (!%p10_p5) target bundleno = 2 (0x2), region = 65 }

// kernel: multiscale_discriminator_pallas.13
= control target key start
LH: loop header
LB: loop body
LE: loop exit
PB: predicated region body
PF: predicated region fallthrough
CT: control target
= control target key end

     0   :  { %s1069_s6 = smov 0   ;;  %s1577_s0 = inlined_call_operand.vmem [shape: f32[2,4,17,17,8], index: 0, kind: input, shape index: {}]   ;;  %s1578_s1 = inlined_call_operand.vmem [shape: f32[2,16,16,8], index: 1, kind: output, shape index: {}]  }
   0x1 LB: > { %s801_s7 = sadd.s32 4294967295, %s1056_s6   ;;  %p805_p0 = scmp.ge.s32.totalorder %s1056_s6, 1  ;;  %s1056_s6 = sphi %s1069_s6, %s11_s6  }
   0x2   : > { %p87_p1 = scmp.lt.s32.totalorder %s1056_s6, 3 }
   0x4   : > { %p88_p2 = pnand %p805_p0, %p87_p1 }
   0x5   : > { %p107_p3 = scmp.lt.s32.totalorder (!%p88_p2), %s801_s7, 1  ;;  %v666_v0 = vlaneseq (!%p88_p2)  ;;  %v1058_v2 = vmov (!%p88_p2), 3.0   ;;  %vm713_vm1 = vcmask (!%p88_p2), 64512  }
   0x6   : > { %91 = sbr.rel (%p88_p2) target bundleno = 105 (0x69), region = 24 }
   0x7   : > { %v667_v1 = vshrl.u32 (!%p88_p2), %v666_v0, 7 }
   0x9   : > { %vm669_vm0 = vcmp.eq.s32.totalorder (!%p88_p2), %v667_v1, 0 }
   0xa   : > { %v671_v3 = vsel (!%p88_p2), %vm669_vm0, 2.0, %v1058_v2 }
   0xb   : > { %v673_v7 = vmul.f32 (!%p88_p2), 2.0, %v671_v3  ;;  %v675_v13 = vmul.f32 (!%p88_p2), 3.0, %v671_v3 }
   0xd   : > { %s1580_s7 = smov (!%p107_p3, %s801_s7), 1  ;;  %1046 = vrcp.f32 %v673_v7 }
   0xe   : > { %s1036_s8 = smul.u32 1632, %s1580_s7  ;;  %1048 = vrcp.f32 %v675_v13  ;;  %s1035_s12 = sshll.u32 %s1580_s7, 8 }
   0xf   : > { %s1156_s15 = scalar_lea.vmem %s1578_s1, %s1035_s12 }
  0x10   : > { %s1083_s11 = scalar_lea.vmem %s1577_s0, %s1036_s8 }
  0x11   : > { %v117_v4 = vld [vmem:[%s1083_s11] sm:$0xff]  ;;  %v809_v5 = vld [vmem:[%s1083_s11 + $0x198] sm:$0xff]  ;;  %v841_v9 = vld [vmem:[%s1083_s11 + $0x330] sm:$0xff] }
  0x12   : > { %v214_v6 = vld [vmem:[%s1083_s11 + $0x1] sm:$0xff]  ;;  %v182_v8 = vadd.f32 %v809_v5, %v117_v4  ;;  %v937_v10 = vld [vmem:[%s1083_s11 + $0x18] sm:$0xff]  ;;  %v969_v11 = vld [vmem:[%s1083_s11 + $0x1b0] sm:$0xff] }
  0x13   : > { %v1092_v12 = vld [vmem:[%s1083_s11 + $0x19] sm:$0xff]  ;;  %v118_v15 = vld [vmem:[%s1083_s11 + $0x8] sm:$0xff]  ;;  %v184_v18 = vadd.f32 %v969_v11, %v937_v10  ;;  %v905_v20 = vld [vmem:[%s1083_s11 + $0x331] sm:$0xff] }
  0x14   : > { %v246_v14 = vadd.f32 %v214_v6, %v182_v8  ;;  %v810_v16 = vld [vmem:[%s1083_s11 + $0x1a0] sm:$0xff]  ;;  %v215_v17 = vld [vmem:[%s1083_s11 + $0x9] sm:$0xff]  ;;  %v842_v22 = vld [vmem:[%s1083_s11 + $0x338] sm:$0xff] }
  0x15   : > { %v873_v19 = vld [vmem:[%s1083_s11 + $0x4c8] sm:$0xff]  ;;  %v183_v21 = vadd.f32 %v810_v16, %v118_v15  ;;  %v938_v24 = vld [vmem:[%s1083_s11 + $0x20] sm:$0xff]  ;;  %v1102_v25 = vld [vmem:[%s1083_s11 + $0x1b8] sm:$0xff]  ;;  %v248_v27 = vadd.f32 %v1092_v12, %v184_v18 }
  0x16   : > { %v311_v23 = vadd.f32 %v841_v9, %v246_v14  ;;  %v1105_v26 = vld [vmem:[%s1083_s11 + $0x21] sm:$0xff]  ;;  %v874_v29 = vld [vmem:[%s1083_s11 + $0x4d0] sm:$0xff]  ;;  %v185_v32 = vadd.f32 %v1102_v25, %v938_v24  ;;  %v906_v34 = vld [vmem:[%s1083_s11 + $0x339] sm:$0xff] }
  0x17   : > { %v247_v28 = vadd.f32 %v215_v17, %v183_v21  ;;  %v843_v30 = vld [vmem:[%s1083_s11 + $0x348] sm:$0xff]  ;;  %v875_v31 = vld [vmem:[%s1083_s11 + $0x4e0] sm:$0xff]  ;;  %v939_v36 = vld [vmem:[%s1083_s11 + $0x30] sm:$0xff] }
  0x18   : > { %v376_v33 = vadd.f32 %v873_v19, %v311_v23  ;;  %v313_v35 = vadd.f32 %v843_v30, %v248_v27  ;;  %v971_v37 = vld [vmem:[%s1083_s11 + $0x1c8] sm:$0xff]  ;;  %v1003_v38 = vld [vmem:[%s1083_s11 + $0x31] sm:$0xff]  ;;  %v249_v41 = vadd.f32 %v1105_v26, %v185_v32  ;;  %v1123_v49 = vld [vmem:[%s1083_s11 + $0x39] sm:$0xff] }
  0x19   : > { %v312_v39 = vadd.f32 %v842_v22, %v247_v28  ;;  %v907_v40 = vld [vmem:[%s1083_s11 + $0x349] sm:$0xff]  ;;  %v186_v44 = vadd.f32 %v971_v37, %v939_v36  ;;  %v940_v47 = vld [vmem:[%s1083_s11 + $0x38] sm:$0xff]  ;;  %v845_v54 = vld [vmem:[%s1083_s11 + $0x360] sm:$0xff] }
  0x1a   : > { %v844_v42 = vld [vmem:[%s1083_s11 + $0x350] sm:$0xff]  ;;  %v876_v43 = vld [vmem:[%s1083_s11 + $0x4e8] sm:$0xff]  ;;  %v440_v45 = vadd.f32 %v905_v20, %v376_v33  ;;  %v378_v46 = vadd.f32 %v875_v31, %v313_v35  ;;  %v877_v58 = vld [vmem:[%s1083_s11 + $0x4f8] sm:$0xff] }
  0x1b   : > { %v972_v48 = vld [vmem:[%s1083_s11 + $0x1d0] sm:$0xff]  ;;  %v377_v50 = vadd.f32 %v874_v29, %v312_v39  ;;  %v314_v51 = vadd.f32 %v844_v42, %v249_v41  ;;  %v250_v53 = vadd.f32 %v1003_v38, %v186_v44  ;;  %v941_v59 = vld [vmem:[%s1083_s11 + $0x48] sm:$0xff]  ;;  %v973_v60 = vld [vmem:[%s1083_s11 + $0x1e0] sm:$0xff] }
  0x1c   : > { %v908_v52 = vld [vmem:[%s1083_s11 + $0x351] sm:$0xff]  ;;  %v187_v55 = vadd.f32 %v972_v48, %v940_v47  ;;  %v505_v56 = vadd.f32 %v937_v10, %v440_v45  ;;  %v442_v57 = vadd.f32 %v907_v40, %v378_v46  ;;  %v909_v0 = vld [vmem:[%s1083_s11 + $0x361] sm:$0xff]  ;;  %v1132_v1 = vld [vmem:[%s1083_s11 + $0x49] sm:$0xff]  ;;  %v188_v9 = vadd.f32 %v973_v60, %v941_v59  ;;  %v1047_v10 = vpop.eup %1046 }
  0x1d   : > { %v441_v61 = vadd.f32 %v906_v34, %v377_v50  ;;  %v379_v62 = vadd.f32 %v876_v43, %v314_v51  ;;  %v315_v63 = vadd.f32 %v845_v54, %v250_v53  ;;  %v846_v3 = vld [vmem:[%s1083_s11 + $0x368] sm:$0xff]  ;;  %v878_v6 = vld [vmem:[%s1083_s11 + $0x500] sm:$0xff]  ;;  %v942_v7 = vld [vmem:[%s1083_s11 + $0x50] sm:$0xff] }
  0x1e   : > { %v251_v2 = vadd.f32 %v1123_v49, %v187_v55  ;;  %v570_v4 = vadd.f32 %v969_v11, %v505_v56  ;;  %v507_v5 = vadd.f32 %v939_v36, %v442_v57  ;;  %v1140_v8 = vld [vmem:[%s1083_s11 + $0x1e8] sm:$0xff]  ;;  %v1143_v17 = vld [vmem:[%s1083_s11 + $0x51] sm:$0xff]  ;;  %v252_v21 = vadd.f32 %v1132_v1, %v188_v9  ;;  %v943_v30 = vld [vmem:[%s1083_s11 + $0x60] sm:$0xff] }
  0x1f   : > { %v506_v13 = vadd.f32 %v938_v24, %v441_v61  ;;  %v443_v14 = vadd.f32 %v908_v52, %v379_v62  ;;  %v380_v15 = vadd.f32 %v877_v58, %v315_v63  ;;  %v847_v11 = vld [vmem:[%s1083_s11 + $0x378] sm:$0xff]  ;;  %v910_v20 = vld [vmem:[%s1083_s11 + $0x369] sm:$0xff]  ;;  %v189_v23 = vadd.f32 %v1140_v8, %v942_v7  ;;  %v1151_v24 = vpop.eup %1048  ;;  %v848_v32 = vld [vmem:[%s1083_s11 + $0x380] sm:$0xff] }
  0x20   : > { %v316_v16 = vadd.f32 %v846_v3, %v251_v2  ;;  %v634_v18 = vadd.f32 %v1092_v12, %v570_v4  ;;  %v572_v19 = vadd.f32 %v971_v37, %v507_v5  ;;  %v879_v22 = vld [vmem:[%s1083_s11 + $0x510] sm:$0xff]  ;;  %v975_v31 = vld [vmem:[%s1083_s11 + $0x1f8] sm:$0xff]  ;;  %v317_v35 = vadd.f32 %v847_v11, %v252_v21  ;;  %v1164_v37 = vld [vmem:[%s1083_s11 + $0x61] sm:$0xff] }
  0x21   : > { %v571_v27 = vadd.f32 %v1102_v25, %v506_v13  ;;  %v508_v28 = vadd.f32 %v940_v47, %v443_v14  ;;  %v444_v12 = vadd.f32 %v909_v0, %v380_v15  ;;  %v911_v36 = vld [vmem:[%s1083_s11 + $0x379] sm:$0xff]  ;;  %v253_v25 = vadd.f32 %v1143_v17, %v189_v23  ;;  %v944_v44 = vld [vmem:[%s1083_s11 + $0x68] sm:$0xff]  ;;  %v849_v57 = vld [vmem:[%s1083_s11 + $0x390] sm:$0xff] }
  0x22   : > { %v381_v29 = vadd.f32 %v878_v6, %v316_v16  ;;  %v678_v33 = vmul.f32 %v1047_v10, %v634_v18  ;;  %v636_v34 = vadd.f32 %v1003_v38, %v572_v19  ;;  %v880_v43 = vld [vmem:[%s1083_s11 + $0x518] sm:$0xff]  ;;  %v976_v38 = vld [vmem:[%s1083_s11 + $0x200] sm:$0xff]  ;;  %v382_v46 = vadd.f32 %v879_v22, %v317_v35  ;;  %v1183_v56 = vld [vmem:[%s1083_s11 + $0x69] sm:$0xff] }
  0x23   : > { %v635_v39 = vadd.f32 %v1105_v26, %v571_v27  ;;  %v573_v40 = vadd.f32 %v972_v48, %v508_v28  ;;  %v509_v41 = vadd.f32 %v941_v59, %v444_v12  ;;  %v318_v47 = vadd.f32 %v848_v32, %v253_v25  ;;  %v912_v50 = vld [vmem:[%s1083_s11 + $0x381] sm:$0xff]  ;;  %v1176_v26 = vld [vmem:[%s1083_s11 + $0x78] sm:$0xff]  ;;  %v1179_v48 = vld [vmem:[%s1083_s11 + $0x210] sm:$0xff] }
  0x24   : > { %v445_v42 = vadd.f32 %v910_v20, %v381_v29  ;;  %714 = vst.msk [vmem:[%s1156_s15] sm:$0xff] %vm713_vm1, %v678_v33  ;;  %v682_v45 = vmul.f32 %v1151_v24, %v636_v34  ;;  %v190_v51 = vadd.f32 %v975_v31, %v943_v30  ;;  %v881_v58 = vld [vmem:[%s1083_s11 + $0x528] sm:$0xff]  ;;  %v446_v59 = vadd.f32 %v911_v36, %v382_v46  ;;  %v1191_v63 = vld [vmem:[%s1083_s11 + $0x79] sm:$0xff]  ;;  %v913_v5 = vld [vmem:[%s1083_s11 + $0x391] sm:$0xff] }
  0x25   : > { %v680_v52 = vmul.f32 0.16666667, %v635_v39  ;;  %v637_v53 = vadd.f32 %v1123_v49, %v573_v40  ;;  %v574_v54 = vadd.f32 %v973_v60, %v509_v41  ;;  %v383_v61 = vadd.f32 %v880_v43, %v318_v47  ;;  %v1194_v49 = vld [vmem:[%s1083_s11 + $0x80] sm:$0xff]  ;;  %v1197_v60 = vld [vmem:[%s1083_s11 + $0x218] sm:$0xff]  ;;  %v851_v16 = vld [vmem:[%s1083_s11 + $0x3a8] sm:$0xff] }
  0x26   : > { %v510_v55 = vadd.f32 %v942_v7, %v445_v42  ;;  %716 = vst.msk [vmem:[%s1156_s15 + $0x10] sm:$0xff] %vm713_vm1, %v682_v45  ;;  %v254_v62 = vadd.f32 %v1164_v37, %v190_v51  ;;  %v191_v0 = vadd.f32 %v976_v38, %v944_v44  ;;  %v850_v6 = vld [vmem:[%s1083_s11 + $0x398] sm:$0xff]  ;;  %v1206_v7 = vld [vmem:[%s1083_s11 + $0x81] sm:$0xff]  ;;  %v192_v9 = vadd.f32 %v1179_v48, %v1176_v26  ;;  %v882_v19 = vld [vmem:[%s1083_s11 + $0x530] sm:$0xff] }
  0x27   : > { %715 = vst.msk [vmem:[%s1156_s15 + $0x8] sm:$0xff] %vm713_vm1, %v680_v52  ;;  %v684_v2 = vmul.f32 0.11111111, %v637_v53  ;;  %v638_v3 = vadd.f32 %v1132_v1, %v574_v54  ;;  %v511_v10 = vadd.f32 %v943_v30, %v446_v59  ;;  %v447_v13 = vadd.f32 %v912_v50, %v383_v61  ;;  %v947_v1 = vld [vmem:[%s1083_s11 + $0x90] sm:$0xff]  ;;  %v883_v21 = vld [vmem:[%s1083_s11 + $0x540] sm:$0xff]  ;;  %v948_v32 = vld [vmem:[%s1083_s11 + $0x98] sm:$0xff] }
  0x28   : > { %v575_v4 = vadd.f32 %v1140_v8, %v510_v55  ;;  %v319_v14 = vadd.f32 %v849_v57, %v254_v62  ;;  %v255_v15 = vadd.f32 %v1183_v56, %v191_v0  ;;  %v1214_v8 = vld [vmem:[%s1083_s11 + $0x228] sm:$0xff]  ;;  %v256_v20 = vadd.f32 %v1191_v63, %v192_v9  ;;  %v1224_v22 = vld [vmem:[%s1083_s11 + $0x91] sm:$0xff]  ;;  %v914_v34 = vld [vmem:[%s1083_s11 + $0x399] sm:$0xff] }
  0x29   : > { %717 = vst.msk [vmem:[%s1156_s15 + $0x18] sm:$0xff] %vm713_vm1, %v684_v2  ;;  %v685_v11 = vmul.f32 %v1151_v24, %v638_v3  ;;  %v193_v23 = vadd.f32 %v1197_v60, %v1194_v49  ;;  %v576_v27 = vadd.f32 %v975_v31, %v511_v10  ;;  %v512_v28 = vadd.f32 %v944_v44, %v447_v13  ;;  %v852_v30 = vld [vmem:[%s1083_s11 + $0x3b0] sm:$0xff]  ;;  %v884_v43 = vld [vmem:[%s1083_s11 + $0x548] sm:$0xff]  ;;  %v1242_v44 = vld [vmem:[%s1083_s11 + $0x99] sm:$0xff] }
  0x2a   : > { %v639_v18 = vadd.f32 %v1143_v17, %v575_v4  ;;  %v384_v12 = vadd.f32 %v881_v58, %v319_v14  ;;  %v320_v29 = vadd.f32 %v850_v6, %v255_v15  ;;  %v1231_v17 = vld [vmem:[%s1083_s11 + $0x230] sm:$0xff]  ;;  %v321_v35 = vadd.f32 %v851_v16, %v256_v20  ;;  %v853_v45 = vld [vmem:[%s1083_s11 + $0x3c0] sm:$0xff]  ;;  %v949_v51 = vld [vmem:[%s1083_s11 + $0xa8] sm:$0xff] }
  0x2b   : > { %718 = vst.msk [vmem:[%s1156_s15 + $0x20] sm:$0xff] %vm713_vm1, %v685_v11  ;;  %v915_v36 = vld [vmem:[%s1083_s11 + $0x3a9] sm:$0xff]  ;;  %v257_v31 = vadd.f32 %v1206_v7, %v193_v23  ;;  %v194_v25 = vadd.f32 %v1214_v8, %v947_v1  ;;  %v640_v39 = vadd.f32 %v1164_v37, %v576_v27  ;;  %v577_v40 = vadd.f32 %v976_v38, %v512_v28  ;;  %v1250_v37 = vld [vmem:[%s1083_s11 + $0x240] sm:$0xff]  ;;  %v916_v57 = vld [vmem:[%s1083_s11 + $0x3b1] sm:$0xff] }
  0x2c   : > { %v686_v33 = vmul.f32 0.11111111, %v639_v18  ;;  %v448_v41 = vadd.f32 %v913_v5, %v384_v12  ;;  %v385_v42 = vadd.f32 %v882_v19, %v320_v29  ;;  %v386_v46 = vadd.f32 %v883_v21, %v321_v35  ;;  %v885_v58 = vld [vmem:[%s1083_s11 + $0x558] sm:$0xff]  ;;  %v854_v59 = vld [vmem:[%s1083_s11 + $0x3c8] sm:$0xff]  ;;  %v950_v4 = vld [vmem:[%s1083_s11 + $0xb0] sm:$0xff] }
  0x2d   : > { %v322_v47 = vadd.f32 %v852_v30, %v257_v31  ;;  %v258_v50 = vadd.f32 %v1224_v22, %v194_v25  ;;  %v195_v38 = vadd.f32 %v1231_v17, %v948_v32  ;;  %v687_v52 = vmul.f32 %v1151_v24, %v640_v39  ;;  %v1260_v2 = vld [vmem:[%s1083_s11 + $0xa9] sm:$0xff]  ;;  %v917_v9 = vld [vmem:[%s1083_s11 + $0x3c1] sm:$0xff]  ;;  %v1275_v18 = vld [vmem:[%s1083_s11 + $0xb1] sm:$0xff] }
  0x2e   : > { %719 = vst.msk [vmem:[%s1156_s15 + $0x28] sm:$0xff] %vm713_vm1, %v686_v33  ;;  %v641_v53 = vadd.f32 %v1183_v56, %v577_v40  ;;  %v513_v54 = vadd.f32 %v1176_v26, %v448_v41  ;;  %v449_v55 = vadd.f32 %v914_v34, %v385_v42  ;;  %v450_v61 = vadd.f32 %v915_v36, %v386_v46  ;;  %v1265_v56 = vld [vmem:[%s1083_s11 + $0x248] sm:$0xff]  ;;  %v886_v10 = vld [vmem:[%s1083_s11 + $0x560] sm:$0xff]  ;;  %v855_v19 = vld [vmem:[%s1083_s11 + $0x3d8] sm:$0xff] }
  0x2f   : > { %v387_v62 = vadd.f32 %v884_v43, %v322_v47  ;;  %v323_v0 = vadd.f32 %v853_v45, %v258_v50  ;;  %v259_v3 = vadd.f32 %v1242_v44, %v195_v38  ;;  %720 = vst.msk [vmem:[%s1156_s15 + $0x30] sm:$0xff] %vm713_vm1, %v687_v52  ;;  %v196_v13 = vadd.f32 %v1250_v37, %v949_v51  ;;  %v918_v20 = vld [vmem:[%s1083_s11 + $0x3c9] sm:$0xff]  ;;  %v951_v30 = vld [vmem:[%s1083_s11 + $0xc0] sm:$0xff]  ;;  %v888_v41 = vld [vmem:[%s1083_s11 + $0x578] sm:$0xff] }
  0x30   : > { %v688_v26 = vmul.f32 0.11111111, %v641_v53  ;;  %v578_v5 = vadd.f32 %v1179_v48, %v513_v54  ;;  %v514_v6 = vadd.f32 %v1194_v49, %v449_v55  ;;  %v515_v14 = vadd.f32 %v947_v1, %v450_v61  ;;  %v887_v21 = vld [vmem:[%s1083_s11 + $0x570] sm:$0xff]  ;;  %v856_v33 = vld [vmem:[%s1083_s11 + $0x3e0] sm:$0xff]  ;;  %v952_v42 = vld [vmem:[%s1083_s11 + $0xc8] sm:$0xff] }
  0x31   : > { %v451_v15 = vadd.f32 %v916_v57, %v387_v62  ;;  %v388_v16 = vadd.f32 %v885_v58, %v323_v0  ;;  %v324_v11 = vadd.f32 %v854_v59, %v259_v3  ;;  %v260_v1 = vadd.f32 %v1260_v2, %v196_v13  ;;  %v919_v36 = vld [vmem:[%s1083_s11 + $0x3d9] sm:$0xff]  ;;  %v1294_v31 = vld [vmem:[%s1083_s11 + $0xc1] sm:$0xff]  ;;  %v1315_v54 = vld [vmem:[%s1083_s11 + $0xc9] sm:$0xff] }
  0x32   : > { %721 = vst.msk [vmem:[%s1156_s15 + $0x38] sm:$0xff] %vm713_vm1, %v688_v26  ;;  %v642_v48 = vadd.f32 %v1191_v63, %v578_v5  ;;  %v579_v49 = vadd.f32 %v1197_v60, %v514_v6  ;;  %v197_v23 = vadd.f32 %v1265_v56, %v950_v4  ;;  %v580_v27 = vadd.f32 %v1214_v8, %v515_v14  ;;  %v983_v63 = vld [vmem:[%s1083_s11 + $0x258] sm:$0xff]  ;;  %v920_v47 = vld [vmem:[%s1083_s11 + $0x3e1] sm:$0xff]  ;;  %v857_v55 = vld [vmem:[%s1083_s11 + $0x3f0] sm:$0xff] }
  0x33   : > { %v516_v28 = vadd.f32 %v948_v32, %v451_v15  ;;  %v452_v12 = vadd.f32 %v917_v9, %v388_v16  ;;  %v389_v29 = vadd.f32 %v886_v10, %v324_v11  ;;  %v325_v35 = vadd.f32 %v855_v19, %v260_v1  ;;  %v889_v57 = vld [vmem:[%s1083_s11 + $0x588] sm:$0xff]  ;;  %v1323_v62 = vld [vmem:[%s1083_s11 + $0xd9] sm:$0xff]  ;;  %v921_v5 = vld [vmem:[%s1083_s11 + $0x3f1] sm:$0xff] }
  0x34   : > { %v689_v60 = vmul.f32 %v1151_v24, %v642_v48  ;;  %v643_v34 = vadd.f32 %v1206_v7, %v579_v49  ;;  %v261_v8 = vadd.f32 %v1275_v18, %v197_v23  ;;  %v644_v32 = vadd.f32 %v1224_v22, %v580_v27  ;;  %v984_v7 = vld [vmem:[%s1083_s11 + $0x260] sm:$0xff]  ;;  %v1306_v22 = vld [vmem:[%s1083_s11 + $0xd8] sm:$0xff]  ;;  %v859_v11 = vld [vmem:[%s1083_s11 + $0x408] sm:$0xff] }
  0x35   : > { %v581_v25 = vadd.f32 %v1231_v17, %v516_v28  ;;  %v517_v39 = vadd.f32 %v949_v51, %v452_v12  ;;  %v453_v40 = vadd.f32 %v918_v20, %v389_v29  ;;  %v390_v45 = vadd.f32 %v887_v21, %v325_v35  ;;  %v1309_v17 = vld [vmem:[%s1083_s11 + $0x270] sm:$0xff]  ;;  %v1329_v0 = vld [vmem:[%s1083_s11 + $0x278] sm:$0xff]  ;;  %v1338_v9 = vld [vmem:[%s1083_s11 + $0xe1] sm:$0xff] }
  0x36   : > { %722 = vst.msk [vmem:[%s1156_s15 + $0x40] sm:$0xff] %vm713_vm1, %v689_v60  ;;  %v690_v43 = vmul.f32 0.11111111, %v643_v34  ;;  %v326_v46 = vadd.f32 %v856_v33, %v261_v8  ;;  %v198_v50 = vadd.f32 %v983_v63, %v951_v30  ;;  %v691_v51 = vmul.f32 %v1151_v24, %v644_v32  ;;  %v858_v6 = vld [vmem:[%s1083_s11 + $0x3f8] sm:$0xff]  ;;  %v890_v49 = vld [vmem:[%s1083_s11 + $0x590] sm:$0xff]  ;;  %v891_v1 = vld [vmem:[%s1083_s11 + $0x5a0] sm:$0xff] }
  0x37   : > { %v645_v38 = vadd.f32 %v1242_v44, %v581_v25  ;;  %v582_v52 = vadd.f32 %v1250_v37, %v517_v39  ;;  %v518_v53 = vadd.f32 %v950_v4, %v453_v40  ;;  %v454_v58 = vadd.f32 %v919_v36, %v390_v45  ;;  %v1326_v37 = vld [vmem:[%s1083_s11 + $0xe0] sm:$0xff]  ;;  %v1356_v21 = vld [vmem:[%s1083_s11 + $0xf1] sm:$0xff]  ;;  %v923_v36 = vld [vmem:[%s1083_s11 + $0x409] sm:$0xff] }
  0x38   : > { %723 = vst.msk [vmem:[%s1156_s15 + $0x48] sm:$0xff] %vm713_vm1, %v690_v43  ;;  %v391_v59 = vadd.f32 %v888_v41, %v326_v46  ;;  %v262_v61 = vadd.f32 %v1294_v31, %v198_v50  ;;  %v199_v44 = vadd.f32 %v984_v7, %v952_v42  ;;  %724 = vst.msk [vmem:[%s1156_s15 + $0x50] sm:$0xff] %vm713_vm1, %v691_v51  ;;  %v956_v33 = vld [vmem:[%s1083_s11 + $0xf8] sm:$0xff]  ;;  %v892_v41 = vld [vmem:[%s1083_s11 + $0x5a8] sm:$0xff] }
  0x39   : > { %v692_v3 = vmul.f32 0.11111111, %v645_v38  ;;  %v646_v4 = vadd.f32 %v1260_v2, %v582_v52  ;;  %v583_v26 = vadd.f32 %v1265_v56, %v518_v53  ;;  %v200_v10 = vadd.f32 %v1309_v17, %v1306_v22  ;;  %v955_v2 = vld [vmem:[%s1083_s11 + $0xf0] sm:$0xff]  ;;  %v1346_v56 = vld [vmem:[%s1083_s11 + $0x288] sm:$0xff]  ;;  %v922_v34 = vld [vmem:[%s1083_s11 + $0x3f9] sm:$0xff] }
  0x3a   : > { %v519_v13 = vadd.f32 %v951_v30, %v454_v58  ;;  %v455_v14 = vadd.f32 %v920_v47, %v391_v59  ;;  %v327_v15 = vadd.f32 %v857_v55, %v262_v61  ;;  %v263_v16 = vadd.f32 %v1315_v54, %v199_v44  ;;  %v860_v30 = vld [vmem:[%s1083_s11 + $0x410] sm:$0xff]  ;;  %v861_v43 = vld [vmem:[%s1083_s11 + $0x420] sm:$0xff]  ;;  %v957_v50 = vld [vmem:[%s1083_s11 + $0x108] sm:$0xff] }
  0x3b   : > { %725 = vst.msk [vmem:[%s1156_s15 + $0x58] sm:$0xff] %vm713_vm1, %v692_v3  ;;  %v693_v19 = vmul.f32 %v1151_v24, %v646_v4  ;;  %v647_v48 = vadd.f32 %v1275_v18, %v583_v26  ;;  %v264_v20 = vadd.f32 %v1323_v62, %v200_v10  ;;  %v201_v23 = vadd.f32 %v1329_v0, %v1326_v37  ;;  %v1363_v18 = vld [vmem:[%s1083_s11 + $0x290] sm:$0xff]  ;;  %v862_v58 = vld [vmem:[%s1083_s11 + $0x428] sm:$0xff] }
  0x3c   : > { %v584_v27 = vadd.f32 %v983_v63, %v519_v13  ;;  %v520_v28 = vadd.f32 %v952_v42, %v455_v14  ;;  %v392_v12 = vadd.f32 %v889_v57, %v327_v15  ;;  %v328_v29 = vadd.f32 %v858_v6, %v263_v16  ;;  %v1374_v42 = vld [vmem:[%s1083_s11 + $0xf9] sm:$0xff]  ;;  %v924_v55 = vld [vmem:[%s1083_s11 + $0x411] sm:$0xff]  ;;  %v1392_v3 = vld [vmem:[%s1083_s11 + $0x109] sm:$0xff] }
  0x3d   : > { %726 = vst.msk [vmem:[%s1156_s15 + $0x60] sm:$0xff] %vm713_vm1, %v693_v19  ;;  %v694_v60 = vmul.f32 0.11111111, %v647_v48  ;;  %v329_v35 = vadd.f32 %v859_v11, %v264_v20  ;;  %v265_v63 = vadd.f32 %v1338_v9, %v201_v23  ;;  %v202_v8 = vadd.f32 %v1346_v56, %v955_v2  ;;  %v893_v57 = vld [vmem:[%s1083_s11 + $0x5b8] sm:$0xff]  ;;  %v958_v26 = vld [vmem:[%s1083_s11 + $0x110] sm:$0xff]  ;;  %v925_v10 = vld [vmem:[%s1083_s11 + $0x421] sm:$0xff] }
  0x3e   : > { %v648_v32 = vadd.f32 %v1294_v31, %v584_v27  ;;  %v585_v25 = vadd.f32 %v984_v7, %v520_v28  ;;  %v456_v39 = vadd.f32 %v921_v5, %v392_v12  ;;  %v393_v40 = vadd.f32 %v890_v49, %v328_v29  ;;  %v1382_v31 = vld [vmem:[%s1083_s11 + $0x2a0] sm:$0xff]  ;;  %v1407_v48 = vld [vmem:[%s1083_s11 + $0x111] sm:$0xff]  ;;  %v926_v20 = vld [vmem:[%s1083_s11 + $0x429] sm:$0xff] }
  0x3f   : > { %727 = vst.msk [vmem:[%s1156_s15 + $0x68] sm:$0xff] %vm713_vm1, %v694_v60  ;;  %v394_v45 = vadd.f32 %v891_v1, %v329_v35  ;;  %v330_v46 = vadd.f32 %v860_v30, %v265_v63  ;;  %v266_v47 = vadd.f32 %v1356_v21, %v202_v8  ;;  %v203_v7 = vadd.f32 %v1363_v18, %v956_v33  ;;  %v894_v13 = vld [vmem:[%s1083_s11 + $0x5c0] sm:$0xff]  ;;  %v863_v49 = vld [vmem:[%s1083_s11 + $0x438] sm:$0xff]  ;;  %v895_v1 = vld [vmem:[%s1083_s11 + $0x5d0] sm:$0xff] }
  0x40   : > { %v695_v51 = vmul.f32 %v1151_v24, %v648_v32  ;;  %v649_v38 = vadd.f32 %v1315_v54, %v585_v25  ;;  %v521_v52 = vadd.f32 %v1306_v22, %v456_v39  ;;  %v457_v53 = vadd.f32 %v922_v34, %v393_v40  ;;  %v1397_v54 = vld [vmem:[%s1083_s11 + $0x2a8] sm:$0xff]  ;;  %v959_v30 = vld [vmem:[%s1083_s11 + $0x120] sm:$0xff]  ;;  %v896_v39 = vld [vmem:[%s1083_s11 + $0x5d8] sm:$0xff] }
  0x41   : > { %v458_v59 = vadd.f32 %v923_v36, %v394_v45  ;;  %v395_v61 = vadd.f32 %v892_v41, %v330_v46  ;;  %v331_v44 = vadd.f32 %v861_v43, %v266_v47  ;;  %v267_v4 = vadd.f32 %v1374_v42, %v203_v7  ;;  %v864_v60 = vld [vmem:[%s1083_s11 + $0x440] sm:$0xff]  ;;  %v960_v40 = vld [vmem:[%s1083_s11 + $0x128] sm:$0xff] }
  0x42   : > { %728 = vst.msk [vmem:[%s1156_s15 + $0x70] sm:$0xff] %vm713_vm1, %v695_v51  ;;  %v696_v22 = vmul.f32 0.11111111, %v649_v38  ;;  %v586_v5 = vadd.f32 %v1309_v17, %v521_v52  ;;  %v522_v6 = vadd.f32 %v1326_v37, %v457_v53  ;;  %v204_v14 = vadd.f32 %v1382_v31, %v957_v50  ;;  %v927_v36 = vld [vmem:[%s1083_s11 + $0x439] sm:$0xff]  ;;  %v1426_v63 = vld [vmem:[%s1083_s11 + $0x121] sm:$0xff]  ;;  %v1447_v52 = vld [vmem:[%s1083_s11 + $0x129] sm:$0xff] }
  0x43   : > { %v523_v15 = vadd.f32 %v955_v2, %v458_v59  ;;  %v459_v16 = vadd.f32 %v924_v55, %v395_v61  ;;  %v396_v11 = vadd.f32 %v893_v57, %v331_v44  ;;  %v332_v19 = vadd.f32 %v862_v58, %v267_v4  ;;  %v928_v46 = vld [vmem:[%s1083_s11 + $0x441] sm:$0xff]  ;;  %v865_v53 = vld [vmem:[%s1083_s11 + $0x450] sm:$0xff]  ;;  %v1455_v61 = vld [vmem:[%s1083_s11 + $0x139] sm:$0xff] }
  0x44   : > { %729 = vst.msk [vmem:[%s1156_s15 + $0x78] sm:$0xff] %vm713_vm1, %v696_v22  ;;  %v650_v17 = vadd.f32 %v1323_v62, %v586_v5  ;;  %v587_v37 = vadd.f32 %v1329_v0, %v522_v6  ;;  %v268_v2 = vadd.f32 %v1392_v3, %v204_v14  ;;  %v205_v23 = vadd.f32 %v1397_v54, %v958_v26  ;;  %v991_v62 = vld [vmem:[%s1083_s11 + $0x2b8] sm:$0xff]  ;;  %v897_v55 = vld [vmem:[%s1083_s11 + $0x5e8] sm:$0xff] }
  0x45   : > { %v588_v27 = vadd.f32 %v1346_v56, %v523_v15  ;;  %v524_v28 = vadd.f32 %v956_v33, %v459_v16  ;;  %v460_v12 = vadd.f32 %v925_v10, %v396_v11  ;;  %v397_v29 = vadd.f32 %v894_v13, %v332_v19  ;;  %v1461_v44 = vld [vmem:[%s1083_s11 + $0x2d8] sm:$0xff]  ;;  %v1470_v10 = vld [vmem:[%s1083_s11 + $0x141] sm:$0xff] }
  0x46   : > { %v697_v0 = vmul.f32 %v1151_v24, %v650_v17  ;;  %v651_v34 = vadd.f32 %v1338_v9, %v587_v37  ;;  %v333_v35 = vadd.f32 %v863_v49, %v268_v2  ;;  %v269_v56 = vadd.f32 %v1407_v48, %v205_v23  ;;  %v992_v9 = vld [vmem:[%s1083_s11 + $0x2c0] sm:$0xff]  ;;  %v929_v5 = vld [vmem:[%s1083_s11 + $0x451] sm:$0xff]  ;;  %v867_v19 = vld [vmem:[%s1083_s11 + $0x468] sm:$0xff] }
  0x47   : > { %v652_v33 = vadd.f32 %v1356_v21, %v588_v27  ;;  %v589_v8 = vadd.f32 %v1363_v18, %v524_v28  ;;  %v525_v32 = vadd.f32 %v957_v50, %v460_v12  ;;  %v461_v25 = vadd.f32 %v926_v20, %v397_v29  ;;  %v1438_v21 = vld [vmem:[%s1083_s11 + $0x138] sm:$0xff]  ;;  %v1441_v18 = vld [vmem:[%s1083_s11 + $0x2d0] sm:$0xff]  ;;  %v899_v2 = vld [vmem:[%s1083_s11 + $0x600] sm:$0xff] }
  0x48   : > { %730 = vst.msk [vmem:[%s1156_s15 + $0x80] sm:$0xff] %vm713_vm1, %v697_v0  ;;  %v698_v41 = vmul.f32 0.11111111, %v651_v34  ;;  %v398_v43 = vadd.f32 %v895_v1, %v333_v35  ;;  %v334_v45 = vadd.f32 %v864_v60, %v269_v56  ;;  %v206_v47 = vadd.f32 %v991_v62, %v959_v30  ;;  %v866_v6 = vld [vmem:[%s1083_s11 + $0x458] sm:$0xff]  ;;  %v898_v37 = vld [vmem:[%s1083_s11 + $0x5f0] sm:$0xff] }
  0x49   : > { %v699_v50 = vmul.f32 %v1151_v24, %v652_v33  ;;  %v653_v7 = vadd.f32 %v1374_v42, %v589_v8  ;;  %v590_v51 = vadd.f32 %v1382_v31, %v525_v32  ;;  %v526_v38 = vadd.f32 %v958_v26, %v461_v25  ;;  %v1458_v31 = vld [vmem:[%s1083_s11 + $0x140] sm:$0xff]  ;;  %v1488_v1 = vld [vmem:[%s1083_s11 + $0x151] sm:$0xff] }
  0x4a   : > { %731 = vst.msk [vmem:[%s1156_s15 + $0x88] sm:$0xff] %vm713_vm1, %v698_v41  ;;  %v462_v57 = vadd.f32 %v927_v36, %v398_v43  ;;  %v399_v58 = vadd.f32 %v896_v39, %v334_v45  ;;  %v270_v59 = vadd.f32 %v1426_v63, %v206_v47  ;;  %v207_v42 = vadd.f32 %v992_v9, %v960_v40  ;;  %v964_v60 = vld [vmem:[%s1083_s11 + $0x158] sm:$0xff]  ;;  %v931_v36 = vld [vmem:[%s1083_s11 + $0x469] sm:$0xff]  ;;  %v869_v41 = vld [vmem:[%s1083_s11 + $0x480] sm:$0xff] }
  0x4b   : > { %732 = vst.msk [vmem:[%s1156_s15 + $0x90] sm:$0xff] %vm713_vm1, %v699_v50  ;;  %v700_v4 = vmul.f32 0.11111111, %v653_v7  ;;  %v654_v26 = vadd.f32 %v1392_v3, %v590_v51  ;;  %v591_v22 = vadd.f32 %v1397_v54, %v526_v38  ;;  %v208_v13 = vadd.f32 %v1441_v18, %v1438_v21  ;;  %v963_v3 = vld [vmem:[%s1083_s11 + $0x150] sm:$0xff]  ;;  %v1478_v54 = vld [vmem:[%s1083_s11 + $0x2e8] sm:$0xff]  ;;  %v930_v34 = vld [vmem:[%s1083_s11 + $0x459] sm:$0xff] }
  0x4c   : > { %v527_v14 = vadd.f32 %v959_v30, %v462_v57  ;;  %v463_v15 = vadd.f32 %v928_v46, %v399_v58  ;;  %v335_v16 = vadd.f32 %v865_v53, %v270_v59  ;;  %v271_v11 = vadd.f32 %v1447_v52, %v207_v42  ;;  %v868_v30 = vld [vmem:[%s1083_s11 + $0x470] sm:$0xff]  ;;  %v900_v39 = vld [vmem:[%s1083_s11 + $0x608] sm:$0xff] }
  0x4d   : > { %733 = vst.msk [vmem:[%s1156_s15 + $0x98] sm:$0xff] %vm713_vm1, %v700_v4  ;;  %v701_v49 = vmul.f32 %v1151_v24, %v654_v26  ;;  %v655_v17 = vadd.f32 %v1407_v48, %v591_v22  ;;  %v272_v20 = vadd.f32 %v1455_v61, %v208_v13  ;;  %v209_v23 = vadd.f32 %v1461_v44, %v1458_v31  ;;  %v1495_v48 = vld [vmem:[%s1083_s11 + $0x2f0] sm:$0xff]  ;;  %v965_v47 = vld [vmem:[%s1083_s11 + $0x168] sm:$0xff] }
  0x4e   : > { %v592_v27 = vadd.f32 %v991_v62, %v527_v14  ;;  %v528_v28 = vadd.f32 %v960_v40, %v463_v15  ;;  %v400_v12 = vadd.f32 %v897_v55, %v335_v16  ;;  %v336_v29 = vadd.f32 %v866_v6, %v271_v11  ;;  %v1506_v40 = vld [vmem:[%s1083_s11 + $0x159] sm:$0xff]  ;;  %v932_v53 = vld [vmem:[%s1083_s11 + $0x471] sm:$0xff]  ;;  %v870_v57 = vld [vmem:[%s1083_s11 + $0x488] sm:$0xff] }
  0x4f   : > { %734 = vst.msk [vmem:[%s1156_s15 + $0xa0] sm:$0xff] %vm713_vm1, %v701_v49  ;;  %v702_v0 = vmul.f32 0.11111111, %v655_v17  ;;  %v337_v35 = vadd.f32 %v867_v19, %v272_v20  ;;  %v273_v62 = vadd.f32 %v1470_v10, %v209_v23  ;;  %v210_v56 = vadd.f32 %v1478_v54, %v963_v3  ;;  %v901_v55 = vld [vmem:[%s1083_s11 + $0x618] sm:$0xff]  ;;  %v1029_v4 = vld [vmem:[%s1083_s11 + $0x169] sm:$0xff]  ;;  %v933_v13 = vld [vmem:[%s1083_s11 + $0x481] sm:$0xff] }
  0x50   : > { %v656_v33 = vadd.f32 %v1426_v63, %v592_v27  ;;  %v593_v8 = vadd.f32 %v992_v9, %v528_v28  ;;  %v464_v32 = vadd.f32 %v929_v5, %v400_v12  ;;  %v401_v25 = vadd.f32 %v898_v37, %v336_v29  ;;  %v997_v63 = vld [vmem:[%s1083_s11 + $0x300] sm:$0xff]  ;;  %v966_v22 = vld [vmem:[%s1083_s11 + $0x170] sm:$0xff]  ;;  %v998_v5 = vld [vmem:[%s1083_s11 + $0x308] sm:$0xff] }
  0x51   : > { %735 = vst.msk [vmem:[%s1156_s15 + $0xa8] sm:$0xff] %vm713_vm1, %v702_v0  ;;  %v402_v43 = vadd.f32 %v899_v2, %v337_v35  ;;  %v338_v45 = vadd.f32 %v868_v30, %v273_v62  ;;  %v274_v46 = vadd.f32 %v1488_v1, %v210_v56  ;;  %v211_v9 = vadd.f32 %v1495_v48, %v964_v60  ;;  %v902_v14 = vld [vmem:[%s1083_s11 + $0x620] sm:$0xff]  ;;  %v1030_v17 = vld [vmem:[%s1083_s11 + $0x171] sm:$0xff] }
  0x52   : > { %v703_v50 = vmul.f32 %v1151_v24, %v656_v33  ;;  %v657_v7 = vadd.f32 %v1447_v52, %v593_v8  ;;  %v529_v51 = vadd.f32 %v1438_v21, %v464_v32  ;;  %v465_v38 = vadd.f32 %v930_v34, %v401_v25  ;;  %v871_v37 = vld [vmem:[%s1083_s11 + $0x498] sm:$0xff]  ;;  %v903_v29 = vld [vmem:[%s1083_s11 + $0x630] sm:$0xff]  ;;  %v872_v30 = vld [vmem:[%s1083_s11 + $0x4a0] sm:$0xff] }
  0x53   : > { %v466_v58 = vadd.f32 %v931_v36, %v402_v43  ;;  %v403_v59 = vadd.f32 %v900_v39, %v338_v45  ;;  %v339_v42 = vadd.f32 %v869_v41, %v274_v46  ;;  %v275_v26 = vadd.f32 %v1506_v40, %v211_v9  ;;  %v904_v56 = vld [vmem:[%s1083_s11 + $0x638] sm:$0xff]  ;;  %v936_v41 = vld [vmem:[%s1083_s11 + $0x4a1] sm:$0xff] }
  0x54   : > { %736 = vst.msk [vmem:[%s1156_s15 + $0xb0] sm:$0xff] %vm713_vm1, %v703_v50  ;;  %v704_v21 = vmul.f32 0.11111111, %v657_v7  ;;  %v594_v52 = vadd.f32 %v1441_v18, %v529_v51  ;;  %v530_v6 = vadd.f32 %v1458_v31, %v465_v38  ;;  %v212_v15 = vadd.f32 %v997_v63, %v965_v47  ;;  %v934_v18 = vld [vmem:[%s1083_s11 + $0x489] sm:$0xff]  ;;  %v999_v50 = vld [vmem:[%s1083_s11 + $0x318] sm:$0xff] }
  0x55   : > { %v531_v16 = vadd.f32 %v963_v3, %v466_v58  ;;  %v467_v11 = vadd.f32 %v932_v53, %v403_v59  ;;  %v404_v19 = vadd.f32 %v901_v55, %v339_v42  ;;  %v340_v49 = vadd.f32 %v870_v57, %v275_v26  ;;  %v1031_v53 = vld [vmem:[%s1083_s11 + $0x181] sm:$0xff]  ;;  %v1032_v42 = vld [vmem:[%s1083_s11 + $0x189] sm:$0xff] }
  0x56   : > { %737 = vst.msk [vmem:[%s1156_s15 + $0xb8] sm:$0xff] %vm713_vm1, %v704_v21  ;;  %v658_v20 = vadd.f32 %v1455_v61, %v594_v52  ;;  %v595_v2 = vadd.f32 %v1461_v44, %v530_v6  ;;  %v276_v23 = vadd.f32 %v1029_v4, %v212_v15  ;;  %v213_v31 = vadd.f32 %v998_v5, %v966_v22  ;;  %v1000_v55 = vld [vmem:[%s1083_s11 + $0x320] sm:$0xff] }
  0x57   : > { %v596_v3 = vadd.f32 %v1478_v54, %v531_v16  ;;  %v532_v27 = vadd.f32 %v964_v60, %v467_v11  ;;  %v468_v28 = vadd.f32 %v933_v13, %v404_v19  ;;  %v405_v12 = vadd.f32 %v902_v14, %v340_v49  ;;  %v935_v60 = vld [vmem:[%s1083_s11 + $0x499] sm:$0xff] }
  0x58   : > { %v705_v0 = vmul.f32 %v1151_v24, %v658_v20  ;;  %v659_v34 = vadd.f32 %v1470_v10, %v595_v2  ;;  %v341_v61 = vadd.f32 %v871_v37, %v276_v23  ;;  %v277_v44 = vadd.f32 %v1030_v17, %v213_v31 }
  0x59   : > { %v660_v35 = vadd.f32 %v1488_v1, %v596_v3  ;;  %v597_v36 = vadd.f32 %v1495_v48, %v532_v27  ;;  %v533_v54 = vadd.f32 %v965_v47, %v468_v28  ;;  %v469_v62 = vadd.f32 %v934_v18, %v405_v12  ;;  %v967_v48 = vld [vmem:[%s1083_s11 + $0x180] sm:$0xff] }
  0x5a   : > { %738 = vst.msk [vmem:[%s1156_s15 + $0xc0] sm:$0xff] %vm713_vm1, %v705_v0  ;;  %v706_v33 = vmul.f32 0.11111111, %v659_v34  ;;  %v406_v8 = vadd.f32 %v903_v29, %v341_v61  ;;  %v342_v10 = vadd.f32 %v872_v30, %v277_v44 }
  0x5b   : > { %v707_v32 = vmul.f32 %v1151_v24, %v660_v35  ;;  %v661_v25 = vadd.f32 %v1506_v40, %v597_v36  ;;  %v598_v1 = vadd.f32 %v997_v63, %v533_v54  ;;  %v534_v39 = vadd.f32 %v966_v22, %v469_v62  ;;  %v968_v40 = vld [vmem:[%s1083_s11 + $0x188] sm:$0xff] }
  0x5c   : > { %739 = vst.msk [vmem:[%s1156_s15 + $0xc8] sm:$0xff] %vm713_vm1, %v706_v33  ;;  %v470_v43 = vadd.f32 %v935_v60, %v406_v8  ;;  %v407_v45 = vadd.f32 %v904_v56, %v342_v10 }
  0x5d   : > { %740 = vst.msk [vmem:[%s1156_s15 + $0xd0] sm:$0xff] %vm713_vm1, %v707_v32  ;;  %v708_v46 = vmul.f32 0.11111111, %v661_v25  ;;  %v662_v47 = vadd.f32 %v1029_v4, %v598_v1  ;;  %v599_v9 = vadd.f32 %v998_v5, %v534_v39 }
  0x5e   : > { %v535_v63 = vadd.f32 %v967_v48, %v470_v43  ;;  %v471_v7 = vadd.f32 %v936_v41, %v407_v45 }
  0x5f   : > { %741 = vst.msk [vmem:[%s1156_s15 + $0xd8] sm:$0xff] %vm713_vm1, %v708_v46  ;;  %v709_v51 = vmul.f32 %v1151_v24, %v662_v47  ;;  %v663_v38 = vadd.f32 %v1030_v17, %v599_v9 }
  0x60   : > { %v600_v57 = vadd.f32 %v999_v50, %v535_v63  ;;  %v536_v58 = vadd.f32 %v968_v40, %v471_v7 }
  0x61   : > { %742 = vst.msk [vmem:[%s1156_s15 + $0xe0] sm:$0xff] %vm713_vm1, %v709_v51  ;;  %v710_v59 = vmul.f32 0.11111111, %v663_v38 }
  0x62   : > { %v664_v4 = vadd.f32 %v1031_v53, %v600_v57  ;;  %v601_v26 = vadd.f32 %v1000_v55, %v536_v58 }
  0x63   : > { %743 = vst.msk [vmem:[%s1156_s15 + $0xe8] sm:$0xff] %vm713_vm1, %v710_v59 }
  0x64   : > { %v711_v22 = vmul.f32 %v1151_v24, %v664_v4  ;;  %v665_v5 = vadd.f32 %v1032_v42, %v601_v26 }
  0x66   : > { %744 = vst.msk [vmem:[%s1156_s15 + $0xf0] sm:$0xff] %vm713_vm1, %v711_v22  ;;  %v712_v21 = vmul.f32 0.11111111, %v665_v5 }
  0x68   : > { %745 = vst.msk [vmem:[%s1156_s15 + $0xf8] sm:$0xff] %vm713_vm1, %v712_v21 }
  0x69 PF: > { %s11_s6 = sadd.s32 1, %s1056_s6  }
  0x6a   : > { %p8_p4 = scmp.ge.s32.totalorder %s11_s6, 4  }
  0x6c   :  { %10 = sbr.rel (!%p8_p4) target bundleno = 1 (0x1), region = 59 }

// kernel: multiscale_discriminator_pallas.14
= control target key start
LH: loop header
LB: loop body
LE: loop exit
PB: predicated region body
PF: predicated region fallthrough
CT: control target
= control target key end

     0   :  { %s1102_s12 = smov 0   ;;  %s1104_s13 = smov 0   ;;  %s1282_s0 = inlined_call_operand.vmem [shape: bf16[2,9,9,32], index: 0, kind: input, shape index: {}]   ;;  %s1283_s1 = inlined_call_operand.vmem [shape: bf16[128,128], index: 1, kind: input, shape index: {}]   ;;  %s1284_s2 = inlined_call_operand.vmem [shape: f32[1,128], index: 2, kind: input, shape index: {}]   ;;  %s1285_s3 = inlined_call_operand.vmem [shape: bf16[2,64,128], index: 3, kind: output, shape index: {}]  }
   0x1   :  { %s1106_s14 = smov 0  }
   0x2 LB: > { %s25_s15 = sadd.s32 1, %s1073_s13  ;;  %p844_p0 = scmp.ge.s32.totalorder %s1077_s14, 1  ;;  %s1077_s14 = sphi %s1106_s14, %s13_s14   ;;  %s1073_s13 = sphi %s1104_s13, %s1287_s13   ;;  %s1069_s12 = sphi %s1102_s12, %s1286_s12  }
   0x3   : > { %p27_p1 = scmp.ge.s32.totalorder %s25_s15, 2  ;;  %p151_p2 = scmp.lt.s32.totalorder %s1077_s14, 3 }
   0x5   : > { %s1289_s15 = smov (%p27_p1, %s25_s15), 0  ;;  %p152_p3 = pnand %p844_p0, %p151_p2 }
   0x6   : > { %p179_p4 = scmp.lt.s32.totalorder (!%p152_p3), %s1069_s12, 1  ;;  %s1079_s20 = smov (!%p152_p3), 64   ;;  %v1047_v35 = vld [vmem:[%s1283_s1] sm:$0xff] (!%p152_p3)   ;;  %v1048_v42 = vld [vmem:[%s1283_s1 + $0x8] sm:$0xff] (!%p152_p3)   ;;  %v1049_v52 = vld [vmem:[%s1283_s1 + $0x10] sm:$0xff] (!%p152_p3)   ;;  %vm476_vm0 = vcmask (!%p152_p3), 261120  }
   0x7   : > { %155 = sbr.rel (%p152_p3) target bundleno = 410 (0x19a), region = 32  ;;  %s1080_s25 = smov (!%p152_p3), 32   ;;  %955 = vmatprep.subr.bf16.mxu0 (!%p152_p3), %v1047_v35  ;;  %979 = vmatprep.subr.bf16.mxu1 (!%p152_p3), %v1047_v35  ;;  %v1050_v61 = vld [vmem:[%s1283_s1 + $0x18] sm:$0xff] (!%p152_p3)   ;;  %vm501_vm1 = vcmask (!%p152_p3), 523264   ;;  %vm518_vm2 = vcmask (!%p152_p3), 785408  }
   0x8   : > { %956 = vmatpush3.bf16.msra.mxu0 (!%p152_p3), %v1047_v35  ;;  %987 = vmatpush3.bf16.msra.mxu1 (!%p152_p3), %v1047_v35  ;;  %s1081_s11 = smov (!%p152_p3), 96  }
   0x9   : > { %957 = vmatprep.subr.bf16.mxu0 (!%p152_p3), %v1048_v42  ;;  %980 = vmatprep.subr.bf16.mxu1 (!%p152_p3), %v1048_v42 }
   0xc   : > { %958 = vmatpush3.bf16.msra.mxu0 (!%p152_p3), %v1048_v42  ;;  %988 = vmatpush3.bf16.msra.mxu1 (!%p152_p3), %v1048_v42 }
   0xd   : > { %959 = vmatprep.subr.bf16.mxu0 (!%p152_p3), %v1049_v52  ;;  %981 = vmatprep.subr.bf16.mxu1 (!%p152_p3), %v1049_v52 }
   0xe   : > { %s1291_s12 = smov (!%p179_p4, %s1069_s12), 1 }
   0xf   : > { %s995_s16 = smul.u32 72, %s1291_s12  ;;  %s911_s18 = sshll.u32 %s1291_s12, 5 }
  0x10   : > { %960 = vmatpush3.bf16.msra.mxu0 %v1049_v52  ;;  %989 = vmatpush3.bf16.msra.mxu1 %v1049_v52  ;;  %s192_s21 = scalar_lea.vmem %s1285_s3, %s911_s18 }
  0x11   : > { %s1126_s19 = scalar_lea.vmem %s1282_s0, %s995_s16  ;;  %961 = vmatprep.subr.bf16.mxu0 %v1050_v61  ;;  %982 = vmatprep.subr.bf16.mxu1 %v1050_v61 }
  0x12   : > { %v1129_v0 = vld [vmem:[%s1126_s19 + $0x10] sm:$0xf]  ;;  %v1132_v1 = vld [vmem:[%s1126_s19 + $0x8] sm:$0xf]  ;;  %v1139_v4 = vld [vmem:[%s1126_s19 + $0x20] sm:$0xf] }
  0x13   : > { %v873_v2 = vcombine.low %v1129_v0, %v1129_v0  ;;  %v872_v3 = vcombine.low %v1132_v1, %v1132_v1  ;;  %v207_v5 = vld [vmem:[%s1126_s19 + $0x24] sm:$0x1]  ;;  %v1144_v7 = vld [vmem:[%s1126_s19] sm:$0xf]  ;;  %v1148_v9 = vld [vmem:[%s1126_s19 + $0x28] sm:$0xf] }
  0x14   : > { %v868_v6 = vcombine.low %v1139_v4, %v207_v5  ;;  %v203_v8 = vld [vmem:[%s1126_s19 + $0x4] sm:$0x1]  ;;  %v208_v11 = vld [vmem:[%s1126_s19 + $0x2c] sm:$0x1]  ;;  %v1155_v12 = vld [vmem:[%s1126_s19 + $0x8] sm:$0xf]  ;;  %962 = vmatpush3.bf16.msra.mxu0 %v1050_v61  ;;  %990 = vmatpush3.bf16.msra.mxu1 %v1050_v61 }
  0x15   : > { %366 = vrot.lane.b32.xlu1 %v873_v2, %s1079_s20  ;;  %364 = vrot.lane.b32.xlu0 %v872_v3, %s1079_s20  ;;  %v864_v10 = vcombine.low %v1144_v7, %v203_v8  ;;  %v204_v15 = vld [vmem:[%s1126_s19 + $0xc] sm:$0x1]  ;;  %v869_v18 = vcombine.low %v1148_v9, %v208_v11  ;;  %v1161_v20 = vld [vmem:[%s1126_s19 + $0x18] sm:$0xf] }
  0x16   : > { %v297_v13 = vshrl.u32 %v868_v6, 16  ;;  %v299_v14 = vshll.u32 %v868_v6, 16  ;;  %v865_v19 = vcombine.low %v1155_v12, %v204_v15  ;;  %v206_v21 = vld [vmem:[%s1126_s19 + $0x1c] sm:$0x1]  ;;  %v1166_v24 = vld [vmem:[%s1126_s19 + $0x10] sm:$0xf] }
  0x17   : > { %v269_v16 = vshrl.u32 %v864_v10, 16  ;;  %v271_v17 = vshll.u32 %v864_v10, 16  ;;  %v867_v23 = vcombine.low %v1161_v20, %v206_v21  ;;  %v205_v25 = vld [vmem:[%s1126_s19 + $0x14] sm:$0x1]  ;;  %v304_v27 = vshrl.u32 %v869_v18, 16  ;;  %v1051_v8 = vld [vmem:[%s1283_s1 + $0x20] sm:$0xff]  }
  0x18   : > { %v301_v22 = vrot.slane %v299_v14, 1  ;;  %v306_v28 = vshll.u32 %v869_v18, 16  ;;  %v1170_v29 = vld [vmem:[%s1126_s19 + $0x38] sm:$0xf]  ;;  %v276_v31 = vshrl.u32 %v865_v19, 16  ;;  %v278_v32 = vshll.u32 %v865_v19, 16  ;;  %963 = vmatprep.subr.bf16.mxu0 %v1051_v8  ;;  %983 = vmatprep.subr.bf16.mxu1 %v1051_v8 }
  0x19   : > { %v273_v26 = vrot.slane %v271_v17, 1  ;;  %v292_v33 = vshll.u32 %v867_v23, 16  ;;  %v210_v34 = vld [vmem:[%s1126_s19 + $0x3c] sm:$0x1]  ;;  %v866_v38 = vcombine.low %v1166_v24, %v205_v25  ;;  %v1179_v40 = vld [vmem:[%s1126_s19 + $0x30] sm:$0xf]  ;;  %964 = vmatpush3.bf16.msra.mxu0 %v1051_v8  ;;  %991 = vmatpush3.bf16.msra.mxu1 %v1051_v8 }
  0x1a   : > { %v302_v30 = vor.u32 %v301_v22, %v297_v13  ;;  %v308_v37 = vrot.slane %v306_v28, 1  ;;  %v871_v39 = vcombine.low %v1170_v29, %v210_v34  ;;  %v209_v41 = vld [vmem:[%s1126_s19 + $0x34] sm:$0x1]  ;;  %v280_v43 = vrot.slane %v278_v32, 1  ;;  %v853_v3 = vld [vmem:[%s1126_s19 + $0x30] sm:$0xf] }
  0x1b   : > { %v274_v36 = vor.u32 %v273_v26, %v269_v16  ;;  %v290_v44 = vshrl.u32 %v867_v23, 16  ;;  %v294_v45 = vrot.slane %v292_v33, 1  ;;  %v870_v46 = vcombine.low %v1179_v40, %v209_v41  ;;  %v857_v62 = vld [vmem:[%s1126_s19 + $0x14] sm:$0x1]  ;;  %v856_v5 = vld [vmem:[%s1126_s19 + $0xc] sm:$0x1] }
  0x1c   : > { %332 = vrot.lane.b32.xlu1 %v302_v30, %s1080_s25  ;;  %v309_v47 = vor.u32 %v308_v37, %v304_v27  ;;  %v283_v48 = vshrl.u32 %v866_v38, 16  ;;  %v285_v49 = vshll.u32 %v866_v38, 16  ;;  %v281_v50 = vor.u32 %v280_v43, %v276_v31  ;;  %v852_v6 = vld [vmem:[%s1126_s19 + $0x28] sm:$0xf]  ;;  %v861_v14 = vld [vmem:[%s1126_s19 + $0x34] sm:$0x1] }
  0x1d   : > { %324 = vrot.lane.b32.xlu0 %v274_v36, %s1080_s25  ;;  %v320_v51 = vshll.u32 %v871_v39, 16  ;;  %v313_v54 = vshll.u32 %v870_v46, 16  ;;  %v295_v55 = vor.u32 %v294_v45, %v290_v44  ;;  %v318_v56 = vshrl.u32 %v871_v39, 16  ;;  %v851_v16 = vld [vmem:[%s1126_s19 + $0x20] sm:$0xf]  ;;  %v1053_v31 = vld [vmem:[%s1283_s1 + $0x30] sm:$0xff]  }
  0x1e   : > { %v287_v53 = vrot.slane %v285_v49, 1  ;;  %v311_v59 = vshrl.u32 %v870_v46, 16  ;;  %v881_v10 = vcombine.low %v1129_v0, %v857_v62  ;;  %v877_v11 = vcombine.low %v853_v3, %v853_v3  ;;  %v860_v17 = vld [vmem:[%s1126_s19 + $0x2c] sm:$0x1]  ;;  %v850_v18 = vld [vmem:[%s1126_s19 + $0x18] sm:$0xf] }
  0x1f   : > { %v322_v57 = vrot.slane %v320_v51, 1  ;;  %v315_v60 = vrot.slane %v313_v54, 1  ;;  %v880_v13 = vcombine.low %v1132_v1, %v856_v5  ;;  %v876_v15 = vcombine.low %v852_v6, %v852_v6  ;;  %v1052_v0 = vld [vmem:[%s1283_s1 + $0x28] sm:$0xff]   ;;  %v859_v25 = vld [vmem:[%s1126_s19 + $0x24] sm:$0x1]  ;;  %v1054_v45 = vld [vmem:[%s1283_s1 + $0x38] sm:$0xff]  }
  0x20   : > { %334 = vrot.lane.b32.xlu1 %v309_v47, %s1080_s25  ;;  %v288_v58 = vor.u32 %v287_v53, %v283_v48  ;;  %v414_v19 = vshll.u32 %v881_v10, 16  ;;  %v885_v1 = vcombine.low %v853_v3, %v861_v14  ;;  %v875_v21 = vcombine.low %v851_v16, %v851_v16  ;;  %v855_v27 = vld [vmem:[%s1126_s19 + $0x40] sm:$0xf]  ;;  %v858_v28 = vld [vmem:[%s1126_s19 + $0x1c] sm:$0x1]  ;;  %965 = vmatprep.subr.bf16.mxu0 %v1052_v0 }
  0x21   : > { %326 = vrot.lane.b32.xlu0 %v281_v50, %s1080_s25  ;;  %v323_v63 = vor.u32 %v322_v57, %v318_v56  ;;  %v316_v2 = vor.u32 %v315_v60, %v311_v59  ;;  %v407_v22 = vshll.u32 %v880_v13, 16  ;;  %v884_v23 = vcombine.low %v852_v6, %v860_v17  ;;  %v854_v30 = vld [vmem:[%s1126_s19 + $0x38] sm:$0xf]  ;;  %v863_v36 = vld [vmem:[%s1126_s19 + $0x44] sm:$0x1]  ;;  %984 = vmatprep.subr.bf16.mxu1 %v1052_v0 }
  0x22   : > { %v874_v26 = vcombine.low %v850_v18, %v850_v18  ;;  %v412_v32 = vshrl.u32 %v881_v10, 16  ;;  %v416_v33 = vrot.slane %v414_v19, 1  ;;  %v405_v34 = vshrl.u32 %v880_v13, 16  ;;  %v862_v41 = vld [vmem:[%s1126_s19 + $0x3c] sm:$0x1]  ;;  %966 = vmatpush3.bf16.msra.mxu0 %v1052_v0  ;;  %992 = vmatpush3.bf16.msra.mxu1 %v1052_v0 }
  0x23   : > { %v883_v35 = vcombine.low %v851_v16, %v859_v25  ;;  %v879_v37 = vcombine.low %v855_v27, %v855_v27  ;;  %v442_v38 = vshll.u32 %v885_v1, 16  ;;  %v882_v39 = vcombine.low %v850_v18, %v858_v28  ;;  %967 = vmatprep.subr.bf16.mxu0 %v1053_v31  ;;  %985 = vmatprep.subr.bf16.mxu1 %v1053_v31 }
  0x24   : > { %330 = vrot.lane.b32.xlu1 %v295_v55, %s1080_s25  ;;  %v878_v42 = vcombine.low %v854_v30, %v854_v30  ;;  %v409_v43 = vrot.slane %v407_v22, 1  ;;  %v435_v44 = vshll.u32 %v884_v23, 16  ;;  %v887_v46 = vcombine.low %v855_v27, %v863_v36 }
  0x25   : > { %328 = vrot.lane.b32.xlu0 %v288_v58, %s1080_s25  ;;  %v417_v47 = vor.u32 %v416_v33, %v412_v32  ;;  %v886_v48 = vcombine.low %v854_v30, %v862_v41  ;;  %v440_v49 = vshrl.u32 %v885_v1, 16  ;;  %v444_v50 = vrot.slane %v442_v38, 1 }
  0x26   : > { %v428_v51 = vshll.u32 %v883_v35, 16  ;;  %v410_v52 = vor.u32 %v409_v43, %v405_v34  ;;  %v433_v53 = vshrl.u32 %v884_v23, 16  ;;  %v437_v54 = vrot.slane %v435_v44, 1  ;;  %968 = vmatpush3.bf16.msra.mxu0 %v1053_v31  ;;  %993 = vmatpush3.bf16.msra.mxu1 %v1053_v31 }
  0x27   : > { %v421_v55 = vshll.u32 %v882_v39, 16  ;;  %969 = vmatprep.subr.bf16.mxu0 %v1054_v45  ;;  %v445_v56 = vor.u32 %v444_v50, %v440_v49  ;;  %v426_v57 = vshrl.u32 %v883_v35, 16  ;;  %v456_v59 = vshll.u32 %v887_v46, 16  ;;  %986 = vmatprep.subr.bf16.mxu1 %v1054_v45 }
  0x28   : > { %338 = vrot.lane.b32.xlu1 %v323_v63, %s1080_s25  ;;  %v430_v58 = vrot.slane %v428_v51, 1  ;;  %v438_v60 = vor.u32 %v437_v54, %v433_v53  ;;  %v419_v61 = vshrl.u32 %v882_v39, 16  ;;  %v449_v63 = vshll.u32 %v886_v48, 16 }
  0x29   : > { %336 = vrot.lane.b32.xlu0 %v316_v2, %s1080_s25  ;;  %v423_v62 = vrot.slane %v421_v55, 1  ;;  %v454_v3 = vshrl.u32 %v887_v46, 16  ;;  %v458_v5 = vrot.slane %v456_v59, 1  ;;  %v447_v8 = vshrl.u32 %v886_v48, 16 }
  0x2a   : > { %970 = vmatpush3.bf16.msra.mxu0 %v1054_v45  ;;  %994 = vmatpush3.bf16.msra.mxu1 %v1054_v45  ;;  %v431_v2 = vor.u32 %v430_v58, %v426_v57  ;;  %v451_v10 = vrot.slane %v449_v63, 1 }
  0x2b   : > { %v424_v6 = vor.u32 %v423_v62, %v419_v61 }
  0x2c   : > { %374 = vrot.lane.b32.xlu1 %v877_v11, %s1079_s20  ;;  %v459_v11 = vor.u32 %v458_v5, %v454_v3  ;;  %v452_v13 = vor.u32 %v451_v10, %v447_v8 }
  0x2d   : > { %372 = vrot.lane.b32.xlu0 %v876_v15, %s1079_s20 }
  0x30   : > { %370 = vrot.lane.b32.xlu1 %v875_v21, %s1079_s20 }
  0x31   : > { %368 = vrot.lane.b32.xlu0 %v874_v26, %s1079_s20 }
  0x34   : > { %378 = vrot.lane.b32.xlu1 %v879_v37, %s1079_s20 }
  0x35   : > { %376 = vrot.lane.b32.xlu0 %v878_v42, %s1079_s20 }
  0x38   : > { %462 = vrot.lane.b32.xlu1 %v417_v47, %s1081_s11 }
  0x39   : > { %460 = vrot.lane.b32.xlu0 %v410_v52, %s1081_s11 }
  0x3c   : > { %470 = vrot.lane.b32.xlu1 %v445_v56, %s1081_s11 }
  0x3d   : > { %468 = vrot.lane.b32.xlu0 %v438_v60, %s1081_s11 }
  0x40   : > { %466 = vrot.lane.b32.xlu1 %v431_v2, %s1081_s11 }
  0x41   : > { %464 = vrot.lane.b32.xlu0 %v424_v6, %s1081_s11 }
  0x44   : > { %474 = vrot.lane.b32.xlu1 %v459_v11, %s1081_s11 }
  0x45   : > { %472 = vrot.lane.b32.xlu0 %v452_v13, %s1081_s11 }
  0x87   : > { %v367_v14 = vpop.permute.xlu1 %366  ;;  %v365_v15 = vpop.permute.xlu0 %364 }
  0x8e   : > { %v333_v16 = vpop.permute.xlu1 %332 }
  0x8f   : > { %v325_v17 = vpop.permute.xlu0 %324  ;;  %v491_v41 = vsel %vm476_vm0, %v1139_v4, %v333_v16 }
  0x90   : > { %v479_v32 = vsel %vm476_vm0, %v1144_v7, %v325_v17 }
  0x91   : > { %v503_v36 = vsel %vm501_vm1, %v479_v32, %v365_v15 }
  0x92   : > { %v335_v18 = vpop.permute.xlu1 %334 }
  0x93   : > { %v327_v0 = vpop.permute.xlu0 %326  ;;  %v494_v39 = vsel %vm476_vm0, %v1148_v9, %v335_v18 }
  0x94   : > { %v482_v30 = vsel %vm476_vm0, %v1155_v12, %v327_v0 }
  0x95   : > { %v505_v34 = vsel %vm501_vm1, %v482_v30, %v367_v14 }
  0x96   : > { %v331_v19 = vpop.permute.xlu1 %330 }
  0x97   : > { %v329_v1 = vpop.permute.xlu0 %328  ;;  %v488_v47 = vsel %vm476_vm0, %v1161_v20, %v331_v19 }
  0x98   : > { %v485_v9 = vsel %vm476_vm0, %v1166_v24, %v329_v1 }
  0x9a   : > { %v339_v21 = vpop.permute.xlu1 %338 }
  0x9b   : > { %v337_v22 = vpop.permute.xlu0 %336  ;;  %v500_v54 = vsel %vm476_vm0, %v1170_v29, %v339_v21  ;;  %v888_v29 = vld [vmem:[%s1284_s2] ss:$0 sm:$0xff] }
  0x9c   : > { %v497_v20 = vsel %vm476_vm0, %v1179_v40, %v337_v22 }
  0x9e   : > { %v375_v23 = vpop.permute.xlu1 %374 }
  0x9f   : > { %v373_v25 = vpop.permute.xlu0 %372  ;;  %v513_v7 = vsel %vm501_vm1, %v494_v39, %v375_v23 }
  0xa0   : > { %v511_v43 = vsel %vm501_vm1, %v491_v41, %v373_v25 }
  0xa2   : > { %v371_v26 = vpop.permute.xlu1 %370 }
  0xa3   : > { %v369_v27 = vpop.permute.xlu0 %368  ;;  %v509_v4 = vsel %vm501_vm1, %v488_v47, %v371_v26 }
  0xa4   : > { %v507_v50 = vsel %vm501_vm1, %v485_v9, %v369_v27 }
  0xa6   : > { %v379_v28 = vpop.permute.xlu1 %378 }
  0xa7   : > { %v377_v31 = vpop.permute.xlu0 %376  ;;  %v517_v24 = vsel %vm501_vm1, %v500_v54, %v379_v28 }
  0xa8   : > { %v515_v57 = vsel %vm501_vm1, %v497_v20, %v377_v31 }
  0xaa   : > { %v463_v33 = vpop.permute.xlu1 %462 }
  0xab   : > { %v461_v35 = vpop.permute.xlu0 %460  ;;  %v522_v37 = vsel %vm518_vm2, %v505_v34, %v463_v33 }
  0xac   : > { %v520_v38 = vsel %vm518_vm2, %v503_v36, %v461_v35 }
  0xad   : > { %v889_v12 = vcombine.low %v520_v38, %v522_v37 }
  0xae   : > { %v471_v42 = vpop.permute.xlu1 %470 }
  0xaf   : > { %971 = vmatprep.mubr.bf16.mxu0 %v889_v12  ;;  %v469_v44 = vpop.permute.xlu0 %468  ;;  %v530_v45 = vsel %vm518_vm2, %v513_v7, %v471_v42 }
  0xb0   : > { %v528_v46 = vsel %vm518_vm2, %v511_v43, %v469_v44 }
  0xb1   : > { %v891_v48 = vcombine.low %v528_v46, %v530_v45 }
  0xb2   : > { %v467_v49 = vpop.permute.xlu1 %466 }
  0xb3   : > { %v526_v51 = vsel %vm518_vm2, %v509_v4, %v467_v49  ;;  %975 = vmatprep.mubr.bf16.mxu1 %v891_v48  ;;  %v465_v52 = vpop.permute.xlu0 %464 }
  0xb4   : > { %v524_v53 = vsel %vm518_vm2, %v507_v50, %v465_v52 }
  0xb5   : > { %v890_v55 = vcombine.low %v524_v53, %v526_v51 }
  0xb6   : > { %v475_v56 = vpop.permute.xlu1 %474 }
  0xb7   : > { %v534_v58 = vsel %vm518_vm2, %v517_v24, %v475_v56  ;;  %972 = vmatmul.mubr.bf16.vlgmr.msra.gmra.mrb[0].mxu0 %v890_v55  ;;  %v473_v59 = vpop.permute.xlu0 %472 }
  0xb8   : > { %v532_v60 = vsel %vm518_vm2, %v515_v57, %v473_v59 }
  0xb9   : > { %v892_v61 = vcombine.low %v532_v60, %v534_v58 }
  0xbb   : > { %976 = vmatmul.mubr.bf16.vlgmr.msra.gmra.mrb[0].mxu1 %v892_v61 }
 0x18a   : > { %v973_v62 = vpop.f32.mrb[0].mxu0 }
 0x18b   : > { %v673_v40 = vadd.f32 %v973_v62, %v888_v29  ;;  %v664_v63 = vpop.f32.mrb[1].mxu0 }
 0x18c   : > { %v665_v2 = vadd.f32 %v888_v29, %v664_v63  ;;  %v974_v3 = vpop.f32.mrb[2].mxu0 }
 0x18d   : > { %v705_v5 = vmul.f32 0.2, %v673_v40  ;;  %v676_v6 = vadd.f32 %v974_v3, %v888_v29  ;;  %v667_v8 = vpop.f32.mrb[3].mxu0  ;;  %vm697_vm3 = vcmp.ge.f32.partialorder %v673_v40, 0.0 }
 0x18e   : > { %v703_v10 = vmul.f32 0.2, %v665_v2  ;;  %v668_v11 = vadd.f32 %v888_v29, %v667_v8  ;;  %v977_v13 = vpop.f32.mrb[0].mxu1  ;;  %vm695_vm4 = vcmp.ge.f32.partialorder %v665_v2, 0.0 }
 0x18f   : > { %vm698_vm5 = vcmp.ge.f32.partialorder %v676_v6, 0.0  ;;  %v706_v14 = vmul.f32 0.2, %v676_v6  ;;  %v689_v15 = vadd.f32 %v977_v13, %v888_v29  ;;  %v680_v16 = vpop.f32.mrb[1].mxu1  ;;  %v713_v19 = vsel %vm697_vm3, %v673_v40, %v705_v5 }
 0x190   : > { %vm696_vm6 = vcmp.ge.f32.partialorder %v668_v11, 0.0  ;;  %v704_v17 = vmul.f32 0.2, %v668_v11  ;;  %v681_v18 = vadd.f32 %v888_v29, %v680_v16  ;;  %v978_v0 = vpop.f32.mrb[2].mxu1  ;;  %v711_v25 = vsel %vm695_vm4, %v665_v2, %v703_v10 }
 0x191   : > { %v714_v1 = vsel %vm698_vm5, %v676_v6, %v706_v14  ;;  %v709_v21 = vmul.f32 0.2, %v689_v15  ;;  %v692_v22 = vadd.f32 %v978_v0, %v888_v29  ;;  %v683_v23 = vpop.f32.mrb[3].mxu1  ;;  %vm701_vm7 = vcmp.ge.f32.partialorder %v689_v15, 0.0 }
 0x192   : > { %v928_v26 = vpack.c.bf16 %v714_v1, %v713_v19  ;;  %v712_v27 = vsel %vm696_vm6, %v668_v11, %v704_v17  ;;  %v707_v31 = vmul.f32 0.2, %v681_v18  ;;  %v684_v32 = vadd.f32 %v888_v29, %v683_v23 }
 0x193   : > { %v923_v28 = vpack.c.bf16 %v712_v27, %v711_v25  ;;  %vm702_vm8 = vcmp.ge.f32.partialorder %v692_v22, 0.0  ;;  %v710_v30 = vmul.f32 0.2, %v692_v22  ;;  %v717_v33 = vsel %vm701_vm7, %v689_v15, %v709_v21 }
 0x194   : > { %940 = vst [vmem:[%s192_s21 + $0x8] sm:$0xff] %v928_v26   ;;  %vm699_vm9 = vcmp.ge.f32.partialorder %v681_v18, 0.0  ;;  %vm700_vm10 = vcmp.ge.f32.partialorder %v684_v32, 0.0  ;;  %v708_v36 = vmul.f32 0.2, %v684_v32 }
 0x195   : > { %924 = vst [vmem:[%s192_s21] sm:$0xff] %v923_v28   ;;  %v718_v34 = vsel %vm702_vm8, %v692_v22, %v710_v30  ;;  %v715_v37 = vsel %vm699_vm9, %v681_v18, %v707_v31 }
 0x196   : > { %v938_v35 = vpack.c.bf16 %v718_v34, %v717_v33  ;;  %v716_v38 = vsel %vm700_vm10, %v684_v32, %v708_v36 }
 0x197   : > { %v933_v39 = vpack.c.bf16 %v716_v38, %v715_v37 }
 0x198   : > { %942 = vst [vmem:[%s192_s21 + $0x18] sm:$0xff] %v938_v35  }
 0x199   : > { %941 = vst [vmem:[%s192_s21 + $0x10] sm:$0xff] %v933_v39  }
 0x19a PF: > { %s13_s14 = sadd.s32 1, %s1077_s14   ;;  %s1286_s12 = smov %s1073_s13 }
 0x19b   : > { %p10_p5 = scmp.ge.s32.totalorder %s13_s14, 4   ;;  %s1287_s13 = smov %s1289_s15 }
 0x19d   :  { %12 = sbr.rel (!%p10_p5) target bundleno = 2 (0x2), region = 63 }

// kernel: multiscale_discriminator_pallas.17
= control target key start
LH: loop header
LB: loop body
LE: loop exit
PB: predicated region body
PF: predicated region fallthrough
CT: control target
= control target key end

     0   :  { %s2240_s12 = smov 0   ;;  %s2242_s13 = smov 0   ;;  %s2684_s0 = inlined_call_operand.vmem [shape: bf16[2,4,4,128], index: 0, kind: input, shape index: {}]   ;;  %s2685_s1 = inlined_call_operand.vmem [shape: bf16[2048,128], index: 1, kind: input, shape index: {}]   ;;  %s2686_s2 = inlined_call_operand.vmem [shape: f32[1,128], index: 2, kind: input, shape index: {}]   ;;  %s2687_s3 = inlined_call_operand.vmem [shape: f32[2,1,128], index: 3, kind: output, shape index: {}]  }
   0x1   :  { %s2244_s14 = smov 0  }
   0x2 LB: > { %s25_s15 = sadd.s32 1, %s2213_s13  ;;  %p1722_p0 = scmp.ge.s32.totalorder %s2217_s14, 1  ;;  %s2217_s14 = sphi %s2244_s14, %s13_s14   ;;  %s2213_s13 = sphi %s2242_s13, %s2689_s13   ;;  %s2209_s12 = sphi %s2240_s12, %s2688_s12  }
   0x3   : > { %p27_p1 = scmp.ge.s32.totalorder %s25_s15, 2  ;;  %p151_p2 = scmp.lt.s32.totalorder %s2217_s14, 3 }
   0x5   : > { %s2691_s15 = smov (%p27_p1, %s25_s15), 0  ;;  %p152_p3 = pnand %p1722_p0, %p151_p2 }
   0x6   : > { %v2067_v0 = vld [vmem:[%s2685_s1 + $0x40] sm:$0xff] (!%p152_p3)   ;;  %v2071_v4 = vld [vmem:[%s2685_s1 + $0x48] sm:$0xff] (!%p152_p3)   ;;  %v2075_v8 = vld [vmem:[%s2685_s1 + $0x50] sm:$0xff] (!%p152_p3)   ;;  %p176_p4 = scmp.lt.s32.totalorder (!%p152_p3), %s2209_s12, 1  ;;  %v203_v29 = vlaneseq (!%p152_p3)  ;;  %v2219_v34 = vmov (!%p152_p3), 1983009808  }
   0x7   : > { %155 = sbr.rel (%p152_p3) target bundleno = 356 (0x164), region = 32  ;;  %v2068_v1 = vld [vmem:[%s2685_s1 + $0xc0] sm:$0xff] (!%p152_p3)   ;;  %1866 = vmatprep.subr.bf16.mxu0 (!%p152_p3), %v2067_v0  ;;  %v2072_v5 = vld [vmem:[%s2685_s1 + $0xc8] sm:$0xff] (!%p152_p3)   ;;  %v2076_v9 = vld [vmem:[%s2685_s1 + $0xd0] sm:$0xff] (!%p152_p3)   ;;  %v201_v35 = vunpack.c.l.s4 (!%p152_p3), %v2219_v34 }
   0x8   : > { %v2069_v2 = vld [vmem:[%s2685_s1] sm:$0xff] (!%p152_p3)   ;;  %1888 = vmatprep.subr.bf16.mxu1 (!%p152_p3), %v2068_v1  ;;  %v2073_v6 = vld [vmem:[%s2685_s1 + $0x8] sm:$0xff] (!%p152_p3)   ;;  %v2077_v10 = vld [vmem:[%s2685_s1 + $0x10] sm:$0xff] (!%p152_p3)   ;;  %v204_v33 = vshrl.u32 (!%p152_p3), %v203_v29, 7 }
   0x9   : > { %v2070_v3 = vld [vmem:[%s2685_s1 + $0x80] sm:$0xff] (!%p152_p3)   ;;  %1867 = vmatpush3.bf16.msra.mxu0 (!%p152_p3), %v2069_v2  ;;  %v2074_v7 = vld [vmem:[%s2685_s1 + $0x88] sm:$0xff] (!%p152_p3)   ;;  %v2078_v11 = vld [vmem:[%s2685_s1 + $0x90] sm:$0xff] (!%p152_p3)   ;;  %v202_v42 = vunpack.c.0.s8 (!%p152_p3), %v201_v35 }
   0xa   : > { %1889 = vmatpush3.bf16.msra.mxu1 (!%p152_p3), %v2070_v3  ;;  %1868 = vmatprep.subr.bf16.mxu0 (!%p152_p3), %v2071_v4  ;;  %v2079_v12 = vld [vmem:[%s2685_s1 + $0x58] sm:$0xff] (!%p152_p3)   ;;  %v2083_v16 = vld [vmem:[%s2685_s1 + $0x60] sm:$0xff] (!%p152_p3)   ;;  %v2087_v20 = vld [vmem:[%s2685_s1 + $0x68] sm:$0xff] (!%p152_p3)  }
   0xb   : > { %1890 = vmatprep.subr.bf16.mxu1 (!%p152_p3), %v2072_v5  ;;  %v2080_v13 = vld [vmem:[%s2685_s1 + $0xd8] sm:$0xff] (!%p152_p3)   ;;  %v2084_v17 = vld [vmem:[%s2685_s1 + $0xe0] sm:$0xff] (!%p152_p3)   ;;  %v2088_v21 = vld [vmem:[%s2685_s1 + $0xe8] sm:$0xff] (!%p152_p3)   ;;  %v2374_v44 = vsub.s32 (!%p152_p3), %v202_v42, %v204_v33 }
   0xc   : > { %v2081_v14 = vld [vmem:[%s2685_s1 + $0x18] sm:$0xff] (!%p152_p3)   ;;  %v2085_v18 = vld [vmem:[%s2685_s1 + $0x20] sm:$0xff] (!%p152_p3)   ;;  %v2089_v22 = vld [vmem:[%s2685_s1 + $0x28] sm:$0xff] (!%p152_p3)  }
   0xd   : > { %1869 = vmatpush3.bf16.msra.mxu0 (!%p152_p3), %v2073_v6  ;;  %v2082_v15 = vld [vmem:[%s2685_s1 + $0x98] sm:$0xff] (!%p152_p3)   ;;  %v2086_v19 = vld [vmem:[%s2685_s1 + $0xa0] sm:$0xff] (!%p152_p3)   ;;  %v2090_v23 = vld [vmem:[%s2685_s1 + $0xa8] sm:$0xff] (!%p152_p3)  }
   0xe   : > { %1891 = vmatpush3.bf16.msra.mxu1 %v2074_v7  ;;  %1870 = vmatprep.subr.bf16.mxu0 %v2075_v8  ;;  %s2693_s12 = smov (!%p176_p4, %s2209_s12), 1  ;;  %v2091_v24 = vld [vmem:[%s2685_s1 + $0x70] sm:$0xff]   ;;  %v2095_v28 = vld [vmem:[%s2685_s1 + $0x78] sm:$0xff]   ;;  %v2099_v40 = vld [vmem:[%s2685_s1 + $0x140] sm:$0xff]  }
   0xf   : > { %1892 = vmatprep.subr.bf16.mxu1 %v2076_v9  ;;  %v2092_v25 = vld [vmem:[%s2685_s1 + $0xf0] sm:$0xff]   ;;  %s1865_s26 = sshll.u32 %s2693_s12, 3  ;;  %v2096_v30 = vld [vmem:[%s2685_s1 + $0xf8] sm:$0xff]   ;;  %v2100_v41 = vld [vmem:[%s2685_s1 + $0x1c0] sm:$0xff]   ;;  %s186_s7 = scalar_lea.vmem %s2687_s3, %s2693_s12 }
  0x10   : > { %v2093_v26 = vld [vmem:[%s2685_s1 + $0x30] sm:$0xff]   ;;  %v2097_v31 = vld [vmem:[%s2685_s1 + $0x38] sm:$0xff]   ;;  %s2361_s8 = scalar_lea.vmem %s2684_s0, %s1865_s26  ;;  %v2102_v45 = vld [vmem:[%s2685_s1 + $0x180] sm:$0xff]  }
  0x11   : > { %1871 = vmatpush3.bf16.msra.mxu0 %v2077_v10  ;;  %v2094_v27 = vld [vmem:[%s2685_s1 + $0xb0] sm:$0xff]   ;;  %v2098_v32 = vld [vmem:[%s2685_s1 + $0xb8] sm:$0xff]   ;;  %v1731_v36 = vld.sshfl [vmem:[%s2361_s8] sm:$0x2 pattern:$0x76325410] }
  0x12   : > { %1893 = vmatpush3.bf16.msra.mxu1 %v2078_v11  ;;  %1872 = vmatprep.subr.bf16.mxu0 %v2079_v12  ;;  %v188_v37 = vld [vmem:[%s2361_s8] sm:$0x1]  ;;  %v219_v38 = vrot.slane %v1731_v36, 1  ;;  %v222_v39 = vshrl.u32 %v1731_v36, 16  ;;  %v2104_v47 = vld [vmem:[%s2685_s1 + $0x1c8] sm:$0xff]   ;;  %v2108_v52 = vld [vmem:[%s2685_s1 + $0x1d0] sm:$0xff]  }
  0x13   : > { %1894 = vmatprep.subr.bf16.mxu1 %v2080_v13  ;;  %v206_v46 = vrot.slane %v188_v37, %v2374_v44  ;;  %v2101_v48 = vld [vmem:[%s2685_s1 + $0x100] sm:$0xff]   ;;  %v2106_v50 = vld [vmem:[%s2685_s1 + $0x188] sm:$0xff]   ;;  %v2110_v54 = vld [vmem:[%s2685_s1 + $0x190] sm:$0xff]  }
  0x14   : > { %v224_v43 = vrot.slane %v222_v39, 1  ;;  %v2103_v51 = vld [vmem:[%s2685_s1 + $0x148] sm:$0xff]   ;;  %v2107_v55 = vld [vmem:[%s2685_s1 + $0x150] sm:$0xff]   ;;  %v2112_v56 = vld [vmem:[%s2685_s1 + $0x1d8] sm:$0xff]  }
  0x15   : > { %1873 = vmatpush3.bf16.msra.mxu0 %v2081_v14  ;;  %v208_v49 = vshrl.u32 %v206_v46, 16  ;;  %v2105_v53 = vld [vmem:[%s2685_s1 + $0x108] sm:$0xff]   ;;  %v2109_v57 = vld [vmem:[%s2685_s1 + $0x110] sm:$0xff]   ;;  %v2114_v58 = vld [vmem:[%s2685_s1 + $0x198] sm:$0xff]  }
  0x16   : > { %1895 = vmatpush3.bf16.msra.mxu1 %v2082_v15  ;;  %1874 = vmatprep.subr.bf16.mxu0 %v2083_v16  ;;  %v2111_v59 = vld [vmem:[%s2685_s1 + $0x158] sm:$0xff]   ;;  %v2116_v60 = vld [vmem:[%s2685_s1 + $0x1e0] sm:$0xff]   ;;  %v2120_v0 = vld [vmem:[%s2685_s1 + $0x1e8] sm:$0xff]  }
  0x17   : > { %1896 = vmatprep.subr.bf16.mxu1 %v2084_v17  ;;  %1404 = vmatprep.mubr.bf16.mxu1 %v224_v43  ;;  %v2113_v61 = vld [vmem:[%s2685_s1 + $0x118] sm:$0xff]   ;;  %v2118_v62 = vld [vmem:[%s2685_s1 + $0x1a0] sm:$0xff]   ;;  %v2122_v2 = vld [vmem:[%s2685_s1 + $0x1a8] sm:$0xff]  }
  0x18   : > { %1364 = vmatprep.mubr.bf16.mxu0 %v208_v49  ;;  %v2115_v63 = vld [vmem:[%s2685_s1 + $0x160] sm:$0xff]   ;;  %v2119_v3 = vld [vmem:[%s2685_s1 + $0x168] sm:$0xff]   ;;  %v2124_v4 = vld [vmem:[%s2685_s1 + $0x1f0] sm:$0xff]  }
  0x19   : > { %1875 = vmatpush3.bf16.msra.mxu0 %v2085_v18  ;;  %v2117_v1 = vld [vmem:[%s2685_s1 + $0x120] sm:$0xff]   ;;  %v2121_v5 = vld [vmem:[%s2685_s1 + $0x128] sm:$0xff]   ;;  %v2126_v6 = vld [vmem:[%s2685_s1 + $0x1b0] sm:$0xff]  }
  0x1a   : > { %1897 = vmatpush3.bf16.msra.mxu1 %v2086_v19  ;;  %1876 = vmatprep.subr.bf16.mxu0 %v2087_v20  ;;  %v2123_v7 = vld [vmem:[%s2685_s1 + $0x170] sm:$0xff]   ;;  %v2128_v9 = vld [vmem:[%s2685_s1 + $0x1f8] sm:$0xff]   ;;  %v1725_v12 = vld [vmem:[%s2361_s8 + $0x2] sm:$0x1] }
  0x1b   : > { %1898 = vmatprep.subr.bf16.mxu1 %v2088_v21  ;;  %v2125_v8 = vld [vmem:[%s2685_s1 + $0x130] sm:$0xff]   ;;  %v2127_v10 = vld [vmem:[%s2685_s1 + $0x178] sm:$0xff]   ;;  %v233_v13 = vrot.slane %v1725_v12, %v2374_v44  ;;  %v1732_v14 = vld.sshfl [vmem:[%s2361_s8 + $0x2] sm:$0x2 pattern:$0x76325410] }
  0x1c   : > { %v2130_v11 = vld [vmem:[%s2685_s1 + $0x1b8] sm:$0xff]   ;;  %v246_v16 = vrot.slane %v1732_v14, 1  ;;  %v249_v17 = vshrl.u32 %v1732_v14, 16  ;;  %v2132_v18 = vld [vmem:[%s2685_s1 + $0x2c0] sm:$0xff]   ;;  %v2139_v29 = vld [vmem:[%s2685_s1 + $0x250] sm:$0xff]  }
  0x1d   : > { %1877 = vmatpush3.bf16.msra.mxu0 %v2089_v22  ;;  %v2129_v15 = vld [vmem:[%s2685_s1 + $0x138] sm:$0xff]   ;;  %v235_v19 = vshrl.u32 %v233_v13, 16  ;;  %v2131_v20 = vld [vmem:[%s2685_s1 + $0x240] sm:$0xff]   ;;  %v2154_v42 = vld [vmem:[%s2685_s1 + $0x2a8] sm:$0xff]  }
  0x1e   : > { %1899 = vmatpush3.bf16.msra.mxu1 %v2090_v23  ;;  %1878 = vmatprep.subr.bf16.mxu0 %v2091_v24  ;;  %v251_v21 = vrot.slane %v249_v17, 1  ;;  %v2134_v22 = vld [vmem:[%s2685_s1 + $0x280] sm:$0xff]   ;;  %v2136_v24 = vld [vmem:[%s2685_s1 + $0x2c8] sm:$0xff]   ;;  %v2143_v33 = vld [vmem:[%s2685_s1 + $0x258] sm:$0xff]  }
  0x1f   : > { %1900 = vmatprep.subr.bf16.mxu1 %v2092_v25  ;;  %v2133_v23 = vld [vmem:[%s2685_s1 + $0x200] sm:$0xff]   ;;  %v2135_v25 = vld [vmem:[%s2685_s1 + $0x248] sm:$0xff]   ;;  %v2146_v34 = vld [vmem:[%s2685_s1 + $0x298] sm:$0xff]  }
  0x20   : > { %v2145_v35 = vld [vmem:[%s2685_s1 + $0x218] sm:$0xff]   ;;  %v2148_v36 = vld [vmem:[%s2685_s1 + $0x2e0] sm:$0xff]   ;;  %v2153_v43 = vld [vmem:[%s2685_s1 + $0x228] sm:$0xff]  }
  0x21   : > { %1879 = vmatpush3.bf16.msra.mxu0 %v2093_v26  ;;  %v2138_v26 = vld [vmem:[%s2685_s1 + $0x288] sm:$0xff]   ;;  %v2149_v39 = vld [vmem:[%s2685_s1 + $0x220] sm:$0xff]   ;;  %v2155_v46 = vld [vmem:[%s2685_s1 + $0x270] sm:$0xff]  }
  0x22   : > { %1901 = vmatpush3.bf16.msra.mxu1 %v2094_v27  ;;  %1880 = vmatprep.subr.bf16.mxu0 %v2095_v28  ;;  %v2137_v27 = vld [vmem:[%s2685_s1 + $0x208] sm:$0xff]   ;;  %v2140_v28 = vld [vmem:[%s2685_s1 + $0x2d0] sm:$0xff]   ;;  %v2160_v49 = vld [vmem:[%s2685_s1 + $0x2f8] sm:$0xff]  }
  0x23   : > { %1902 = vmatprep.subr.bf16.mxu1 %v2096_v30  ;;  %v2142_v30 = vld [vmem:[%s2685_s1 + $0x290] sm:$0xff]   ;;  %v2179_v13 = vld [vmem:[%s2685_s1 + $0x360] sm:$0xff]   ;;  %v2183_v17 = vld [vmem:[%s2685_s1 + $0x368] sm:$0xff]  }
  0x24   : > { %v2182_v14 = vld [vmem:[%s2685_s1 + $0x3a0] sm:$0xff]  }
  0x25   : > { %1881 = vmatpush3.bf16.msra.mxu0 %v2097_v31  ;;  %v2141_v31 = vld [vmem:[%s2685_s1 + $0x210] sm:$0xff]  }
  0x26   : > { %1903 = vmatpush3.bf16.msra.mxu1 %v2098_v32  ;;  %1910 = vmatprep.subr.bf16.mxu0 %v2099_v40  ;;  %v2144_v32 = vld [vmem:[%s2685_s1 + $0x2d8] sm:$0xff]   ;;  %v2152_v40 = vld [vmem:[%s2685_s1 + $0x2e8] sm:$0xff]  }
  0x27   : > { %1932 = vmatprep.subr.bf16.mxu1 %v2100_v41  ;;  %v2151_v41 = vld [vmem:[%s2685_s1 + $0x268] sm:$0xff]  }
  0x28   : > { %1365 = vmatmul.mubr.bf16.vlgmr.msra.gmra.mrb[0].mxu0 %v188_v37  ;;  %v2147_v37 = vld [vmem:[%s2685_s1 + $0x260] sm:$0xff]  }
  0x29   : > { %1405 = vmatmul.mubr.bf16.vlgmr.msra.gmra.mrb[0].mxu1 %v219_v38  ;;  %1911 = vmatpush3.bf16.msra.mxu0 %v2101_v48  ;;  %v2150_v38 = vld [vmem:[%s2685_s1 + $0x2a0] sm:$0xff]   ;;  %v2157_v48 = vld [vmem:[%s2685_s1 + $0x230] sm:$0xff]  }
  0x2a   : > { %1933 = vmatpush3.bf16.msra.mxu1 %v2102_v45  ;;  %1912 = vmatprep.subr.bf16.mxu0 %v2103_v51  ;;  %v2156_v45 = vld [vmem:[%s2685_s1 + $0x2f0] sm:$0xff]   ;;  %v2162_v51 = vld [vmem:[%s2685_s1 + $0x2b8] sm:$0xff]  }
  0x2b   : > { %1934 = vmatprep.subr.bf16.mxu1 %v2104_v47  ;;  %1444 = vmatprep.mubr.bf16.mxu0 %v235_v19  ;;  %v2158_v47 = vld [vmem:[%s2685_s1 + $0x2b0] sm:$0xff]   ;;  %v2185_v19 = vld [vmem:[%s2685_s1 + $0x328] sm:$0xff]  }
  0x2c   : > { %1484 = vmatprep.mubr.bf16.mxu1 %v251_v21  ;;  %v2187_v21 = vld [vmem:[%s2685_s1 + $0x370] sm:$0xff]  }
  0x2d   : > { %1913 = vmatpush3.bf16.msra.mxu0 %v2105_v53 }
  0x2e   : > { %1935 = vmatpush3.bf16.msra.mxu1 %v2106_v50  ;;  %1914 = vmatprep.subr.bf16.mxu0 %v2107_v55  ;;  %v2159_v50 = vld [vmem:[%s2685_s1 + $0x278] sm:$0xff]  }
  0x2f   : > { %1936 = vmatprep.subr.bf16.mxu1 %v2108_v52  ;;  %v1727_v52 = vld [vmem:[%s2361_s8 + $0x4] sm:$0x1]  ;;  %v2161_v55 = vld [vmem:[%s2685_s1 + $0x238] sm:$0xff]  }
  0x30   : > { %v260_v53 = vrot.slane %v1727_v52, %v2374_v44 }
  0x31   : > { %1915 = vmatpush3.bf16.msra.mxu0 %v2109_v57 }
  0x32   : > { %1937 = vmatpush3.bf16.msra.mxu1 %v2110_v54  ;;  %1916 = vmatprep.subr.bf16.mxu0 %v2111_v59  ;;  %v1733_v54 = vld.sshfl [vmem:[%s2361_s8 + $0x4] sm:$0x2 pattern:$0x76325410]  ;;  %v262_v59 = vshrl.u32 %v260_v53, 16 }
  0x33   : > { %1938 = vmatprep.subr.bf16.mxu1 %v2112_v56  ;;  %v273_v56 = vrot.slane %v1733_v54, 1  ;;  %v276_v57 = vshrl.u32 %v1733_v54, 16 }
  0x35   : > { %1917 = vmatpush3.bf16.msra.mxu0 %v2113_v61  ;;  %v278_v61 = vrot.slane %v276_v57, 1 }
  0x36   : > { %1939 = vmatpush3.bf16.msra.mxu1 %v2114_v58  ;;  %1918 = vmatprep.subr.bf16.mxu0 %v2115_v63  ;;  %v2164_v58 = vld [vmem:[%s2685_s1 + $0x3c0] sm:$0xff]  }
  0x37   : > { %1940 = vmatprep.subr.bf16.mxu1 %v2116_v60  ;;  %v2163_v60 = vld [vmem:[%s2685_s1 + $0x340] sm:$0xff]  }
  0x38   : > { %v2165_v63 = vld [vmem:[%s2685_s1 + $0x300] sm:$0xff]  }
  0x39   : > { %1919 = vmatpush3.bf16.msra.mxu0 %v2117_v1  ;;  %v2167_v1 = vld [vmem:[%s2685_s1 + $0x348] sm:$0xff]  }
  0x3a   : > { %1941 = vmatpush3.bf16.msra.mxu1 %v2118_v62  ;;  %1920 = vmatprep.subr.bf16.mxu0 %v2119_v3  ;;  %v2166_v62 = vld [vmem:[%s2685_s1 + $0x380] sm:$0xff]   ;;  %v2169_v3 = vld [vmem:[%s2685_s1 + $0x308] sm:$0xff]  }
  0x3b   : > { %1942 = vmatprep.subr.bf16.mxu1 %v2120_v0  ;;  %v2168_v0 = vld [vmem:[%s2685_s1 + $0x3c8] sm:$0xff]  }
  0x3d   : > { %1921 = vmatpush3.bf16.msra.mxu0 %v2121_v5  ;;  %v2171_v5 = vld [vmem:[%s2685_s1 + $0x350] sm:$0xff]  }
  0x3e   : > { %1943 = vmatpush3.bf16.msra.mxu1 %v2122_v2  ;;  %1922 = vmatprep.subr.bf16.mxu0 %v2123_v7  ;;  %v2170_v2 = vld [vmem:[%s2685_s1 + $0x388] sm:$0xff]   ;;  %v2173_v7 = vld [vmem:[%s2685_s1 + $0x310] sm:$0xff]  }
  0x3f   : > { %1944 = vmatprep.subr.bf16.mxu1 %v2124_v4  ;;  %v2172_v4 = vld [vmem:[%s2685_s1 + $0x3d0] sm:$0xff]  }
  0x41   : > { %1923 = vmatpush3.bf16.msra.mxu0 %v2125_v8  ;;  %v2176_v8 = vld [vmem:[%s2685_s1 + $0x3d8] sm:$0xff]  }
  0x42   : > { %1945 = vmatpush3.bf16.msra.mxu1 %v2126_v6  ;;  %1924 = vmatprep.subr.bf16.mxu0 %v2127_v10  ;;  %v2174_v6 = vld [vmem:[%s2685_s1 + $0x390] sm:$0xff]   ;;  %v2178_v10 = vld [vmem:[%s2685_s1 + $0x398] sm:$0xff]  }
  0x43   : > { %1946 = vmatprep.subr.bf16.mxu1 %v2128_v9  ;;  %v2175_v9 = vld [vmem:[%s2685_s1 + $0x358] sm:$0xff]  }
  0x45   : > { %1925 = vmatpush3.bf16.msra.mxu0 %v2129_v15  ;;  %v2181_v15 = vld [vmem:[%s2685_s1 + $0x320] sm:$0xff]  }
  0x46   : > { %1947 = vmatpush3.bf16.msra.mxu1 %v2130_v11  ;;  %1954 = vmatprep.subr.bf16.mxu0 %v2131_v20  ;;  %v2177_v11 = vld [vmem:[%s2685_s1 + $0x318] sm:$0xff]   ;;  %v2188_v20 = vld [vmem:[%s2685_s1 + $0x3f0] sm:$0xff]  }
  0x47   : > { %1976 = vmatprep.subr.bf16.mxu1 %v2132_v18  ;;  %v2186_v18 = vld [vmem:[%s2685_s1 + $0x3a8] sm:$0xff]  }
  0x48   : > { %1445 = vmatmul.mubr.bf16.vlgmr.msra.gmra.mrb[4].mxu0 %v1725_v12  ;;  %v2180_v12 = vld [vmem:[%s2685_s1 + $0x3e0] sm:$0xff]  }
  0x49   : > { %1485 = vmatmul.mubr.bf16.vlgmr.msra.gmra.mrb[4].mxu1 %v246_v16  ;;  %1955 = vmatpush3.bf16.msra.mxu0 %v2133_v23  ;;  %v2184_v16 = vld [vmem:[%s2685_s1 + $0x3e8] sm:$0xff]   ;;  %v2189_v23 = vld [vmem:[%s2685_s1 + $0x330] sm:$0xff]  }
  0x4a   : > { %1977 = vmatpush3.bf16.msra.mxu1 %v2134_v22  ;;  %1956 = vmatprep.subr.bf16.mxu0 %v2135_v25  ;;  %v2190_v22 = vld [vmem:[%s2685_s1 + $0x3b0] sm:$0xff]   ;;  %v2191_v25 = vld [vmem:[%s2685_s1 + $0x378] sm:$0xff]  }
  0x4b   : > { %1978 = vmatprep.subr.bf16.mxu1 %v2136_v24  ;;  %1524 = vmatprep.mubr.bf16.mxu0 %v262_v59  ;;  %v2192_v24 = vld [vmem:[%s2685_s1 + $0x3f8] sm:$0xff]  }
  0x4c   : > { %1564 = vmatprep.mubr.bf16.mxu1 %v278_v61 }
  0x4d   : > { %1957 = vmatpush3.bf16.msra.mxu0 %v2137_v27  ;;  %v1729_v27 = vld [vmem:[%s2361_s8 + $0x6] sm:$0x1] }
  0x4e   : > { %1979 = vmatpush3.bf16.msra.mxu1 %v2138_v26  ;;  %1958 = vmatprep.subr.bf16.mxu0 %v2139_v29  ;;  %v2194_v26 = vld [vmem:[%s2685_s1 + $0x3b8] sm:$0xff]   ;;  %v1734_v29 = vld.sshfl [vmem:[%s2361_s8 + $0x6] sm:$0x2 pattern:$0x76325410] }
  0x4f   : > { %1980 = vmatprep.subr.bf16.mxu1 %v2140_v28  ;;  %v287_v28 = vrot.slane %v1729_v27, %v2374_v44 }
  0x51   : > { %1959 = vmatpush3.bf16.msra.mxu0 %v2141_v31  ;;  %v303_v31 = vshrl.u32 %v1734_v29, 16 }
  0x52   : > { %1981 = vmatpush3.bf16.msra.mxu1 %v2142_v30  ;;  %1960 = vmatprep.subr.bf16.mxu0 %v2143_v33  ;;  %v2193_v30 = vld [vmem:[%s2685_s1 + $0x338] sm:$0xff]   ;;  %v300_v33 = vrot.slane %v1734_v29, 1 }
  0x53   : > { %1982 = vmatprep.subr.bf16.mxu1 %v2144_v32  ;;  %v289_v32 = vshrl.u32 %v287_v28, 16 }
  0x55   : > { %1961 = vmatpush3.bf16.msra.mxu0 %v2145_v35 }
  0x56   : > { %1983 = vmatpush3.bf16.msra.mxu1 %v2146_v34  ;;  %1962 = vmatprep.subr.bf16.mxu0 %v2147_v37  ;;  %v305_v34 = vrot.slane %v303_v31, 1 }
  0x57   : > { %1984 = vmatprep.subr.bf16.mxu1 %v2148_v36 }
  0x59   : > { %1963 = vmatpush3.bf16.msra.mxu0 %v2149_v39 }
  0x5a   : > { %1985 = vmatpush3.bf16.msra.mxu1 %v2150_v38  ;;  %1964 = vmatprep.subr.bf16.mxu0 %v2151_v41 }
  0x5b   : > { %1986 = vmatprep.subr.bf16.mxu1 %v2152_v40  ;;  %v563_v40 = vld [vmem:[%s2686_s2] sm:$0x1] }
  0x5d   : > { %1965 = vmatpush3.bf16.msra.mxu0 %v2153_v43 }
  0x5e   : > { %1987 = vmatpush3.bf16.msra.mxu1 %v2154_v42  ;;  %1966 = vmatprep.subr.bf16.mxu0 %v2155_v46 }
  0x5f   : > { %1988 = vmatprep.subr.bf16.mxu1 %v2156_v45 }
  0x61   : > { %1967 = vmatpush3.bf16.msra.mxu0 %v2157_v48 }
  0x62   : > { %1989 = vmatpush3.bf16.msra.mxu1 %v2158_v47  ;;  %1968 = vmatprep.subr.bf16.mxu0 %v2159_v50 }
  0x63   : > { %1990 = vmatprep.subr.bf16.mxu1 %v2160_v49 }
  0x65   : > { %1969 = vmatpush3.bf16.msra.mxu0 %v2161_v55 }
  0x66   : > { %1991 = vmatpush3.bf16.msra.mxu1 %v2162_v51  ;;  %1998 = vmatprep.subr.bf16.mxu0 %v2163_v60 }
  0x67   : > { %2020 = vmatprep.subr.bf16.mxu1 %v2164_v58 }
  0x68   : > { %1525 = vmatmul.mubr.bf16.vlgmr.msra.gmra.mrb[8].mxu0 %v1727_v52 }
  0x69   : > { %1565 = vmatmul.mubr.bf16.vlgmr.msra.gmra.mrb[8].mxu1 %v273_v56  ;;  %1999 = vmatpush3.bf16.msra.mxu0 %v2165_v63 }
  0x6a   : > { %2021 = vmatpush3.bf16.msra.mxu1 %v2166_v62  ;;  %2000 = vmatprep.subr.bf16.mxu0 %v2167_v1 }
  0x6b   : > { %2022 = vmatprep.subr.bf16.mxu1 %v2168_v0  ;;  %1604 = vmatprep.mubr.bf16.mxu0 %v289_v32 }
  0x6c   : > { %1644 = vmatprep.mubr.bf16.mxu1 %v305_v34 }
  0x6d   : > { %2001 = vmatpush3.bf16.msra.mxu0 %v2169_v3 }
  0x6e   : > { %2023 = vmatpush3.bf16.msra.mxu1 %v2170_v2  ;;  %2002 = vmatprep.subr.bf16.mxu0 %v2171_v5 }
  0x6f   : > { %2024 = vmatprep.subr.bf16.mxu1 %v2172_v4 }
  0x71   : > { %2003 = vmatpush3.bf16.msra.mxu0 %v2173_v7 }
  0x72   : > { %2025 = vmatpush3.bf16.msra.mxu1 %v2174_v6  ;;  %2004 = vmatprep.subr.bf16.mxu0 %v2175_v9 }
  0x73   : > { %2026 = vmatprep.subr.bf16.mxu1 %v2176_v8 }
  0x75   : > { %2005 = vmatpush3.bf16.msra.mxu0 %v2177_v11 }
  0x76   : > { %2027 = vmatpush3.bf16.msra.mxu1 %v2178_v10  ;;  %2006 = vmatprep.subr.bf16.mxu0 %v2179_v13 }
  0x77   : > { %2028 = vmatprep.subr.bf16.mxu1 %v2180_v12 }
  0x79   : > { %2007 = vmatpush3.bf16.msra.mxu0 %v2181_v15 }
  0x7a   : > { %2029 = vmatpush3.bf16.msra.mxu1 %v2182_v14  ;;  %2008 = vmatprep.subr.bf16.mxu0 %v2183_v17 }
  0x7b   : > { %2030 = vmatprep.subr.bf16.mxu1 %v2184_v16 }
  0x7d   : > { %2009 = vmatpush3.bf16.msra.mxu0 %v2185_v19 }
  0x7e   : > { %2031 = vmatpush3.bf16.msra.mxu1 %v2186_v18  ;;  %2010 = vmatprep.subr.bf16.mxu0 %v2187_v21 }
  0x7f   : > { %2032 = vmatprep.subr.bf16.mxu1 %v2188_v20 }
  0x81   : > { %2011 = vmatpush3.bf16.msra.mxu0 %v2189_v23 }
  0x82   : > { %2033 = vmatpush3.bf16.msra.mxu1 %v2190_v22  ;;  %2012 = vmatprep.subr.bf16.mxu0 %v2191_v25 }
  0x83   : > { %2034 = vmatprep.subr.bf16.mxu1 %v2192_v24 }
  0x85   : > { %2013 = vmatpush3.bf16.msra.mxu0 %v2193_v30 }
  0x86   : > { %2035 = vmatpush3.bf16.msra.mxu1 %v2194_v26 }
  0x88   : > { %1605 = vmatmul.mubr.bf16.vlgmr.msra.gmra.mrb[12].mxu0 %v1729_v27 }
  0x89   : > { %1645 = vmatmul.mubr.bf16.vlgmr.msra.gmra.mrb[12].mxu1 %v300_v33 }
  0xfb   : > { %v1882_v39 = vpop.f32.mrb[0].mxu0 }
  0xfc   : > { %v1904_v35 = vpop.f32.mrb[0].mxu1  ;;  %v1883_v41 = vpop.f32.mrb[1].mxu0 }
  0xfd   : > { %v1905_v36 = vpop.f32.mrb[1].mxu1  ;;  %v1884_v42 = vadd.f32 %v1883_v41, %v1882_v39  ;;  %v1885_v43 = vpop.f32.mrb[2].mxu0 }
  0xfe   : > { %v1906_v44 = vadd.f32 %v1905_v36, %v1904_v35  ;;  %v1907_v37 = vpop.f32.mrb[2].mxu1  ;;  %v1886_v45 = vpop.f32.mrb[3].mxu0 }
  0xff   : > { %v1908_v38 = vpop.f32.mrb[3].mxu1  ;;  %v1367_v46 = vadd.f32 %v1884_v42, %v563_v40 }
 0x101   : > { %v1407_v47 = vadd.f32 %v1906_v44, %v1367_v46 }
 0x11b   : > { %v1926_v53 = vpop.f32.mrb[4].mxu0 }
 0x11c   : > { %v1948_v48 = vpop.f32.mrb[4].mxu1  ;;  %v1927_v54 = vpop.f32.mrb[5].mxu0 }
 0x11d   : > { %v1949_v49 = vpop.f32.mrb[5].mxu1  ;;  %v1928_v55 = vadd.f32 %v1927_v54, %v1926_v53  ;;  %v1929_v56 = vpop.f32.mrb[6].mxu0 }
 0x11e   : > { %v1950_v50 = vadd.f32 %v1949_v49, %v1948_v48  ;;  %v1951_v51 = vpop.f32.mrb[6].mxu1  ;;  %v1930_v57 = vpop.f32.mrb[7].mxu0 }
 0x11f   : > { %v1952_v52 = vpop.f32.mrb[7].mxu1  ;;  %v1447_v58 = vadd.f32 %v1928_v55, %v1407_v47 }
 0x121   : > { %v1487_v59 = vadd.f32 %v1950_v50, %v1447_v58 }
 0x13b   : > { %v1970_v0 = vpop.f32.mrb[8].mxu0 }
 0x13c   : > { %v1992_v60 = vpop.f32.mrb[8].mxu1  ;;  %v1971_v2 = vpop.f32.mrb[9].mxu0 }
 0x13d   : > { %v1993_v61 = vpop.f32.mrb[9].mxu1  ;;  %v1972_v3 = vadd.f32 %v1971_v2, %v1970_v0  ;;  %v1973_v4 = vpop.f32.mrb[10].mxu0 }
 0x13e   : > { %v1994_v62 = vadd.f32 %v1993_v61, %v1992_v60  ;;  %v1995_v63 = vpop.f32.mrb[10].mxu1  ;;  %v1974_v5 = vpop.f32.mrb[11].mxu0 }
 0x13f   : > { %v1996_v1 = vpop.f32.mrb[11].mxu1  ;;  %v1527_v6 = vadd.f32 %v1972_v3, %v1487_v59 }
 0x141   : > { %v1567_v7 = vadd.f32 %v1994_v62, %v1527_v6 }
 0x15b   : > { %v2014_v10 = vpop.f32.mrb[12].mxu0 }
 0x15c   : > { %v2036_v8 = vpop.f32.mrb[12].mxu1  ;;  %v2015_v13 = vpop.f32.mrb[13].mxu0 }
 0x15d   : > { %v2037_v9 = vpop.f32.mrb[13].mxu1  ;;  %v2016_v15 = vadd.f32 %v2015_v13, %v2014_v10  ;;  %v2017_v16 = vpop.f32.mrb[14].mxu0 }
 0x15e   : > { %v2038_v11 = vadd.f32 %v2037_v9, %v2036_v8  ;;  %v2039_v12 = vpop.f32.mrb[14].mxu1  ;;  %v2018_v17 = vpop.f32.mrb[15].mxu0 }
 0x15f   : > { %v2040_v14 = vpop.f32.mrb[15].mxu1  ;;  %v1607_v18 = vadd.f32 %v2016_v15, %v1567_v7 }
 0x161   : > { %v1647_v19 = vadd.f32 %v2038_v11, %v1607_v18 }
 0x163   : > { %1652 = vst [vmem:[%s186_s7] sm:$0x1] %v1647_v19 }
 0x164 PF: > { %s13_s14 = sadd.s32 1, %s2217_s14   ;;  %s2688_s12 = smov %s2213_s13 }
 0x165   : > { %p10_p5 = scmp.ge.s32.totalorder %s13_s14, 4   ;;  %s2689_s13 = smov %s2691_s15 }
 0x167   :  { %12 = sbr.rel (!%p10_p5) target bundleno = 2 (0x2), region = 65 }

// kernel: multiscale_discriminator_pallas.16
= control target key start
LH: loop header
LB: loop body
LE: loop exit
PB: predicated region body
PF: predicated region fallthrough
CT: control target
= control target key end

     0   :  { %s2724_s12 = smov 0   ;;  %s2726_s13 = smov 0   ;;  %s3216_s0 = inlined_call_operand.vmem [shape: bf16[2,3,3,512], index: 0, kind: input, shape index: {}]   ;;  %s3217_s1 = inlined_call_operand.vmem [shape: bf16[2048,128], index: 1, kind: input, shape index: {}]   ;;  %s3218_s2 = inlined_call_operand.vmem [shape: f32[1,128], index: 2, kind: input, shape index: {}]   ;;  %s3219_s3 = inlined_call_operand.vmem [shape: bf16[2,4,128], index: 3, kind: output, shape index: {}]  }
   0x1   :  { %s2728_s14 = smov 0  }
   0x2 LB: > { %s25_s15 = sadd.s32 1, %s2696_s13  ;;  %p2198_p0 = scmp.ge.s32.totalorder %s2700_s14, 1  ;;  %s2700_s14 = sphi %s2728_s14, %s13_s14   ;;  %s2696_s13 = sphi %s2726_s13, %s3221_s13   ;;  %s2692_s12 = sphi %s2724_s12, %s3220_s12  }
   0x3   : > { %p27_p1 = scmp.ge.s32.totalorder %s25_s15, 2  ;;  %p151_p2 = scmp.lt.s32.totalorder %s2700_s14, 3 }
   0x5   : > { %s3223_s15 = smov (%p27_p1, %s25_s15), 0  ;;  %p152_p3 = pnand %p2198_p0, %p151_p2 }
   0x6   : > { %v2543_v0 = vld [vmem:[%s3217_s1 + $0x40] sm:$0xff] (!%p152_p3)   ;;  %v2547_v4 = vld [vmem:[%s3217_s1 + $0x48] sm:$0xff] (!%p152_p3)   ;;  %v2551_v8 = vld [vmem:[%s3217_s1 + $0x50] sm:$0xff] (!%p152_p3)   ;;  %p177_p4 = scmp.lt.s32.totalorder (!%p152_p3), %s2692_s12, 1  ;;  %v205_v28 = vlaneseq (!%p152_p3)  ;;  %v2702_v36 = vmov (!%p152_p3), 1983009808  }
   0x7   : > { %155 = sbr.rel (%p152_p3) target bundleno = 363 (0x16b), region = 32  ;;  %v2544_v1 = vld [vmem:[%s3217_s1 + $0xc0] sm:$0xff] (!%p152_p3)   ;;  %2340 = vmatprep.subr.bf16.mxu0 (!%p152_p3), %v2543_v0  ;;  %v2548_v5 = vld [vmem:[%s3217_s1 + $0xc8] sm:$0xff] (!%p152_p3)   ;;  %v2552_v9 = vld [vmem:[%s3217_s1 + $0xd0] sm:$0xff] (!%p152_p3)   ;;  %v203_v37 = vunpack.c.l.s4 (!%p152_p3), %v2702_v36  ;;  %v2703_v38 = vmov (!%p152_p3), 1966171168  }
   0x8   : > { %v2545_v2 = vld [vmem:[%s3217_s1] sm:$0xff] (!%p152_p3)   ;;  %2362 = vmatprep.subr.bf16.mxu1 (!%p152_p3), %v2544_v1  ;;  %v2549_v6 = vld [vmem:[%s3217_s1 + $0x8] sm:$0xff] (!%p152_p3)   ;;  %v2553_v10 = vld [vmem:[%s3217_s1 + $0x10] sm:$0xff] (!%p152_p3)   ;;  %v206_v33 = vshrl.u32 (!%p152_p3), %v205_v28, 7  ;;  %v460_v39 = vunpack.c.l.s4 (!%p152_p3), %v2703_v38 }
   0x9   : > { %v2546_v3 = vld [vmem:[%s3217_s1 + $0x80] sm:$0xff] (!%p152_p3)   ;;  %2341 = vmatpush3.bf16.msra.mxu0 (!%p152_p3), %v2545_v2  ;;  %v2550_v7 = vld [vmem:[%s3217_s1 + $0x88] sm:$0xff] (!%p152_p3)   ;;  %v2554_v11 = vld [vmem:[%s3217_s1 + $0x90] sm:$0xff] (!%p152_p3)   ;;  %v204_v42 = vunpack.c.0.s8 (!%p152_p3), %v203_v37 }
   0xa   : > { %2363 = vmatpush3.bf16.msra.mxu1 (!%p152_p3), %v2546_v3  ;;  %2342 = vmatprep.subr.bf16.mxu0 (!%p152_p3), %v2547_v4  ;;  %v2555_v12 = vld [vmem:[%s3217_s1 + $0x58] sm:$0xff] (!%p152_p3)   ;;  %v2559_v16 = vld [vmem:[%s3217_s1 + $0x60] sm:$0xff] (!%p152_p3)   ;;  %v2563_v20 = vld [vmem:[%s3217_s1 + $0x68] sm:$0xff] (!%p152_p3)   ;;  %v461_v45 = vunpack.c.0.s8 (!%p152_p3), %v460_v39 }
   0xb   : > { %2364 = vmatprep.subr.bf16.mxu1 (!%p152_p3), %v2548_v5  ;;  %v2556_v13 = vld [vmem:[%s3217_s1 + $0xd8] sm:$0xff] (!%p152_p3)   ;;  %v2560_v17 = vld [vmem:[%s3217_s1 + $0xe0] sm:$0xff] (!%p152_p3)   ;;  %v2564_v21 = vld [vmem:[%s3217_s1 + $0xe8] sm:$0xff] (!%p152_p3)   ;;  %v2858_v46 = vsub.s32 (!%p152_p3), %v204_v42, %v206_v33 }
   0xc   : > { %v2557_v14 = vld [vmem:[%s3217_s1 + $0x18] sm:$0xff] (!%p152_p3)   ;;  %v2561_v18 = vld [vmem:[%s3217_s1 + $0x20] sm:$0xff] (!%p152_p3)   ;;  %v2565_v22 = vld [vmem:[%s3217_s1 + $0x28] sm:$0xff] (!%p152_p3)   ;;  %v2864_v51 = vsub.s32 (!%p152_p3), %v461_v45, %v206_v33 }
   0xd   : > { %2343 = vmatpush3.bf16.msra.mxu0 (!%p152_p3), %v2549_v6  ;;  %v2558_v15 = vld [vmem:[%s3217_s1 + $0x98] sm:$0xff] (!%p152_p3)   ;;  %v2562_v19 = vld [vmem:[%s3217_s1 + $0xa0] sm:$0xff] (!%p152_p3)   ;;  %v2566_v23 = vld [vmem:[%s3217_s1 + $0xa8] sm:$0xff] (!%p152_p3)  }
   0xe   : > { %2365 = vmatpush3.bf16.msra.mxu1 %v2550_v7  ;;  %2344 = vmatprep.subr.bf16.mxu0 %v2551_v8  ;;  %s3225_s12 = smov (!%p177_p4, %s2692_s12), 1  ;;  %v2567_v24 = vld [vmem:[%s3217_s1 + $0x70] sm:$0xff]   ;;  %v2571_v29 = vld [vmem:[%s3217_s1 + $0x78] sm:$0xff]   ;;  %v2577_v40 = vld [vmem:[%s3217_s1 + $0x140] sm:$0xff]  }
   0xf   : > { %2366 = vmatprep.subr.bf16.mxu1 %v2552_v9  ;;  %v2568_v25 = vld [vmem:[%s3217_s1 + $0xf0] sm:$0xff]   ;;  %s2516_s22 = smul.u32 24, %s3225_s12  ;;  %v2572_v30 = vld [vmem:[%s3217_s1 + $0xf8] sm:$0xff]   ;;  %v2578_v44 = vld [vmem:[%s3217_s1 + $0x1c0] sm:$0xff]   ;;  %s2200_s4 = sshll.u32 %s3225_s12, 1 }
  0x10   : > { %v2569_v26 = vld [vmem:[%s3217_s1 + $0x30] sm:$0xff]   ;;  %v2573_v31 = vld [vmem:[%s3217_s1 + $0x38] sm:$0xff]   ;;  %v2579_v8 = vld [vmem:[%s3217_s1 + $0x100] sm:$0xff]   ;;  %s188_s8 = scalar_lea.vmem %s3219_s3, %s2200_s4 }
  0x11   : > { %2345 = vmatpush3.bf16.msra.mxu0 %v2553_v10  ;;  %v2570_v27 = vld [vmem:[%s3217_s1 + $0xb0] sm:$0xff]   ;;  %s2842_s6 = scalar_lea.vmem %s3216_s0, %s2516_s22  ;;  %v2574_v32 = vld [vmem:[%s3217_s1 + $0xb8] sm:$0xff]   ;;  %v2580_v10 = vld [vmem:[%s3217_s1 + $0x180] sm:$0xff]  }
  0x12   : > { %2367 = vmatpush3.bf16.msra.mxu1 %v2554_v11  ;;  %2346 = vmatprep.subr.bf16.mxu0 %v2555_v12  ;;  %v190_v34 = vld [vmem:[%s2842_s6] sm:$0x55]  ;;  %v191_v35 = vld [vmem:[%s2842_s6 + $0x8] sm:$0x55]  ;;  %v2590_v28 = vld [vmem:[%s3217_s1 + $0x1d8] sm:$0xff]  }
  0x13   : > { %2368 = vmatprep.subr.bf16.mxu1 %v2556_v13  ;;  %v201_v41 = vcombine.high %v190_v34, %v190_v34  ;;  %v218_v43 = vcombine.high %v191_v35, %v191_v35  ;;  %v208_v47 = vrot.slane %v190_v34, %v2858_v46  ;;  %v225_v49 = vrot.slane %v191_v35, %v2858_v46  ;;  %v2581_v12 = vld [vmem:[%s3217_s1 + $0x148] sm:$0xff]   ;;  %v2592_v34 = vld [vmem:[%s3217_s1 + $0x198] sm:$0xff]   ;;  %v2593_v39 = vld [vmem:[%s3217_s1 + $0x160] sm:$0xff]  }
  0x14   : > { %v2595_v45 = vld [vmem:[%s3217_s1 + $0x120] sm:$0xff]  }
  0x15   : > { %2347 = vmatpush3.bf16.msra.mxu0 %v2557_v14  ;;  %v215_v48 = vrot.slane %v201_v41, %v2858_v46  ;;  %v232_v50 = vrot.slane %v218_v43, %v2858_v46  ;;  %v216_v52 = vcombine.high %v208_v47, %v208_v47  ;;  %v233_v54 = vcombine.high %v225_v49, %v225_v49  ;;  %v2582_v14 = vld [vmem:[%s3217_s1 + $0x1c8] sm:$0xff]  }
  0x16   : > { %2369 = vmatpush3.bf16.msra.mxu1 %v2558_v15  ;;  %2348 = vmatprep.subr.bf16.mxu0 %v2559_v16  ;;  %v2583_v15 = vld [vmem:[%s3217_s1 + $0x108] sm:$0xff]  }
  0x17   : > { %2370 = vmatprep.subr.bf16.mxu1 %v2560_v17  ;;  %v217_v53 = vcombine.high %v215_v48, %v215_v48  ;;  %v234_v55 = vcombine.high %v232_v50, %v232_v50  ;;  %v455_v56 = vcombine.low %v208_v47, %v216_v52  ;;  %v553_v58 = vcombine.low %v225_v49, %v233_v54  ;;  %v2584_v16 = vld [vmem:[%s3217_s1 + $0x188] sm:$0xff]   ;;  %v2585_v17 = vld [vmem:[%s3217_s1 + $0x150] sm:$0xff]  }
  0x19   : > { %2349 = vmatpush3.bf16.msra.mxu0 %v2561_v18  ;;  %v456_v57 = vcombine.low %v215_v48, %v217_v53  ;;  %v554_v59 = vcombine.low %v232_v50, %v234_v55  ;;  %v465_v60 = vrot.slane %v455_v56, %v2864_v51  ;;  %v563_v62 = vrot.slane %v553_v58, %v2864_v51  ;;  %v2586_v18 = vld [vmem:[%s3217_s1 + $0x1d0] sm:$0xff]  }
  0x1a   : > { %2371 = vmatpush3.bf16.msra.mxu1 %v2562_v19  ;;  %2350 = vmatprep.subr.bf16.mxu0 %v2563_v20  ;;  %v2587_v19 = vld [vmem:[%s3217_s1 + $0x110] sm:$0xff]  }
  0x1b   : > { %2372 = vmatprep.subr.bf16.mxu1 %v2564_v21  ;;  %v472_v61 = vrot.slane %v456_v57, %v2864_v51  ;;  %v570_v63 = vrot.slane %v554_v59, %v2864_v51  ;;  %v2588_v20 = vld [vmem:[%s3217_s1 + $0x190] sm:$0xff]   ;;  %v192_v21 = vld [vmem:[%s2842_s6] sm:$0xff] }
  0x1d   : > { %2351 = vmatpush3.bf16.msra.mxu0 %v2565_v22  ;;  %v487_v0 = vcombine.low %v465_v60, %v472_v61  ;;  %v585_v1 = vcombine.low %v563_v62, %v570_v63  ;;  %v193_v22 = vld [vmem:[%s2842_s6 + $0x8] sm:$0xff] }
  0x1e   : > { %2373 = vmatpush3.bf16.msra.mxu1 %v2566_v23  ;;  %2352 = vmatprep.subr.bf16.mxu0 %v2567_v24  ;;  %v2589_v23 = vld [vmem:[%s3217_s1 + $0x158] sm:$0xff]   ;;  %v237_v24 = vcombine.high %v192_v21, %v192_v21  ;;  %v2597_v60 = vld [vmem:[%s3217_s1 + $0x168] sm:$0xff]  }
  0x1f   : > { %2374 = vmatprep.subr.bf16.mxu1 %v2568_v25  ;;  %v495_v2 = vrot.slane %v487_v0, %v2864_v51  ;;  %v593_v3 = vrot.slane %v585_v1, %v2864_v51  ;;  %v244_v25 = vrot.slane %v192_v21, %v2858_v46  ;;  %v2596_v1 = vld [vmem:[%s3217_s1 + $0x1a0] sm:$0xff]  }
  0x21   : > { %2353 = vmatpush3.bf16.msra.mxu0 %v2569_v26  ;;  %v2206_v4 = vcombine.low %v495_v2, %v593_v3  ;;  %v254_v26 = vcombine.high %v193_v22, %v193_v22  ;;  %v272_v35 = vshrl.u32 %v244_v25, 16  ;;  %v274_v36 = vshll.u32 %v244_v25, 16 }
  0x22   : > { %2375 = vmatpush3.bf16.msra.mxu1 %v2570_v27  ;;  %2354 = vmatprep.subr.bf16.mxu0 %v2571_v29  ;;  %v261_v27 = vrot.slane %v193_v22, %v2858_v46  ;;  %v2591_v29 = vld [vmem:[%s3217_s1 + $0x118] sm:$0xff]   ;;  %v2603_v22 = vld [vmem:[%s3217_s1 + $0x130] sm:$0xff]  }
  0x23   : > { %2376 = vmatprep.subr.bf16.mxu1 %v2572_v30  ;;  %v922_v5 = vrot.slane %v2206_v4, %v2864_v51  ;;  %v251_v30 = vrot.slane %v237_v24, %v2858_v46  ;;  %v276_v47 = vrot.slane %v274_v36, 1  ;;  %v2612_v36 = vld [vmem:[%s3217_s1 + $0x2c0] sm:$0xff]  }
  0x24   : > { %v269_v33 = vcombine.high %v261_v27, %v261_v27  ;;  %v300_v37 = vshrl.u32 %v261_v27, 16  ;;  %v302_v38 = vshll.u32 %v261_v27, 16  ;;  %v2604_v27 = vld [vmem:[%s3217_s1 + $0x1b0] sm:$0xff]  }
  0x25   : > { %2355 = vmatpush3.bf16.msra.mxu0 %v2573_v31  ;;  %v930_v6 = vcombine.high %v922_v5, %v922_v5  ;;  %v938_v7 = vrot.slane %v922_v5, %v2864_v51  ;;  %v252_v31 = vcombine.high %v244_v25, %v244_v25  ;;  %v253_v41 = vcombine.high %v251_v30, %v251_v30  ;;  %v2605_v25 = vld [vmem:[%s3217_s1 + $0x178] sm:$0xff]  }
  0x26   : > { %2377 = vmatpush3.bf16.msra.mxu1 %v2574_v32  ;;  %2384 = vmatprep.subr.bf16.mxu0 %v2577_v40  ;;  %v268_v32 = vrot.slane %v254_v26, %v2858_v46  ;;  %v2594_v40 = vld [vmem:[%s3217_s1 + $0x1e0] sm:$0xff]   ;;  %v286_v48 = vshrl.u32 %v251_v30, 16  ;;  %v288_v49 = vshll.u32 %v251_v30, 16  ;;  %v304_v50 = vrot.slane %v302_v38, 1  ;;  %v2607_v30 = vld [vmem:[%s3217_s1 + $0x138] sm:$0xff]  }
  0x27   : > { %2406 = vmatprep.subr.bf16.mxu1 %v2578_v44  ;;  %v952_v9 = vrot.slane %v930_v6, %v2864_v51  ;;  %v960_v11 = vcombine.high %v938_v7, %v938_v7  ;;  %v279_v43 = vshrl.u32 %v252_v31, 16  ;;  %v281_v44 = vshll.u32 %v252_v31, 16  ;;  %v2598_v6 = vld [vmem:[%s3217_s1 + $0x1e8] sm:$0xff]  }
  0x28   : > { %v270_v42 = vcombine.high %v268_v32, %v268_v32  ;;  %v293_v53 = vshrl.u32 %v253_v41, 16  ;;  %v295_v54 = vshll.u32 %v253_v41, 16  ;;  %v307_v55 = vshrl.u32 %v269_v33, 16  ;;  %v2613_v41 = vld [vmem:[%s3217_s1 + $0x200] sm:$0xff]  }
  0x29   : > { %1830 = vmatprep.mubr.bf16.mxu0 %v952_v9  ;;  %v962_v13 = vcombine.high %v952_v9, %v952_v9  ;;  %v283_v52 = vrot.slane %v281_v44, 1  ;;  %v277_v56 = vor.u32 %v276_v47, %v272_v35  ;;  %v290_v57 = vrot.slane %v288_v49, 1  ;;  %v2617_v49 = vld [vmem:[%s3217_s1 + $0x208] sm:$0xff]  }
  0x2a   : > { %1831 = vmatmul.mubr.bf16.vlgmr.msra.gmra.mrb[0].mxu0 %v938_v7  ;;  %v305_v58 = vor.u32 %v304_v50, %v300_v37  ;;  %v309_v59 = vshll.u32 %v269_v33, 16  ;;  %v297_v62 = vrot.slane %v295_v54, 1  ;;  %v314_v63 = vshrl.u32 %v268_v32, 16  ;;  %v2611_v33 = vld [vmem:[%s3217_s1 + $0x240] sm:$0xff]   ;;  %v2618_v50 = vld [vmem:[%s3217_s1 + $0x288] sm:$0xff]  }
  0x2b   : > { %1870 = vmatprep.mubr.bf16.mxu1 %v962_v13  ;;  %2385 = vmatpush3.bf16.msra.mxu0 %v2579_v8  ;;  %v284_v61 = vor.u32 %v283_v52, %v279_v43  ;;  %v316_v0 = vshll.u32 %v268_v32, 16  ;;  %v291_v2 = vor.u32 %v290_v57, %v286_v48  ;;  %v321_v4 = vshrl.u32 %v270_v42, 16  ;;  %v2601_v13 = vld [vmem:[%s3217_s1 + $0x170] sm:$0xff]   ;;  %v2614_v43 = vld [vmem:[%s3217_s1 + $0x280] sm:$0xff]   ;;  %v2616_v48 = vld [vmem:[%s3217_s1 + $0x2c8] sm:$0xff]  }
  0x2c   : > { %1871 = vmatmul.mubr.bf16.vlgmr.msra.gmra.mrb[0].mxu1 %v960_v11  ;;  %2386 = vmatprep.subr.bf16.mxu0 %v2581_v12  ;;  %v311_v3 = vrot.slane %v309_v59, 1  ;;  %v323_v5 = vshll.u32 %v270_v42, 16  ;;  %v298_v7 = vor.u32 %v297_v62, %v293_v53  ;;  %v2619_v52 = vld [vmem:[%s3217_s1 + $0x250] sm:$0xff]   ;;  %v2201_v53 = vld [vmem:[%s2842_s6 + $0x8] sm:$0x55] }
  0x2d   : > { %2407 = vmatpush3.bf16.msra.mxu1 %v2580_v10  ;;  %v318_v8 = vrot.slane %v316_v0, 1  ;;  %v457_v9 = vcombine.low %v277_v56, %v284_v61  ;;  %v2599_v10 = vld [vmem:[%s3217_s1 + $0x128] sm:$0xff]   ;;  %v2202_v54 = vld [vmem:[%s2842_s6 + $0x10] sm:$0x55]  ;;  %v329_v56 = vcombine.high %v2201_v53, %v2201_v53  ;;  %v336_v57 = vrot.slane %v2201_v53, %v2858_v46  ;;  %v2623_v61 = vld [vmem:[%s3217_s1 + $0x258] sm:$0xff]  }
  0x2e   : > { %2408 = vmatprep.subr.bf16.mxu1 %v2582_v14  ;;  %v312_v11 = vor.u32 %v311_v3, %v307_v55  ;;  %v325_v12 = vrot.slane %v323_v5, 1  ;;  %v2620_v55 = vld [vmem:[%s3217_s1 + $0x2d0] sm:$0xff]   ;;  %v353_v59 = vrot.slane %v2202_v54, %v2858_v46  ;;  %v2624_v3 = vld [vmem:[%s3217_s1 + $0x2d8] sm:$0xff]  }
  0x2f   : > { %2387 = vmatpush3.bf16.msra.mxu0 %v2583_v15  ;;  %v319_v14 = vor.u32 %v318_v8, %v314_v63  ;;  %v458_v15 = vcombine.low %v291_v2, %v298_v7  ;;  %v343_v62 = vrot.slane %v329_v56, %v2858_v46  ;;  %v344_v63 = vcombine.high %v336_v57, %v336_v57  ;;  %v2622_v2 = vld [vmem:[%s3217_s1 + $0x290] sm:$0xff]   ;;  %v2625_v8 = vld [vmem:[%s3217_s1 + $0x218] sm:$0xff]  }
  0x30   : > { %2388 = vmatprep.subr.bf16.mxu0 %v2585_v17  ;;  %v2600_v17 = vld [vmem:[%s3217_s1 + $0x1a8] sm:$0xff]   ;;  %v2653_v53 = vld [vmem:[%s3217_s1 + $0x350] sm:$0xff]  }
  0x31   : > { %2409 = vmatpush3.bf16.msra.mxu1 %v2584_v16  ;;  %v479_v16 = vrot.slane %v457_v9, %v2864_v51  ;;  %v486_v21 = vrot.slane %v458_v15, %v2864_v51  ;;  %v2627_v9 = vld [vmem:[%s3217_s1 + $0x260] sm:$0xff]   ;;  %v2654_v56 = vld [vmem:[%s3217_s1 + $0x3d0] sm:$0xff]  }
  0x32   : > { %2410 = vmatprep.subr.bf16.mxu1 %v2586_v18  ;;  %v326_v18 = vor.u32 %v325_v12, %v321_v4  ;;  %v345_v4 = vcombine.high %v343_v62, %v343_v62  ;;  %v2628_v15 = vld [vmem:[%s3217_s1 + $0x2e0] sm:$0xff]  }
  0x33   : > { %2389 = vmatpush3.bf16.msra.mxu0 %v2587_v19  ;;  %v555_v19 = vcombine.low %v305_v58, %v312_v11  ;;  %v488_v26 = vcombine.low %v479_v16, %v486_v21  ;;  %v346_v58 = vcombine.high %v2202_v54, %v2202_v54  ;;  %v2652_v54 = vld [vmem:[%s3217_s1 + $0x388] sm:$0xff]  }
  0x34   : > { %2390 = vmatprep.subr.bf16.mxu0 %v2589_v23  ;;  %v556_v23 = vcombine.low %v319_v14, %v326_v18  ;;  %v2626_v14 = vld [vmem:[%s3217_s1 + $0x298] sm:$0xff]   ;;  %v2629_v18 = vld [vmem:[%s3217_s1 + $0x220] sm:$0xff]  }
  0x35   : > { %2411 = vmatpush3.bf16.msra.mxu1 %v2588_v20  ;;  %v2602_v20 = vld [vmem:[%s3217_s1 + $0x1f0] sm:$0xff]   ;;  %v577_v24 = vrot.slane %v555_v19, %v2864_v51  ;;  %v502_v31 = vrot.slane %v488_v26, %v2864_v51  ;;  %v360_v0 = vrot.slane %v346_v58, %v2858_v46  ;;  %v2631_v19 = vld [vmem:[%s3217_s1 + $0x268] sm:$0xff]  }
  0x36   : > { %2412 = vmatprep.subr.bf16.mxu1 %v2590_v28  ;;  %v584_v28 = vrot.slane %v556_v23, %v2864_v51  ;;  %v2632_v23 = vld [vmem:[%s3217_s1 + $0x2e8] sm:$0xff]  }
  0x37   : > { %2391 = vmatpush3.bf16.msra.mxu0 %v2591_v29  ;;  %v2606_v29 = vld [vmem:[%s3217_s1 + $0x1f8] sm:$0xff]   ;;  %v362_v5 = vcombine.high %v360_v0, %v360_v0  ;;  %v2633_v26 = vld [vmem:[%s3217_s1 + $0x228] sm:$0xff]  }
  0x38   : > { %2392 = vmatprep.subr.bf16.mxu0 %v2593_v39  ;;  %v586_v32 = vcombine.low %v577_v24, %v584_v28 }
  0x39   : > { %2413 = vmatpush3.bf16.msra.mxu1 %v2592_v34  ;;  %v2608_v34 = vld [vmem:[%s3217_s1 + $0x1b8] sm:$0xff]   ;;  %v603_v12 = vcombine.low %v360_v0, %v362_v5 }
  0x3a   : > { %2414 = vmatprep.subr.bf16.mxu1 %v2594_v40  ;;  %v2980_v35 = vrot.slane %v586_v32, %v2864_v51  ;;  %v2637_v32 = vld [vmem:[%s3217_s1 + $0x230] sm:$0xff]  }
  0x3b   : > { %2393 = vmatpush3.bf16.msra.mxu0 %v2595_v45  ;;  %v2615_v45 = vld [vmem:[%s3217_s1 + $0x248] sm:$0xff]  }
  0x3c   : > { %2394 = vmatprep.subr.bf16.mxu0 %v2597_v60  ;;  %v2207_v37 = vcombine.low %v502_v31, %v2980_v35  ;;  %v2621_v60 = vld [vmem:[%s3217_s1 + $0x210] sm:$0xff]  }
  0x3d   : > { %2415 = vmatpush3.bf16.msra.mxu1 %v2596_v1  ;;  %v361_v1 = vcombine.high %v353_v59, %v353_v59 }
  0x3e   : > { %2416 = vmatprep.subr.bf16.mxu1 %v2598_v6  ;;  %v929_v38 = vrot.slane %v2207_v37, %v2864_v51  ;;  %v504_v6 = vcombine.low %v336_v57, %v344_v63  ;;  %v2640_v37 = vld [vmem:[%s3217_s1 + $0x2f8] sm:$0xff]  }
  0x3f   : > { %2395 = vmatpush3.bf16.msra.mxu0 %v2599_v10  ;;  %v602_v7 = vcombine.low %v353_v59, %v361_v1  ;;  %v505_v10 = vcombine.low %v343_v62, %v345_v4  ;;  %v2655_v59 = vld [vmem:[%s3217_s1 + $0x310] sm:$0xff]  }
  0x40   : > { %2396 = vmatprep.subr.bf16.mxu0 %v2601_v13  ;;  %v931_v39 = vcombine.high %v929_v38, %v929_v38  ;;  %v945_v40 = vrot.slane %v929_v38, %v2864_v51  ;;  %v514_v11 = vrot.slane %v504_v6, %v2864_v51  ;;  %v2656_v1 = vld [vmem:[%s3217_s1 + $0x390] sm:$0xff]  }
  0x41   : > { %2417 = vmatpush3.bf16.msra.mxu1 %v2600_v17  ;;  %v612_v13 = vrot.slane %v602_v7, %v2864_v51  ;;  %v521_v16 = vrot.slane %v505_v10, %v2864_v51  ;;  %v619_v17 = vrot.slane %v603_v12, %v2864_v51 }
  0x42   : > { %2418 = vmatprep.subr.bf16.mxu1 %v2602_v20  ;;  %v959_v42 = vrot.slane %v931_v39, %v2864_v51  ;;  %v961_v44 = vcombine.high %v945_v40, %v945_v40  ;;  %v2641_v39 = vld [vmem:[%s3217_s1 + $0x238] sm:$0xff]  }
  0x43   : > { %2397 = vmatpush3.bf16.msra.mxu0 %v2603_v22  ;;  %v536_v20 = vcombine.low %v514_v11, %v521_v16  ;;  %v634_v21 = vcombine.low %v612_v13, %v619_v17  ;;  %v2630_v22 = vld [vmem:[%s3217_s1 + $0x2a0] sm:$0xff]  }
  0x44   : > { %2398 = vmatprep.subr.bf16.mxu0 %v2605_v25  ;;  %1910 = vmatprep.mubr.bf16.mxu0 %v959_v42  ;;  %v963_v47 = vcombine.high %v959_v42, %v959_v42  ;;  %v2645_v42 = vld [vmem:[%s3217_s1 + $0x340] sm:$0xff]  }
  0x45   : > { %2419 = vmatpush3.bf16.msra.mxu1 %v2604_v27  ;;  %v544_v24 = vrot.slane %v536_v20, %v2864_v51  ;;  %v642_v25 = vrot.slane %v634_v21, %v2864_v51  ;;  %v2635_v27 = vld [vmem:[%s3217_s1 + $0x270] sm:$0xff]   ;;  %v2662_v16 = vld [vmem:[%s3217_s1 + $0x3e0] sm:$0xff]   ;;  %v2665_v21 = vld [vmem:[%s3217_s1 + $0x368] sm:$0xff]  }
  0x46   : > { %2420 = vmatprep.subr.bf16.mxu1 %v2606_v29  ;;  %1950 = vmatprep.mubr.bf16.mxu1 %v963_v47  ;;  %v2634_v29 = vld [vmem:[%s3217_s1 + $0x2a8] sm:$0xff]  }
  0x47   : > { %2399 = vmatpush3.bf16.msra.mxu0 %v2607_v30  ;;  %v2208_v28 = vcombine.low %v544_v24, %v642_v25  ;;  %v2636_v30 = vld [vmem:[%s3217_s1 + $0x2f0] sm:$0xff]   ;;  %v2664_v24 = vld [vmem:[%s3217_s1 + $0x3a0] sm:$0xff]   ;;  %v2666_v25 = vld [vmem:[%s3217_s1 + $0x3e8] sm:$0xff]  }
  0x48   : > { %2428 = vmatprep.subr.bf16.mxu0 %v2611_v33  ;;  %v2639_v33 = vld [vmem:[%s3217_s1 + $0x278] sm:$0xff]  }
  0x49   : > { %2421 = vmatpush3.bf16.msra.mxu1 %v2608_v34  ;;  %v972_v31 = vrot.slane %v2208_v28, %v2864_v51  ;;  %v2667_v28 = vld [vmem:[%s3217_s1 + $0x328] sm:$0xff]  }
  0x4a   : > { %2450 = vmatprep.subr.bf16.mxu1 %v2612_v36  ;;  %1911 = vmatmul.mubr.bf16.vlgmr.msra.gmra.mrb[4].mxu0 %v945_v40  ;;  %v2638_v36 = vld [vmem:[%s3217_s1 + $0x2b0] sm:$0xff]  }
  0x4b   : > { %2429 = vmatpush3.bf16.msra.mxu0 %v2613_v41  ;;  %v980_v34 = vcombine.high %v972_v31, %v972_v31  ;;  %v988_v41 = vrot.slane %v972_v31, %v2864_v51  ;;  %v2668_v31 = vld [vmem:[%s3217_s1 + $0x3a8] sm:$0xff]  }
  0x4c   : > { %1951 = vmatmul.mubr.bf16.vlgmr.msra.gmra.mrb[4].mxu1 %v961_v44  ;;  %2430 = vmatprep.subr.bf16.mxu0 %v2615_v45  ;;  %v2646_v44 = vld [vmem:[%s3217_s1 + $0x3c0] sm:$0xff]  }
  0x4d   : > { %2451 = vmatpush3.bf16.msra.mxu1 %v2614_v43  ;;  %v1002_v38 = vrot.slane %v980_v34, %v2864_v51  ;;  %v2642_v43 = vld [vmem:[%s3217_s1 + $0x2b8] sm:$0xff]   ;;  %v2647_v45 = vld [vmem:[%s3217_s1 + $0x300] sm:$0xff]   ;;  %v1010_v47 = vcombine.high %v988_v41, %v988_v41  ;;  %v2671_v34 = vld [vmem:[%s3217_s1 + $0x330] sm:$0xff]  }
  0x4e   : > { %2452 = vmatprep.subr.bf16.mxu1 %v2616_v48  ;;  %v2649_v48 = vld [vmem:[%s3217_s1 + $0x348] sm:$0xff]  }
  0x4f   : > { %2431 = vmatpush3.bf16.msra.mxu0 %v2617_v49  ;;  %1990 = vmatprep.mubr.bf16.mxu0 %v1002_v38  ;;  %v1012_v40 = vcombine.high %v1002_v38, %v1002_v38  ;;  %v2648_v49 = vld [vmem:[%s3217_s1 + $0x380] sm:$0xff]   ;;  %v2672_v38 = vld [vmem:[%s3217_s1 + $0x3b0] sm:$0xff]  }
  0x50   : > { %2432 = vmatprep.subr.bf16.mxu0 %v2619_v52  ;;  %v2651_v52 = vld [vmem:[%s3217_s1 + $0x308] sm:$0xff]  }
  0x51   : > { %2453 = vmatpush3.bf16.msra.mxu1 %v2618_v50  ;;  %2030 = vmatprep.mubr.bf16.mxu1 %v1012_v40  ;;  %v2650_v50 = vld [vmem:[%s3217_s1 + $0x3c8] sm:$0xff]  }
  0x52   : > { %2454 = vmatprep.subr.bf16.mxu1 %v2620_v55  ;;  %v2204_v55 = vld [vmem:[%s2842_s6 + $0x10] sm:$0xff] }
  0x53   : > { %2433 = vmatpush3.bf16.msra.mxu0 %v2621_v60  ;;  %v382_v57 = vcombine.high %v2204_v55, %v2204_v55  ;;  %v389_v58 = vrot.slane %v2204_v55, %v2858_v46  ;;  %v2657_v60 = vld [vmem:[%s3217_s1 + $0x358] sm:$0xff]  }
  0x54   : > { %2434 = vmatprep.subr.bf16.mxu0 %v2623_v61 }
  0x55   : > { %2455 = vmatpush3.bf16.msra.mxu1 %v2622_v2  ;;  %v396_v61 = vrot.slane %v382_v57, %v2858_v46  ;;  %v397_v62 = vcombine.high %v389_v58, %v389_v58  ;;  %v428_v63 = vshrl.u32 %v389_v58, 16  ;;  %v430_v0 = vshll.u32 %v389_v58, 16  ;;  %v2658_v2 = vld [vmem:[%s3217_s1 + $0x3d8] sm:$0xff]  }
  0x56   : > { %2456 = vmatprep.subr.bf16.mxu1 %v2624_v3  ;;  %v2659_v46 = vld [vmem:[%s3217_s1 + $0x318] sm:$0xff]  }
  0x57   : > { %2435 = vmatpush3.bf16.msra.mxu0 %v2625_v8  ;;  %v398_v3 = vcombine.high %v396_v61, %v396_v61  ;;  %v432_v4 = vrot.slane %v430_v0, 1  ;;  %v435_v5 = vshrl.u32 %v397_v62, 16  ;;  %v437_v6 = vshll.u32 %v397_v62, 16 }
  0x58   : > { %2436 = vmatprep.subr.bf16.mxu0 %v2627_v9  ;;  %v442_v7 = vshrl.u32 %v396_v61, 16  ;;  %v444_v8 = vshll.u32 %v396_v61, 16  ;;  %v2661_v9 = vld [vmem:[%s3217_s1 + $0x360] sm:$0xff]  }
  0x59   : > { %2457 = vmatpush3.bf16.msra.mxu1 %v2626_v14  ;;  %v433_v10 = vor.u32 %v432_v4, %v428_v63  ;;  %v439_v11 = vrot.slane %v437_v6, 1  ;;  %v449_v12 = vshrl.u32 %v398_v3, 16  ;;  %v451_v13 = vshll.u32 %v398_v3, 16  ;;  %v2660_v14 = vld [vmem:[%s3217_s1 + $0x398] sm:$0xff]  }
  0x5a   : > { %2458 = vmatprep.subr.bf16.mxu1 %v2628_v15  ;;  %v446_v15 = vrot.slane %v444_v8, 1 }
  0x5b   : > { %2437 = vmatpush3.bf16.msra.mxu0 %v2629_v18  ;;  %v440_v17 = vor.u32 %v439_v11, %v435_v5  ;;  %v453_v18 = vrot.slane %v451_v13, 1 }
  0x5c   : > { %2438 = vmatprep.subr.bf16.mxu0 %v2631_v19  ;;  %v2663_v19 = vld [vmem:[%s3217_s1 + $0x320] sm:$0xff]   ;;  %v447_v20 = vor.u32 %v446_v15, %v442_v7 }
  0x5d   : > { %2459 = vmatpush3.bf16.msra.mxu1 %v2630_v22  ;;  %v454_v22 = vor.u32 %v453_v18, %v449_v12 }
  0x5e   : > { %2460 = vmatprep.subr.bf16.mxu1 %v2632_v23  ;;  %v604_v23 = vcombine.low %v433_v10, %v440_v17 }
  0x5f   : > { %2439 = vmatpush3.bf16.msra.mxu0 %v2633_v26  ;;  %v605_v26 = vcombine.low %v447_v20, %v454_v22 }
  0x60   : > { %2440 = vmatprep.subr.bf16.mxu0 %v2635_v27  ;;  %v626_v27 = vrot.slane %v604_v23, %v2864_v51 }
  0x61   : > { %2461 = vmatpush3.bf16.msra.mxu1 %v2634_v29  ;;  %v2669_v29 = vld [vmem:[%s3217_s1 + $0x370] sm:$0xff]  }
  0x62   : > { %2462 = vmatprep.subr.bf16.mxu1 %v2636_v30  ;;  %v633_v30 = vrot.slane %v605_v26, %v2864_v51 }
  0x63   : > { %2441 = vmatpush3.bf16.msra.mxu0 %v2637_v32  ;;  %v2670_v32 = vld [vmem:[%s3217_s1 + $0x3f0] sm:$0xff]  }
  0x64   : > { %2442 = vmatprep.subr.bf16.mxu0 %v2639_v33  ;;  %v635_v33 = vcombine.low %v626_v27, %v633_v30 }
  0x65   : > { %2463 = vmatpush3.bf16.msra.mxu1 %v2638_v36  ;;  %v2673_v36 = vld [vmem:[%s3217_s1 + $0x378] sm:$0xff]  }
  0x66   : > { %2464 = vmatprep.subr.bf16.mxu1 %v2640_v37  ;;  %v649_v37 = vrot.slane %v635_v33, %v2864_v51 }
  0x67   : > { %2443 = vmatpush3.bf16.msra.mxu0 %v2641_v39  ;;  %v2674_v39 = vld [vmem:[%s3217_s1 + $0x3f8] sm:$0xff]  }
  0x68   : > { %2472 = vmatprep.subr.bf16.mxu0 %v2645_v42  ;;  %v2209_v40 = vcombine.low %v2980_v35, %v649_v37 }
  0x69   : > { %2465 = vmatpush3.bf16.msra.mxu1 %v2642_v43  ;;  %v2676_v43 = vld [vmem:[%s3217_s1 + $0x3b8] sm:$0xff]  }
  0x6a   : > { %1991 = vmatmul.mubr.bf16.vlgmr.msra.gmra.mrb[8].mxu0 %v988_v41  ;;  %2494 = vmatprep.subr.bf16.mxu1 %v2646_v44  ;;  %v2675_v41 = vld [vmem:[%s3217_s1 + $0x338] sm:$0xff]   ;;  %v979_v42 = vrot.slane %v2209_v40, %v2864_v51 }
  0x6b   : > { %2473 = vmatpush3.bf16.msra.mxu0 %v2647_v45 }
  0x6c   : > { %2031 = vmatmul.mubr.bf16.vlgmr.msra.gmra.mrb[8].mxu1 %v1010_v47  ;;  %2474 = vmatprep.subr.bf16.mxu0 %v2649_v48  ;;  %v981_v44 = vcombine.high %v979_v42, %v979_v42  ;;  %v995_v45 = vrot.slane %v979_v42, %v2864_v51 }
  0x6d   : > { %2495 = vmatpush3.bf16.msra.mxu1 %v2648_v49 }
  0x6e   : > { %2496 = vmatprep.subr.bf16.mxu1 %v2650_v50  ;;  %v1009_v35 = vrot.slane %v981_v44, %v2864_v51  ;;  %v1011_v47 = vcombine.high %v995_v45, %v995_v45  ;;  %v2205_v50 = vld [vmem:[%s3218_s2] ss:$0 sm:$0xff] }
  0x6f   : > { %2475 = vmatpush3.bf16.msra.mxu0 %v2651_v52 }
  0x70   : > { %2476 = vmatprep.subr.bf16.mxu0 %v2653_v53  ;;  %2070 = vmatprep.mubr.bf16.mxu0 %v1009_v35  ;;  %v1013_v48 = vcombine.high %v1009_v35, %v1009_v35 }
  0x71   : > { %2497 = vmatpush3.bf16.msra.mxu1 %v2652_v54 }
  0x72   : > { %2498 = vmatprep.subr.bf16.mxu1 %v2654_v56  ;;  %2110 = vmatprep.mubr.bf16.mxu1 %v1013_v48 }
  0x73   : > { %2477 = vmatpush3.bf16.msra.mxu0 %v2655_v59 }
  0x74   : > { %2478 = vmatprep.subr.bf16.mxu0 %v2657_v60 }
  0x75   : > { %2499 = vmatpush3.bf16.msra.mxu1 %v2656_v1 }
  0x76   : > { %2500 = vmatprep.subr.bf16.mxu1 %v2658_v2 }
  0x77   : > { %2479 = vmatpush3.bf16.msra.mxu0 %v2659_v46 }
  0x78   : > { %2480 = vmatprep.subr.bf16.mxu0 %v2661_v9 }
  0x79   : > { %2501 = vmatpush3.bf16.msra.mxu1 %v2660_v14 }
  0x7a   : > { %2502 = vmatprep.subr.bf16.mxu1 %v2662_v16 }
  0x7b   : > { %2481 = vmatpush3.bf16.msra.mxu0 %v2663_v19 }
  0x7c   : > { %2482 = vmatprep.subr.bf16.mxu0 %v2665_v21 }
  0x7d   : > { %2503 = vmatpush3.bf16.msra.mxu1 %v2664_v24 }
  0x7e   : > { %2504 = vmatprep.subr.bf16.mxu1 %v2666_v25 }
  0x7f   : > { %2483 = vmatpush3.bf16.msra.mxu0 %v2667_v28 }
  0x80   : > { %2484 = vmatprep.subr.bf16.mxu0 %v2669_v29 }
  0x81   : > { %2505 = vmatpush3.bf16.msra.mxu1 %v2668_v31 }
  0x82   : > { %2506 = vmatprep.subr.bf16.mxu1 %v2670_v32 }
  0x83   : > { %2485 = vmatpush3.bf16.msra.mxu0 %v2671_v34 }
  0x84   : > { %2486 = vmatprep.subr.bf16.mxu0 %v2673_v36 }
  0x85   : > { %2507 = vmatpush3.bf16.msra.mxu1 %v2672_v38 }
  0x86   : > { %2508 = vmatprep.subr.bf16.mxu1 %v2674_v39 }
  0x87   : > { %2487 = vmatpush3.bf16.msra.mxu0 %v2675_v41 }
  0x89   : > { %2509 = vmatpush3.bf16.msra.mxu1 %v2676_v43 }
  0x8a   : > { %2071 = vmatmul.mubr.bf16.vlgmr.msra.gmra.mrb[12].mxu0 %v995_v45 }
  0x8c   : > { %2111 = vmatmul.mubr.bf16.vlgmr.msra.gmra.mrb[12].mxu1 %v1011_v47 }
  0xfd   : > { %v2356_v49 = vpop.f32.mrb[0].mxu0 }
  0xfe   : > { %v2357_v52 = vpop.f32.mrb[1].mxu0 }
  0xff   : > { %v2378_v53 = vpop.f32.mrb[0].mxu1  ;;  %v2358_v54 = vadd.f32 %v2357_v52, %v2356_v49  ;;  %v2359_v55 = vpop.f32.mrb[2].mxu0 }
 0x100   : > { %v2379_v56 = vpop.f32.mrb[1].mxu1  ;;  %v2360_v57 = vpop.f32.mrb[3].mxu0 }
 0x101   : > { %v1833_v58 = vadd.f32 %v2358_v54, %v2205_v50  ;;  %v2380_v51 = vadd.f32 %v2379_v56, %v2378_v53  ;;  %v2381_v59 = vpop.f32.mrb[2].mxu1 }
 0x102   : > { %v2382_v60 = vpop.f32.mrb[3].mxu1 }
 0x103   : > { %v1873_v61 = vadd.f32 %v2380_v51, %v1833_v58 }
 0x11d   : > { %v2400_v62 = vpop.f32.mrb[4].mxu0 }
 0x11e   : > { %v2401_v63 = vpop.f32.mrb[5].mxu0 }
 0x11f   : > { %v2422_v0 = vpop.f32.mrb[4].mxu1  ;;  %v2402_v1 = vadd.f32 %v2401_v63, %v2400_v62  ;;  %v2403_v2 = vpop.f32.mrb[6].mxu0 }
 0x120   : > { %v2423_v3 = vpop.f32.mrb[5].mxu1  ;;  %v2404_v4 = vpop.f32.mrb[7].mxu0 }
 0x121   : > { %v1913_v5 = vadd.f32 %v2402_v1, %v1873_v61  ;;  %v2424_v6 = vadd.f32 %v2423_v3, %v2422_v0  ;;  %v2425_v46 = vpop.f32.mrb[6].mxu1 }
 0x122   : > { %v2426_v7 = vpop.f32.mrb[7].mxu1 }
 0x123   : > { %v1953_v8 = vadd.f32 %v2424_v6, %v1913_v5 }
 0x13d   : > { %v2444_v9 = vpop.f32.mrb[8].mxu0 }
 0x13e   : > { %v2445_v10 = vpop.f32.mrb[9].mxu0 }
 0x13f   : > { %v2466_v11 = vpop.f32.mrb[8].mxu1  ;;  %v2446_v12 = vadd.f32 %v2445_v10, %v2444_v9  ;;  %v2447_v13 = vpop.f32.mrb[10].mxu0 }
 0x140   : > { %v2467_v14 = vpop.f32.mrb[9].mxu1  ;;  %v2448_v15 = vpop.f32.mrb[11].mxu0 }
 0x141   : > { %v1993_v16 = vadd.f32 %v2446_v12, %v1953_v8  ;;  %v2468_v17 = vadd.f32 %v2467_v14, %v2466_v11  ;;  %v2469_v18 = vpop.f32.mrb[10].mxu1 }
 0x142   : > { %v2470_v19 = vpop.f32.mrb[11].mxu1 }
 0x143   : > { %v2033_v20 = vadd.f32 %v2468_v17, %v1993_v16 }
 0x15d   : > { %v2488_v21 = vpop.f32.mrb[12].mxu0 }
 0x15e   : > { %v2489_v22 = vpop.f32.mrb[13].mxu0 }
 0x15f   : > { %v2510_v23 = vpop.f32.mrb[12].mxu1  ;;  %v2490_v24 = vadd.f32 %v2489_v22, %v2488_v21  ;;  %v2491_v25 = vpop.f32.mrb[14].mxu0 }
 0x160   : > { %v2511_v26 = vpop.f32.mrb[13].mxu1  ;;  %v2492_v27 = vpop.f32.mrb[15].mxu0 }
 0x161   : > { %v2073_v28 = vadd.f32 %v2490_v24, %v2033_v20  ;;  %v2512_v29 = vadd.f32 %v2511_v26, %v2510_v23  ;;  %v2513_v30 = vpop.f32.mrb[14].mxu1 }
 0x162   : > { %v2514_v31 = vpop.f32.mrb[15].mxu1 }
 0x163   : > { %v2113_v32 = vadd.f32 %v2512_v29, %v2073_v28 }
 0x165   : > { %vm2118_vm0 = vcmp.ge.f32.partialorder %v2113_v32, 0.0  ;;  %v2119_v33 = vmul.f32 0.2, %v2113_v32 }
 0x167   : > { %v2120_v34 = vsel %vm2118_vm0, %v2113_v32, %v2119_v33 }
 0x168   : > { %v2121_v36 = vpack.c.bf16 %v2120_v34, %v2120_v34 }
 0x16a   : > { %2122 = vst [vmem:[%s188_s8] sm:$0x3] %v2121_v36 }
 0x16b PF: > { %s13_s14 = sadd.s32 1, %s2700_s14   ;;  %s3220_s12 = smov %s2696_s13 }
 0x16c   : > { %p10_p5 = scmp.ge.s32.totalorder %s13_s14, 4   ;;  %s3221_s13 = smov %s3223_s15 }
 0x16e   :  { %12 = sbr.rel (!%p10_p5) target bundleno = 2 (0x2), region = 63 }

</bundles_post_ra>
